<compile_context>
chip_gen: v7x
topology: tpu7x:2x2x1
jax: 0.10.0
libtpu: 0.0.40
codegen_flags: <defaults>
</compile_context>

<pallas_src>
import numpy as np
import jax
import jax.numpy as jnp
from jax.experimental import pallas as pl
from jax.experimental.pallas import tpu as pltpu


COUT_PAD = 128     # lane-dense feature width (multiple of 128)
STATS_PAD = 128    # lane-dense pass-1 output width: [count | x | y | z | 0...]
KIN_PAD = 16       # padded MLP input width: [points | nor_pc | ctr_to_pt | 1 | pad]
VMEM_LIMIT = 48 * 1024 * 1024


def _round_up(x, m):
    return (x + m - 1) // m * m


# ----------------------------------------------------------------------------
# Pass 1: per-voxel [count, sum_x, sum_y, sum_z] (lane-dense, padded to 128),
# accumulated over N tiles via a one-hot scatter matmul.
# ----------------------------------------------------------------------------
def _stats_kernel(inv_ref, rhs_ref, stats_ref):
    j = pl.program_id(0)          # V tile (parallel)
    i = pl.program_id(1)          # N tile (arbitrary / reduction axis, minor)
    tv = stats_ref.shape[0]
    tn = rhs_ref.shape[0]

    # One-hot in (V, N) orientation: the scatter matmul contracts the last dim
    # of the big LHS (natural MXU feed).  Padded points carry inv = -1 and
    # padded voxels are never referenced, so they contribute nothing.
    v_ids = jax.lax.broadcasted_iota(jnp.int32, (tv, tn), 0) + j * tv
    onehot = (v_ids == inv_ref[...]).astype(jnp.float32)               # (tv, tn)

    @pl.when(i == 0)
    def _():
        stats_ref[...] = jnp.zeros_like(stats_ref)

    # counts + sum_xyz fused into one matmul: rhs columns = [1, x, y, z, 0...].
    stats_ref[...] += jnp.dot(onehot, rhs_ref[...],
                              preferred_element_type=jnp.float32)


# ----------------------------------------------------------------------------
# Per-point MLP hidden layer, computed once per point (b1 folded into W1 via a
# constant-1 input column).
# ----------------------------------------------------------------------------
def _point_mlp_kernel(x_ref, w1_ref, h_ref):
    h_ref[...] = jnp.maximum(
        jnp.dot(x_ref[...], w1_ref[...], preferred_element_type=jnp.float32),
        0.0)


# ----------------------------------------------------------------------------
# Pass 2: scatter_sum of h into voxels; finalize applies mean, W2 and b2 once
# per V tile (mean is linear in W2/b2, so hoisting them is exact).
# ----------------------------------------------------------------------------
def _scatter_kernel(inv_ref, h_ref, cnt_ref, w2_ref, b2_ref, out_ref):
    j = pl.program_id(0)          # V tile (parallel)
    i = pl.program_id(1)          # N tile (arbitrary / reduction axis, minor)
    tv = out_ref.shape[0]
    tn = h_ref.shape[0]

    v_ids = jax.lax.broadcasted_iota(jnp.int32, (tv, tn), 0) + j * tv
    onehot = (v_ids == inv_ref[...]).astype(jnp.float32)               # (tv, tn)

    @pl.when(i == 0)
    def _():
        out_ref[...] = jnp.zeros_like(out_ref)

    out_ref[...] += jnp.dot(onehot, h_ref[...],
                            preferred_element_type=jnp.float32)        # (tv, 128)

    @pl.when(i == pl.num_programs(1) - 1)
    def _():
        mean_h = out_ref[...] / cnt_ref[...]                           # exact div
        out_ref[...] = (jnp.dot(mean_h, w2_ref[...],
                                preferred_element_type=jnp.float32)
                        + b2_ref[...])


# ----------------------------------------------------------------------------
# Wrapper
# ----------------------------------------------------------------------------
def voxel_3d_generator_forward(points, grid_ind, inv_idx, num_voxels,
                               coors_range_xyz, spatial_shape,
                               W1, b1, W2, b2, *, tile_n=2048, tile_v=512):
    """Returns the per-voxel features data_dict['pt_fea'], shape (V, Cout)."""
    N, Cin = points.shape
    Cout = W2.shape[1]
    V = int(num_voxels)
    assert Cin + 6 + 1 <= KIN_PAD and Cout <= COUT_PAD
    assert tile_n % 128 == 0 and tile_v % 128 == 0
    f32 = jnp.float32

    Np = _round_up(N, tile_n)
    Vp = _round_up(V, tile_v)     # pad V to a static 128-multiple bucket

    coors_range_xyz = jnp.asarray(coors_range_xyz, f32)                # (3, 2)
    spatial = jnp.asarray(spatial_shape, f32)                          # (3,)
    intervals = (coors_range_xyz[:, 1] - coors_range_xyz[:, 0]) / spatial
    mins = coors_range_xyz[:, 0]

    xyz = points[:, :3].astype(f32)
    # matches voxelization.return_xyz: grid * intervals + lower-corner offset
    centers = grid_ind.astype(f32) * intervals + mins
    ctr_to_pt = xyz - centers

    # ---- padded kernel inputs (host/XLA layout plumbing only) --------------
    inv_row = jnp.full((1, Np), -1, jnp.int32).at[0, :N].set(
        inv_idx.astype(jnp.int32))

    # Pass-1 per-point operand, lane-dense: columns = [1, x, y, z, 0...].
    rhs = jnp.zeros((Np, STATS_PAD), f32)
    rhs = rhs.at[:N, 0].set(1.0).at[:N, 1:4].set(xyz)

    grid = (Vp // tile_v, Np // tile_n)
    cparams2d = pltpu.CompilerParams(
        dimension_semantics=("parallel", "arbitrary"),
        vmem_limit_bytes=VMEM_LIMIT)
    cparams1d = pltpu.CompilerParams(
        dimension_semantics=("parallel",),
        vmem_limit_bytes=VMEM_LIMIT)

    # ---- pass 1: per-voxel counts + coordinate sums ------------------------
    stats = pl.pallas_call(
        _stats_kernel,
        out_shape=jax.ShapeDtypeStruct((Vp, STATS_PAD), f32),
        grid=grid,
        in_specs=[pl.BlockSpec((1, tile_n), lambda j, i: (0, i)),
                  pl.BlockSpec((tile_n, STATS_PAD), lambda j, i: (i, 0))],
        out_specs=pl.BlockSpec((tile_v, STATS_PAD), lambda j, i: (j, 0)),
        compiler_params=cparams2d,
    )(inv_row, rhs)

    counts = jnp.maximum(stats[:, 0:1], 1.0)                           # (Vp, 1)
    mean_xyz = stats[:, 1:4] / counts                                  # (Vp, 3)
    nor_pc = xyz - mean_xyz[inv_idx]           # XLA gather of per-point mean

    # Per-point MLP input: [points | nor_pc | ctr_to_pt | 1(bias) | pad].
    xfeat = jnp.zeros((Np, KIN_PAD), f32)
    xfeat = xfeat.at[:N, :Cin].set(points.astype(f32))
    xfeat = xfeat.at[:N, Cin:Cin + 3].set(nor_pc)
    xfeat = xfeat.at[:N, Cin + 3:Cin + 6].set(ctr_to_pt)
    xfeat = xfeat.at[:, Cin + 6].set(1.0)      # bias column (b1 folded into W1)

    w1p = jnp.zeros((KIN_PAD, COUT_PAD), f32)
    w1p = w1p.at[:Cin + 6, :Cout].set(W1.astype(f32))
    w1p = w1p.at[Cin + 6, :Cout].set(b1.astype(f32))
    w2p = jnp.zeros((COUT_PAD, COUT_PAD), f32).at[:Cout, :Cout].set(
        W2.astype(f32))
    b2p = jnp.zeros((1, COUT_PAD), f32).at[0, :Cout].set(b2.astype(f32))

    # ---- per-point hidden layer (computed exactly once per point) ----------
    h = pl.pallas_call(
        _point_mlp_kernel,
        out_shape=jax.ShapeDtypeStruct((Np, COUT_PAD), f32),
        grid=(Np // tile_n,),
        in_specs=[pl.BlockSpec((tile_n, KIN_PAD), lambda i: (i, 0)),
                  pl.BlockSpec((KIN_PAD, COUT_PAD), lambda i: (0, 0))],
        out_specs=pl.BlockSpec((tile_n, COUT_PAD), lambda i: (i, 0)),
        compiler_params=cparams1d,
    )(xfeat, w1p)

    # ---- pass 2: feature scatter_mean + hoisted W2/b2 finalize --------------
    out_p = pl.pallas_call(
        _scatter_kernel,
        out_shape=jax.ShapeDtypeStruct((Vp, COUT_PAD), f32),
        grid=grid,
        in_specs=[pl.BlockSpec((1, tile_n), lambda j, i: (0, i)),
                  pl.BlockSpec((tile_n, COUT_PAD), lambda j, i: (i, 0)),
                  pl.BlockSpec((tile_v, 1), lambda j, i: (j, 0)),
                  pl.BlockSpec((COUT_PAD, COUT_PAD), lambda j, i: (0, 0)),
                  pl.BlockSpec((1, COUT_PAD), lambda j, i: (0, 0))],
        out_specs=pl.BlockSpec((tile_v, COUT_PAD), lambda j, i: (j, 0)),
        compiler_params=cparams2d,
    )(inv_row, h, counts, w2p, b2p)

    return out_p[:V, :Cout]


# ----------------------------------------------------------------------------
# Pure-JAX reference (mirrors the PyTorch forward, no Pallas)
# ----------------------------------------------------------------------------
def reference_forward(points, grid_ind, inv_idx, num_voxels,
                      coors_range_xyz, spatial_shape, W1, b1, W2, b2):
    N = points.shape[0]
    V = int(num_voxels)
    coors_range_xyz = jnp.asarray(coors_range_xyz, jnp.float32)
    spatial = jnp.asarray(spatial_shape, jnp.float32)
    intervals = (coors_range_xyz[:, 1] - coors_range_xyz[:, 0]) / spatial
    mins = coors_range_xyz[:, 0]

    xyz = points[:, :3]
    counts = jax.ops.segment_sum(jnp.ones((N,), jnp.float32), inv_idx,
                                 num_segments=V)
    counts = jnp.maximum(counts, 1.0)[:, None]
    mean_xyz = jax.ops.segment_sum(xyz, inv_idx, num_segments=V) / counts
    nor_pc = xyz - mean_xyz[inv_idx]
    centers = grid_ind.astype(jnp.float32) * intervals + mins
    ctr = xyz - centers
    feat = jnp.concatenate([points, nor_pc, ctr], axis=1)
    h = jnp.maximum(feat @ W1 + b1, 0.0)
    f = h @ W2 + b2
    return jax.ops.segment_sum(f, inv_idx, num_segments=V) / counts


if __name__ == "__main__":
    # ----- deterministic synthetic problem (small but exercises the grid) ----
    N, Cin, Cout = 2048, 4, 32
    spatial_shape = [16, 16, 8]
    coors_range_xyz = [[0.0, 25.6], [0.0, 25.6], [-4.0, 4.0]]

    key = jax.random.PRNGKey(0)
    kxyz, kint, kw1, kb1, kw2, kb2 = jax.random.split(key, 6)

    mins_np = np.array([r[0] for r in coors_range_xyz], np.float32)
    maxs_np = np.array([r[1] for r in coors_range_xyz], np.float32)
    spatial_np = np.array(spatial_shape, np.int64)

    u = jax.random.uniform(kxyz, (N, 3), jnp.float32)
    xyz = jnp.asarray(mins_np) + u * jnp.asarray((maxs_np - mins_np) * 0.999)
    intensity = jax.random.uniform(kint, (N, 1), jnp.float32)
    points = jnp.concatenate([xyz, intensity], axis=1)               # (N, Cin)

    # Host-side voxelization glue (mirrors voxelization.sparse_quantize +
    # torch.unique at scale 1).
    # TODO(synk): torch.unique / scatter_max label voting stay host-side.
    xyz_np = np.asarray(xyz)
    idx_np = np.floor(spatial_np * (xyz_np - mins_np)
                      / (maxs_np - mins_np)).astype(np.int64)
    idx_np = np.clip(idx_np, 0, spatial_np - 1)
    flat = (idx_np[:, 0] * spatial_np[1] * spatial_np[2]
            + idx_np[:, 1] * spatial_np[2] + idx_np[:, 2])
    _, inv_np = np.unique(flat, return_inverse=True)
    V = int(inv_np.max()) + 1
    grid_ind = jnp.asarray(idx_np.astype(np.int32))
    inv_idx = jnp.asarray(inv_np.astype(np.int32))

    # deterministic PPmodel parameters: Linear(Cin+6, Cout) -> ReLU -> Linear
    W1 = 0.05 * jax.random.normal(kw1, (Cin + 6, Cout), jnp.float32)
    b1 = 0.05 * jax.random.normal(kb1, (Cout,), jnp.float32)
    W2 = 0.05 * jax.random.normal(kw2, (Cout, Cout), jnp.float32)
    b2 = 0.05 * jax.random.normal(kb2, (Cout,), jnp.float32)

    out = voxel_3d_generator_forward(points, grid_ind, inv_idx, V,
                                     coors_range_xyz, spatial_shape,
                                     W1, b1, W2, b2,
                                     tile_n=2048, tile_v=512)
    out = jax.block_until_ready(out)

    ref = jax.block_until_ready(
        reference_forward(points, grid_ind, inv_idx, V,
                          coors_range_xyz, spatial_shape, W1, b1, W2, b2))

    assert out.shape == (V, Cout), (out.shape, (V, Cout))
    np.testing.assert_allclose(np.asarray(out), np.asarray(ref),
                               rtol=5e-2, atol=5e-2)
    print("KERNEL_OK")
</pallas_src>

<mosaic_0001>
module attributes {stable_mosaic.version = 11 : i64} {
  func.func @_stats_kernel(%arg0: i32, %arg1: i32, %arg2: memref<1x2048xi32, #tpu.memory_space<vmem>>, %arg3: memref<2048x128xf32, #tpu.memory_space<vmem>>, %arg4: memref<512x128xf32, #tpu.memory_space<vmem>>) attributes {dimension_semantics = [#tpu.dimension_semantics<parallel>, #tpu.dimension_semantics<arbitrary>], iteration_bounds = array<i64: 3, 1>, scalar_prefetch = 0 : i64, scratch_operands = 0 : i64, tpu.core_type = #tpu.core_type<tc>, window_params = [{transform_indices = @transform_0, window_bounds = array<i64: 1, 2048>}, {transform_indices = @transform_1, window_bounds = array<i64: 2048, 128>}, {transform_indices = @transform_2, window_bounds = array<i64: 512, 128>}]} {
    %0 = tpu.iota {dimensions = array<i32: 0>} : vector<512x2048xi32>
    %c512_i32 = arith.constant 512 : i32
    %1 = arith.muli %arg0, %c512_i32 : i32
    %2 = vector.broadcast %1 : i32 to vector<512x2048xi32>
    %3 = arith.addi %0, %2 : vector<512x2048xi32>
    %c0 = arith.constant 0 : index
    %c0_0 = arith.constant 0 : index
    %4 = vector.load %arg2[%c0, %c0_0] : memref<1x2048xi32, #tpu.memory_space<vmem>>, vector<1x2048xi32>
    %5 = vector.broadcast %4 : vector<1x2048xi32> to vector<512x2048xi32>
    %6 = arith.cmpi eq, %3, %5 : vector<512x2048xi32>
    %7 = arith.extui %6 : vector<512x2048xi1> to vector<512x2048xi32>
    %8 = arith.sitofp %7 : vector<512x2048xi32> to vector<512x2048xf32>
    %c0_i32 = arith.constant 0 : i32
    %9 = arith.cmpi eq, %arg1, %c0_i32 : i32
    %10 = arith.extui %9 : i1 to i32
    %c0_i32_1 = arith.constant 0 : i32
    %11 = arith.cmpi ne, %10, %c0_i32_1 : i32
    scf.if %11 {
      %cst_8 = arith.constant 0.000000e+00 : f32
      %17 = vector.broadcast %cst_8 : f32 to vector<512x128xf32>
      %c0_9 = arith.constant 0 : index
      %c0_10 = arith.constant 0 : index
      %18 = vector.load %arg4[%c0_9, %c0_10] : memref<512x128xf32, #tpu.memory_space<vmem>>, vector<512x128xf32>
      tpu.vector_store %arg4[%c0_9, %c0_10], %17 {strides = array<i32>} : memref<512x128xf32, #tpu.memory_space<vmem>>, vector<512x128xf32>,
    } else {
    }
    %c0_2 = arith.constant 0 : index
    %c0_3 = arith.constant 0 : index
    %12 = vector.load %arg4[%c0_2, %c0_3] : memref<512x128xf32, #tpu.memory_space<vmem>>, vector<512x128xf32>
    %c0_4 = arith.constant 0 : index
    %c0_5 = arith.constant 0 : index
    %13 = vector.load %arg3[%c0_4, %c0_5] : memref<2048x128xf32, #tpu.memory_space<vmem>>, vector<2048x128xf32>
    %cst = arith.constant dense<0.000000e+00> : vector<512x128xf32>
    %14 = tpu.matmul %8, %13, %cst {dimension_numbers = #tpu.dot_dimension_numbers<[1], [0], [0], [1], [0, 0, 1, 1], [], []>} : vector<512x2048xf32>, vector<2048x128xf32>, vector<512x128xf32> -> vector<512x128xf32>
    %15 = arith.addf %12, %14 : vector<512x128xf32>
    %c0_6 = arith.constant 0 : index
    %c0_7 = arith.constant 0 : index
    %16 = vector.load %arg4[%c0_6, %c0_7] : memref<512x128xf32, #tpu.memory_space<vmem>>, vector<512x128xf32>
    tpu.vector_store %arg4[%c0_6, %c0_7], %15 {strides = array<i32>} : memref<512x128xf32, #tpu.memory_space<vmem>>, vector<512x128xf32>,
    return
  }
  func.func @transform_0(%arg0: i32, %arg1: i32) -> (i32, i32) {
    %c0_i32 = arith.constant 0 : i32
    %c0_i32_0 = arith.constant 0 : i32
    return %c0_i32, %arg1 : i32, i32
  }
  func.func @transform_1(%arg0: i32, %arg1: i32) -> (i32, i32) {
    %c0_i32 = arith.constant 0 : i32
    %c0_i32_0 = arith.constant 0 : i32
    return %arg1, %c0_i32 : i32, i32
  }
  func.func @transform_2(%arg0: i32, %arg1: i32) -> (i32, i32) {
    %c0_i32 = arith.constant 0 : i32
    %c0_i32_0 = arith.constant 0 : i32
    return %arg0, %c0_i32 : i32, i32
  }
}

</mosaic_0001>

<bundles_post_ra>
// kernel: tpu_custom_call.1
= control target key start
LH: loop header
LB: loop body
LE: loop exit
PB: predicated region body
PF: predicated region fallthrough
CT: control target
= control target key end

     0   :  { %7 = vsyncpa [#allocation3], 0  ;;  %s14414_s0 = inlined_call_operand.hbm [shape: s32[1,2048], index: 0, kind: input, shape index: {}]   ;;  %s14415_s1 = inlined_call_operand.hbm [shape: f32[2048,128], index: 1, kind: input, shape index: {}]   ;;  %s14416_s2 = inlined_call_operand.hbm [shape: f32[1536,128], index: 2, kind: output, shape index: {}]  }
   0x1   :  { %8 = vsyncpa [#allocation6], 0 }
   0x2   :  { %9 = vsyncpa [#allocation4], 0 }
   0x3   :  { %11 = vsyncpa [#allocation4 + $0x1], 0  ;;  %s9845_s9 = smov 0   ;;  %s9847_s10 = smov 0  }
   0x4   :  { %s9849_s11 = smov 0   ;;  %s9851_s12 = smov 0  }
   0x5   :  { %s9853_s13 = smov 0   ;;  %s9855_s14 = smov 0  }
   0x6 LB: > { %s7144_s15 = sadd.s32 4294967295, %s9819_s14   ;;  %s7145_s16 = sadd.s32 4294967294, %s9819_s14   ;;  %s9819_s14 = sphi %s9855_s14, %s17_s14   ;;  %s9815_s13 = sphi %s9853_s13, %s14954_s13   ;;  %s9811_s12 = sphi %s9851_s12, %s14953_s12   ;;  %s9807_s11 = sphi %s9849_s11, %s14952_s11   ;;  %s9803_s10 = sphi %s9847_s10, %s14951_s10   ;;  %s9799_s9 = sphi %s9845_s9, %s14950_s9  }
   0x7   : > { %s29_s17 = sadd.s32 1, %s9815_s13  ;;  %s88_s18 = sadd.s32 1, %s9807_s11 }
   0x8   : > { %p31_p0 = scmp.ge.s32.totalorder %s29_s17, 3  ;;  %p98_p1 = scmp.ne.s32.totalorder %s9807_s11, %s9803_s10 }
   0x9   : > { %p99_p2 = scmp.eq.s32.totalorder %s7144_s15, 2  ;;  %p104_p3 = scmp.ne.s32.totalorder %s9803_s10, %s9799_s9 }
   0xa   : > { %s14956_s17 = smov (%p31_p0, %s29_s17), 0  ;;  %p105_p5 = scmp.eq.s32.totalorder %s7145_s16, 2 }
   0xb   : > { %p9885_p4 = por %p99_p2, %p98_p1  ;;  %s85_s20 = ssub.s32 %s9815_s13, %s14956_s17 }
   0xc   : > { %p7146_p6 = scmp.ge.s32.totalorder %s9819_s14, 1  ;;  %p86_p7 = scmp.eq.s32.totalorder %s85_s20, 0 }
   0xd   : > { %s14569_s19 = scalar_select %p9885_p4, 1, 0 }
   0xe   : > { %p9892_p8 = por %p105_p5, %p104_p3  ;;  %p112_p9 = scmp.lt.s32.totalorder %s9819_s14, 4 }
   0xf   : > { %s9898_s22 = scalar_select %p86_p7, %s9807_s11, %s88_s18  }
  0x10   : > { %s14570_s21 = scalar_select %p9892_p8, 1, 0 }
  0x11   : > { %p9900_p10 = pnand %p7146_p6, %p112_p9  ;;  %p9904_p11 = scmp.eq.s32.totalorder %s7144_s15, 0 }
  0x12   : > { %s9821_s25 = smov [#allocation2]   ;;  %s9822_s27 = smov [#allocation5]  }
  0x13   : > { %s14571_s23 = scalar_select %p9900_p10, 1, 0 }
  0x14   : > { %s14572_s24 = scalar_select %p9904_p11, 1, 0 }
  0x15   : > { %p9602_p12 = pneg %p9900_p10  ;;  %s128_s26 = sshll.u32 %s9821_s25, 4  ;;  %s129_s26 = int_to_ptr.vmem [resolvable:$true] %s128_s26 }
  0x16   : > { %s141_s28 = sshll.u32 %s9822_s27, 4  ;;  %s9677_s4 = scalar_lea.hbm %s14414_s0, 256  ;;  %s9916_s28 = int_to_ptr.vmem [resolvable:$true] %s141_s28 }
  0x17   : > { %p9912_p13 = pnand %p9904_p11, %p9602_p12  ;;  %p9678_p0 = scmp.ne.s32.totalorder %s14414_s0, %s9677_s4 }
  0x18   : > { %p9684_p5 = scmp.lt.u32.totalorder %s9677_s4, %s14414_s0 }
  0x19   : > { %p9679_p1 = pneg %p9912_p13 }
  0x1b   : > { %p9680_p2 = pnand %p9679_p1, %p9678_p0 }
  0x1d   : > { %p9681_p3 = pneg %p9680_p2 }
  0x1f   : > { %p9686_p6 = pnand %p9684_p5, %p9681_p3 }
  0x21   : > { %9689 = shalt.err (!%p9686_p6)
}
  0x22   : > { %s9690_s15 = scalar_lea.vmem %s129_s26, 256  ;;  %p9698_p8 = scmp.lt.s32.totalorder %s129_s26, %s129_s26 }
  0x23   : > { %p9691_p7 = scmp.ne.s32.totalorder %s129_s26, %s9690_s15  ;;  %p9699_p4 = scmp.lt.s32.totalorder %s9690_s15, %s9690_s15 }
  0x25   : > { %p9693_p9 = pnand %p9691_p7, %p9679_p1  ;;  %p9700_p11 = por %p9699_p4, %p9698_p8 }
  0x27   : > { %p9694_p12 = pneg %p9693_p9 }
  0x29   : > { %p9701_p10 = pnand %p9700_p11, %p9694_p12 }
  0x2b   : > { %9704 = shalt.err (!%p9701_p10)
}
  0x2c   : > { %9605 = dma.hbm_to_vmem [thread:$0]  (!%p9912_p13), %s14414_s0, 256, %s129_s26, [#allocation3]  }
  0x2d   : > { %s9705_s27 = scalar_lea.hbm %s14415_s1, 32768 }
  0x2e   : > { %p9706_p0 = scmp.ne.s32.totalorder %s14415_s1, %s9705_s27  ;;  %p9712_p10 = scmp.lt.u32.totalorder %s9705_s27, %s14415_s1 }
  0x30   : > { %p9708_p4 = pnand %p9706_p0, %p9679_p1 }
  0x32   : > { %p9709_p8 = pneg %p9708_p4 }
  0x34   : > { %p9714_p11 = pnand %p9712_p10, %p9709_p8 }
  0x36   : > { %9717 = shalt.err (!%p9714_p11)
}
  0x37   : > { %s9718_s26 = scalar_lea.vmem %s9916_s28, 32768  ;;  %p9726_p6 = scmp.lt.s32.totalorder %s9916_s28, %s9916_s28 }
  0x38   : > { %p9719_p2 = scmp.ne.s32.totalorder %s9916_s28, %s9718_s26  ;;  %p9727_p7 = scmp.lt.s32.totalorder %s9718_s26, %s9718_s26 }
  0x3a   : > { %p9721_p3 = pnand %p9719_p2, %p9679_p1  ;;  %p9728_p9 = por %p9727_p7, %p9726_p6 }
  0x3c   : > { %p9722_p5 = pneg %p9721_p3 }
  0x3e   : > { %p9729_p12 = pnand %p9728_p9, %p9722_p5 }
  0x40   : > { %9732 = shalt.err (!%p9729_p12)
}
  0x41   : > { %s9823_s6 = smov 128   ;;  %s9824_s7 = smov 8  }
  0x42   : > { %9608 = dma.hbm_to_vmem [thread:$0]  (!%p9912_p13), %s14415_s1, 32768, %s9916_s28, [#allocation6], %s9823_s6, %s9823_s6, %s9824_s7  }
  0x43   : > { %p14574_p0 = scmp.ne.s32.totalorder %s14571_s23, 0 }
  0x45   : > { %157 = sbr.rel (%p14574_p0) target bundleno = 1398 (0x576), region = 28 }
  0x4c   : > { %p14575_p1 = scmp.ne.s32.totalorder %s14572_s24, 0 }
  0x4e   : > { %9786 = dma.done.wait (%p14575_p1), [#allocation3], 256  }
  0x4f   : > { %9788 = vsyncadd (%p14575_p1), [#allocation3], 4294967040 }
  0x50   : > { %9790 = dma.done.wait (%p14575_p1), [#allocation6], 32768  }
  0x51   : > { %9792 = vsyncadd (%p14575_p1), [#allocation6], 4294934528  ;;  %v14425_v0 = vmov 0.0|0.0   ;;  %v3582_v1 = vld [vmem:[#allocation5] sm:$0xff]  ;;  %v3583_v2 = vld [vmem:[#allocation5 + $0x8] sm:$0xff]  ;;  %v181_v23 = vlaneseq  ;;  %s7153_s23 = sshll.u32 %s9811_s12, 9 }
  0x52   : > { %9208 = vmatprep.subr.bf16.mxu0 %v14425_v0  ;;  %9256 = vmatprep.subr.bf16.mxu1 %v14425_v0  ;;  %v3614_v3 = vld [vmem:[#allocation5 + $0x100] sm:$0xff]  ;;  %v9209_v4 = vpack.c.bf16 %v3583_v2, %v3582_v1  ;;  %v3615_v5 = vld [vmem:[#allocation5 + $0x108] sm:$0xff]  ;;  %v3584_v6 = vld [vmem:[#allocation5 + $0x10] sm:$0xff]  ;;  %v9988_v37 = vstv %s7153_s23  ;;  %v14469_v56 = vmov 1.0   ;;  %s175_s24 = sand.u32 1, %s9803_s10   ;;  %s9207_s16 = sshll.u32 %s9811_s12, 13 }
  0x53   : > { %v3585_v7 = vld [vmem:[#allocation5 + $0x18] sm:$0xff]  ;;  %v9257_v8 = vpack.c.bf16 %v3615_v5, %v3614_v3  ;;  %v3616_v9 = vld [vmem:[#allocation5 + $0x110] sm:$0xff]  ;;  %v3586_v13 = vld [vmem:[#allocation5 + $0x20] sm:$0xff]  ;;  %v9983_v30 = vshrl.u32 %v181_v23, 7  ;;  %s7152_s28 = sshll.u32 %s175_s24, 9  ;;  %s14361_s27 = scalar_lea.hbm %s14416_s2, %s9207_s16 }
  0x54   : > { %v3617_v10 = vld [vmem:[#allocation5 + $0x118] sm:$0xff]  ;;  %9210 = vmatpush1.bf16.msra.mxu0 %v9209_v4  ;;  %v9212_v11 = vpack.c.bf16 %v3585_v7, %v3584_v6  ;;  %v3587_v14 = vld [vmem:[#allocation5 + $0x28] sm:$0xff]  ;;  %v3618_v15 = vld [vmem:[#allocation5 + $0x120] sm:$0xff]  ;;  %s14128_s29 = scalar_lea.vmem [#allocation7], %s7152_s28  ;;  %s14368_s30 = scalar_lea.sflag [#allocation4], %s175_s24 }
  0x55   : > { %9258 = vmatpush1.bf16.msra.mxu1 %v9257_v8  ;;  %9211 = vmatprep.subr.bf16.mxu0 %v14425_v0  ;;  %v9260_v12 = vpack.c.bf16 %v3617_v10, %v3616_v9  ;;  %v3619_v16 = vld [vmem:[#allocation5 + $0x128] sm:$0xff]  ;;  %v9215_v17 = vpack.c.bf16 %v3587_v14, %v3586_v13  ;;  %v3588_v19 = vld [vmem:[#allocation5 + $0x30] sm:$0xff]  ;;  %v3589_v20 = vld [vmem:[#allocation5 + $0x38] sm:$0xff]  ;;  %14576 = vst [vmem:[#allocation11_spill] sm:$0xff] %v9983_v30  ;;  %v14424_v38 = vsub.s32 1, %v9983_v30  ;;  %v14423_v40 = vsub.s32 3, %v9983_v30 }
  0x56   : > { %9259 = vmatprep.subr.bf16.mxu1 %v14425_v0  ;;  %v9263_v18 = vpack.c.bf16 %v3619_v16, %v3618_v15  ;;  %v3620_v21 = vld [vmem:[#allocation5 + $0x130] sm:$0xff]  ;;  %v3621_v22 = vld [vmem:[#allocation5 + $0x138] sm:$0xff]  ;;  %v9218_v24 = vpack.c.bf16 %v3589_v20, %v3588_v19  ;;  %v3590_v26 = vld [vmem:[#allocation5 + $0x40] sm:$0xff]  ;;  %v9995_v44 = vadd.s32 %v9988_v37, %v9983_v30  ;;  %s7060_s18 = sshll.u32 %s14128_s29, 4  ;;  %p14948_p4 = scmp.ne.s32.totalorder %s14569_s19, 0  ;;  %s14363_s18 = int_to_ptr.vmem [resolvable:$true] %s7060_s18 }
  0x57   : > { %v9266_v25 = vpack.c.bf16 %v3621_v22, %v3620_v21  ;;  %v3591_v27 = vld [vmem:[#allocation5 + $0x48] sm:$0xff]  ;;  %v3622_v28 = vld [vmem:[#allocation5 + $0x140] sm:$0xff]  ;;  %v3592_v33 = vld [vmem:[#allocation5 + $0x50] sm:$0xff]  ;;  %s9733_s3 = scalar_lea.vmem %s14363_s18, 8192  ;;  %s9827_s12 = smov [#allocation7]  }
  0x58   : > { %9213 = vmatpush1.bf16.msra.mxu0 %v9212_v11  ;;  %v3623_v29 = vld [vmem:[#allocation5 + $0x148] sm:$0xff]  ;;  %v9221_v31 = vpack.c.bf16 %v3591_v27, %v3590_v26  ;;  %v3593_v34 = vld [vmem:[#allocation5 + $0x58] sm:$0xff]  ;;  %v3624_v35 = vld [vmem:[#allocation5 + $0x150] sm:$0xff]  ;;  %14577 = vst [vmem:[#allocation12_spill] sm:$0xff] %v9995_v44  ;;  %p9734_p13 = scmp.ne.s32.totalorder %s14363_s18, %s9733_s3  ;;  %s9737_s4 = sshll.u32 %s9827_s12, 4  ;;  %s9738_s4 = int_to_ptr.vmem [resolvable:$false] %s9737_s4 }
  0x59   : > { %9261 = vmatpush1.bf16.msra.mxu1 %v9260_v12  ;;  %9214 = vmatprep.subr.bf16.mxu0 %v14425_v0  ;;  %v9269_v32 = vpack.c.bf16 %v3623_v29, %v3622_v28  ;;  %v3625_v36 = vld [vmem:[#allocation5 + $0x158] sm:$0xff]  ;;  %v9224_v39 = vpack.c.bf16 %v3593_v34, %v3592_v33  ;;  %v3594_v42 = vld [vmem:[#allocation5 + $0x60] sm:$0xff]  ;;  %v3595_v43 = vld [vmem:[#allocation5 + $0x68] sm:$0xff]  ;;  %s9739_s5 = scalar_lea.vmem %s9738_s4, 16384  ;;  %p9740_p11 = scmp.lt.s32.totalorder %s14363_s18, %s9738_s4 }
  0x5a   : > { %9262 = vmatprep.subr.bf16.mxu1 %v14425_v0  ;;  %v9272_v41 = vpack.c.bf16 %v3625_v36, %v3624_v35  ;;  %v3626_v45 = vld [vmem:[#allocation5 + $0x160] sm:$0xff]  ;;  %v3627_v46 = vld [vmem:[#allocation5 + $0x168] sm:$0xff]  ;;  %v9998_v47 = vld [vmem:[#allocation2] sm:$0xff]  ;;  %v9227_v49 = vpack.c.bf16 %v3595_v43, %v3594_v42  ;;  %p9735_p8 = pnand %p9734_p13, %p14948_p4  ;;  %p9741_p2 = scmp.lt.s32.totalorder %s9739_s5, %s9733_s3 }
  0x5b   : > { %v10003_v48 = vrot.slane %v9998_v47, %v14424_v38  ;;  %v10008_v50 = vrot.slane %v9998_v47, %v14423_v40  ;;  %v9275_v51 = vpack.c.bf16 %v3627_v46, %v3626_v45  ;;  %v3596_v52 = vld [vmem:[#allocation5 + $0x70] sm:$0xff]  ;;  %v3597_v53 = vld [vmem:[#allocation5 + $0x78] sm:$0xff]  ;;  %v3598_v59 = vld [vmem:[#allocation5 + $0x80] sm:$0xff]  ;;  %v14421_v46 = vsub.s32 2, %v9983_v30 }
  0x5c   : > { %9216 = vmatpush1.bf16.msra.mxu0 %v9215_v17  ;;  %v3628_v54 = vld [vmem:[#allocation5 + $0x170] sm:$0xff]  ;;  %v3629_v55 = vld [vmem:[#allocation5 + $0x178] sm:$0xff]  ;;  %v9230_v57 = vpack.c.bf16 %v3597_v53, %v3596_v52  ;;  %v3599_v60 = vld [vmem:[#allocation5 + $0x88] sm:$0xff]  ;;  %v183_v52 = vadd.s32 8, %v9983_v30  ;;  %v235_v40 = vadd.s32 424, %v9983_v30  ;;  %v236_v38 = vadd.s32 432, %v9983_v30  ;;  %p9736_p10 = pneg %p9735_p8  ;;  %p9742_p3 = por %p9741_p2, %p9740_p11 }
  0x5d   : > { %9264 = vmatpush1.bf16.msra.mxu1 %v9263_v18  ;;  %9217 = vmatprep.subr.bf16.mxu0 %v14425_v0  ;;  %vm379_vm0 = vcmp.eq.s32.totalorder %v9995_v44, %v10003_v48  ;;  %vm381_vm1 = vcmp.eq.s32.totalorder %v9995_v44, %v10008_v50  ;;  %v9278_v58 = vpack.c.bf16 %v3629_v55, %v3628_v54  ;;  %v3630_v61 = vld [vmem:[#allocation5 + $0x180] sm:$0xff]  ;;  %v3631_v62 = vld [vmem:[#allocation5 + $0x188] sm:$0xff]  ;;  %v3600_v2 = vld [vmem:[#allocation5 + $0x90] sm:$0xff] }
  0x5e   : > { %9265 = vmatprep.subr.bf16.mxu1 %v14425_v0  ;;  %8178 = vmatprep.mubr.msk.f32.mxu0 %vm379_vm0, %v14469_v56  ;;  %v9233_v63 = vpack.c.bf16 %v3599_v60, %v3598_v59  ;;  %v9281_v1 = vpack.c.bf16 %v3631_v62, %v3630_v61  ;;  %v3601_v3 = vld [vmem:[#allocation5 + $0x98] sm:$0xff]  ;;  %v3632_v4 = vld [vmem:[#allocation5 + $0x190] sm:$0xff]  ;;  %v3602_v8 = vld [vmem:[#allocation5 + $0xa0] sm:$0xff]  ;;  %v184_v60 = vadd.s32 16, %v9983_v30  ;;  %v10051_v61 = vadd.s32 %v9988_v37, %v183_v52  ;;  %p9743_p5 = pnand %p9742_p3, %p9736_p10 }
  0x5f   : > { %8306 = vmatprep.mubr.msk.f32.mxu1 %vm381_vm1, %v14469_v56  ;;  %v3633_v5 = vld [vmem:[#allocation5 + $0x198] sm:$0xff]  ;;  %v9236_v6 = vpack.c.bf16 %v3601_v3, %v3600_v2  ;;  %v3603_v9 = vld [vmem:[#allocation5 + $0xa8] sm:$0xff]  ;;  %v3634_v10 = vld [vmem:[#allocation5 + $0x1a0] sm:$0xff]  ;;  %v185_v2 = vadd.s32 24, %v9983_v30 }
  0x60   : > { %9219 = vmatpush1.bf16.msra.mxu0 %v9218_v24  ;;  %v9284_v7 = vpack.c.bf16 %v3633_v5, %v3632_v4  ;;  %v3635_v11 = vld [vmem:[#allocation5 + $0x1a8] sm:$0xff]  ;;  %v9239_v12 = vpack.c.bf16 %v3603_v9, %v3602_v8  ;;  %v3604_v14 = vld [vmem:[#allocation5 + $0xb0] sm:$0xff]  ;;  %v3605_v15 = vld [vmem:[#allocation5 + $0xb8] sm:$0xff]  ;;  %14578 = vst [vmem:[#allocation13_spill] sm:$0xff] %v10051_v61  ;;  %v10060_v3 = vadd.s32 %v9988_v37, %v184_v60  ;;  %v186_v9 = vadd.s32 32, %v9983_v30 }
  0x61   : > { %9267 = vmatpush1.bf16.msra.mxu1 %v9266_v25  ;;  %9220 = vmatprep.subr.bf16.mxu0 %v14425_v0  ;;  %v9287_v13 = vpack.c.bf16 %v3635_v11, %v3634_v10  ;;  %v3636_v16 = vld [vmem:[#allocation5 + $0x1b0] sm:$0xff]  ;;  %v3637_v17 = vld [vmem:[#allocation5 + $0x1b8] sm:$0xff]  ;;  %v9242_v18 = vpack.c.bf16 %v3605_v15, %v3604_v14  ;;  %v3606_v20 = vld [vmem:[#allocation5 + $0xc0] sm:$0xff]  ;;  %vm395_vm4 = vcmp.eq.s32.totalorder %v10051_v61, %v10003_v48 }
  0x62   : > { %9268 = vmatprep.subr.bf16.mxu1 %v14425_v0  ;;  %v9290_v19 = vpack.c.bf16 %v3637_v17, %v3636_v16  ;;  %v3607_v21 = vld [vmem:[#allocation5 + $0xc8] sm:$0xff]  ;;  %v3638_v22 = vld [vmem:[#allocation5 + $0x1c0] sm:$0xff]  ;;  %v3608_v26 = vld [vmem:[#allocation5 + $0xd0] sm:$0xff]  ;;  %vm397_vm5 = vcmp.eq.s32.totalorder %v10051_v61, %v10008_v50  ;;  %v10072_v8 = vadd.s32 %v9988_v37, %v185_v2  ;;  %vm411_vm8 = vcmp.eq.s32.totalorder %v10060_v3, %v10003_v48 }
  0x63   : > { %v3639_v23 = vld [vmem:[#allocation5 + $0x1c8] sm:$0xff]  ;;  %v9245_v24 = vpack.c.bf16 %v3607_v21, %v3606_v20  ;;  %v3609_v27 = vld [vmem:[#allocation5 + $0xd8] sm:$0xff]  ;;  %v3640_v28 = vld [vmem:[#allocation5 + $0x1d0] sm:$0xff]  ;;  %vm413_vm9 = vcmp.eq.s32.totalorder %v10060_v3, %v10008_v50  ;;  %v10091_v16 = vadd.s32 %v9988_v37, %v186_v9  ;;  %v187_v17 = vadd.s32 40, %v9983_v30 }
  0x64   : > { %9222 = vmatpush1.bf16.msra.mxu0 %v9221_v31  ;;  %v9293_v25 = vpack.c.bf16 %v3639_v23, %v3638_v22  ;;  %v3641_v29 = vld [vmem:[#allocation5 + $0x1d8] sm:$0xff]  ;;  %v9248_v31 = vpack.c.bf16 %v3609_v27, %v3608_v26  ;;  %v3610_v33 = vld [vmem:[#allocation5 + $0xe0] sm:$0xff]  ;;  %v3611_v34 = vld [vmem:[#allocation5 + $0xe8] sm:$0xff]  ;;  %vm427_vm12 = vcmp.eq.s32.totalorder %v10072_v8, %v10003_v48  ;;  %vm429_vm13 = vcmp.eq.s32.totalorder %v10072_v8, %v10008_v50 }
  0x65   : > { %9270 = vmatpush1.bf16.msra.mxu1 %v9269_v32  ;;  %9223 = vmatprep.subr.bf16.mxu0 %v14425_v0  ;;  %v9296_v32 = vpack.c.bf16 %v3641_v29, %v3640_v28  ;;  %v3642_v35 = vld [vmem:[#allocation5 + $0x1e0] sm:$0xff]  ;;  %v3643_v36 = vld [vmem:[#allocation5 + $0x1e8] sm:$0xff]  ;;  %v3612_v43 = vld [vmem:[#allocation5 + $0xf0] sm:$0xff]  ;;  %vm443_vm0 = vcmp.eq.s32.totalorder %v10091_v16, %v10003_v48  ;;  %vm445_vm1 = vcmp.eq.s32.totalorder %v10091_v16, %v10008_v50  ;;  %v192_v9 = vadd.s32 80, %v9983_v30 }
  0x66   : > { %9271 = vmatprep.subr.bf16.mxu1 %v14425_v0  ;;  %v9299_v42 = vpack.c.bf16 %v3643_v36, %v3642_v35  ;;  %v3613_v45 = vld [vmem:[#allocation5 + $0xf8] sm:$0xff]  ;;  %v3647_v59 = vld [vmem:[#allocation5 + $0x208] sm:$0xff]  ;;  %v3678_v62 = vld [vmem:[#allocation5 + $0x300] sm:$0xff] }
  0x67   : > { %v9254_v53 = vpack.c.bf16 %v3613_v45, %v3612_v43  ;;  %v3648_v4 = vld [vmem:[#allocation5 + $0x210] sm:$0xff]  ;;  %v3649_v5 = vld [vmem:[#allocation5 + $0x218] sm:$0xff]  ;;  %v3682_v14 = vld [vmem:[#allocation5 + $0x320] sm:$0xff] }
  0x68   : > { %9225 = vmatpush1.bf16.msra.mxu0 %v9224_v39  ;;  %v9251_v39 = vpack.c.bf16 %v3611_v34, %v3610_v33  ;;  %v9308_v10 = vpack.c.bf16 %v3649_v5, %v3648_v4  ;;  %v3683_v15 = vld [vmem:[#allocation5 + $0x328] sm:$0xff]  ;;  %v3652_v20 = vld [vmem:[#allocation5 + $0x230] sm:$0xff]  ;;  %v3653_v21 = vld [vmem:[#allocation5 + $0x238] sm:$0xff]  ;;  %v189_v34 = vadd.s32 56, %v9983_v30 }
  0x69   : > { %9273 = vmatpush1.bf16.msra.mxu1 %v9272_v41  ;;  %9226 = vmatprep.subr.bf16.mxu0 %v14425_v0  ;;  %v14422_v41 = vsub.s32 0, %v9983_v30  ;;  %v3684_v22 = vld [vmem:[#allocation5 + $0x330] sm:$0xff]  ;;  %v3685_v23 = vld [vmem:[#allocation5 + $0x338] sm:$0xff]  ;;  %v9314_v26 = vpack.c.bf16 %v3653_v21, %v3652_v20  ;;  %v3654_v28 = vld [vmem:[#allocation5 + $0x240] sm:$0xff] }
  0x6a   : > { %9274 = vmatprep.subr.bf16.mxu1 %v14425_v0  ;;  %v9362_v27 = vpack.c.bf16 %v3685_v23, %v3684_v22  ;;  %v3655_v29 = vld [vmem:[#allocation5 + $0x248] sm:$0xff]  ;;  %v3688_v43 = vld [vmem:[#allocation5 + $0x350] sm:$0xff]  ;;  %v3689_v45 = vld [vmem:[#allocation5 + $0x358] sm:$0xff] }
  0x6b   : > { %v10040_v54 = vrot.slane %v9998_v47, %v14422_v41  ;;  %v9317_v35 = vpack.c.bf16 %v3655_v29, %v3654_v28  ;;  %v3691_v60 = vld [vmem:[#allocation5 + $0x368] sm:$0xff]  ;;  %v3661_v4 = vld [vmem:[#allocation5 + $0x278] sm:$0xff]  ;;  %v3692_v5 = vld [vmem:[#allocation5 + $0x370] sm:$0xff]  ;;  %v234_v41 = vadd.s32 416, %v9983_v30 }
  0x6c   : > { %9228 = vmatpush1.bf16.msra.mxu0 %v9227_v49  ;;  %v3644_v49 = vld [vmem:[#allocation5 + $0x1f0] sm:$0xff]  ;;  %v3665_v22 = vld [vmem:[#allocation5 + $0x298] sm:$0xff] }
  0x6d   : > { %9276 = vmatpush1.bf16.msra.mxu1 %v9275_v51  ;;  %9229 = vmatprep.subr.bf16.mxu0 %v14425_v0  ;;  %v3645_v51 = vld [vmem:[#allocation5 + $0x1f8] sm:$0xff]  ;;  %vm378_vm2 = vcmp.eq.s32.totalorder %v9995_v44, %v10040_v54  ;;  %vm394_vm6 = vcmp.eq.s32.totalorder %v10051_v61, %v10040_v54  ;;  %vm410_vm10 = vcmp.eq.s32.totalorder %v10060_v3, %v10040_v54  ;;  %v3664_v21 = vld [vmem:[#allocation5 + $0x290] sm:$0xff] }
  0x6e   : > { %9277 = vmatprep.subr.bf16.mxu1 %v14425_v0  ;;  %v9302_v55 = vpack.c.bf16 %v3645_v51, %v3644_v49  ;;  %vm426_vm14 = vcmp.eq.s32.totalorder %v10072_v8, %v10040_v54  ;;  %v10145_v49 = vadd.s32 %v9988_v37, %v189_v34  ;;  %v190_v51 = vadd.s32 64, %v9983_v30  ;;  %v3696_v23 = vld [vmem:[#allocation5 + $0x390] sm:$0xff]  ;;  %v3698_v34 = vld [vmem:[#allocation5 + $0x3a0] sm:$0xff] }
  0x6f   : > { %v9332_v28 = vpack.c.bf16 %v3665_v22, %v3664_v21 }
  0x70   : > { %9231 = vmatpush1.bf16.msra.mxu0 %v9230_v57  ;;  %v10046_v57 = vrot.slane %v9998_v47, %v14421_v46  ;;  %v233_v46 = vadd.s32 408, %v9983_v30 }
  0x71   : > { %9279 = vmatpush1.bf16.msra.mxu1 %v9278_v58  ;;  %9232 = vmatprep.subr.bf16.mxu0 %v14425_v0  ;;  %v3646_v58 = vld [vmem:[#allocation5 + $0x200] sm:$0xff] }
  0x72   : > { %9280 = vmatprep.subr.bf16.mxu1 %v14425_v0  ;;  %vm380_vm3 = vcmp.eq.s32.totalorder %v9995_v44, %v10046_v57  ;;  %vm396_vm7 = vcmp.eq.s32.totalorder %v10051_v61, %v10046_v57  ;;  %vm412_vm11 = vcmp.eq.s32.totalorder %v10060_v3, %v10046_v57  ;;  %vm428_vm15 = vcmp.eq.s32.totalorder %v10072_v8, %v10046_v57 }
  0x74   : > { %9234 = vmatpush1.bf16.msra.mxu0 %v9233_v63  ;;  %v3679_v63 = vld [vmem:[#allocation5 + $0x308] sm:$0xff] }
  0x75   : > { %9282 = vmatpush1.bf16.msra.mxu1 %v9281_v1  ;;  %9235 = vmatprep.subr.bf16.mxu0 %v14425_v0  ;;  %v9305_v1 = vpack.c.bf16 %v3647_v59, %v3646_v58  ;;  %v9353_v47 = vpack.c.bf16 %v3679_v63, %v3678_v62  ;;  %v3659_v58 = vld [vmem:[#allocation5 + $0x268] sm:$0xff]  ;;  %v3690_v59 = vld [vmem:[#allocation5 + $0x360] sm:$0xff]  ;;  %v10163_v62 = vadd.s32 %v9988_v37, %v190_v51  ;;  %v191_v63 = vadd.s32 72, %v9983_v30 }
  0x76   : > { %9283 = vmatprep.subr.bf16.mxu1 %v14425_v0  ;;  %v9371_v2 = vpack.c.bf16 %v3691_v60, %v3690_v59  ;;  %v196_v51 = vadd.s32 112, %v9983_v30  ;;  %v3669_v59 = vld [vmem:[#allocation5 + $0x2b8] sm:$0xff]  ;;  %v3700_v60 = vld [vmem:[#allocation5 + $0x3b0] sm:$0xff] }
  0x78   : > { %9237 = vmatpush1.bf16.msra.mxu0 %v9236_v6  ;;  %v3680_v6 = vld [vmem:[#allocation5 + $0x310] sm:$0xff] }
  0x79   : > { %9285 = vmatpush1.bf16.msra.mxu1 %v9284_v7  ;;  %9238 = vmatprep.subr.bf16.mxu0 %v14425_v0  ;;  %v3681_v7 = vld [vmem:[#allocation5 + $0x318] sm:$0xff] }
  0x7a   : > { %9286 = vmatprep.subr.bf16.mxu1 %v14425_v0  ;;  %v9356_v11 = vpack.c.bf16 %v3681_v7, %v3680_v6  ;;  %v3693_v6 = vld [vmem:[#allocation5 + $0x378] sm:$0xff]  ;;  %v10181_v7 = vadd.s32 %v9988_v37, %v191_v63 }
  0x7c   : > { %9240 = vmatpush1.bf16.msra.mxu0 %v9239_v12  ;;  %v3650_v12 = vld [vmem:[#allocation5 + $0x220] sm:$0xff] }
  0x7d   : > { %9288 = vmatpush1.bf16.msra.mxu1 %v9287_v13  ;;  %9241 = vmatprep.subr.bf16.mxu0 %v14425_v0  ;;  %v3651_v13 = vld [vmem:[#allocation5 + $0x228] sm:$0xff] }
  0x7e   : > { %9289 = vmatprep.subr.bf16.mxu1 %v14425_v0 }
  0x80   : > { %9243 = vmatpush1.bf16.msra.mxu0 %v9242_v18  ;;  %v9311_v18 = vpack.c.bf16 %v3651_v13, %v3650_v12  ;;  %v3662_v12 = vld [vmem:[#allocation5 + $0x280] sm:$0xff]  ;;  %v3663_v13 = vld [vmem:[#allocation5 + $0x288] sm:$0xff] }
  0x81   : > { %9291 = vmatpush1.bf16.msra.mxu1 %v9290_v19  ;;  %9244 = vmatprep.subr.bf16.mxu0 %v14425_v0  ;;  %v9359_v19 = vpack.c.bf16 %v3683_v15, %v3682_v14  ;;  %v3694_v14 = vld [vmem:[#allocation5 + $0x380] sm:$0xff]  ;;  %v3695_v15 = vld [vmem:[#allocation5 + $0x388] sm:$0xff] }
  0x82   : > { %9292 = vmatprep.subr.bf16.mxu1 %v14425_v0  ;;  %v9377_v20 = vpack.c.bf16 %v3695_v15, %v3694_v14  ;;  %v3671_v14 = vld [vmem:[#allocation5 + $0x2c8] sm:$0xff]  ;;  %v3702_v15 = vld [vmem:[#allocation5 + $0x3c0] sm:$0xff] }
  0x84   : > { %9246 = vmatpush1.bf16.msra.mxu0 %v9245_v24  ;;  %v10109_v24 = vadd.s32 %v9988_v37, %v187_v17  ;;  %v10199_v17 = vadd.s32 %v9988_v37, %v192_v9  ;;  %v200_v9 = vadd.s32 144, %v9983_v30 }
  0x85   : > { %9294 = vmatpush1.bf16.msra.mxu1 %v9293_v25  ;;  %9247 = vmatprep.subr.bf16.mxu0 %v14425_v0  ;;  %v188_v25 = vadd.s32 48, %v9983_v30 }
  0x86   : > { %9295 = vmatprep.subr.bf16.mxu1 %v14425_v0 }
  0x87   : > { %v10127_v33 = vadd.s32 %v9988_v37, %v188_v25  ;;  %v3697_v25 = vld [vmem:[#allocation5 + $0x398] sm:$0xff] }
  0x88   : > { %9249 = vmatpush1.bf16.msra.mxu0 %v9248_v31  ;;  %v3686_v31 = vld [vmem:[#allocation5 + $0x340] sm:$0xff]  ;;  %v9380_v29 = vpack.c.bf16 %v3697_v25, %v3696_v23  ;;  %v203_v23 = vadd.s32 168, %v9983_v30 }
  0x89   : > { %9297 = vmatpush1.bf16.msra.mxu1 %v9296_v32  ;;  %9250 = vmatprep.subr.bf16.mxu0 %v14425_v0  ;;  %v3687_v32 = vld [vmem:[#allocation5 + $0x348] sm:$0xff] }
  0x8a   : > { %9298 = vmatprep.subr.bf16.mxu1 %v14425_v0  ;;  %v9365_v36 = vpack.c.bf16 %v3687_v32, %v3686_v31  ;;  %v3666_v31 = vld [vmem:[#allocation5 + $0x2a0] sm:$0xff]  ;;  %v3667_v32 = vld [vmem:[#allocation5 + $0x2a8] sm:$0xff]  ;;  %v10391_v25 = vadd.s32 %v9988_v37, %v203_v23 }
  0x8c   : > { %9252 = vmatpush1.bf16.msra.mxu0 %v9251_v39  ;;  %v3656_v39 = vld [vmem:[#allocation5 + $0x250] sm:$0xff]  ;;  %14581 = vst [vmem:[#allocation16_spill] sm:$0xff] %v10391_v25 }
  0x8d   : > { %9300 = vmatpush1.bf16.msra.mxu1 %v9299_v42  ;;  %9253 = vmatprep.subr.bf16.mxu0 %v14425_v0  ;;  %v3657_v42 = vld [vmem:[#allocation5 + $0x258] sm:$0xff] }
  0x8e   : > { %9301 = vmatprep.subr.bf16.mxu1 %v14425_v0  ;;  %v9320_v52 = vpack.c.bf16 %v3657_v42, %v3656_v39  ;;  %v195_v39 = vadd.s32 104, %v9983_v30  ;;  %v9335_v42 = vpack.c.bf16 %v3667_v32, %v3666_v31  ;;  %v206_v31 = vadd.s32 192, %v9983_v30  ;;  %v3672_v32 = vld [vmem:[#allocation5 + $0x2d0] sm:$0xff] }
  0x90   : > { %9255 = vmatpush1.bf16.msra.mxu0 %v9254_v53  ;;  %v9368_v53 = vpack.c.bf16 %v3689_v45, %v3688_v43  ;;  %v10258_v45 = vadd.s32 %v9988_v37, %v195_v39 }
  0x91   : > { %9303 = vmatpush1.bf16.msra.mxu1 %v9302_v55  ;;  %9304 = vmatprep.subr.bf16.mxu0 %v14425_v0  ;;  %v3658_v55 = vld [vmem:[#allocation5 + $0x260] sm:$0xff] }
  0x92   : > { %9352 = vmatprep.subr.bf16.mxu1 %v14425_v0 }
  0x93   : > { %8179 = vmatmul.mubr.msk.f32.vlgmr.msra.gmra.mrb[0].mxu0 %vm378_vm2, %v14469_v56  ;;  %vm442_vm2 = vcmp.eq.s32.totalorder %v10091_v16, %v10040_v54 }
  0x94   : > { %8307 = vmatmul.mubr.msk.f32.vlgmr.msra.gmra.mrb[0].mxu1 %vm380_vm3, %v14469_v56  ;;  %9306 = vmatpush1.bf16.msra.mxu0 %v9305_v1  ;;  %vm444_vm3 = vcmp.eq.s32.totalorder %v10091_v16, %v10046_v57  ;;  %v9323_v1 = vpack.c.bf16 %v3659_v58, %v3658_v55  ;;  %v198_v55 = vadd.s32 128, %v9983_v30  ;;  %v3668_v58 = vld [vmem:[#allocation5 + $0x2b0] sm:$0xff] }
  0x95   : > { %8180 = vmatprep.mubr.msk.f32.mxu0 %vm395_vm4, %v14469_v56  ;;  %9354 = vmatpush1.bf16.msra.mxu1 %v9353_v47  ;;  %vm459_vm4 = vcmp.eq.s32.totalorder %v10109_v24, %v10003_v48  ;;  %v3660_v47 = vld [vmem:[#allocation5 + $0x270] sm:$0xff] }
  0x96   : > { %8308 = vmatprep.mubr.msk.f32.mxu1 %vm397_vm5, %v14469_v56  ;;  %9307 = vmatprep.subr.bf16.mxu0 %v14425_v0  ;;  %vm461_vm5 = vcmp.eq.s32.totalorder %v10109_v24, %v10008_v50 }
  0x97   : > { %8181 = vmatmul.mubr.msk.f32.gmra.mrb[2].mxu0 %vm394_vm6, %v14469_v56  ;;  %9355 = vmatprep.subr.bf16.mxu1 %v14425_v0  ;;  %vm458_vm6 = vcmp.eq.s32.totalorder %v10109_v24, %v10040_v54 }
  0x98   : > { %8309 = vmatmul.mubr.msk.f32.gmra.mrb[2].mxu1 %vm396_vm7, %v14469_v56  ;;  %8182 = vmatprep.mubr.msk.f32.mxu0 %vm411_vm8, %v14469_v56  ;;  %vm460_vm7 = vcmp.eq.s32.totalorder %v10109_v24, %v10046_v57  ;;  %vm475_vm8 = vcmp.eq.s32.totalorder %v10127_v33, %v10003_v48 }
  0x99   : > { %8310 = vmatprep.mubr.msk.f32.mxu1 %vm413_vm9, %v14469_v56  ;;  %9309 = vmatpush1.bf16.msra.mxu0 %v9308_v10  ;;  %vm477_vm9 = vcmp.eq.s32.totalorder %v10127_v33, %v10008_v50  ;;  %v9326_v10 = vpack.c.bf16 %v3661_v4, %v3660_v47  ;;  %v10308_v4 = vadd.s32 %v9988_v37, %v198_v55  ;;  %v207_v55 = vadd.s32 200, %v9983_v30 }
  0x9a   : > { %9357 = vmatpush1.bf16.msra.mxu1 %v9356_v11  ;;  %9310 = vmatprep.subr.bf16.mxu0 %v14425_v0  ;;  %v9374_v11 = vpack.c.bf16 %v3693_v6, %v3692_v5  ;;  %v199_v5 = vadd.s32 136, %v9983_v30 }
  0x9b   : > { %8183 = vmatmul.mubr.msk.f32.gmra.mrb[4].mxu0 %vm410_vm10, %v14469_v56  ;;  %9358 = vmatprep.subr.bf16.mxu1 %v14425_v0  ;;  %vm474_vm10 = vcmp.eq.s32.totalorder %v10127_v33, %v10040_v54  ;;  %14579 = vst [vmem:[#allocation14_spill] sm:$0xff] %v10308_v4 }
  0x9c   : > { %8311 = vmatmul.mubr.msk.f32.gmra.mrb[4].mxu1 %vm412_vm11, %v14469_v56  ;;  %8184 = vmatprep.mubr.msk.f32.mxu0 %vm427_vm12, %v14469_v56  ;;  %vm476_vm11 = vcmp.eq.s32.totalorder %v10127_v33, %v10046_v57  ;;  %vm491_vm12 = vcmp.eq.s32.totalorder %v10145_v49, %v10003_v48  ;;  %v10325_v6 = vadd.s32 %v9988_v37, %v199_v5  ;;  %v3675_v5 = vld [vmem:[#allocation5 + $0x2e8] sm:$0xff] }
  0x9d   : > { %8312 = vmatprep.mubr.msk.f32.mxu1 %vm429_vm13, %v14469_v56  ;;  %9312 = vmatpush1.bf16.msra.mxu0 %v9311_v18  ;;  %vm493_vm13 = vcmp.eq.s32.totalorder %v10145_v49, %v10008_v50  ;;  %v193_v18 = vadd.s32 88, %v9983_v30 }
  0x9e   : > { %9360 = vmatpush1.bf16.msra.mxu1 %v9359_v19  ;;  %9313 = vmatprep.subr.bf16.mxu0 %v14425_v0  ;;  %v9329_v19 = vpack.c.bf16 %v3663_v13, %v3662_v12  ;;  %v3670_v13 = vld [vmem:[#allocation5 + $0x2c0] sm:$0xff] }
  0x9f   : > { %8185 = vmatmul.mubr.msk.f32.gmra.mrb[6].mxu0 %vm426_vm14, %v14469_v56  ;;  %9361 = vmatprep.subr.bf16.mxu1 %v14425_v0  ;;  %vm490_vm14 = vcmp.eq.s32.totalorder %v10145_v49, %v10040_v54 }
  0xa0   : > { %8313 = vmatmul.mubr.msk.f32.gmra.mrb[6].mxu1 %vm428_vm15, %v14469_v56  ;;  %8186 = vmatprep.mubr.msk.f32.mxu0 %vm443_vm0, %v14469_v56  ;;  %vm492_vm15 = vcmp.eq.s32.totalorder %v10145_v49, %v10046_v57  ;;  %vm507_vm0 = vcmp.eq.s32.totalorder %v10163_v62, %v10003_v48 }
  0xa1   : > { %8314 = vmatprep.mubr.msk.f32.mxu1 %vm445_vm1, %v14469_v56  ;;  %9315 = vmatpush1.bf16.msra.mxu0 %v9314_v26  ;;  %vm509_vm1 = vcmp.eq.s32.totalorder %v10163_v62, %v10008_v50  ;;  %v10217_v26 = vadd.s32 %v9988_v37, %v193_v18  ;;  %v202_v18 = vadd.s32 160, %v9983_v30 }
  0xa2   : > { %9363 = vmatpush1.bf16.msra.mxu1 %v9362_v27  ;;  %9316 = vmatprep.subr.bf16.mxu0 %v14425_v0  ;;  %v194_v27 = vadd.s32 96, %v9983_v30 }
  0xa3   : > { %8187 = vmatmul.mubr.msk.f32.gmra.mrb[8].mxu0 %vm442_vm2, %v14469_v56  ;;  %9364 = vmatprep.subr.bf16.mxu1 %v14425_v0  ;;  %vm506_vm2 = vcmp.eq.s32.totalorder %v10163_v62, %v10040_v54  ;;  %v10374_v22 = vadd.s32 %v9988_v37, %v202_v18 }
  0xa4   : > { %8315 = vmatmul.mubr.msk.f32.gmra.mrb[8].mxu1 %vm444_vm3, %v14469_v56  ;;  %8188 = vmatprep.mubr.msk.f32.mxu0 %vm459_vm4, %v14469_v56  ;;  %vm508_vm3 = vcmp.eq.s32.totalorder %v10163_v62, %v10046_v57  ;;  %vm523_vm4 = vcmp.eq.s32.totalorder %v10181_v7, %v10003_v48 }
  0xa5   : > { %8316 = vmatprep.mubr.msk.f32.mxu1 %vm461_vm5, %v14469_v56  ;;  %9318 = vmatpush1.bf16.msra.mxu0 %v9317_v35  ;;  %vm525_vm5 = vcmp.eq.s32.totalorder %v10181_v7, %v10008_v50  ;;  %v3699_v35 = vld [vmem:[#allocation5 + $0x3a8] sm:$0xff]  ;;  %14580 = vst [vmem:[#allocation15_spill] sm:$0xff] %v10374_v22 }
  0xa6   : > { %9366 = vmatpush1.bf16.msra.mxu1 %v9365_v36  ;;  %9319 = vmatprep.subr.bf16.mxu0 %v14425_v0  ;;  %v10235_v36 = vadd.s32 %v9988_v37, %v194_v27  ;;  %v9383_v43 = vpack.c.bf16 %v3699_v35, %v3698_v34  ;;  %v204_v27 = vadd.s32 176, %v9983_v30  ;;  %v3673_v34 = vld [vmem:[#allocation5 + $0x2d8] sm:$0xff] }
  0xa7   : > { %8189 = vmatmul.mubr.msk.f32.gmra.mrb[10].mxu0 %vm458_vm6, %v14469_v56  ;;  %9367 = vmatprep.subr.bf16.mxu1 %v14425_v0  ;;  %vm522_vm6 = vcmp.eq.s32.totalorder %v10181_v7, %v10040_v54  ;;  %v9344_v39 = vpack.c.bf16 %v3673_v34, %v3672_v32  ;;  %v214_v34 = vadd.s32 256, %v9983_v30 }
  0xa8   : > { %8317 = vmatmul.mubr.msk.f32.gmra.mrb[10].mxu1 %vm460_vm7, %v14469_v56  ;;  %8190 = vmatprep.mubr.msk.f32.mxu0 %vm475_vm8, %v14469_v56  ;;  %vm524_vm7 = vcmp.eq.s32.totalorder %v10181_v7, %v10046_v57  ;;  %vm539_vm8 = vcmp.eq.s32.totalorder %v10199_v17, %v10003_v48 }
  0xa9   : > { %8318 = vmatprep.mubr.msk.f32.mxu1 %vm477_vm9, %v14469_v56  ;;  %9321 = vmatpush1.bf16.msra.mxu0 %v9320_v52  ;;  %vm541_vm9 = vcmp.eq.s32.totalorder %v10199_v17, %v10008_v50  ;;  %v10276_v52 = vadd.s32 %v9988_v37, %v196_v51 }
  0xaa   : > { %9369 = vmatpush1.bf16.msra.mxu1 %v9368_v53  ;;  %9322 = vmatprep.subr.bf16.mxu0 %v14425_v0  ;;  %v197_v53 = vadd.s32 120, %v9983_v30 }
  0xab   : > { %8191 = vmatmul.mubr.msk.f32.gmra.mrb[12].mxu0 %vm474_vm10, %v14469_v56  ;;  %9370 = vmatprep.subr.bf16.mxu1 %v14425_v0  ;;  %vm538_vm10 = vcmp.eq.s32.totalorder %v10199_v17, %v10040_v54 }
  0xac   : > { %8319 = vmatmul.mubr.msk.f32.gmra.mrb[12].mxu1 %vm476_vm11, %v14469_v56  ;;  %8192 = vmatprep.mubr.msk.f32.mxu0 %vm491_vm12, %v14469_v56  ;;  %vm540_vm11 = vcmp.eq.s32.totalorder %v10199_v17, %v10046_v57  ;;  %vm555_vm12 = vcmp.eq.s32.totalorder %v10217_v26, %v10003_v48  ;;  %v10293_v63 = vadd.s32 %v9988_v37, %v197_v53 }
  0xad   : > { %8320 = vmatprep.mubr.msk.f32.mxu1 %vm493_vm13, %v14469_v56  ;;  %9324 = vmatpush1.bf16.msra.mxu0 %v9323_v1  ;;  %vm557_vm13 = vcmp.eq.s32.totalorder %v10217_v26, %v10008_v50  ;;  %v9338_v1 = vpack.c.bf16 %v3669_v59, %v3668_v58  ;;  %v10440_v53 = vadd.s32 %v9988_v37, %v206_v31  ;;  %v208_v59 = vadd.s32 208, %v9983_v30  ;;  %v3677_v31 = vld [vmem:[#allocation5 + $0x2f8] sm:$0xff] }
  0xae   : > { %9372 = vmatpush1.bf16.msra.mxu1 %v9371_v2  ;;  %9325 = vmatprep.subr.bf16.mxu0 %v14425_v0  ;;  %v3701_v2 = vld [vmem:[#allocation5 + $0x3b8] sm:$0xff]  ;;  %v10458_v58 = vadd.s32 %v9988_v37, %v207_v55  ;;  %v10572_v55 = vadd.s32 %v9988_v37, %v214_v34  ;;  %v222_v34 = vadd.s32 320, %v9983_v30 }
  0xaf   : > { %8193 = vmatmul.mubr.msk.f32.gmra.mrb[14].mxu0 %vm490_vm14, %v14469_v56  ;;  %9373 = vmatprep.subr.bf16.mxu1 %v14425_v0  ;;  %vm554_vm14 = vcmp.eq.s32.totalorder %v10217_v26, %v10040_v54  ;;  %v9386_v47 = vpack.c.bf16 %v3701_v2, %v3700_v60  ;;  %14583 = vst [vmem:[#allocation18_spill] sm:$0xff] %v10440_v53  ;;  %v210_v2 = vadd.s32 224, %v9983_v30 }
  0xb0   : > { %8321 = vmatmul.mubr.msk.f32.gmra.mrb[14].mxu1 %vm492_vm15, %v14469_v56  ;;  %8194 = vmatprep.mubr.msk.f32.mxu0 %vm507_vm0, %v14469_v56  ;;  %vm556_vm15 = vcmp.eq.s32.totalorder %v10217_v26, %v10046_v57  ;;  %vm571_vm0 = vcmp.eq.s32.totalorder %v10235_v36, %v10003_v48  ;;  %14584 = vst [vmem:[#allocation19_spill] sm:$0xff] %v10458_v58 }
  0xb1   : > { %8322 = vmatprep.mubr.msk.f32.mxu1 %vm509_vm1, %v14469_v56  ;;  %9327 = vmatpush1.bf16.msra.mxu0 %v9326_v10  ;;  %vm573_vm1 = vcmp.eq.s32.totalorder %v10235_v36, %v10008_v50  ;;  %v201_v10 = vadd.s32 152, %v9983_v30  ;;  %v10474_v60 = vadd.s32 %v9988_v37, %v208_v59  ;;  %v10506_v18 = vadd.s32 %v9988_v37, %v210_v2 }
  0xb2   : > { %9375 = vmatpush1.bf16.msra.mxu1 %v9374_v11  ;;  %9328 = vmatprep.subr.bf16.mxu0 %v14425_v0  ;;  %v10343_v11 = vadd.s32 %v9988_v37, %v200_v9  ;;  %v215_v59 = vadd.s32 264, %v9983_v30  ;;  %v216_v2 = vadd.s32 272, %v9983_v30 }
  0xb3   : > { %8195 = vmatmul.mubr.msk.f32.gmra.mrb[16].mxu0 %vm506_vm2, %v14469_v56  ;;  %9376 = vmatprep.subr.bf16.mxu1 %v14425_v0  ;;  %vm570_vm2 = vcmp.eq.s32.totalorder %v10235_v36, %v10040_v54  ;;  %v10353_v12 = vadd.s32 %v9988_v37, %v201_v10  ;;  %14585 = vst [vmem:[#allocation20_spill] sm:$0xff] %v10506_v18 }
  0xb4   : > { %8323 = vmatmul.mubr.msk.f32.gmra.mrb[16].mxu1 %vm508_vm3, %v14469_v56  ;;  %8196 = vmatprep.mubr.msk.f32.mxu0 %vm523_vm4, %v14469_v56  ;;  %vm572_vm3 = vcmp.eq.s32.totalorder %v10235_v36, %v10046_v57  ;;  %vm587_vm4 = vcmp.eq.s32.totalorder %v10258_v45, %v10003_v48 }
  0xb5   : > { %8324 = vmatprep.mubr.msk.f32.mxu1 %vm525_vm5, %v14469_v56  ;;  %9330 = vmatpush1.bf16.msra.mxu0 %v9329_v19  ;;  %vm589_vm5 = vcmp.eq.s32.totalorder %v10258_v45, %v10008_v50  ;;  %v9341_v19 = vpack.c.bf16 %v3671_v14, %v3670_v13  ;;  %v3706_v13 = vld [vmem:[#allocation5 + $0x3e0] sm:$0xff]  ;;  %v3707_v14 = vld [vmem:[#allocation5 + $0x3e8] sm:$0xff] }
  0xb6   : > { %9378 = vmatpush1.bf16.msra.mxu1 %v9377_v20  ;;  %9331 = vmatprep.subr.bf16.mxu0 %v14425_v0  ;;  %v3703_v20 = vld [vmem:[#allocation5 + $0x3c8] sm:$0xff] }
  0xb7   : > { %8197 = vmatmul.mubr.msk.f32.gmra.mrb[18].mxu0 %vm522_vm6, %v14469_v56  ;;  %9379 = vmatprep.subr.bf16.mxu1 %v14425_v0  ;;  %vm586_vm6 = vcmp.eq.s32.totalorder %v10258_v45, %v10040_v54  ;;  %v9389_v21 = vpack.c.bf16 %v3703_v20, %v3702_v15  ;;  %v9395_v15 = vpack.c.bf16 %v3707_v14, %v3706_v13  ;;  %v218_v13 = vadd.s32 288, %v9983_v30 }
  0xb8   : > { %8325 = vmatmul.mubr.msk.f32.gmra.mrb[18].mxu1 %vm524_vm7, %v14469_v56  ;;  %8198 = vmatprep.mubr.msk.f32.mxu0 %vm539_vm8, %v14469_v56  ;;  %vm588_vm7 = vcmp.eq.s32.totalorder %v10258_v45, %v10046_v57  ;;  %vm603_vm8 = vcmp.eq.s32.totalorder %v10276_v52, %v10003_v48 }
  0xb9   : > { %8326 = vmatprep.mubr.msk.f32.mxu1 %vm541_vm9, %v14469_v56  ;;  %9333 = vmatpush1.bf16.msra.mxu0 %v9332_v28  ;;  %vm605_vm9 = vcmp.eq.s32.totalorder %v10276_v52, %v10008_v50  ;;  %v10408_v28 = vadd.s32 %v9988_v37, %v204_v27  ;;  %v213_v27 = vadd.s32 248, %v9983_v30  ;;  %v10638_v14 = vadd.s32 %v9988_v37, %v218_v13 }
  0xba   : > { %9381 = vmatpush1.bf16.msra.mxu1 %v9380_v29  ;;  %9334 = vmatprep.subr.bf16.mxu0 %v14425_v0  ;;  %v205_v29 = vadd.s32 184, %v9983_v30  ;;  %v226_v13 = vadd.s32 352, %v9983_v30 }
  0xbb   : > { %8199 = vmatmul.mubr.msk.f32.gmra.mrb[20].mxu0 %vm538_vm10, %v14469_v56  ;;  %9382 = vmatprep.subr.bf16.mxu1 %v14425_v0  ;;  %vm602_vm10 = vcmp.eq.s32.totalorder %v10276_v52, %v10040_v54  ;;  %v10556_v32 = vadd.s32 %v9988_v37, %v213_v27  ;;  %14590 = vst [vmem:[#allocation25_spill] sm:$0xff] %v10638_v14 }
  0xbc   : > { %8327 = vmatmul.mubr.msk.f32.gmra.mrb[20].mxu1 %vm540_vm11, %v14469_v56  ;;  %8200 = vmatprep.mubr.msk.f32.mxu0 %vm555_vm12, %v14469_v56  ;;  %vm604_vm11 = vcmp.eq.s32.totalorder %v10276_v52, %v10046_v57  ;;  %vm619_vm12 = vcmp.eq.s32.totalorder %v10293_v63, %v10003_v48  ;;  %v10425_v35 = vadd.s32 %v9988_v37, %v205_v29  ;;  %v3676_v29 = vld [vmem:[#allocation5 + $0x2f0] sm:$0xff] }
  0xbd   : > { %8328 = vmatprep.mubr.msk.f32.mxu1 %vm557_vm13, %v14469_v56  ;;  %9336 = vmatpush1.bf16.msra.mxu0 %v9335_v42  ;;  %vm621_vm13 = vcmp.eq.s32.totalorder %v10293_v63, %v10008_v50  ;;  %v3704_v42 = vld [vmem:[#allocation5 + $0x3d0] sm:$0xff] }
  0xbe   : > { %9384 = vmatpush1.bf16.msra.mxu1 %v9383_v43  ;;  %9337 = vmatprep.subr.bf16.mxu0 %v14425_v0  ;;  %14582 = vst [vmem:[#allocation17_spill] sm:$0xff] %v10425_v35  ;;  %v3705_v43 = vld [vmem:[#allocation5 + $0x3d8] sm:$0xff] }
  0xbf   : > { %8201 = vmatmul.mubr.msk.f32.gmra.mrb[22].mxu0 %vm554_vm14, %v14469_v56  ;;  %9385 = vmatprep.subr.bf16.mxu1 %v14425_v0  ;;  %vm618_vm14 = vcmp.eq.s32.totalorder %v10293_v63, %v10040_v54  ;;  %v9392_v51 = vpack.c.bf16 %v3705_v43, %v3704_v42  ;;  %v3708_v42 = vld [vmem:[#allocation5 + $0x3f0] sm:$0xff]  ;;  %v3709_v43 = vld [vmem:[#allocation5 + $0x3f8] sm:$0xff] }
  0xc0   : > { %8329 = vmatmul.mubr.msk.f32.gmra.mrb[22].mxu1 %vm556_vm15, %v14469_v56  ;;  %8202 = vmatprep.mubr.msk.f32.mxu0 %vm571_vm0, %v14469_v56  ;;  %vm620_vm15 = vcmp.eq.s32.totalorder %v10293_v63, %v10046_v57  ;;  %vm635_vm0 = vcmp.eq.s32.totalorder %v10308_v4, %v10003_v48 }
  0xc1   : > { %8330 = vmatprep.mubr.msk.f32.mxu1 %vm573_vm1, %v14469_v56  ;;  %9339 = vmatpush1.bf16.msra.mxu0 %v9338_v1  ;;  %vm637_vm1 = vcmp.eq.s32.totalorder %v10308_v4, %v10008_v50  ;;  %v209_v1 = vadd.s32 216, %v9983_v30 }
  0xc2   : > { %9387 = vmatpush1.bf16.msra.mxu1 %v9386_v47  ;;  %9340 = vmatprep.subr.bf16.mxu0 %v14425_v0  ;;  %v3674_v47 = vld [vmem:[#allocation5 + $0x2e0] sm:$0xff] }
  0xc3   : > { %8203 = vmatmul.mubr.msk.f32.gmra.mrb[24].mxu0 %vm570_vm2, %v14469_v56  ;;  %9388 = vmatprep.subr.bf16.mxu1 %v14425_v0  ;;  %vm634_vm2 = vcmp.eq.s32.totalorder %v10308_v4, %v10040_v54  ;;  %v10491_v9 = vadd.s32 %v9988_v37, %v209_v1  ;;  %v9347_v10 = vpack.c.bf16 %v3675_v5, %v3674_v47  ;;  %v217_v5 = vadd.s32 280, %v9983_v30 }
  0xc4   : > { %8331 = vmatmul.mubr.msk.f32.gmra.mrb[24].mxu1 %vm572_vm3, %v14469_v56  ;;  %8204 = vmatprep.mubr.msk.f32.mxu0 %vm587_vm4, %v14469_v56  ;;  %vm636_vm3 = vcmp.eq.s32.totalorder %v10308_v4, %v10046_v57  ;;  %vm651_vm4 = vcmp.eq.s32.totalorder %v10325_v6, %v10003_v48  ;;  %v10590_v1 = vadd.s32 %v9988_v37, %v215_v59 }
  0xc5   : > { %8332 = vmatprep.mubr.msk.f32.mxu1 %vm589_vm5, %v14469_v56  ;;  %vm653_vm5 = vcmp.eq.s32.totalorder %v10325_v6, %v10008_v50  ;;  %9342 = vmatpush1.bf16.msra.mxu0 %v9341_v19  ;;  %v211_v19 = vadd.s32 232, %v9983_v30  ;;  %v10606_v47 = vadd.s32 %v9988_v37, %v216_v2  ;;  %v225_v2 = vadd.s32 344, %v9983_v30 }
  0xc6   : > { %9390 = vmatpush1.bf16.msra.mxu1 %v9389_v21  ;;  %9343 = vmatprep.subr.bf16.mxu0 %v14425_v0  ;;  %v212_v21 = vadd.s32 240, %v9983_v30  ;;  %14587 = vst [vmem:[#allocation22_spill] sm:$0xff] %v10590_v1 }
  0xc7   : > { %8205 = vmatmul.mubr.msk.f32.gmra.mrb[26].mxu0 %vm586_vm6, %v14469_v56  ;;  %vm650_vm6 = vcmp.eq.s32.totalorder %v10325_v6, %v10040_v54  ;;  %9391 = vmatprep.subr.bf16.mxu1 %v14425_v0  ;;  %v10524_v20 = vadd.s32 %v9988_v37, %v211_v19  ;;  %14588 = vst [vmem:[#allocation23_spill] sm:$0xff] %v10606_v47 }
  0xc8   : > { %8333 = vmatmul.mubr.msk.f32.gmra.mrb[26].mxu1 %vm588_vm7, %v14469_v56  ;;  %8206 = vmatprep.mubr.msk.f32.mxu0 %vm603_vm8, %v14469_v56  ;;  %vm652_vm7 = vcmp.eq.s32.totalorder %v10325_v6, %v10046_v57  ;;  %vm667_vm8 = vcmp.eq.s32.totalorder %v10343_v11, %v10003_v48  ;;  %v10540_v23 = vadd.s32 %v9988_v37, %v212_v21  ;;  %v220_v21 = vadd.s32 304, %v9983_v30 }
  0xc9   : > { %8334 = vmatprep.mubr.msk.f32.mxu1 %vm605_vm9, %v14469_v56  ;;  %vm669_vm9 = vcmp.eq.s32.totalorder %v10343_v11, %v10008_v50  ;;  %9345 = vmatpush1.bf16.msra.mxu0 %v9344_v39  ;;  %14586 = vst [vmem:[#allocation21_spill] sm:$0xff] %v10524_v20  ;;  %v9350_v39 = vpack.c.bf16 %v3677_v31, %v3676_v29  ;;  %v221_v29 = vadd.s32 312, %v9983_v30 }
  0xca   : > { %9393 = vmatpush1.bf16.msra.mxu1 %v9392_v51  ;;  %9346 = vmatprep.subr.bf16.mxu0 %v14425_v0  ;;  %v9398_v51 = vpack.c.bf16 %v3709_v43, %v3708_v42  ;;  %v10670_v27 = vadd.s32 %v9988_v37, %v220_v21  ;;  %v223_v42 = vadd.s32 328, %v9983_v30  ;;  %v227_v21 = vadd.s32 360, %v9983_v30 }
  0xcb   : > { %8207 = vmatmul.mubr.msk.f32.gmra.mrb[28].mxu0 %vm602_vm10, %v14469_v56  ;;  %vm666_vm10 = vcmp.eq.s32.totalorder %v10343_v11, %v10040_v54  ;;  %9394 = vmatprep.subr.bf16.mxu1 %v14425_v0  ;;  %v10686_v31 = vadd.s32 %v9988_v37, %v221_v29 }
  0xcc   : > { %8335 = vmatmul.mubr.msk.f32.gmra.mrb[28].mxu1 %vm604_vm11, %v14469_v56  ;;  %8208 = vmatprep.mubr.msk.f32.mxu0 %vm619_vm12, %v14469_v56  ;;  %vm668_vm11 = vcmp.eq.s32.totalorder %v10343_v11, %v10046_v57  ;;  %vm683_vm12 = vcmp.eq.s32.totalorder %v10353_v12, %v10003_v48  ;;  %14592 = vst [vmem:[#allocation27_spill] sm:$0xff] %v10670_v27 }
  0xcd   : > { %8336 = vmatprep.mubr.msk.f32.mxu1 %vm621_vm13, %v14469_v56  ;;  %vm685_vm13 = vcmp.eq.s32.totalorder %v10353_v12, %v10008_v50  ;;  %9348 = vmatpush1.bf16.msra.mxu0 %v9347_v10  ;;  %v10622_v10 = vadd.s32 %v9988_v37, %v217_v5  ;;  %14593 = vst [vmem:[#allocation28_spill] sm:$0xff] %v10686_v31 }
  0xce   : > { %9396 = vmatpush1.bf16.msra.mxu1 %v9395_v15  ;;  %9349 = vmatprep.subr.bf16.mxu0 %v14425_v0  ;;  %v219_v15 = vadd.s32 296, %v9983_v30  ;;  %v10718_v43 = vadd.s32 %v9988_v37, %v223_v42  ;;  %v10750_v5 = vadd.s32 %v9988_v37, %v225_v2  ;;  %v10782_v29 = vadd.s32 %v9988_v37, %v227_v21 }
  0xcf   : > { %8209 = vmatmul.mubr.msk.f32.gmra.mrb[30].mxu0 %vm618_vm14, %v14469_v56  ;;  %vm682_vm14 = vcmp.eq.s32.totalorder %v10353_v12, %v10040_v54  ;;  %9397 = vmatprep.subr.bf16.mxu1 %v14425_v0  ;;  %14589 = vst [vmem:[#allocation24_spill] sm:$0xff] %v10622_v10 }
  0xd0   : > { %8337 = vmatmul.mubr.msk.f32.gmra.mrb[30].mxu1 %vm620_vm15, %v14469_v56  ;;  %8210 = vmatprep.mubr.msk.f32.mxu0 %vm635_vm0, %v14469_v56  ;;  %vm684_vm15 = vcmp.eq.s32.totalorder %v10353_v12, %v10046_v57  ;;  %vm699_vm0 = vcmp.eq.s32.totalorder %v10374_v22, %v10003_v48  ;;  %v10654_v19 = vadd.s32 %v9988_v37, %v219_v15 }
  0xd1   : > { %8338 = vmatprep.mubr.msk.f32.mxu1 %vm637_vm1, %v14469_v56  ;;  %vm701_vm1 = vcmp.eq.s32.totalorder %v10374_v22, %v10008_v50  ;;  %9351 = vmatpush1.bf16.msra.mxu0 %v9350_v39  ;;  %v10702_v39 = vadd.s32 %v9988_v37, %v222_v34  ;;  %14595 = vst [vmem:[#allocation30_spill] sm:$0xff] %v10718_v43  ;;  %14597 = vst [vmem:[#allocation32_spill] sm:$0xff] %v10750_v5  ;;  %v228_v34 = vadd.s32 368, %v9983_v30 }
  0xd2   : > { %9399 = vmatpush1.bf16.msra.mxu1 %v9398_v51  ;;  %9400 = vmatprep.subr.bf16.mxu0 %v14425_v0  ;;  %14591 = vst [vmem:[#allocation26_spill] sm:$0xff] %v10654_v19  ;;  %v224_v51 = vadd.s32 336, %v9983_v30  ;;  %v10766_v15 = vadd.s32 %v9988_v37, %v226_v13  ;;  %14599 = vst [vmem:[#allocation34_spill] sm:$0xff] %v10782_v29  ;;  %v230_v13 = vadd.s32 384, %v9983_v30 }
  0xd3   : > { %8211 = vmatmul.mubr.msk.f32.gmra.mrb[32].mxu0 %vm634_vm2, %v14469_v56  ;;  %vm698_vm2 = vcmp.eq.s32.totalorder %v10374_v22, %v10040_v54  ;;  %9448 = vmatprep.subr.bf16.mxu1 %v14425_v0  ;;  %14594 = vst [vmem:[#allocation29_spill] sm:$0xff] %v10702_v39  ;;  %v10798_v42 = vadd.s32 %v9988_v37, %v228_v34  ;;  %v231_v34 = vadd.s32 392, %v9983_v30  ;;  %v237_v0 = vadd.s32 440, %v9983_v30 }
  0xd4   : > { %8339 = vmatmul.mubr.msk.f32.gmra.mrb[32].mxu1 %vm636_vm3, %v14469_v56  ;;  %8212 = vmatprep.mubr.msk.f32.mxu0 %vm651_vm4, %v14469_v56  ;;  %vm700_vm3 = vcmp.eq.s32.totalorder %v10374_v22, %v10046_v57  ;;  %vm715_vm4 = vcmp.eq.s32.totalorder %v10391_v25, %v10003_v48  ;;  %v10734_v59 = vadd.s32 %v9988_v37, %v224_v51  ;;  %v229_v51 = vadd.s32 376, %v9983_v30 }
  0xd5   : > { %8340 = vmatprep.mubr.msk.f32.mxu1 %vm653_vm5, %v14469_v56  ;;  %vm717_vm5 = vcmp.eq.s32.totalorder %v10391_v25, %v10008_v50  ;;  %14598 = vst [vmem:[#allocation33_spill] sm:$0xff] %v10766_v15  ;;  %14600 = vst [vmem:[#allocation35_spill] sm:$0xff] %v10798_v42  ;;  %v10830_v21 = vadd.s32 %v9988_v37, %v230_v13  ;;  %v232_v13 = vadd.s32 400, %v9983_v30 }
  0xd6   : > { %14596 = vst [vmem:[#allocation31_spill] sm:$0xff] %v10734_v59  ;;  %v10814_v2 = vadd.s32 %v9988_v37, %v229_v51  ;;  %v10846_v51 = vadd.s32 %v9988_v37, %v231_v34 }
  0xd7   : > { %8213 = vmatmul.mubr.msk.f32.gmra.mrb[34].mxu0 %vm650_vm6, %v14469_v56  ;;  %vm714_vm6 = vcmp.eq.s32.totalorder %v10391_v25, %v10040_v54  ;;  %14602 = vst [vmem:[#allocation37_spill] sm:$0xff] %v10830_v21  ;;  %v10862_v34 = vadd.s32 %v9988_v37, %v232_v13  ;;  %v10878_v13 = vadd.s32 %v9988_v37, %v233_v46 }
  0xd8   : > { %8341 = vmatmul.mubr.msk.f32.gmra.mrb[34].mxu1 %vm652_vm7, %v14469_v56  ;;  %8214 = vmatprep.mubr.msk.f32.mxu0 %vm667_vm8, %v14469_v56  ;;  %vm716_vm7 = vcmp.eq.s32.totalorder %v10391_v25, %v10046_v57  ;;  %vm731_vm8 = vcmp.eq.s32.totalorder %v10408_v28, %v10003_v48  ;;  %14601 = vst [vmem:[#allocation36_spill] sm:$0xff] %v10814_v2  ;;  %14603 = vst [vmem:[#allocation38_spill] sm:$0xff] %v10846_v51 }
  0xd9   : > { %8342 = vmatprep.mubr.msk.f32.mxu1 %vm669_vm9, %v14469_v56  ;;  %vm733_vm9 = vcmp.eq.s32.totalorder %v10408_v28, %v10008_v50  ;;  %14604 = vst [vmem:[#allocation39_spill] sm:$0xff] %v10862_v34  ;;  %14605 = vst [vmem:[#allocation40_spill] sm:$0xff] %v10878_v13  ;;  %v10894_v46 = vadd.s32 %v9988_v37, %v234_v41  ;;  %v10910_v41 = vadd.s32 %v9988_v37, %v235_v40 }
  0xda   : > { %v10926_v40 = vadd.s32 %v9988_v37, %v236_v38  ;;  %v10942_v38 = vadd.s32 %v9988_v37, %v237_v0 }
  0xdb   : > { %8215 = vmatmul.mubr.msk.f32.gmra.mrb[36].mxu0 %vm666_vm10, %v14469_v56  ;;  %vm730_vm10 = vcmp.eq.s32.totalorder %v10408_v28, %v10040_v54  ;;  %14606 = vst [vmem:[#allocation41_spill] sm:$0xff] %v10894_v46  ;;  %14607 = vst [vmem:[#allocation42_spill] sm:$0xff] %v10910_v41 }
  0xdc   : > { %8343 = vmatmul.mubr.msk.f32.gmra.mrb[36].mxu1 %vm668_vm11, %v14469_v56  ;;  %8216 = vmatprep.mubr.msk.f32.mxu0 %vm683_vm12, %v14469_v56  ;;  %vm732_vm11 = vcmp.eq.s32.totalorder %v10408_v28, %v10046_v57  ;;  %vm747_vm12 = vcmp.eq.s32.totalorder %v10425_v35, %v10003_v48  ;;  %14608 = vst [vmem:[#allocation43_spill] sm:$0xff] %v10926_v40  ;;  %14609 = vst [vmem:[#allocation44_spill] sm:$0xff] %v10942_v38 }
  0xdd   : > { %8344 = vmatprep.mubr.msk.f32.mxu1 %vm685_vm13, %v14469_v56  ;;  %vm749_vm13 = vcmp.eq.s32.totalorder %v10425_v35, %v10008_v50 }
  0xdf   : > { %8217 = vmatmul.mubr.msk.f32.gmra.mrb[38].mxu0 %vm682_vm14, %v14469_v56  ;;  %vm746_vm14 = vcmp.eq.s32.totalorder %v10425_v35, %v10040_v54 }
  0xe0   : > { %8345 = vmatmul.mubr.msk.f32.gmra.mrb[38].mxu1 %vm684_vm15, %v14469_v56  ;;  %8218 = vmatprep.mubr.msk.f32.mxu0 %vm699_vm0, %v14469_v56  ;;  %vm748_vm15 = vcmp.eq.s32.totalorder %v10425_v35, %v10046_v57  ;;  %vm763_vm0 = vcmp.eq.s32.totalorder %v10440_v53, %v10003_v48 }
  0xe1   : > { %8346 = vmatprep.mubr.msk.f32.mxu1 %vm701_vm1, %v14469_v56  ;;  %vm765_vm1 = vcmp.eq.s32.totalorder %v10440_v53, %v10008_v50 }
  0xe3   : > { %8219 = vmatmul.mubr.msk.f32.gmra.mrb[40].mxu0 %vm698_vm2, %v14469_v56  ;;  %vm762_vm2 = vcmp.eq.s32.totalorder %v10440_v53, %v10040_v54 }
  0xe4   : > { %8347 = vmatmul.mubr.msk.f32.gmra.mrb[40].mxu1 %vm700_vm3, %v14469_v56  ;;  %8220 = vmatprep.mubr.msk.f32.mxu0 %vm715_vm4, %v14469_v56  ;;  %vm764_vm3 = vcmp.eq.s32.totalorder %v10440_v53, %v10046_v57  ;;  %vm779_vm4 = vcmp.eq.s32.totalorder %v10458_v58, %v10003_v48 }
  0xe5   : > { %8348 = vmatprep.mubr.msk.f32.mxu1 %vm717_vm5, %v14469_v56  ;;  %vm781_vm5 = vcmp.eq.s32.totalorder %v10458_v58, %v10008_v50 }
  0xe7   : > { %8221 = vmatmul.mubr.msk.f32.gmra.mrb[42].mxu0 %vm714_vm6, %v14469_v56  ;;  %vm778_vm6 = vcmp.eq.s32.totalorder %v10458_v58, %v10040_v54 }
  0xe8   : > { %8349 = vmatmul.mubr.msk.f32.gmra.mrb[42].mxu1 %vm716_vm7, %v14469_v56  ;;  %8222 = vmatprep.mubr.msk.f32.mxu0 %vm731_vm8, %v14469_v56  ;;  %vm780_vm7 = vcmp.eq.s32.totalorder %v10458_v58, %v10046_v57  ;;  %vm795_vm8 = vcmp.eq.s32.totalorder %v10474_v60, %v10003_v48 }
  0xe9   : > { %8350 = vmatprep.mubr.msk.f32.mxu1 %vm733_vm9, %v14469_v56  ;;  %vm797_vm9 = vcmp.eq.s32.totalorder %v10474_v60, %v10008_v50 }
  0xeb   : > { %8223 = vmatmul.mubr.msk.f32.gmra.mrb[44].mxu0 %vm730_vm10, %v14469_v56  ;;  %vm794_vm10 = vcmp.eq.s32.totalorder %v10474_v60, %v10040_v54 }
  0xec   : > { %8351 = vmatmul.mubr.msk.f32.gmra.mrb[44].mxu1 %vm732_vm11, %v14469_v56  ;;  %8224 = vmatprep.mubr.msk.f32.mxu0 %vm747_vm12, %v14469_v56  ;;  %vm796_vm11 = vcmp.eq.s32.totalorder %v10474_v60, %v10046_v57  ;;  %vm811_vm12 = vcmp.eq.s32.totalorder %v10491_v9, %v10003_v48 }
  0xed   : > { %8352 = vmatprep.mubr.msk.f32.mxu1 %vm749_vm13, %v14469_v56  ;;  %vm813_vm13 = vcmp.eq.s32.totalorder %v10491_v9, %v10008_v50 }
  0xef   : > { %8225 = vmatmul.mubr.msk.f32.gmra.mrb[46].mxu0 %vm746_vm14, %v14469_v56  ;;  %vm810_vm14 = vcmp.eq.s32.totalorder %v10491_v9, %v10040_v54 }
  0xf0   : > { %8353 = vmatmul.mubr.msk.f32.gmra.mrb[46].mxu1 %vm748_vm15, %v14469_v56  ;;  %8226 = vmatprep.mubr.msk.f32.mxu0 %vm763_vm0, %v14469_v56  ;;  %vm812_vm15 = vcmp.eq.s32.totalorder %v10491_v9, %v10046_v57  ;;  %vm827_vm0 = vcmp.eq.s32.totalorder %v10506_v18, %v10003_v48 }
  0xf1   : > { %8354 = vmatprep.mubr.msk.f32.mxu1 %vm765_vm1, %v14469_v56  ;;  %vm829_vm1 = vcmp.eq.s32.totalorder %v10506_v18, %v10008_v50 }
  0xf3   : > { %8227 = vmatmul.mubr.msk.f32.gmra.mrb[48].mxu0 %vm762_vm2, %v14469_v56  ;;  %vm826_vm2 = vcmp.eq.s32.totalorder %v10506_v18, %v10040_v54 }
  0xf4   : > { %8355 = vmatmul.mubr.msk.f32.gmra.mrb[48].mxu1 %vm764_vm3, %v14469_v56  ;;  %8228 = vmatprep.mubr.msk.f32.mxu0 %vm779_vm4, %v14469_v56  ;;  %vm828_vm3 = vcmp.eq.s32.totalorder %v10506_v18, %v10046_v57  ;;  %vm843_vm4 = vcmp.eq.s32.totalorder %v10524_v20, %v10003_v48 }
  0xf5   : > { %8356 = vmatprep.mubr.msk.f32.mxu1 %vm781_vm5, %v14469_v56  ;;  %vm845_vm5 = vcmp.eq.s32.totalorder %v10524_v20, %v10008_v50 }
  0xf7   : > { %8229 = vmatmul.mubr.msk.f32.gmra.mrb[50].mxu0 %vm778_vm6, %v14469_v56  ;;  %vm842_vm6 = vcmp.eq.s32.totalorder %v10524_v20, %v10040_v54 }
  0xf8   : > { %8357 = vmatmul.mubr.msk.f32.gmra.mrb[50].mxu1 %vm780_vm7, %v14469_v56  ;;  %8230 = vmatprep.mubr.msk.f32.mxu0 %vm795_vm8, %v14469_v56  ;;  %vm844_vm7 = vcmp.eq.s32.totalorder %v10524_v20, %v10046_v57  ;;  %vm859_vm8 = vcmp.eq.s32.totalorder %v10540_v23, %v10003_v48 }
  0xf9   : > { %8358 = vmatprep.mubr.msk.f32.mxu1 %vm797_vm9, %v14469_v56  ;;  %vm861_vm9 = vcmp.eq.s32.totalorder %v10540_v23, %v10008_v50 }
  0xfb   : > { %8231 = vmatmul.mubr.msk.f32.gmra.mrb[52].mxu0 %vm794_vm10, %v14469_v56  ;;  %vm858_vm10 = vcmp.eq.s32.totalorder %v10540_v23, %v10040_v54 }
  0xfc   : > { %8359 = vmatmul.mubr.msk.f32.gmra.mrb[52].mxu1 %vm796_vm11, %v14469_v56  ;;  %8232 = vmatprep.mubr.msk.f32.mxu0 %vm811_vm12, %v14469_v56  ;;  %vm860_vm11 = vcmp.eq.s32.totalorder %v10540_v23, %v10046_v57  ;;  %vm875_vm12 = vcmp.eq.s32.totalorder %v10556_v32, %v10003_v48 }
  0xfd   : > { %8360 = vmatprep.mubr.msk.f32.mxu1 %vm813_vm13, %v14469_v56  ;;  %vm877_vm13 = vcmp.eq.s32.totalorder %v10556_v32, %v10008_v50 }
  0xff   : > { %8233 = vmatmul.mubr.msk.f32.gmra.mrb[54].mxu0 %vm810_vm14, %v14469_v56  ;;  %vm874_vm14 = vcmp.eq.s32.totalorder %v10556_v32, %v10040_v54 }
 0x100   : > { %8361 = vmatmul.mubr.msk.f32.gmra.mrb[54].mxu1 %vm812_vm15, %v14469_v56  ;;  %8234 = vmatprep.mubr.msk.f32.mxu0 %vm827_vm0, %v14469_v56  ;;  %vm876_vm15 = vcmp.eq.s32.totalorder %v10556_v32, %v10046_v57  ;;  %vm891_vm0 = vcmp.eq.s32.totalorder %v10572_v55, %v10003_v48 }
 0x101   : > { %8362 = vmatprep.mubr.msk.f32.mxu1 %vm829_vm1, %v14469_v56  ;;  %vm893_vm1 = vcmp.eq.s32.totalorder %v10572_v55, %v10008_v50 }
 0x103   : > { %8235 = vmatmul.mubr.msk.f32.gmra.mrb[56].mxu0 %vm826_vm2, %v14469_v56  ;;  %vm890_vm2 = vcmp.eq.s32.totalorder %v10572_v55, %v10040_v54 }
 0x104   : > { %8363 = vmatmul.mubr.msk.f32.gmra.mrb[56].mxu1 %vm828_vm3, %v14469_v56  ;;  %8236 = vmatprep.mubr.msk.f32.mxu0 %vm843_vm4, %v14469_v56  ;;  %vm892_vm3 = vcmp.eq.s32.totalorder %v10572_v55, %v10046_v57  ;;  %vm907_vm4 = vcmp.eq.s32.totalorder %v10590_v1, %v10003_v48 }
 0x105   : > { %8364 = vmatprep.mubr.msk.f32.mxu1 %vm845_vm5, %v14469_v56  ;;  %vm909_vm5 = vcmp.eq.s32.totalorder %v10590_v1, %v10008_v50 }
 0x107   : > { %8237 = vmatmul.mubr.msk.f32.gmra.mrb[58].mxu0 %vm842_vm6, %v14469_v56  ;;  %vm906_vm6 = vcmp.eq.s32.totalorder %v10590_v1, %v10040_v54 }
 0x108   : > { %8365 = vmatmul.mubr.msk.f32.gmra.mrb[58].mxu1 %vm844_vm7, %v14469_v56  ;;  %8238 = vmatprep.mubr.msk.f32.mxu0 %vm859_vm8, %v14469_v56  ;;  %vm908_vm7 = vcmp.eq.s32.totalorder %v10590_v1, %v10046_v57  ;;  %vm923_vm8 = vcmp.eq.s32.totalorder %v10606_v47, %v10003_v48 }
 0x109   : > { %8366 = vmatprep.mubr.msk.f32.mxu1 %vm861_vm9, %v14469_v56  ;;  %vm925_vm9 = vcmp.eq.s32.totalorder %v10606_v47, %v10008_v50 }
 0x10b   : > { %8239 = vmatmul.mubr.msk.f32.gmra.mrb[60].mxu0 %vm858_vm10, %v14469_v56  ;;  %vm922_vm10 = vcmp.eq.s32.totalorder %v10606_v47, %v10040_v54 }
 0x10c   : > { %8367 = vmatmul.mubr.msk.f32.gmra.mrb[60].mxu1 %vm860_vm11, %v14469_v56  ;;  %8240 = vmatprep.mubr.msk.f32.mxu0 %vm875_vm12, %v14469_v56  ;;  %vm924_vm11 = vcmp.eq.s32.totalorder %v10606_v47, %v10046_v57  ;;  %vm939_vm12 = vcmp.eq.s32.totalorder %v10622_v10, %v10003_v48 }
 0x10d   : > { %8368 = vmatprep.mubr.msk.f32.mxu1 %vm877_vm13, %v14469_v56  ;;  %vm941_vm13 = vcmp.eq.s32.totalorder %v10622_v10, %v10008_v50 }
 0x10f   : > { %8241 = vmatmul.mubr.msk.f32.gmra.mrb[62].mxu0 %vm874_vm14, %v14469_v56  ;;  %vm938_vm14 = vcmp.eq.s32.totalorder %v10622_v10, %v10040_v54 }
 0x110   : > { %8369 = vmatmul.mubr.msk.f32.gmra.mrb[62].mxu1 %vm876_vm15, %v14469_v56  ;;  %8242 = vmatprep.mubr.msk.f32.mxu0 %vm891_vm0, %v14469_v56  ;;  %vm940_vm15 = vcmp.eq.s32.totalorder %v10622_v10, %v10046_v57  ;;  %vm955_vm0 = vcmp.eq.s32.totalorder %v10638_v14, %v10003_v48 }
 0x111   : > { %8370 = vmatprep.mubr.msk.f32.mxu1 %vm893_vm1, %v14469_v56  ;;  %vm957_vm1 = vcmp.eq.s32.totalorder %v10638_v14, %v10008_v50 }
 0x113   : > { %8243 = vmatmul.mubr.msk.f32.gmra.mrb[64].mxu0 %vm890_vm2, %v14469_v56  ;;  %vm954_vm2 = vcmp.eq.s32.totalorder %v10638_v14, %v10040_v54 }
 0x114   : > { %8371 = vmatmul.mubr.msk.f32.gmra.mrb[64].mxu1 %vm892_vm3, %v14469_v56  ;;  %8244 = vmatprep.mubr.msk.f32.mxu0 %vm907_vm4, %v14469_v56  ;;  %vm956_vm3 = vcmp.eq.s32.totalorder %v10638_v14, %v10046_v57  ;;  %vm971_vm4 = vcmp.eq.s32.totalorder %v10654_v19, %v10003_v48 }
 0x115   : > { %8372 = vmatprep.mubr.msk.f32.mxu1 %vm909_vm5, %v14469_v56  ;;  %vm973_vm5 = vcmp.eq.s32.totalorder %v10654_v19, %v10008_v50 }
 0x117   : > { %8245 = vmatmul.mubr.msk.f32.gmra.mrb[66].mxu0 %vm906_vm6, %v14469_v56  ;;  %vm970_vm6 = vcmp.eq.s32.totalorder %v10654_v19, %v10040_v54 }
 0x118   : > { %8373 = vmatmul.mubr.msk.f32.gmra.mrb[66].mxu1 %vm908_vm7, %v14469_v56  ;;  %8246 = vmatprep.mubr.msk.f32.mxu0 %vm923_vm8, %v14469_v56  ;;  %vm972_vm7 = vcmp.eq.s32.totalorder %v10654_v19, %v10046_v57  ;;  %vm987_vm8 = vcmp.eq.s32.totalorder %v10670_v27, %v10003_v48 }
 0x119   : > { %8374 = vmatprep.mubr.msk.f32.mxu1 %vm925_vm9, %v14469_v56  ;;  %vm989_vm9 = vcmp.eq.s32.totalorder %v10670_v27, %v10008_v50 }
 0x11b   : > { %8247 = vmatmul.mubr.msk.f32.gmra.mrb[68].mxu0 %vm922_vm10, %v14469_v56  ;;  %vm986_vm10 = vcmp.eq.s32.totalorder %v10670_v27, %v10040_v54 }
 0x11c   : > { %8375 = vmatmul.mubr.msk.f32.gmra.mrb[68].mxu1 %vm924_vm11, %v14469_v56  ;;  %8248 = vmatprep.mubr.msk.f32.mxu0 %vm939_vm12, %v14469_v56  ;;  %vm988_vm11 = vcmp.eq.s32.totalorder %v10670_v27, %v10046_v57  ;;  %vm1003_vm12 = vcmp.eq.s32.totalorder %v10686_v31, %v10003_v48 }
 0x11d   : > { %8376 = vmatprep.mubr.msk.f32.mxu1 %vm941_vm13, %v14469_v56  ;;  %vm1005_vm13 = vcmp.eq.s32.totalorder %v10686_v31, %v10008_v50 }
 0x11f   : > { %8249 = vmatmul.mubr.msk.f32.gmra.mrb[70].mxu0 %vm938_vm14, %v14469_v56  ;;  %vm1002_vm14 = vcmp.eq.s32.totalorder %v10686_v31, %v10040_v54 }
 0x120   : > { %8377 = vmatmul.mubr.msk.f32.gmra.mrb[70].mxu1 %vm940_vm15, %v14469_v56  ;;  %8250 = vmatprep.mubr.msk.f32.mxu0 %vm955_vm0, %v14469_v56  ;;  %vm1004_vm15 = vcmp.eq.s32.totalorder %v10686_v31, %v10046_v57  ;;  %vm1019_vm0 = vcmp.eq.s32.totalorder %v10702_v39, %v10003_v48 }
 0x121   : > { %8378 = vmatprep.mubr.msk.f32.mxu1 %vm957_vm1, %v14469_v56  ;;  %vm1021_vm1 = vcmp.eq.s32.totalorder %v10702_v39, %v10008_v50 }
 0x123   : > { %8251 = vmatmul.mubr.msk.f32.gmra.mrb[72].mxu0 %vm954_vm2, %v14469_v56  ;;  %vm1018_vm2 = vcmp.eq.s32.totalorder %v10702_v39, %v10040_v54 }
 0x124   : > { %8379 = vmatmul.mubr.msk.f32.gmra.mrb[72].mxu1 %vm956_vm3, %v14469_v56  ;;  %8252 = vmatprep.mubr.msk.f32.mxu0 %vm971_vm4, %v14469_v56  ;;  %vm1020_vm3 = vcmp.eq.s32.totalorder %v10702_v39, %v10046_v57  ;;  %vm1035_vm4 = vcmp.eq.s32.totalorder %v10718_v43, %v10003_v48 }
 0x125   : > { %8380 = vmatprep.mubr.msk.f32.mxu1 %vm973_vm5, %v14469_v56  ;;  %vm1037_vm5 = vcmp.eq.s32.totalorder %v10718_v43, %v10008_v50 }
 0x127   : > { %8253 = vmatmul.mubr.msk.f32.gmra.mrb[74].mxu0 %vm970_vm6, %v14469_v56  ;;  %vm1034_vm6 = vcmp.eq.s32.totalorder %v10718_v43, %v10040_v54 }
 0x128   : > { %8381 = vmatmul.mubr.msk.f32.gmra.mrb[74].mxu1 %vm972_vm7, %v14469_v56  ;;  %8254 = vmatprep.mubr.msk.f32.mxu0 %vm987_vm8, %v14469_v56  ;;  %vm1036_vm7 = vcmp.eq.s32.totalorder %v10718_v43, %v10046_v57  ;;  %vm1051_vm8 = vcmp.eq.s32.totalorder %v10734_v59, %v10003_v48 }
 0x129   : > { %8382 = vmatprep.mubr.msk.f32.mxu1 %vm989_vm9, %v14469_v56  ;;  %vm1053_vm9 = vcmp.eq.s32.totalorder %v10734_v59, %v10008_v50 }
 0x12b   : > { %8255 = vmatmul.mubr.msk.f32.gmra.mrb[76].mxu0 %vm986_vm10, %v14469_v56  ;;  %vm1050_vm10 = vcmp.eq.s32.totalorder %v10734_v59, %v10040_v54 }
 0x12c   : > { %8383 = vmatmul.mubr.msk.f32.gmra.mrb[76].mxu1 %vm988_vm11, %v14469_v56  ;;  %8256 = vmatprep.mubr.msk.f32.mxu0 %vm1003_vm12, %v14469_v56  ;;  %vm1052_vm11 = vcmp.eq.s32.totalorder %v10734_v59, %v10046_v57  ;;  %vm1067_vm12 = vcmp.eq.s32.totalorder %v10750_v5, %v10003_v48 }
 0x12d   : > { %8384 = vmatprep.mubr.msk.f32.mxu1 %vm1005_vm13, %v14469_v56  ;;  %vm1069_vm13 = vcmp.eq.s32.totalorder %v10750_v5, %v10008_v50 }
 0x12f   : > { %8257 = vmatmul.mubr.msk.f32.gmra.mrb[78].mxu0 %vm1002_vm14, %v14469_v56  ;;  %vm1066_vm14 = vcmp.eq.s32.totalorder %v10750_v5, %v10040_v54 }
 0x130   : > { %8385 = vmatmul.mubr.msk.f32.gmra.mrb[78].mxu1 %vm1004_vm15, %v14469_v56  ;;  %8258 = vmatprep.mubr.msk.f32.mxu0 %vm1019_vm0, %v14469_v56  ;;  %vm1068_vm15 = vcmp.eq.s32.totalorder %v10750_v5, %v10046_v57  ;;  %vm1083_vm0 = vcmp.eq.s32.totalorder %v10766_v15, %v10003_v48 }
 0x131   : > { %8386 = vmatprep.mubr.msk.f32.mxu1 %vm1021_vm1, %v14469_v56  ;;  %vm1085_vm1 = vcmp.eq.s32.totalorder %v10766_v15, %v10008_v50 }
 0x133   : > { %8259 = vmatmul.mubr.msk.f32.gmra.mrb[80].mxu0 %vm1018_vm2, %v14469_v56  ;;  %vm1082_vm2 = vcmp.eq.s32.totalorder %v10766_v15, %v10040_v54 }
 0x134   : > { %8387 = vmatmul.mubr.msk.f32.gmra.mrb[80].mxu1 %vm1020_vm3, %v14469_v56  ;;  %8260 = vmatprep.mubr.msk.f32.mxu0 %vm1035_vm4, %v14469_v56  ;;  %vm1084_vm3 = vcmp.eq.s32.totalorder %v10766_v15, %v10046_v57  ;;  %vm1099_vm4 = vcmp.eq.s32.totalorder %v10782_v29, %v10003_v48 }
 0x135   : > { %8388 = vmatprep.mubr.msk.f32.mxu1 %vm1037_vm5, %v14469_v56  ;;  %vm1101_vm5 = vcmp.eq.s32.totalorder %v10782_v29, %v10008_v50 }
 0x137   : > { %8261 = vmatmul.mubr.msk.f32.gmra.mrb[82].mxu0 %vm1034_vm6, %v14469_v56  ;;  %vm1098_vm6 = vcmp.eq.s32.totalorder %v10782_v29, %v10040_v54 }
 0x138   : > { %8389 = vmatmul.mubr.msk.f32.gmra.mrb[82].mxu1 %vm1036_vm7, %v14469_v56  ;;  %8262 = vmatprep.mubr.msk.f32.mxu0 %vm1051_vm8, %v14469_v56  ;;  %vm1100_vm7 = vcmp.eq.s32.totalorder %v10782_v29, %v10046_v57  ;;  %vm1115_vm8 = vcmp.eq.s32.totalorder %v10798_v42, %v10003_v48  ;;  %v3749_v29 = vld [vmem:[#allocation5 + $0x538] sm:$0xff] }
 0x139   : > { %8390 = vmatprep.mubr.msk.f32.mxu1 %vm1053_vm9, %v14469_v56  ;;  %vm1117_vm9 = vcmp.eq.s32.totalorder %v10798_v42, %v10008_v50 }
 0x13b   : > { %8263 = vmatmul.mubr.msk.f32.gmra.mrb[84].mxu0 %vm1050_vm10, %v14469_v56  ;;  %vm1114_vm10 = vcmp.eq.s32.totalorder %v10798_v42, %v10040_v54 }
 0x13c   : > { %8391 = vmatmul.mubr.msk.f32.gmra.mrb[84].mxu1 %vm1052_vm11, %v14469_v56  ;;  %8264 = vmatprep.mubr.msk.f32.mxu0 %vm1067_vm12, %v14469_v56  ;;  %vm1116_vm11 = vcmp.eq.s32.totalorder %v10798_v42, %v10046_v57  ;;  %vm1131_vm12 = vcmp.eq.s32.totalorder %v10814_v2, %v10003_v48  ;;  %v3747_v42 = vld [vmem:[#allocation5 + $0x528] sm:$0xff] }
 0x13d   : > { %8392 = vmatprep.mubr.msk.f32.mxu1 %vm1069_vm13, %v14469_v56  ;;  %vm1133_vm13 = vcmp.eq.s32.totalorder %v10814_v2, %v10008_v50 }
 0x13f   : > { %8265 = vmatmul.mubr.msk.f32.gmra.mrb[86].mxu0 %vm1066_vm14, %v14469_v56  ;;  %vm1130_vm14 = vcmp.eq.s32.totalorder %v10814_v2, %v10040_v54 }
 0x140   : > { %8393 = vmatmul.mubr.msk.f32.gmra.mrb[86].mxu1 %vm1068_vm15, %v14469_v56  ;;  %8266 = vmatprep.mubr.msk.f32.mxu0 %vm1083_vm0, %v14469_v56  ;;  %vm1132_vm15 = vcmp.eq.s32.totalorder %v10814_v2, %v10046_v57  ;;  %vm1147_vm0 = vcmp.eq.s32.totalorder %v10830_v21, %v10003_v48 }
 0x141   : > { %8394 = vmatprep.mubr.msk.f32.mxu1 %vm1085_vm1, %v14469_v56  ;;  %vm1149_vm1 = vcmp.eq.s32.totalorder %v10830_v21, %v10008_v50 }
 0x143   : > { %8267 = vmatmul.mubr.msk.f32.gmra.mrb[88].mxu0 %vm1082_vm2, %v14469_v56  ;;  %vm1146_vm2 = vcmp.eq.s32.totalorder %v10830_v21, %v10040_v54 }
 0x144   : > { %8395 = vmatmul.mubr.msk.f32.gmra.mrb[88].mxu1 %vm1084_vm3, %v14469_v56  ;;  %8268 = vmatprep.mubr.msk.f32.mxu0 %vm1099_vm4, %v14469_v56  ;;  %vm1148_vm3 = vcmp.eq.s32.totalorder %v10830_v21, %v10046_v57  ;;  %vm1163_vm4 = vcmp.eq.s32.totalorder %v10846_v51, %v10003_v48 }
 0x145   : > { %8396 = vmatprep.mubr.msk.f32.mxu1 %vm1101_vm5, %v14469_v56  ;;  %vm1165_vm5 = vcmp.eq.s32.totalorder %v10846_v51, %v10008_v50 }
 0x147   : > { %8269 = vmatmul.mubr.msk.f32.gmra.mrb[90].mxu0 %vm1098_vm6, %v14469_v56  ;;  %vm1162_vm6 = vcmp.eq.s32.totalorder %v10846_v51, %v10040_v54 }
 0x148   : > { %8397 = vmatmul.mubr.msk.f32.gmra.mrb[90].mxu1 %vm1100_vm7, %v14469_v56  ;;  %8270 = vmatprep.mubr.msk.f32.mxu0 %vm1115_vm8, %v14469_v56  ;;  %vm1164_vm7 = vcmp.eq.s32.totalorder %v10846_v51, %v10046_v57  ;;  %vm1179_vm8 = vcmp.eq.s32.totalorder %v10862_v34, %v10003_v48 }
 0x149   : > { %8398 = vmatprep.mubr.msk.f32.mxu1 %vm1117_vm9, %v14469_v56  ;;  %vm1181_vm9 = vcmp.eq.s32.totalorder %v10862_v34, %v10008_v50 }
 0x14b   : > { %8271 = vmatmul.mubr.msk.f32.gmra.mrb[92].mxu0 %vm1114_vm10, %v14469_v56  ;;  %vm1178_vm10 = vcmp.eq.s32.totalorder %v10862_v34, %v10040_v54 }
 0x14c   : > { %8399 = vmatmul.mubr.msk.f32.gmra.mrb[92].mxu1 %vm1116_vm11, %v14469_v56  ;;  %8272 = vmatprep.mubr.msk.f32.mxu0 %vm1131_vm12, %v14469_v56  ;;  %vm1180_vm11 = vcmp.eq.s32.totalorder %v10862_v34, %v10046_v57  ;;  %vm1195_vm12 = vcmp.eq.s32.totalorder %v10878_v13, %v10003_v48 }
 0x14d   : > { %8400 = vmatprep.mubr.msk.f32.mxu1 %vm1133_vm13, %v14469_v56  ;;  %vm1197_vm13 = vcmp.eq.s32.totalorder %v10878_v13, %v10008_v50 }
 0x14f   : > { %8273 = vmatmul.mubr.msk.f32.gmra.mrb[94].mxu0 %vm1130_vm14, %v14469_v56  ;;  %vm1194_vm14 = vcmp.eq.s32.totalorder %v10878_v13, %v10040_v54 }
 0x150   : > { %8401 = vmatmul.mubr.msk.f32.gmra.mrb[94].mxu1 %vm1132_vm15, %v14469_v56  ;;  %8274 = vmatprep.mubr.msk.f32.mxu0 %vm1147_vm0, %v14469_v56  ;;  %vm1196_vm15 = vcmp.eq.s32.totalorder %v10878_v13, %v10046_v57  ;;  %vm1211_vm0 = vcmp.eq.s32.totalorder %v10894_v46, %v10003_v48 }
 0x151   : > { %8402 = vmatprep.mubr.msk.f32.mxu1 %vm1149_vm1, %v14469_v56  ;;  %vm1213_vm1 = vcmp.eq.s32.totalorder %v10894_v46, %v10008_v50 }
 0x153   : > { %8275 = vmatmul.mubr.msk.f32.gmra.mrb[96].mxu0 %vm1146_vm2, %v14469_v56  ;;  %vm1210_vm2 = vcmp.eq.s32.totalorder %v10894_v46, %v10040_v54 }
 0x154   : > { %8403 = vmatmul.mubr.msk.f32.gmra.mrb[96].mxu1 %vm1148_vm3, %v14469_v56  ;;  %8276 = vmatprep.mubr.msk.f32.mxu0 %vm1163_vm4, %v14469_v56  ;;  %vm1212_vm3 = vcmp.eq.s32.totalorder %v10894_v46, %v10046_v57  ;;  %vm1227_vm4 = vcmp.eq.s32.totalorder %v10910_v41, %v10003_v48  ;;  %v238_v46 = vadd.s32 448, %v9983_v30 }
 0x155   : > { %8404 = vmatprep.mubr.msk.f32.mxu1 %vm1165_vm5, %v14469_v56  ;;  %vm1229_vm5 = vcmp.eq.s32.totalorder %v10910_v41, %v10008_v50 }
 0x156   : > { %v10960_v0 = vadd.s32 %v9988_v37, %v238_v46 }
 0x157   : > { %8277 = vmatmul.mubr.msk.f32.gmra.mrb[98].mxu0 %vm1162_vm6, %v14469_v56  ;;  %vm1226_vm6 = vcmp.eq.s32.totalorder %v10910_v41, %v10040_v54 }
 0x158   : > { %8405 = vmatmul.mubr.msk.f32.gmra.mrb[98].mxu1 %vm1164_vm7, %v14469_v56  ;;  %8278 = vmatprep.mubr.msk.f32.mxu0 %vm1179_vm8, %v14469_v56  ;;  %vm1228_vm7 = vcmp.eq.s32.totalorder %v10910_v41, %v10046_v57  ;;  %vm1243_vm8 = vcmp.eq.s32.totalorder %v10926_v40, %v10003_v48  ;;  %14611 = vst [vmem:[#allocation46_spill] sm:$0xff] %v10960_v0 }
 0x159   : > { %8406 = vmatprep.mubr.msk.f32.mxu1 %vm1181_vm9, %v14469_v56  ;;  %vm1245_vm9 = vcmp.eq.s32.totalorder %v10926_v40, %v10008_v50 }
 0x15b   : > { %8279 = vmatmul.mubr.msk.f32.gmra.mrb[100].mxu0 %vm1178_vm10, %v14469_v56  ;;  %vm1242_vm10 = vcmp.eq.s32.totalorder %v10926_v40, %v10040_v54 }
 0x15c   : > { %8407 = vmatmul.mubr.msk.f32.gmra.mrb[100].mxu1 %vm1180_vm11, %v14469_v56  ;;  %8280 = vmatprep.mubr.msk.f32.mxu0 %vm1195_vm12, %v14469_v56  ;;  %vm1244_vm11 = vcmp.eq.s32.totalorder %v10926_v40, %v10046_v57  ;;  %vm1259_vm12 = vcmp.eq.s32.totalorder %v10942_v38, %v10003_v48 }
 0x15d   : > { %8408 = vmatprep.mubr.msk.f32.mxu1 %vm1197_vm13, %v14469_v56  ;;  %vm1261_vm13 = vcmp.eq.s32.totalorder %v10942_v38, %v10008_v50 }
 0x15f   : > { %8281 = vmatmul.mubr.msk.f32.gmra.mrb[102].mxu0 %vm1194_vm14, %v14469_v56  ;;  %vm1258_vm14 = vcmp.eq.s32.totalorder %v10942_v38, %v10040_v54 }
 0x160   : > { %8409 = vmatmul.mubr.msk.f32.gmra.mrb[102].mxu1 %vm1196_vm15, %v14469_v56  ;;  %8282 = vmatprep.mubr.msk.f32.mxu0 %vm1211_vm0, %v14469_v56  ;;  %vm1260_vm15 = vcmp.eq.s32.totalorder %v10942_v38, %v10046_v57  ;;  %vm1275_vm0 = vcmp.eq.s32.totalorder %v10960_v0, %v10003_v48 }
 0x161   : > { %8410 = vmatprep.mubr.msk.f32.mxu1 %vm1213_vm1, %v14469_v56  ;;  %vm1277_vm1 = vcmp.eq.s32.totalorder %v10960_v0, %v10008_v50 }
 0x163   : > { %8283 = vmatmul.mubr.msk.f32.gmra.mrb[104].mxu0 %vm1210_vm2, %v14469_v56  ;;  %vm1274_vm2 = vcmp.eq.s32.totalorder %v10960_v0, %v10040_v54 }
 0x164   : > { %8411 = vmatmul.mubr.msk.f32.gmra.mrb[104].mxu1 %vm1212_vm3, %v14469_v56  ;;  %8284 = vmatprep.mubr.msk.f32.mxu0 %vm1227_vm4, %v14469_v56  ;;  %vm1276_vm3 = vcmp.eq.s32.totalorder %v10960_v0, %v10046_v57 }
 0x165   : > { %8412 = vmatprep.mubr.msk.f32.mxu1 %vm1229_vm5, %v14469_v56 }
 0x166   : > { %v3904_v13 = vpop.f32.mrb[0].mxu0 }
 0x167   : > { %v3906_v34 = vpop.f32.mrb[1].mxu0  ;;  %8285 = vmatmul.mubr.msk.f32.gmra.mrb[106].mxu0 %vm1226_vm6, %v14469_v56  ;;  %v4289_v51 = vpop.f32.mrb[0].mxu1 }
 0x168   : > { %v10948_v21 = vadd.f32 %v4289_v51, %v3904_v13  ;;  %8413 = vmatmul.mubr.msk.f32.gmra.mrb[106].mxu1 %vm1228_vm7, %v14469_v56  ;;  %v4291_v41 = vpop.f32.mrb[1].mxu1  ;;  %8286 = vmatprep.mubr.msk.f32.mxu0 %vm1243_vm8, %v14469_v56  ;;  %v239_v51 = vadd.s32 456, %v9983_v30 }
 0x169   : > { %8414 = vmatprep.mubr.msk.f32.mxu1 %vm1245_vm9, %v14469_v56 }
 0x16a   : > { %14610 = vst [vmem:[#allocation45_spill] sm:$0xff] %v10948_v21  ;;  %v3909_v34 = vpop.f32.mrb[2].mxu0  ;;  %v10978_v46 = vadd.s32 %v9988_v37, %v239_v51 }
 0x16b   : > { %v3911_v13 = vpop.f32.mrb[3].mxu0  ;;  %8287 = vmatmul.mubr.msk.f32.gmra.mrb[108].mxu0 %vm1242_vm10, %v14469_v56  ;;  %v4294_v41 = vpop.f32.mrb[2].mxu1 }
 0x16c   : > { %v10966_v21 = vadd.f32 %v4294_v41, %v3909_v34  ;;  %8415 = vmatmul.mubr.msk.f32.gmra.mrb[108].mxu1 %vm1244_vm11, %v14469_v56  ;;  %v4296_v40 = vpop.f32.mrb[3].mxu1  ;;  %8288 = vmatprep.mubr.msk.f32.mxu0 %vm1259_vm12, %v14469_v56  ;;  %14613 = vst [vmem:[#allocation48_spill] sm:$0xff] %v10978_v46  ;;  %v240_v34 = vadd.s32 464, %v9983_v30  ;;  %vm1291_vm4 = vcmp.eq.s32.totalorder %v10978_v46, %v10003_v48 }
 0x16d   : > { %8416 = vmatprep.mubr.msk.f32.mxu1 %vm1261_vm13, %v14469_v56  ;;  %vm1293_vm5 = vcmp.eq.s32.totalorder %v10978_v46, %v10008_v50  ;;  %vm1290_vm6 = vcmp.eq.s32.totalorder %v10978_v46, %v10040_v54  ;;  %vm1292_vm7 = vcmp.eq.s32.totalorder %v10978_v46, %v10046_v57 }
 0x16e   : > { %14612 = vst [vmem:[#allocation47_spill] sm:$0xff] %v10966_v21  ;;  %v3914_v13 = vpop.f32.mrb[4].mxu0  ;;  %v10996_v51 = vadd.s32 %v9988_v37, %v240_v34 }
 0x16f   : > { %v3916_v40 = vpop.f32.mrb[5].mxu0  ;;  %8289 = vmatmul.mubr.msk.f32.gmra.mrb[110].mxu0 %vm1258_vm14, %v14469_v56  ;;  %v4299_v41 = vpop.f32.mrb[4].mxu1 }
 0x170   : > { %v10984_v21 = vadd.f32 %v4299_v41, %v3914_v13  ;;  %8417 = vmatmul.mubr.msk.f32.gmra.mrb[110].mxu1 %vm1260_vm15, %v14469_v56  ;;  %v4301_v38 = vpop.f32.mrb[5].mxu1  ;;  %8290 = vmatprep.mubr.msk.f32.mxu0 %vm1275_vm0, %v14469_v56  ;;  %14615 = vst [vmem:[#allocation50_spill] sm:$0xff] %v10996_v51  ;;  %v241_v13 = vadd.s32 472, %v9983_v30  ;;  %vm1307_vm8 = vcmp.eq.s32.totalorder %v10996_v51, %v10003_v48 }
 0x171   : > { %8418 = vmatprep.mubr.msk.f32.mxu1 %vm1277_vm1, %v14469_v56  ;;  %vm1309_vm9 = vcmp.eq.s32.totalorder %v10996_v51, %v10008_v50  ;;  %vm1306_vm10 = vcmp.eq.s32.totalorder %v10996_v51, %v10040_v54  ;;  %vm1308_vm11 = vcmp.eq.s32.totalorder %v10996_v51, %v10046_v57 }
 0x172   : > { %14614 = vst [vmem:[#allocation49_spill] sm:$0xff] %v10984_v21  ;;  %v3919_v40 = vpop.f32.mrb[6].mxu0  ;;  %v11014_v34 = vadd.s32 %v9988_v37, %v241_v13 }
 0x173   : > { %v3921_v38 = vpop.f32.mrb[7].mxu0  ;;  %8291 = vmatmul.mubr.msk.f32.gmra.mrb[112].mxu0 %vm1274_vm2, %v14469_v56  ;;  %v4304_v41 = vpop.f32.mrb[6].mxu1 }
 0x174   : > { %v11002_v21 = vadd.f32 %v4304_v41, %v3919_v40  ;;  %8419 = vmatmul.mubr.msk.f32.gmra.mrb[112].mxu1 %vm1276_vm3, %v14469_v56  ;;  %v4306_v0 = vpop.f32.mrb[7].mxu1  ;;  %8292 = vmatprep.mubr.msk.f32.mxu0 %vm1291_vm4, %v14469_v56  ;;  %14617 = vst [vmem:[#allocation52_spill] sm:$0xff] %v11014_v34  ;;  %v242_v40 = vadd.s32 480, %v9983_v30  ;;  %vm1323_vm12 = vcmp.eq.s32.totalorder %v11014_v34, %v10003_v48 }
 0x175   : > { %8420 = vmatprep.mubr.msk.f32.mxu1 %vm1293_vm5, %v14469_v56  ;;  %vm1325_vm13 = vcmp.eq.s32.totalorder %v11014_v34, %v10008_v50  ;;  %vm1322_vm14 = vcmp.eq.s32.totalorder %v11014_v34, %v10040_v54  ;;  %vm1324_vm15 = vcmp.eq.s32.totalorder %v11014_v34, %v10046_v57 }
 0x176   : > { %14616 = vst [vmem:[#allocation51_spill] sm:$0xff] %v11002_v21  ;;  %v3924_v38 = vpop.f32.mrb[8].mxu0  ;;  %v11032_v13 = vadd.s32 %v9988_v37, %v242_v40 }
 0x177   : > { %v3926_v0 = vpop.f32.mrb[9].mxu0  ;;  %8293 = vmatmul.mubr.msk.f32.gmra.mrb[114].mxu0 %vm1290_vm6, %v14469_v56  ;;  %v4309_v41 = vpop.f32.mrb[8].mxu1 }
 0x178   : > { %v11020_v21 = vadd.f32 %v4309_v41, %v3924_v38  ;;  %8421 = vmatmul.mubr.msk.f32.gmra.mrb[114].mxu1 %vm1292_vm7, %v14469_v56  ;;  %v4311_v46 = vpop.f32.mrb[9].mxu1  ;;  %8294 = vmatprep.mubr.msk.f32.mxu0 %vm1307_vm8, %v14469_v56  ;;  %14619 = vst [vmem:[#allocation54_spill] sm:$0xff] %v11032_v13  ;;  %v243_v38 = vadd.s32 488, %v9983_v30  ;;  %vm1339_vm0 = vcmp.eq.s32.totalorder %v11032_v13, %v10003_v48 }
 0x179   : > { %8422 = vmatprep.mubr.msk.f32.mxu1 %vm1309_vm9, %v14469_v56  ;;  %vm1341_vm1 = vcmp.eq.s32.totalorder %v11032_v13, %v10008_v50  ;;  %vm1338_vm2 = vcmp.eq.s32.totalorder %v11032_v13, %v10040_v54  ;;  %vm1340_vm3 = vcmp.eq.s32.totalorder %v11032_v13, %v10046_v57 }
 0x17a   : > { %14618 = vst [vmem:[#allocation53_spill] sm:$0xff] %v11020_v21  ;;  %v3929_v0 = vpop.f32.mrb[10].mxu0  ;;  %v11050_v40 = vadd.s32 %v9988_v37, %v243_v38 }
 0x17b   : > { %v3931_v46 = vpop.f32.mrb[11].mxu0  ;;  %8295 = vmatmul.mubr.msk.f32.gmra.mrb[116].mxu0 %vm1306_vm10, %v14469_v56  ;;  %v4314_v41 = vpop.f32.mrb[10].mxu1 }
 0x17c   : > { %v11038_v21 = vadd.f32 %v4314_v41, %v3929_v0  ;;  %8423 = vmatmul.mubr.msk.f32.gmra.mrb[116].mxu1 %vm1308_vm11, %v14469_v56  ;;  %v4316_v51 = vpop.f32.mrb[11].mxu1  ;;  %8296 = vmatprep.mubr.msk.f32.mxu0 %vm1323_vm12, %v14469_v56  ;;  %14621 = vst [vmem:[#allocation56_spill] sm:$0xff] %v11050_v40  ;;  %v244_v0 = vadd.s32 496, %v9983_v30  ;;  %vm1355_vm4 = vcmp.eq.s32.totalorder %v11050_v40, %v10003_v48 }
 0x17d   : > { %8424 = vmatprep.mubr.msk.f32.mxu1 %vm1325_vm13, %v14469_v56  ;;  %vm1357_vm5 = vcmp.eq.s32.totalorder %v11050_v40, %v10008_v50  ;;  %vm1354_vm6 = vcmp.eq.s32.totalorder %v11050_v40, %v10040_v54  ;;  %vm1356_vm7 = vcmp.eq.s32.totalorder %v11050_v40, %v10046_v57 }
 0x17e   : > { %14620 = vst [vmem:[#allocation55_spill] sm:$0xff] %v11038_v21  ;;  %v3934_v46 = vpop.f32.mrb[12].mxu0  ;;  %v11068_v38 = vadd.s32 %v9988_v37, %v244_v0 }
 0x17f   : > { %v3936_v51 = vpop.f32.mrb[13].mxu0  ;;  %8297 = vmatmul.mubr.msk.f32.gmra.mrb[118].mxu0 %vm1322_vm14, %v14469_v56  ;;  %v4319_v41 = vpop.f32.mrb[12].mxu1 }
 0x180   : > { %v11056_v21 = vadd.f32 %v4319_v41, %v3934_v46  ;;  %8425 = vmatmul.mubr.msk.f32.gmra.mrb[118].mxu1 %vm1324_vm15, %v14469_v56  ;;  %v4321_v34 = vpop.f32.mrb[13].mxu1  ;;  %8298 = vmatprep.mubr.msk.f32.mxu0 %vm1339_vm0, %v14469_v56  ;;  %14623 = vst [vmem:[#allocation58_spill] sm:$0xff] %v11068_v38  ;;  %v245_v46 = vadd.s32 504, %v9983_v30  ;;  %vm1371_vm8 = vcmp.eq.s32.totalorder %v11068_v38, %v10003_v48 }
 0x181   : > { %8426 = vmatprep.mubr.msk.f32.mxu1 %vm1341_vm1, %v14469_v56  ;;  %vm1373_vm9 = vcmp.eq.s32.totalorder %v11068_v38, %v10008_v50  ;;  %vm1370_vm10 = vcmp.eq.s32.totalorder %v11068_v38, %v10040_v54  ;;  %vm1372_vm11 = vcmp.eq.s32.totalorder %v11068_v38, %v10046_v57 }
 0x182   : > { %14622 = vst [vmem:[#allocation57_spill] sm:$0xff] %v11056_v21  ;;  %v3939_v51 = vpop.f32.mrb[14].mxu0  ;;  %v11086_v0 = vadd.s32 %v9988_v37, %v245_v46 }
 0x183   : > { %v3941_v34 = vpop.f32.mrb[15].mxu0  ;;  %8299 = vmatmul.mubr.msk.f32.gmra.mrb[120].mxu0 %vm1338_vm2, %v14469_v56  ;;  %v4324_v41 = vpop.f32.mrb[14].mxu1 }
 0x184   : > { %v11074_v21 = vadd.f32 %v4324_v41, %v3939_v51  ;;  %8427 = vmatmul.mubr.msk.f32.gmra.mrb[120].mxu1 %vm1340_vm3, %v14469_v56  ;;  %v4326_v13 = vpop.f32.mrb[15].mxu1  ;;  %8300 = vmatprep.mubr.msk.f32.mxu0 %vm1355_vm4, %v14469_v56  ;;  %14625 = vst [vmem:[#allocation60_spill] sm:$0xff] %v11086_v0  ;;  %v14457_v51 = vsub.s32 5, %v9983_v30  ;;  %vm1387_vm12 = vcmp.eq.s32.totalorder %v11086_v0, %v10003_v48 }
 0x185   : > { %8428 = vmatprep.mubr.msk.f32.mxu1 %vm1357_vm5, %v14469_v56  ;;  %v14458_v13 = vsub.s32 7, %v9983_v30  ;;  %vm1389_vm13 = vcmp.eq.s32.totalorder %v11086_v0, %v10008_v50  ;;  %vm1386_vm14 = vcmp.eq.s32.totalorder %v11086_v0, %v10040_v54  ;;  %v14628_v50 = vsub.s32 4, %v9983_v30  ;;  %v3742_v54 = vld [vmem:[#allocation5 + $0x500] sm:$0xff] }
 0x186   : > { %14624 = vst [vmem:[#allocation59_spill] sm:$0xff] %v11074_v21  ;;  %v3944_v34 = vpop.f32.mrb[16].mxu0  ;;  %vm1388_vm15 = vcmp.eq.s32.totalorder %v11086_v0, %v10046_v57 }
 0x187   : > { %v3946_v41 = vpop.f32.mrb[17].mxu0  ;;  %8301 = vmatmul.mubr.msk.f32.gmra.mrb[122].mxu0 %vm1354_vm6, %v14469_v56  ;;  %v4329_v21 = vpop.f32.mrb[16].mxu1 }
 0x188   : > { %v11093_v2 = vadd.f32 %v4329_v21, %v3944_v34  ;;  %8429 = vmatmul.mubr.msk.f32.gmra.mrb[122].mxu1 %vm1356_vm7, %v14469_v56  ;;  %v4331_v40 = vpop.f32.mrb[17].mxu1  ;;  %8302 = vmatprep.mubr.msk.f32.mxu0 %vm1371_vm8, %v14469_v56  ;;  %v9675_v21 = vld [vmem:[#allocation2] sm:$0xff] }
 0x189   : > { %8430 = vmatprep.mubr.msk.f32.mxu1 %vm1373_vm9, %v14469_v56  ;;  %v11107_v46 = vrot.slane %v9675_v21, %v14457_v51  ;;  %v11114_v41 = vrot.slane %v9675_v21, %v14458_v13  ;;  %v11125_v40 = vrot.slane %v9675_v21, %v14628_v50  ;;  %v3743_v50 = vld [vmem:[#allocation5 + $0x508] sm:$0xff] }
 0x18a   : > { %14626 = vst [vmem:[#allocation61_spill] sm:$0xff] %v11093_v2  ;;  %v3949_v34 = vpop.f32.mrb[18].mxu0 }
 0x18b   : > { %v3951_v37 = vpop.f32.mrb[19].mxu0  ;;  %8303 = vmatmul.mubr.msk.f32.gmra.mrb[124].mxu0 %vm1370_vm10, %v14469_v56  ;;  %v4334_v2 = vpop.f32.mrb[18].mxu1  ;;  %vm383_vm0 = vcmp.eq.s32.totalorder %v9995_v44, %v11107_v46  ;;  %vm385_vm1 = vcmp.eq.s32.totalorder %v9995_v44, %v11114_v41  ;;  %vm382_vm2 = vcmp.eq.s32.totalorder %v9995_v44, %v11125_v40  ;;  %vm399_vm4 = vcmp.eq.s32.totalorder %v10051_v61, %v11107_v46 }
 0x18c   : > { %v11117_v48 = vadd.f32 %v4334_v2, %v3949_v34  ;;  %8431 = vmatmul.mubr.msk.f32.gmra.mrb[124].mxu1 %vm1372_vm11, %v14469_v56  ;;  %v4336_v51 = vpop.f32.mrb[19].mxu1  ;;  %8304 = vmatprep.mubr.msk.f32.mxu0 %vm1387_vm12, %v14469_v56  ;;  %v3710_v2 = vld [vmem:[#allocation5 + $0x400] sm:$0xff]  ;;  %v3711_v37 = vld [vmem:[#allocation5 + $0x408] sm:$0xff]  ;;  %vm401_vm5 = vcmp.eq.s32.totalorder %v10051_v61, %v11114_v41  ;;  %vm398_vm6 = vcmp.eq.s32.totalorder %v10051_v61, %v11125_v40 }
 0x18d   : > { %8432 = vmatprep.mubr.msk.f32.mxu1 %vm1389_vm13, %v14469_v56  ;;  %v14629_v51 = vsub.s32 6, %v9983_v30  ;;  %vm415_vm8 = vcmp.eq.s32.totalorder %v10060_v3, %v11107_v46  ;;  %vm417_vm9 = vcmp.eq.s32.totalorder %v10060_v3, %v11114_v41  ;;  %vm414_vm10 = vcmp.eq.s32.totalorder %v10060_v3, %v11125_v40 }
 0x18e   : > { %14627 = vst [vmem:[#allocation62_spill] sm:$0xff] %v11117_v48  ;;  %v3954_v13 = vpop.f32.mrb[20].mxu0  ;;  %vm431_vm12 = vcmp.eq.s32.totalorder %v10072_v8, %v11107_v46  ;;  %vm433_vm13 = vcmp.eq.s32.totalorder %v10072_v8, %v11114_v41 }
 0x18f   : > { %v11134_v34 = vrot.slane %v9675_v21, %v14629_v51  ;;  %v3956_v48 = vpop.f32.mrb[21].mxu0  ;;  %8305 = vmatmul.mubr.msk.f32.gmra.mrb[126].mxu0 %vm1386_vm14, %v14469_v56  ;;  %v4339_v38 = vpop.f32.mrb[20].mxu1  ;;  %v9401_v21 = vpack.c.bf16 %v3711_v37, %v3710_v2  ;;  %v3744_v2 = vld [vmem:[#allocation5 + $0x510] sm:$0xff]  ;;  %v3745_v37 = vld [vmem:[#allocation5 + $0x518] sm:$0xff]  ;;  %vm430_vm14 = vcmp.eq.s32.totalorder %v10072_v8, %v11125_v40 }
 0x190   : > { %v11139_v57 = vadd.f32 %v4339_v38, %v3954_v13  ;;  %8433 = vmatmul.mubr.msk.f32.gmra.mrb[126].mxu1 %vm1388_vm15, %v14469_v56  ;;  %v4341_v0 = vpop.f32.mrb[21].mxu1  ;;  %8434 = vmatprep.mubr.msk.f32.mxu0 %vm383_vm0, %v14469_v56  ;;  %v9449_v48 = vpack.c.bf16 %v3743_v50, %v3742_v54  ;;  %v3712_v38 = vld [vmem:[#allocation5 + $0x410] sm:$0xff]  ;;  %v3713_v13 = vld [vmem:[#allocation5 + $0x418] sm:$0xff]  ;;  %vm447_vm0 = vcmp.eq.s32.totalorder %v10091_v16, %v11107_v46 }
 0x191   : > { %8562 = vmatprep.mubr.msk.f32.mxu1 %vm385_vm1, %v14469_v56  ;;  %vm384_vm3 = vcmp.eq.s32.totalorder %v9995_v44, %v11134_v34  ;;  %vm400_vm7 = vcmp.eq.s32.totalorder %v10051_v61, %v11134_v34  ;;  %v9404_v54 = vpack.c.bf16 %v3713_v13, %v3712_v38  ;;  %vm416_vm11 = vcmp.eq.s32.totalorder %v10060_v3, %v11134_v34  ;;  %v3748_v61 = vld [vmem:[#allocation5 + $0x530] sm:$0xff] }
 0x192   : > { %14630 = vst [vmem:[#allocation63_spill] sm:$0xff] %v11139_v57  ;;  %v3959_v51 = vpop.f32.mrb[22].mxu0  ;;  %vm432_vm15 = vcmp.eq.s32.totalorder %v10072_v8, %v11134_v34  ;;  %vm449_vm1 = vcmp.eq.s32.totalorder %v10091_v16, %v11114_v41 }
 0x193   : > { %v3961_v57 = vpop.f32.mrb[23].mxu0  ;;  %v4344_v0 = vpop.f32.mrb[22].mxu1  ;;  %8435 = vmatmul.mubr.msk.f32.vlgmr.msra.gmra.mrb[128].mxu0 %vm382_vm2, %v14469_v56  ;;  %vm446_vm2 = vcmp.eq.s32.totalorder %v10091_v16, %v11125_v40 }
 0x194   : > { %v11153_v30 = vadd.f32 %v4344_v0, %v3959_v51  ;;  %9402 = vmatpush1.bf16.msra.mxu0 %v9401_v21  ;;  %v4346_v44 = vpop.f32.mrb[23].mxu1  ;;  %8563 = vmatmul.mubr.msk.f32.vlgmr.msra.gmra.mrb[128].mxu1 %vm384_vm3, %v14469_v56  ;;  %v9452_v57 = vpack.c.bf16 %v3745_v37, %v3744_v2  ;;  %v3714_v21 = vld [vmem:[#allocation5 + $0x420] sm:$0xff]  ;;  %v3715_v51 = vld [vmem:[#allocation5 + $0x428] sm:$0xff]  ;;  %vm448_vm3 = vcmp.eq.s32.totalorder %v10091_v16, %v11134_v34 }
 0x195   : > { %8436 = vmatprep.mubr.msk.f32.mxu0 %vm399_vm4, %v14469_v56  ;;  %9450 = vmatpush1.bf16.msra.mxu1 %v9449_v48  ;;  %v14632_v44 = vmov 0.0|0.0   ;;  %v9407_v2 = vpack.c.bf16 %v3715_v51, %v3714_v21  ;;  %v3719_v51 = vld [vmem:[#allocation5 + $0x448] sm:$0xff]  ;;  %vm463_vm4 = vcmp.eq.s32.totalorder %v10109_v24, %v11107_v46 }
 0x196   : > { %14631 = vst [vmem:[#allocation64_spill] sm:$0xff] %v11153_v30  ;;  %v3964_v50 = vpop.f32.mrb[24].mxu0  ;;  %8564 = vmatprep.mubr.msk.f32.mxu1 %vm401_vm5, %v14469_v56  ;;  %9403 = vmatprep.subr.bf16.mxu0 %v14632_v44  ;;  %v3746_v30 = vld [vmem:[#allocation5 + $0x520] sm:$0xff]  ;;  %vm465_vm5 = vcmp.eq.s32.totalorder %v10109_v24, %v11114_v41 }
 0x197   : > { %v3966_v0 = vpop.f32.mrb[25].mxu0  ;;  %v4349_v48 = vpop.f32.mrb[24].mxu1  ;;  %8437 = vmatmul.mubr.msk.f32.gmra.mrb[130].mxu0 %vm398_vm6, %v14469_v56  ;;  %9451 = vmatprep.subr.bf16.mxu1 %v14632_v44  ;;  %vm462_vm6 = vcmp.eq.s32.totalorder %v10109_v24, %v11125_v40 }
 0x198   : > { %v11169_v38 = vadd.f32 %v4349_v48, %v3964_v50  ;;  %v4351_v13 = vpop.f32.mrb[25].mxu1  ;;  %8565 = vmatmul.mubr.msk.f32.gmra.mrb[130].mxu1 %vm400_vm7, %v14469_v56  ;;  %8438 = vmatprep.mubr.msk.f32.mxu0 %vm415_vm8, %v14469_v56  ;;  %v9455_v50 = vpack.c.bf16 %v3747_v42, %v3746_v30  ;;  %v3716_v0 = vld [vmem:[#allocation5 + $0x430] sm:$0xff]  ;;  %v3717_v48 = vld [vmem:[#allocation5 + $0x438] sm:$0xff]  ;;  %v9458_v42 = vpack.c.bf16 %v3749_v29, %v3748_v61 }
 0x199   : > { %8566 = vmatprep.mubr.msk.f32.mxu1 %vm417_vm9, %v14469_v56  ;;  %9405 = vmatpush1.bf16.msra.mxu0 %v9404_v54  ;;  %v9410_v30 = vpack.c.bf16 %v3717_v48, %v3716_v0  ;;  %v3720_v48 = vld [vmem:[#allocation5 + $0x450] sm:$0xff]  ;;  %vm464_vm7 = vcmp.eq.s32.totalorder %v10109_v24, %v11134_v34  ;;  %vm479_vm8 = vcmp.eq.s32.totalorder %v10127_v33, %v11107_v46 }
 0x19a   : > { %14633 = vst [vmem:[#allocation65_spill] sm:$0xff] %v11169_v38  ;;  %v3969_v37 = vpop.f32.mrb[26].mxu0  ;;  %9453 = vmatpush1.bf16.msra.mxu1 %v9452_v57  ;;  %9406 = vmatprep.subr.bf16.mxu0 %v14632_v44  ;;  %v14634_v38 = vmov 1.0   ;;  %v3718_v57 = vld [vmem:[#allocation5 + $0x440] sm:$0xff]  ;;  %vm481_vm9 = vcmp.eq.s32.totalorder %v10127_v33, %v11114_v41 }
 0x19b   : > { %v3971_v13 = vpop.f32.mrb[27].mxu0  ;;  %v4354_v56 = vpop.f32.mrb[26].mxu1  ;;  %8439 = vmatmul.mubr.msk.f32.gmra.mrb[132].mxu0 %vm414_vm10, %v14634_v38  ;;  %9454 = vmatprep.subr.bf16.mxu1 %v14632_v44  ;;  %v9413_v61 = vpack.c.bf16 %v3719_v51, %v3718_v57  ;;  %vm478_vm10 = vcmp.eq.s32.totalorder %v10127_v33, %v11125_v40 }
 0x19c   : > { %v11194_v54 = vadd.f32 %v4354_v56, %v3969_v37  ;;  %v4356_v21 = vpop.f32.mrb[27].mxu1  ;;  %8567 = vmatmul.mubr.msk.f32.gmra.mrb[132].mxu1 %vm416_vm11, %v14634_v38  ;;  %8440 = vmatprep.mubr.msk.f32.mxu0 %vm431_vm12, %v14634_v38  ;;  %vm480_vm11 = vcmp.eq.s32.totalorder %v10127_v33, %v11134_v34  ;;  %vm495_vm12 = vcmp.eq.s32.totalorder %v10145_v49, %v11107_v46 }
 0x19d   : > { %8568 = vmatprep.mubr.msk.f32.mxu1 %vm433_vm13, %v14634_v38  ;;  %9408 = vmatpush1.bf16.msra.mxu0 %v9407_v2  ;;  %v3750_v21 = vld [vmem:[#allocation5 + $0x540] sm:$0xff]  ;;  %vm497_vm13 = vcmp.eq.s32.totalorder %v10145_v49, %v11114_v41 }
 0x19e   : > { %14635 = vst [vmem:[#allocation66_spill] sm:$0xff] %v11194_v54  ;;  %v3974_v56 = vpop.f32.mrb[28].mxu0  ;;  %9456 = vmatpush1.bf16.msra.mxu1 %v9455_v50  ;;  %9409 = vmatprep.subr.bf16.mxu0 %v14632_v44  ;;  %v3751_v54 = vld [vmem:[#allocation5 + $0x548] sm:$0xff] }
 0x19f   : > { %v3976_v37 = vpop.f32.mrb[29].mxu0  ;;  %v4359_v13 = vpop.f32.mrb[28].mxu1  ;;  %8441 = vmatmul.mubr.msk.f32.gmra.mrb[134].mxu0 %vm430_vm14, %v14634_v38  ;;  %9457 = vmatprep.subr.bf16.mxu1 %v14632_v44  ;;  %v9461_v50 = vpack.c.bf16 %v3751_v54, %v3750_v21  ;;  %v3722_v21 = vld [vmem:[#allocation5 + $0x460] sm:$0xff]  ;;  %vm494_vm14 = vcmp.eq.s32.totalorder %v10145_v49, %v11125_v40 }
 0x1a0   : > { %v11219_v2 = vadd.f32 %v4359_v13, %v3974_v56  ;;  %v4361_v0 = vpop.f32.mrb[29].mxu1  ;;  %8569 = vmatmul.mubr.msk.f32.gmra.mrb[134].mxu1 %vm432_vm15, %v14634_v38  ;;  %8442 = vmatprep.mubr.msk.f32.mxu0 %vm447_vm0, %v14634_v38  ;;  %v3721_v56 = vld [vmem:[#allocation5 + $0x458] sm:$0xff]  ;;  %vm496_vm15 = vcmp.eq.s32.totalorder %v10145_v49, %v11134_v34  ;;  %vm511_vm0 = vcmp.eq.s32.totalorder %v10163_v62, %v11107_v46 }
 0x1a1   : > { %8570 = vmatprep.mubr.msk.f32.mxu1 %vm449_vm1, %v14634_v38  ;;  %9411 = vmatpush1.bf16.msra.mxu0 %v9410_v30  ;;  %v3752_v0 = vld [vmem:[#allocation5 + $0x550] sm:$0xff]  ;;  %v9416_v54 = vpack.c.bf16 %v3721_v56, %v3720_v48  ;;  %vm513_vm1 = vcmp.eq.s32.totalorder %v10163_v62, %v11114_v41 }
 0x1a2   : > { %14636 = vst [vmem:[#allocation67_spill] sm:$0xff] %v11219_v2  ;;  %v3979_v29 = vpop.f32.mrb[30].mxu0  ;;  %9459 = vmatpush1.bf16.msra.mxu1 %v9458_v42  ;;  %9412 = vmatprep.subr.bf16.mxu0 %v14632_v44  ;;  %v3753_v2 = vld [vmem:[#allocation5 + $0x558] sm:$0xff] }
 0x1a3   : > { %v3981_v37 = vpop.f32.mrb[31].mxu0  ;;  %v4364_v13 = vpop.f32.mrb[30].mxu1  ;;  %8443 = vmatmul.mubr.msk.f32.gmra.mrb[136].mxu0 %vm446_vm2, %v14634_v38  ;;  %9460 = vmatprep.subr.bf16.mxu1 %v14632_v44  ;;  %v9464_v51 = vpack.c.bf16 %v3753_v2, %v3752_v0  ;;  %v3724_v0 = vld [vmem:[#allocation5 + $0x470] sm:$0xff]  ;;  %vm510_vm2 = vcmp.eq.s32.totalorder %v10163_v62, %v11125_v40 }
 0x1a4   : > { %v11244_v30 = vadd.f32 %v4364_v13, %v3979_v29  ;;  %v4366_v57 = vpop.f32.mrb[31].mxu1  ;;  %8571 = vmatmul.mubr.msk.f32.gmra.mrb[136].mxu1 %vm448_vm3, %v14634_v38  ;;  %8444 = vmatprep.mubr.msk.f32.mxu0 %vm463_vm4, %v14634_v38  ;;  %v3723_v29 = vld [vmem:[#allocation5 + $0x468] sm:$0xff]  ;;  %vm512_vm3 = vcmp.eq.s32.totalorder %v10163_v62, %v11134_v34  ;;  %vm527_vm4 = vcmp.eq.s32.totalorder %v10181_v7, %v11107_v46 }
 0x1a5   : > { %8572 = vmatprep.mubr.msk.f32.mxu1 %vm465_vm5, %v14634_v38  ;;  %9414 = vmatpush1.bf16.msra.mxu0 %v9413_v61  ;;  %v3754_v57 = vld [vmem:[#allocation5 + $0x560] sm:$0xff]  ;;  %v9419_v2 = vpack.c.bf16 %v3723_v29, %v3722_v21  ;;  %vm529_vm5 = vcmp.eq.s32.totalorder %v10181_v7, %v11114_v41 }
 0x1a6   : > { %14637 = vst [vmem:[#allocation68_spill] sm:$0xff] %v11244_v30  ;;  %v3984_v42 = vpop.f32.mrb[32].mxu0  ;;  %9462 = vmatpush1.bf16.msra.mxu1 %v9461_v50  ;;  %9415 = vmatprep.subr.bf16.mxu0 %v14632_v44  ;;  %v3755_v30 = vld [vmem:[#allocation5 + $0x568] sm:$0xff] }
 0x1a7   : > { %v3986_v37 = vpop.f32.mrb[33].mxu0  ;;  %v4369_v13 = vpop.f32.mrb[32].mxu1  ;;  %8445 = vmatmul.mubr.msk.f32.gmra.mrb[138].mxu0 %vm462_vm6, %v14634_v38  ;;  %9463 = vmatprep.subr.bf16.mxu1 %v14632_v44  ;;  %v9467_v56 = vpack.c.bf16 %v3755_v30, %v3754_v57  ;;  %v3726_v57 = vld [vmem:[#allocation5 + $0x480] sm:$0xff]  ;;  %vm526_vm6 = vcmp.eq.s32.totalorder %v10181_v7, %v11125_v40 }
 0x1a8   : > { %v11269_v61 = vadd.f32 %v4369_v13, %v3984_v42  ;;  %v4371_v48 = vpop.f32.mrb[33].mxu1  ;;  %8573 = vmatmul.mubr.msk.f32.gmra.mrb[138].mxu1 %vm464_vm7, %v14634_v38  ;;  %8446 = vmatprep.mubr.msk.f32.mxu0 %vm479_vm8, %v14634_v38  ;;  %v3725_v42 = vld [vmem:[#allocation5 + $0x478] sm:$0xff]  ;;  %vm528_vm7 = vcmp.eq.s32.totalorder %v10181_v7, %v11134_v34  ;;  %vm543_vm8 = vcmp.eq.s32.totalorder %v10199_v17, %v11107_v46 }
 0x1a9   : > { %8574 = vmatprep.mubr.msk.f32.mxu1 %vm481_vm9, %v14634_v38  ;;  %9417 = vmatpush1.bf16.msra.mxu0 %v9416_v54  ;;  %v3756_v48 = vld [vmem:[#allocation5 + $0x570] sm:$0xff]  ;;  %v9422_v30 = vpack.c.bf16 %v3725_v42, %v3724_v0  ;;  %vm545_vm9 = vcmp.eq.s32.totalorder %v10199_v17, %v11114_v41 }
 0x1aa   : > { %14638 = vst [vmem:[#allocation69_spill] sm:$0xff] %v11269_v61  ;;  %v3989_v50 = vpop.f32.mrb[34].mxu0  ;;  %9465 = vmatpush1.bf16.msra.mxu1 %v9464_v51  ;;  %9418 = vmatprep.subr.bf16.mxu0 %v14632_v44  ;;  %v3757_v61 = vld [vmem:[#allocation5 + $0x578] sm:$0xff] }
 0x1ab   : > { %v3991_v37 = vpop.f32.mrb[35].mxu0  ;;  %v4374_v13 = vpop.f32.mrb[34].mxu1  ;;  %8447 = vmatmul.mubr.msk.f32.gmra.mrb[140].mxu0 %vm478_vm10, %v14634_v38  ;;  %9466 = vmatprep.subr.bf16.mxu1 %v14632_v44  ;;  %v9470_v29 = vpack.c.bf16 %v3757_v61, %v3756_v48  ;;  %v3728_v48 = vld [vmem:[#allocation5 + $0x490] sm:$0xff]  ;;  %vm542_vm10 = vcmp.eq.s32.totalorder %v10199_v17, %v11125_v40 }
 0x1ac   : > { %v11294_v54 = vadd.f32 %v4374_v13, %v3989_v50  ;;  %v4376_v21 = vpop.f32.mrb[35].mxu1  ;;  %8575 = vmatmul.mubr.msk.f32.gmra.mrb[140].mxu1 %vm480_vm11, %v14634_v38  ;;  %8448 = vmatprep.mubr.msk.f32.mxu0 %vm495_vm12, %v14634_v38  ;;  %v3727_v50 = vld [vmem:[#allocation5 + $0x488] sm:$0xff]  ;;  %vm544_vm11 = vcmp.eq.s32.totalorder %v10199_v17, %v11134_v34  ;;  %vm559_vm12 = vcmp.eq.s32.totalorder %v10217_v26, %v11107_v46 }
 0x1ad   : > { %8576 = vmatprep.mubr.msk.f32.mxu1 %vm497_vm13, %v14634_v38  ;;  %9420 = vmatpush1.bf16.msra.mxu0 %v9419_v2  ;;  %v3758_v21 = vld [vmem:[#allocation5 + $0x580] sm:$0xff]  ;;  %v9425_v61 = vpack.c.bf16 %v3727_v50, %v3726_v57  ;;  %vm561_vm13 = vcmp.eq.s32.totalorder %v10217_v26, %v11114_v41 }
 0x1ae   : > { %14639 = vst [vmem:[#allocation70_spill] sm:$0xff] %v11294_v54  ;;  %v3994_v51 = vpop.f32.mrb[36].mxu0  ;;  %9468 = vmatpush1.bf16.msra.mxu1 %v9467_v56  ;;  %9421 = vmatprep.subr.bf16.mxu0 %v14632_v44  ;;  %v3759_v54 = vld [vmem:[#allocation5 + $0x588] sm:$0xff] }
 0x1af   : > { %v3996_v37 = vpop.f32.mrb[37].mxu0  ;;  %v4379_v13 = vpop.f32.mrb[36].mxu1  ;;  %8449 = vmatmul.mubr.msk.f32.gmra.mrb[142].mxu0 %vm494_vm14, %v14634_v38  ;;  %9469 = vmatprep.subr.bf16.mxu1 %v14632_v44  ;;  %v9473_v42 = vpack.c.bf16 %v3759_v54, %v3758_v21  ;;  %v3730_v21 = vld [vmem:[#allocation5 + $0x4a0] sm:$0xff]  ;;  %vm558_vm14 = vcmp.eq.s32.totalorder %v10217_v26, %v11125_v40 }
 0x1b0   : > { %v11319_v2 = vadd.f32 %v4379_v13, %v3994_v51  ;;  %v4381_v0 = vpop.f32.mrb[37].mxu1  ;;  %8577 = vmatmul.mubr.msk.f32.gmra.mrb[142].mxu1 %vm496_vm15, %v14634_v38  ;;  %8450 = vmatprep.mubr.msk.f32.mxu0 %vm511_vm0, %v14634_v38  ;;  %v3729_v51 = vld [vmem:[#allocation5 + $0x498] sm:$0xff]  ;;  %vm560_vm15 = vcmp.eq.s32.totalorder %v10217_v26, %v11134_v34  ;;  %vm575_vm0 = vcmp.eq.s32.totalorder %v10235_v36, %v11107_v46 }
 0x1b1   : > { %8578 = vmatprep.mubr.msk.f32.mxu1 %vm513_vm1, %v14634_v38  ;;  %9423 = vmatpush1.bf16.msra.mxu0 %v9422_v30  ;;  %v3760_v0 = vld [vmem:[#allocation5 + $0x590] sm:$0xff]  ;;  %v9428_v54 = vpack.c.bf16 %v3729_v51, %v3728_v48  ;;  %vm577_vm1 = vcmp.eq.s32.totalorder %v10235_v36, %v11114_v41 }
 0x1b2   : > { %14640 = vst [vmem:[#allocation71_spill] sm:$0xff] %v11319_v2  ;;  %v3999_v56 = vpop.f32.mrb[38].mxu0  ;;  %9471 = vmatpush1.bf16.msra.mxu1 %v9470_v29  ;;  %9424 = vmatprep.subr.bf16.mxu0 %v14632_v44  ;;  %v3761_v2 = vld [vmem:[#allocation5 + $0x598] sm:$0xff] }
 0x1b3   : > { %v4001_v37 = vpop.f32.mrb[39].mxu0  ;;  %v4384_v13 = vpop.f32.mrb[38].mxu1  ;;  %8451 = vmatmul.mubr.msk.f32.gmra.mrb[144].mxu0 %vm510_vm2, %v14634_v38  ;;  %9472 = vmatprep.subr.bf16.mxu1 %v14632_v44  ;;  %v9476_v50 = vpack.c.bf16 %v3761_v2, %v3760_v0  ;;  %vm574_vm2 = vcmp.eq.s32.totalorder %v10235_v36, %v11125_v40 }
 0x1b4   : > { %v11344_v30 = vadd.f32 %v4384_v13, %v3999_v56  ;;  %v4386_v57 = vpop.f32.mrb[39].mxu1  ;;  %8579 = vmatmul.mubr.msk.f32.gmra.mrb[144].mxu1 %vm512_vm3, %v14634_v38  ;;  %8452 = vmatprep.mubr.msk.f32.mxu0 %vm527_vm4, %v14634_v38  ;;  %v3731_v56 = vld [vmem:[#allocation5 + $0x4a8] sm:$0xff]  ;;  %vm576_vm3 = vcmp.eq.s32.totalorder %v10235_v36, %v11134_v34  ;;  %vm591_vm4 = vcmp.eq.s32.totalorder %v10258_v45, %v11107_v46 }
 0x1b5   : > { %8580 = vmatprep.mubr.msk.f32.mxu1 %vm529_vm5, %v14634_v38  ;;  %9426 = vmatpush1.bf16.msra.mxu0 %v9425_v61  ;;  %v3762_v57 = vld [vmem:[#allocation5 + $0x5a0] sm:$0xff]  ;;  %v9431_v2 = vpack.c.bf16 %v3731_v56, %v3730_v21  ;;  %vm593_vm5 = vcmp.eq.s32.totalorder %v10258_v45, %v11114_v41 }
 0x1b6   : > { %14641 = vst [vmem:[#allocation72_spill] sm:$0xff] %v11344_v30  ;;  %v4004_v29 = vpop.f32.mrb[40].mxu0  ;;  %9474 = vmatpush1.bf16.msra.mxu1 %v9473_v42  ;;  %9427 = vmatprep.subr.bf16.mxu0 %v14632_v44  ;;  %v3763_v30 = vld [vmem:[#allocation5 + $0x5a8] sm:$0xff] }
 0x1b7   : > { %v4006_v37 = vpop.f32.mrb[41].mxu0  ;;  %v4389_v13 = vpop.f32.mrb[40].mxu1  ;;  %8453 = vmatmul.mubr.msk.f32.gmra.mrb[146].mxu0 %vm526_vm6, %v14634_v38  ;;  %9475 = vmatprep.subr.bf16.mxu1 %v14632_v44  ;;  %v9479_v51 = vpack.c.bf16 %v3763_v30, %v3762_v57  ;;  %vm590_vm6 = vcmp.eq.s32.totalorder %v10258_v45, %v11125_v40 }
 0x1b8   : > { %v11369_v61 = vadd.f32 %v4389_v13, %v4004_v29  ;;  %v4391_v48 = vpop.f32.mrb[41].mxu1  ;;  %8581 = vmatmul.mubr.msk.f32.gmra.mrb[146].mxu1 %vm528_vm7, %v14634_v38  ;;  %8454 = vmatprep.mubr.msk.f32.mxu0 %vm543_vm8, %v14634_v38  ;;  %vm592_vm7 = vcmp.eq.s32.totalorder %v10258_v45, %v11134_v34  ;;  %vm607_vm8 = vcmp.eq.s32.totalorder %v10276_v52, %v11107_v46 }
 0x1b9   : > { %8582 = vmatprep.mubr.msk.f32.mxu1 %vm545_vm9, %v14634_v38  ;;  %9429 = vmatpush1.bf16.msra.mxu0 %v9428_v54  ;;  %vm609_vm9 = vcmp.eq.s32.totalorder %v10276_v52, %v11114_v41 }
 0x1ba   : > { %v4009_v42 = vpop.f32.mrb[42].mxu0  ;;  %9477 = vmatpush1.bf16.msra.mxu1 %v9476_v50  ;;  %9430 = vmatprep.subr.bf16.mxu0 %v14632_v44 }
 0x1bb   : > { %v4011_v0 = vpop.f32.mrb[43].mxu0  ;;  %v4394_v29 = vpop.f32.mrb[42].mxu1  ;;  %8455 = vmatmul.mubr.msk.f32.gmra.mrb[148].mxu0 %vm542_vm10, %v14634_v38  ;;  %9478 = vmatprep.subr.bf16.mxu1 %v14632_v44  ;;  %vm606_vm10 = vcmp.eq.s32.totalorder %v10276_v52, %v11125_v40 }
 0x1bc   : > { %v11394_v37 = vadd.f32 %v4394_v29, %v4009_v42  ;;  %v4396_v13 = vpop.f32.mrb[43].mxu1  ;;  %8583 = vmatmul.mubr.msk.f32.gmra.mrb[148].mxu1 %vm544_vm11, %v14634_v38  ;;  %8456 = vmatprep.mubr.msk.f32.mxu0 %vm559_vm12, %v14634_v38  ;;  %v3732_v0 = vld [vmem:[#allocation5 + $0x4b0] sm:$0xff]  ;;  %v3733_v29 = vld [vmem:[#allocation5 + $0x4b8] sm:$0xff]  ;;  %vm608_vm11 = vcmp.eq.s32.totalorder %v10276_v52, %v11134_v34  ;;  %vm623_vm12 = vcmp.eq.s32.totalorder %v10293_v63, %v11107_v46 }
 0x1bd   : > { %8584 = vmatprep.mubr.msk.f32.mxu1 %vm561_vm13, %v14634_v38  ;;  %9432 = vmatpush1.bf16.msra.mxu0 %v9431_v2  ;;  %v9434_v13 = vpack.c.bf16 %v3733_v29, %v3732_v0  ;;  %vm625_vm13 = vcmp.eq.s32.totalorder %v10293_v63, %v11114_v41 }
 0x1be   : > { %v4014_v30 = vpop.f32.mrb[44].mxu0  ;;  %9480 = vmatpush1.bf16.msra.mxu1 %v9479_v51  ;;  %9433 = vmatprep.subr.bf16.mxu0 %v14632_v44 }
 0x1bf   : > { %v4016_v54 = vpop.f32.mrb[45].mxu0  ;;  %v4399_v50 = vpop.f32.mrb[44].mxu1  ;;  %8457 = vmatmul.mubr.msk.f32.gmra.mrb[150].mxu0 %vm558_vm14, %v14634_v38  ;;  %9481 = vmatprep.subr.bf16.mxu1 %v14632_v44  ;;  %vm622_vm14 = vcmp.eq.s32.totalorder %v10293_v63, %v11125_v40 }
 0x1c0   : > { %v11410_v21 = vadd.f32 %v4399_v50, %v4014_v30  ;;  %v4401_v56 = vpop.f32.mrb[45].mxu1  ;;  %8585 = vmatmul.mubr.msk.f32.gmra.mrb[150].mxu1 %vm560_vm15, %v14634_v38  ;;  %8458 = vmatprep.mubr.msk.f32.mxu0 %vm575_vm0, %v14634_v38  ;;  %v3764_v54 = vld [vmem:[#allocation5 + $0x5b0] sm:$0xff]  ;;  %v3765_v50 = vld [vmem:[#allocation5 + $0x5b8] sm:$0xff]  ;;  %vm624_vm15 = vcmp.eq.s32.totalorder %v10293_v63, %v11134_v34  ;;  %vm639_vm0 = vcmp.eq.s32.totalorder %v10308_v4, %v11107_v46 }
 0x1c1   : > { %8586 = vmatprep.mubr.msk.f32.mxu1 %vm577_vm1, %v14634_v38  ;;  %9435 = vmatpush1.bf16.msra.mxu0 %v9434_v13  ;;  %vm641_vm1 = vcmp.eq.s32.totalorder %v10308_v4, %v11114_v41 }
 0x1c2   : > { %v4019_v57 = vpop.f32.mrb[46].mxu0  ;;  %9436 = vmatprep.subr.bf16.mxu0 %v14632_v44 }
 0x1c3   : > { %v4021_v48 = vpop.f32.mrb[47].mxu0  ;;  %v4404_v2 = vpop.f32.mrb[46].mxu1  ;;  %8459 = vmatmul.mubr.msk.f32.gmra.mrb[152].mxu0 %vm574_vm2, %v14634_v38  ;;  %vm638_vm2 = vcmp.eq.s32.totalorder %v10308_v4, %v11125_v40 }
 0x1c4   : > { %v11424_v42 = vadd.f32 %v4404_v2, %v4019_v57  ;;  %v4406_v51 = vpop.f32.mrb[47].mxu1  ;;  %8587 = vmatmul.mubr.msk.f32.gmra.mrb[152].mxu1 %vm576_vm3, %v14634_v38  ;;  %8460 = vmatprep.mubr.msk.f32.mxu0 %vm591_vm4, %v14634_v38  ;;  %v9482_v48 = vpack.c.bf16 %v3765_v50, %v3764_v54  ;;  %vm640_vm3 = vcmp.eq.s32.totalorder %v10308_v4, %v11134_v34 }
 0x1c5   : > { %8588 = vmatprep.mubr.msk.f32.mxu1 %vm593_vm5, %v14634_v38  ;;  %vm655_vm4 = vcmp.eq.s32.totalorder %v10325_v6, %v11107_v46  ;;  %vm657_vm5 = vcmp.eq.s32.totalorder %v10325_v6, %v11114_v41 }
 0x1c6   : > { %v4024_v30 = vpop.f32.mrb[48].mxu0  ;;  %9483 = vmatpush1.bf16.msra.mxu1 %v9482_v48 }
 0x1c7   : > { %v4026_v56 = vpop.f32.mrb[49].mxu0  ;;  %v4409_v57 = vpop.f32.mrb[48].mxu1  ;;  %8461 = vmatmul.mubr.msk.f32.gmra.mrb[154].mxu0 %vm590_vm6, %v14634_v38  ;;  %9484 = vmatprep.subr.bf16.mxu1 %v14632_v44  ;;  %vm654_vm6 = vcmp.eq.s32.totalorder %v10325_v6, %v11125_v40 }
 0x1c8   : > { %v11438_v2 = vadd.f32 %v4409_v57, %v4024_v30  ;;  %v4411_v51 = vpop.f32.mrb[49].mxu1  ;;  %8589 = vmatmul.mubr.msk.f32.gmra.mrb[154].mxu1 %vm592_vm7, %v14634_v38  ;;  %8462 = vmatprep.mubr.msk.f32.mxu0 %vm607_vm8, %v14634_v38  ;;  %vm656_vm7 = vcmp.eq.s32.totalorder %v10325_v6, %v11134_v34  ;;  %vm671_vm8 = vcmp.eq.s32.totalorder %v10343_v11, %v11107_v46 }
 0x1c9   : > { %8590 = vmatprep.mubr.msk.f32.mxu1 %vm609_vm9, %v14634_v38  ;;  %vm673_vm9 = vcmp.eq.s32.totalorder %v10343_v11, %v11114_v41 }
 0x1ca   : > { %v4029_v0 = vpop.f32.mrb[50].mxu0 }
 0x1cb   : > { %v4031_v29 = vpop.f32.mrb[51].mxu0  ;;  %v4414_v30 = vpop.f32.mrb[50].mxu1  ;;  %8463 = vmatmul.mubr.msk.f32.gmra.mrb[156].mxu0 %vm606_vm10, %v14634_v38  ;;  %vm670_vm10 = vcmp.eq.s32.totalorder %v10343_v11, %v11125_v40 }
 0x1cc   : > { %v11454_v54 = vadd.f32 %v4414_v30, %v4029_v0  ;;  %v4416_v50 = vpop.f32.mrb[51].mxu1  ;;  %8591 = vmatmul.mubr.msk.f32.gmra.mrb[156].mxu1 %vm608_vm11, %v14634_v38  ;;  %8464 = vmatprep.mubr.msk.f32.mxu0 %vm623_vm12, %v14634_v38  ;;  %vm672_vm11 = vcmp.eq.s32.totalorder %v10343_v11, %v11134_v34  ;;  %vm687_vm12 = vcmp.eq.s32.totalorder %v10353_v12, %v11107_v46 }
 0x1cd   : > { %8592 = vmatprep.mubr.msk.f32.mxu1 %vm625_vm13, %v14634_v38  ;;  %vm689_vm13 = vcmp.eq.s32.totalorder %v10353_v12, %v11114_v41 }
 0x1ce   : > { %14642 = vst [vmem:[#allocation73_spill] sm:$0xff] %v11454_v54  ;;  %v4034_v13 = vpop.f32.mrb[52].mxu0 }
 0x1cf   : > { %v4036_v56 = vpop.f32.mrb[53].mxu0  ;;  %v4419_v57 = vpop.f32.mrb[52].mxu1  ;;  %8465 = vmatmul.mubr.msk.f32.gmra.mrb[158].mxu0 %vm622_vm14, %v14634_v38  ;;  %vm686_vm14 = vcmp.eq.s32.totalorder %v10353_v12, %v11125_v40 }
 0x1d0   : > { %v11468_v48 = vadd.f32 %v4419_v57, %v4034_v13  ;;  %v4421_v51 = vpop.f32.mrb[53].mxu1  ;;  %8593 = vmatmul.mubr.msk.f32.gmra.mrb[158].mxu1 %vm624_vm15, %v14634_v38  ;;  %8466 = vmatprep.mubr.msk.f32.mxu0 %vm639_vm0, %v14634_v38  ;;  %v3734_v56 = vld [vmem:[#allocation5 + $0x4c0] sm:$0xff]  ;;  %v3735_v57 = vld [vmem:[#allocation5 + $0x4c8] sm:$0xff]  ;;  %vm688_vm15 = vcmp.eq.s32.totalorder %v10353_v12, %v11134_v34  ;;  %vm703_vm0 = vcmp.eq.s32.totalorder %v10374_v22, %v11107_v46 }
 0x1d1   : > { %8594 = vmatprep.mubr.msk.f32.mxu1 %vm641_vm1, %v14634_v38  ;;  %v9437_v51 = vpack.c.bf16 %v3735_v57, %v3734_v56  ;;  %vm705_vm1 = vcmp.eq.s32.totalorder %v10374_v22, %v11114_v41 }
 0x1d2   : > { %14643 = vst [vmem:[#allocation74_spill] sm:$0xff] %v11468_v48  ;;  %v4039_v0 = vpop.f32.mrb[54].mxu0 }
 0x1d3   : > { %v4041_v29 = vpop.f32.mrb[55].mxu0  ;;  %v4424_v30 = vpop.f32.mrb[54].mxu1  ;;  %8467 = vmatmul.mubr.msk.f32.gmra.mrb[160].mxu0 %vm638_vm2, %v14634_v38  ;;  %vm702_vm2 = vcmp.eq.s32.totalorder %v10374_v22, %v11125_v40 }
 0x1d4   : > { %v11482_v50 = vadd.f32 %v4424_v30, %v4039_v0  ;;  %v4426_v13 = vpop.f32.mrb[55].mxu1  ;;  %8595 = vmatmul.mubr.msk.f32.gmra.mrb[160].mxu1 %vm640_vm3, %v14634_v38  ;;  %8468 = vmatprep.mubr.msk.f32.mxu0 %vm655_vm4, %v14634_v38  ;;  %v3766_v29 = vld [vmem:[#allocation5 + $0x5c0] sm:$0xff]  ;;  %v3767_v30 = vld [vmem:[#allocation5 + $0x5c8] sm:$0xff]  ;;  %vm704_vm3 = vcmp.eq.s32.totalorder %v10374_v22, %v11134_v34  ;;  %vm719_vm4 = vcmp.eq.s32.totalorder %v10391_v25, %v11107_v46 }
 0x1d5   : > { %8596 = vmatprep.mubr.msk.f32.mxu1 %vm657_vm5, %v14634_v38  ;;  %v9485_v48 = vpack.c.bf16 %v3767_v30, %v3766_v29  ;;  %9438 = vmatpush1.bf16.msra.mxu0 %v9437_v51  ;;  %vm721_vm5 = vcmp.eq.s32.totalorder %v10391_v25, %v11114_v41 }
 0x1d6   : > { %14644 = vst [vmem:[#allocation75_spill] sm:$0xff] %v11482_v50  ;;  %v4044_v0 = vpop.f32.mrb[56].mxu0  ;;  %9439 = vmatprep.subr.bf16.mxu0 %v14632_v44 }
 0x1d7   : > { %v4046_v13 = vpop.f32.mrb[57].mxu0  ;;  %v4429_v50 = vpop.f32.mrb[56].mxu1  ;;  %8469 = vmatmul.mubr.msk.f32.gmra.mrb[162].mxu0 %vm654_vm6, %v14634_v38  ;;  %9486 = vmatpush1.bf16.msra.mxu1 %v9485_v48  ;;  %vm718_vm6 = vcmp.eq.s32.totalorder %v10391_v25, %v11125_v40 }
 0x1d8   : > { %v11496_v4 = vadd.f32 %v4429_v50, %v4044_v0  ;;  %v4431_v54 = vpop.f32.mrb[57].mxu1  ;;  %8597 = vmatmul.mubr.msk.f32.gmra.mrb[162].mxu1 %vm656_vm7, %v14634_v38  ;;  %8470 = vmatprep.mubr.msk.f32.mxu0 %vm671_vm8, %v14634_v38  ;;  %vm720_vm7 = vcmp.eq.s32.totalorder %v10391_v25, %v11134_v34  ;;  %vm735_vm8 = vcmp.eq.s32.totalorder %v10408_v28, %v11107_v46 }
 0x1d9   : > { %8598 = vmatprep.mubr.msk.f32.mxu1 %vm673_vm9, %v14634_v38  ;;  %9487 = vmatprep.subr.bf16.mxu1 %v14632_v44  ;;  %vm737_vm9 = vcmp.eq.s32.totalorder %v10408_v28, %v11114_v41 }
 0x1da   : > { %v4049_v56 = vpop.f32.mrb[58].mxu0 }
 0x1db   : > { %v4051_v54 = vpop.f32.mrb[59].mxu0  ;;  %v4434_v50 = vpop.f32.mrb[58].mxu1  ;;  %8471 = vmatmul.mubr.msk.f32.gmra.mrb[164].mxu0 %vm670_vm10, %v14634_v38  ;;  %vm734_vm10 = vcmp.eq.s32.totalorder %v10408_v28, %v11125_v40 }
 0x1dc   : > { %v11512_v57 = vadd.f32 %v4434_v50, %v4049_v56  ;;  %v4436_v0 = vpop.f32.mrb[59].mxu1  ;;  %8599 = vmatmul.mubr.msk.f32.gmra.mrb[164].mxu1 %vm672_vm11, %v14634_v38  ;;  %8472 = vmatprep.mubr.msk.f32.mxu0 %vm687_vm12, %v14634_v38  ;;  %vm736_vm11 = vcmp.eq.s32.totalorder %v10408_v28, %v11134_v34  ;;  %vm751_vm12 = vcmp.eq.s32.totalorder %v10425_v35, %v11107_v46 }
 0x1dd   : > { %8600 = vmatprep.mubr.msk.f32.mxu1 %vm689_vm13, %v14634_v38  ;;  %vm753_vm13 = vcmp.eq.s32.totalorder %v10425_v35, %v11114_v41 }
 0x1de   : > { %v4054_v48 = vpop.f32.mrb[60].mxu0 }
 0x1df   : > { %v4056_v51 = vpop.f32.mrb[61].mxu0  ;;  %v4439_v29 = vpop.f32.mrb[60].mxu1  ;;  %8473 = vmatmul.mubr.msk.f32.gmra.mrb[166].mxu0 %vm686_vm14, %v14634_v38  ;;  %vm750_vm14 = vcmp.eq.s32.totalorder %v10425_v35, %v11125_v40 }
 0x1e0   : > { %v11526_v30 = vadd.f32 %v4439_v29, %v4054_v48  ;;  %v4441_v13 = vpop.f32.mrb[61].mxu1  ;;  %8601 = vmatmul.mubr.msk.f32.gmra.mrb[166].mxu1 %vm688_vm15, %v14634_v38  ;;  %8474 = vmatprep.mubr.msk.f32.mxu0 %vm703_vm0, %v14634_v38  ;;  %v3736_v51 = vld [vmem:[#allocation5 + $0x4d0] sm:$0xff]  ;;  %v3737_v29 = vld [vmem:[#allocation5 + $0x4d8] sm:$0xff]  ;;  %vm752_vm15 = vcmp.eq.s32.totalorder %v10425_v35, %v11134_v34  ;;  %vm767_vm0 = vcmp.eq.s32.totalorder %v10440_v53, %v11107_v46 }
 0x1e1   : > { %8602 = vmatprep.mubr.msk.f32.mxu1 %vm705_vm1, %v14634_v38  ;;  %v9440_v13 = vpack.c.bf16 %v3737_v29, %v3736_v51  ;;  %vm769_vm1 = vcmp.eq.s32.totalorder %v10440_v53, %v11114_v41 }
 0x1e2   : > { %14645 = vst [vmem:[#allocation76_spill] sm:$0xff] %v11526_v30  ;;  %v4059_v56 = vpop.f32.mrb[62].mxu0 }
 0x1e3   : > { %v4061_v54 = vpop.f32.mrb[63].mxu0  ;;  %v4444_v50 = vpop.f32.mrb[62].mxu1  ;;  %8475 = vmatmul.mubr.msk.f32.gmra.mrb[168].mxu0 %vm702_vm2, %v14634_v38  ;;  %vm766_vm2 = vcmp.eq.s32.totalorder %v10440_v53, %v11125_v40 }
 0x1e4   : > { %v11540_v0 = vadd.f32 %v4444_v50, %v4059_v56  ;;  %v4446_v48 = vpop.f32.mrb[63].mxu1  ;;  %8603 = vmatmul.mubr.msk.f32.gmra.mrb[168].mxu1 %vm704_vm3, %v14634_v38  ;;  %8476 = vmatprep.mubr.msk.f32.mxu0 %vm719_vm4, %v14634_v38  ;;  %vm768_vm3 = vcmp.eq.s32.totalorder %v10440_v53, %v11134_v34  ;;  %vm783_vm4 = vcmp.eq.s32.totalorder %v10458_v58, %v11107_v46 }
 0x1e5   : > { %8604 = vmatprep.mubr.msk.f32.mxu1 %vm721_vm5, %v14634_v38  ;;  %v3768_v48 = vld [vmem:[#allocation5 + $0x5d0] sm:$0xff]  ;;  %9441 = vmatpush1.bf16.msra.mxu0 %v9440_v13  ;;  %vm785_vm5 = vcmp.eq.s32.totalorder %v10458_v58, %v11114_v41 }
 0x1e6   : > { %14646 = vst [vmem:[#allocation77_spill] sm:$0xff] %v11540_v0  ;;  %v4064_v56 = vpop.f32.mrb[64].mxu0  ;;  %v3769_v0 = vld [vmem:[#allocation5 + $0x5d8] sm:$0xff]  ;;  %9442 = vmatprep.subr.bf16.mxu0 %v14632_v44 }
 0x1e7   : > { %v4066_v54 = vpop.f32.mrb[65].mxu0  ;;  %v4449_v50 = vpop.f32.mrb[64].mxu1  ;;  %8477 = vmatmul.mubr.msk.f32.gmra.mrb[170].mxu0 %vm718_vm6, %v14634_v38  ;;  %v9488_v51 = vpack.c.bf16 %v3769_v0, %v3768_v48  ;;  %vm782_vm6 = vcmp.eq.s32.totalorder %v10458_v58, %v11125_v40 }
 0x1e8   : > { %v11554_v30 = vadd.f32 %v4449_v50, %v4064_v56  ;;  %v4451_v22 = vpop.f32.mrb[65].mxu1  ;;  %8605 = vmatmul.mubr.msk.f32.gmra.mrb[170].mxu1 %vm720_vm7, %v14634_v38  ;;  %8478 = vmatprep.mubr.msk.f32.mxu0 %vm735_vm8, %v14634_v38  ;;  %vm784_vm7 = vcmp.eq.s32.totalorder %v10458_v58, %v11134_v34  ;;  %vm799_vm8 = vcmp.eq.s32.totalorder %v10474_v60, %v11107_v46 }
 0x1e9   : > { %8606 = vmatprep.mubr.msk.f32.mxu1 %vm737_vm9, %v14634_v38  ;;  %9489 = vmatpush1.bf16.msra.mxu1 %v9488_v51  ;;  %vm801_vm9 = vcmp.eq.s32.totalorder %v10474_v60, %v11114_v41 }
 0x1ea   : > { %v4069_v29 = vpop.f32.mrb[66].mxu0  ;;  %9490 = vmatprep.subr.bf16.mxu1 %v14632_v44 }
 0x1eb   : > { %v4071_v22 = vpop.f32.mrb[67].mxu0  ;;  %v4454_v56 = vpop.f32.mrb[66].mxu1  ;;  %8479 = vmatmul.mubr.msk.f32.gmra.mrb[172].mxu0 %vm734_vm10, %v14634_v38  ;;  %vm798_vm10 = vcmp.eq.s32.totalorder %v10474_v60, %v11125_v40 }
 0x1ec   : > { %v11570_v0 = vadd.f32 %v4454_v56, %v4069_v29  ;;  %v4456_v54 = vpop.f32.mrb[67].mxu1  ;;  %8607 = vmatmul.mubr.msk.f32.gmra.mrb[172].mxu1 %vm736_vm11, %v14634_v38  ;;  %8480 = vmatprep.mubr.msk.f32.mxu0 %vm751_vm12, %v14634_v38  ;;  %vm800_vm11 = vcmp.eq.s32.totalorder %v10474_v60, %v11134_v34  ;;  %vm815_vm12 = vcmp.eq.s32.totalorder %v10491_v9, %v11107_v46 }
 0x1ed   : > { %8608 = vmatprep.mubr.msk.f32.mxu1 %vm753_vm13, %v14634_v38  ;;  %vm817_vm13 = vcmp.eq.s32.totalorder %v10491_v9, %v11114_v41 }
 0x1ee   : > { %v4074_v13 = vpop.f32.mrb[68].mxu0 }
 0x1ef   : > { %v4076_v50 = vpop.f32.mrb[69].mxu0  ;;  %v4459_v48 = vpop.f32.mrb[68].mxu1  ;;  %8481 = vmatmul.mubr.msk.f32.gmra.mrb[174].mxu0 %vm750_vm14, %v14634_v38  ;;  %vm814_vm14 = vcmp.eq.s32.totalorder %v10491_v9, %v11125_v40 }
 0x1f0   : > { %v11584_v51 = vadd.f32 %v4459_v48, %v4074_v13  ;;  %v4461_v29 = vpop.f32.mrb[69].mxu1  ;;  %8609 = vmatmul.mubr.msk.f32.gmra.mrb[174].mxu1 %vm752_vm15, %v14634_v38  ;;  %8482 = vmatprep.mubr.msk.f32.mxu0 %vm767_vm0, %v14634_v38  ;;  %v3738_v13 = vld [vmem:[#allocation5 + $0x4e0] sm:$0xff]  ;;  %v3739_v50 = vld [vmem:[#allocation5 + $0x4e8] sm:$0xff]  ;;  %vm816_vm15 = vcmp.eq.s32.totalorder %v10491_v9, %v11134_v34  ;;  %vm831_vm0 = vcmp.eq.s32.totalorder %v10506_v18, %v11107_v46 }
 0x1f1   : > { %8610 = vmatprep.mubr.msk.f32.mxu1 %vm769_vm1, %v14634_v38  ;;  %vm833_vm1 = vcmp.eq.s32.totalorder %v10506_v18, %v11114_v41 }
 0x1f2   : > { %14647 = vst [vmem:[#allocation78_spill] sm:$0xff] %v11584_v51  ;;  %v4079_v22 = vpop.f32.mrb[70].mxu0  ;;  %v9443_v51 = vpack.c.bf16 %v3739_v50, %v3738_v13 }
 0x1f3   : > { %v4081_v56 = vpop.f32.mrb[71].mxu0  ;;  %v4464_v54 = vpop.f32.mrb[70].mxu1  ;;  %8483 = vmatmul.mubr.msk.f32.gmra.mrb[176].mxu0 %vm766_vm2, %v14634_v38  ;;  %vm830_vm2 = vcmp.eq.s32.totalorder %v10506_v18, %v11125_v40 }
 0x1f4   : > { %v11598_v48 = vadd.f32 %v4464_v54, %v4079_v22  ;;  %v4466_v29 = vpop.f32.mrb[71].mxu1  ;;  %8611 = vmatmul.mubr.msk.f32.gmra.mrb[176].mxu1 %vm768_vm3, %v14634_v38  ;;  %8484 = vmatprep.mubr.msk.f32.mxu0 %vm783_vm4, %v14634_v38  ;;  %vm832_vm3 = vcmp.eq.s32.totalorder %v10506_v18, %v11134_v34  ;;  %vm847_vm4 = vcmp.eq.s32.totalorder %v10524_v20, %v11107_v46 }
 0x1f5   : > { %8612 = vmatprep.mubr.msk.f32.mxu1 %vm785_vm5, %v14634_v38  ;;  %9444 = vmatpush1.bf16.msra.mxu0 %v9443_v51  ;;  %v3770_v29 = vld [vmem:[#allocation5 + $0x5e0] sm:$0xff]  ;;  %vm849_vm5 = vcmp.eq.s32.totalorder %v10524_v20, %v11114_v41 }
 0x1f6   : > { %14648 = vst [vmem:[#allocation79_spill] sm:$0xff] %v11598_v48  ;;  %v4084_v56 = vpop.f32.mrb[72].mxu0  ;;  %v3771_v48 = vld [vmem:[#allocation5 + $0x5e8] sm:$0xff]  ;;  %9445 = vmatprep.subr.bf16.mxu0 %v14632_v44 }
 0x1f7   : > { %v4086_v22 = vpop.f32.mrb[73].mxu0  ;;  %v4469_v54 = vpop.f32.mrb[72].mxu1  ;;  %8485 = vmatmul.mubr.msk.f32.gmra.mrb[178].mxu0 %vm782_vm6, %v14634_v38  ;;  %v9491_v58 = vpack.c.bf16 %v3771_v48, %v3770_v29  ;;  %vm846_vm6 = vcmp.eq.s32.totalorder %v10524_v20, %v11125_v40 }
 0x1f8   : > { %v11613_v13 = vadd.f32 %v4469_v54, %v4084_v56  ;;  %v4471_v50 = vpop.f32.mrb[73].mxu1  ;;  %8613 = vmatmul.mubr.msk.f32.gmra.mrb[178].mxu1 %vm784_vm7, %v14634_v38  ;;  %8486 = vmatprep.mubr.msk.f32.mxu0 %vm799_vm8, %v14634_v38  ;;  %vm848_vm7 = vcmp.eq.s32.totalorder %v10524_v20, %v11134_v34  ;;  %vm863_vm8 = vcmp.eq.s32.totalorder %v10540_v23, %v11107_v46 }
 0x1f9   : > { %8614 = vmatprep.mubr.msk.f32.mxu1 %vm801_vm9, %v14634_v38  ;;  %9492 = vmatpush1.bf16.msra.mxu1 %v9491_v58  ;;  %vm865_vm9 = vcmp.eq.s32.totalorder %v10540_v23, %v11114_v41 }
 0x1fa   : > { %v4089_v51 = vpop.f32.mrb[74].mxu0  ;;  %9493 = vmatprep.subr.bf16.mxu1 %v14632_v44 }
 0x1fb   : > { %v4091_v56 = vpop.f32.mrb[75].mxu0  ;;  %v4474_v22 = vpop.f32.mrb[74].mxu1  ;;  %8487 = vmatmul.mubr.msk.f32.gmra.mrb[180].mxu0 %vm798_vm10, %v14634_v38  ;;  %vm862_vm10 = vcmp.eq.s32.totalorder %v10540_v23, %v11125_v40 }
 0x1fc   : > { %v11628_v48 = vadd.f32 %v4474_v22, %v4089_v51  ;;  %v4476_v54 = vpop.f32.mrb[75].mxu1  ;;  %8615 = vmatmul.mubr.msk.f32.gmra.mrb[180].mxu1 %vm800_vm11, %v14634_v38  ;;  %8488 = vmatprep.mubr.msk.f32.mxu0 %vm815_vm12, %v14634_v38  ;;  %vm864_vm11 = vcmp.eq.s32.totalorder %v10540_v23, %v11134_v34  ;;  %vm879_vm12 = vcmp.eq.s32.totalorder %v10556_v32, %v11107_v46 }
 0x1fd   : > { %8616 = vmatprep.mubr.msk.f32.mxu1 %vm817_vm13, %v14634_v38  ;;  %vm881_vm13 = vcmp.eq.s32.totalorder %v10556_v32, %v11114_v41 }
 0x1fe   : > { %v4094_v58 = vpop.f32.mrb[76].mxu0 }
 0x1ff   : > { %v4096_v29 = vpop.f32.mrb[77].mxu0  ;;  %v4479_v50 = vpop.f32.mrb[76].mxu1  ;;  %8489 = vmatmul.mubr.msk.f32.gmra.mrb[182].mxu0 %vm814_vm14, %v14634_v38  ;;  %vm878_vm14 = vcmp.eq.s32.totalorder %v10556_v32, %v11125_v40 }
 0x200   : > { %v11642_v51 = vadd.f32 %v4479_v50, %v4094_v58  ;;  %v4481_v56 = vpop.f32.mrb[77].mxu1  ;;  %8617 = vmatmul.mubr.msk.f32.gmra.mrb[182].mxu1 %vm816_vm15, %v14634_v38  ;;  %8490 = vmatprep.mubr.msk.f32.mxu0 %vm831_vm0, %v14634_v38  ;;  %v3740_v29 = vld [vmem:[#allocation5 + $0x4f0] sm:$0xff]  ;;  %v3741_v50 = vld [vmem:[#allocation5 + $0x4f8] sm:$0xff]  ;;  %vm880_vm15 = vcmp.eq.s32.totalorder %v10556_v32, %v11134_v34  ;;  %vm895_vm0 = vcmp.eq.s32.totalorder %v10572_v55, %v11107_v46 }
 0x201   : > { %8618 = vmatprep.mubr.msk.f32.mxu1 %vm833_vm1, %v14634_v38  ;;  %v9446_v18 = vpack.c.bf16 %v3741_v50, %v3740_v29  ;;  %vm897_vm1 = vcmp.eq.s32.totalorder %v10572_v55, %v11114_v41 }
 0x202   : > { %14649 = vst [vmem:[#allocation80_spill] sm:$0xff] %v11642_v51  ;;  %v4099_v22 = vpop.f32.mrb[78].mxu0 }
 0x203   : > { %v4101_v54 = vpop.f32.mrb[79].mxu0  ;;  %v4484_v58 = vpop.f32.mrb[78].mxu1  ;;  %8491 = vmatmul.mubr.msk.f32.gmra.mrb[184].mxu0 %vm830_vm2, %v14634_v38  ;;  %vm894_vm2 = vcmp.eq.s32.totalorder %v10572_v55, %v11125_v40 }
 0x204   : > { %v11656_v56 = vadd.f32 %v4484_v58, %v4099_v22  ;;  %v4486_v51 = vpop.f32.mrb[79].mxu1  ;;  %8619 = vmatmul.mubr.msk.f32.gmra.mrb[184].mxu1 %vm832_vm3, %v14634_v38  ;;  %8492 = vmatprep.mubr.msk.f32.mxu0 %vm847_vm4, %v14634_v38  ;;  %v3772_v58 = vld [vmem:[#allocation5 + $0x5f0] sm:$0xff]  ;;  %vm896_vm3 = vcmp.eq.s32.totalorder %v10572_v55, %v11134_v34  ;;  %vm911_vm4 = vcmp.eq.s32.totalorder %v10590_v1, %v11107_v46 }
 0x205   : > { %8620 = vmatprep.mubr.msk.f32.mxu1 %vm849_vm5, %v14634_v38  ;;  %9447 = vmatpush1.bf16.msra.mxu0 %v9446_v18  ;;  %vm913_vm5 = vcmp.eq.s32.totalorder %v10590_v1, %v11114_v41 }
 0x206   : > { %14650 = vst [vmem:[#allocation81_spill] sm:$0xff] %v11656_v56  ;;  %v4104_v54 = vpop.f32.mrb[80].mxu0  ;;  %v3773_v56 = vld [vmem:[#allocation5 + $0x5f8] sm:$0xff]  ;;  %9496 = vmatprep.subr.bf16.mxu0 %v14632_v44 }
 0x207   : > { %v4106_v51 = vpop.f32.mrb[81].mxu0  ;;  %v4489_v22 = vpop.f32.mrb[80].mxu1  ;;  %8493 = vmatmul.mubr.msk.f32.gmra.mrb[186].mxu0 %vm846_vm6, %v14634_v38  ;;  %v9494_v20 = vpack.c.bf16 %v3773_v56, %v3772_v58  ;;  %vm910_vm6 = vcmp.eq.s32.totalorder %v10590_v1, %v11125_v40 }
 0x208   : > { %v11671_v29 = vadd.f32 %v4489_v22, %v4104_v54  ;;  %v4491_v50 = vpop.f32.mrb[81].mxu1  ;;  %8621 = vmatmul.mubr.msk.f32.gmra.mrb[186].mxu1 %vm848_vm7, %v14634_v38  ;;  %8494 = vmatprep.mubr.msk.f32.mxu0 %vm863_vm8, %v14634_v38  ;;  %vm912_vm7 = vcmp.eq.s32.totalorder %v10590_v1, %v11134_v34  ;;  %vm927_vm8 = vcmp.eq.s32.totalorder %v10606_v47, %v11107_v46  ;;  %v3809_v1 = vld [vmem:[#allocation5 + $0x718] sm:$0xff] }
 0x209   : > { %8622 = vmatprep.mubr.msk.f32.mxu1 %vm865_vm9, %v14634_v38  ;;  %9495 = vmatpush1.bf16.msra.mxu1 %v9494_v20  ;;  %vm929_vm9 = vcmp.eq.s32.totalorder %v10606_v47, %v11114_v41 }
 0x20a   : > { %v4109_v18 = vpop.f32.mrb[82].mxu0  ;;  %9544 = vmatprep.subr.bf16.mxu1 %v14632_v44 }
 0x20b   : > { %v4111_v54 = vpop.f32.mrb[83].mxu0  ;;  %v4494_v51 = vpop.f32.mrb[82].mxu1  ;;  %8495 = vmatmul.mubr.msk.f32.gmra.mrb[188].mxu0 %vm862_vm10, %v14634_v38  ;;  %vm926_vm10 = vcmp.eq.s32.totalorder %v10606_v47, %v11125_v40 }
 0x20c   : > { %v11686_v56 = vadd.f32 %v4494_v51, %v4109_v18  ;;  %v4496_v22 = vpop.f32.mrb[83].mxu1  ;;  %8623 = vmatmul.mubr.msk.f32.gmra.mrb[188].mxu1 %vm864_vm11, %v14634_v38  ;;  %8496 = vmatprep.mubr.msk.f32.mxu0 %vm879_vm12, %v14634_v38  ;;  %vm928_vm11 = vcmp.eq.s32.totalorder %v10606_v47, %v11134_v34  ;;  %vm943_vm12 = vcmp.eq.s32.totalorder %v10622_v10, %v11107_v46 }
 0x20d   : > { %8624 = vmatprep.mubr.msk.f32.mxu1 %vm881_vm13, %v14634_v38  ;;  %vm945_vm13 = vcmp.eq.s32.totalorder %v10622_v10, %v11114_v41 }
 0x20e   : > { %v4114_v20 = vpop.f32.mrb[84].mxu0 }
 0x20f   : > { %v4116_v58 = vpop.f32.mrb[85].mxu0  ;;  %v4499_v50 = vpop.f32.mrb[84].mxu1  ;;  %8497 = vmatmul.mubr.msk.f32.gmra.mrb[190].mxu0 %vm878_vm14, %v14634_v38  ;;  %vm942_vm14 = vcmp.eq.s32.totalorder %v10622_v10, %v11125_v40 }
 0x210   : > { %v11700_v18 = vadd.f32 %v4499_v50, %v4114_v20  ;;  %v4501_v54 = vpop.f32.mrb[85].mxu1  ;;  %8625 = vmatmul.mubr.msk.f32.gmra.mrb[190].mxu1 %vm880_vm15, %v14634_v38  ;;  %8498 = vmatprep.mubr.msk.f32.mxu0 %vm895_vm0, %v14634_v38  ;;  %vm944_vm15 = vcmp.eq.s32.totalorder %v10622_v10, %v11134_v34  ;;  %vm959_vm0 = vcmp.eq.s32.totalorder %v10638_v14, %v11107_v46 }
 0x211   : > { %8626 = vmatprep.mubr.msk.f32.mxu1 %vm897_vm1, %v14634_v38  ;;  %vm961_vm1 = vcmp.eq.s32.totalorder %v10638_v14, %v11114_v41 }
 0x212   : > { %v4119_v51 = vpop.f32.mrb[86].mxu0 }
 0x213   : > { %v4121_v22 = vpop.f32.mrb[87].mxu0  ;;  %v4504_v20 = vpop.f32.mrb[86].mxu1  ;;  %8499 = vmatmul.mubr.msk.f32.gmra.mrb[192].mxu0 %vm894_vm2, %v14634_v38  ;;  %vm958_vm2 = vcmp.eq.s32.totalorder %v10638_v14, %v11125_v40 }
 0x214   : > { %v11714_v58 = vadd.f32 %v4504_v20, %v4119_v51  ;;  %v4506_v50 = vpop.f32.mrb[87].mxu1  ;;  %8627 = vmatmul.mubr.msk.f32.gmra.mrb[192].mxu1 %vm896_vm3, %v14634_v38  ;;  %8500 = vmatprep.mubr.msk.f32.mxu0 %vm911_vm4, %v14634_v38  ;;  %vm960_vm3 = vcmp.eq.s32.totalorder %v10638_v14, %v11134_v34  ;;  %vm975_vm4 = vcmp.eq.s32.totalorder %v10654_v19, %v11107_v46 }
 0x215   : > { %8628 = vmatprep.mubr.msk.f32.mxu1 %vm913_vm5, %v14634_v38  ;;  %vm977_vm5 = vcmp.eq.s32.totalorder %v10654_v19, %v11114_v41 }
 0x216   : > { %14651 = vst [vmem:[#allocation82_spill] sm:$0xff] %v11714_v58  ;;  %v4124_v54 = vpop.f32.mrb[88].mxu0 }
 0x217   : > { %v4126_v51 = vpop.f32.mrb[89].mxu0  ;;  %v4509_v22 = vpop.f32.mrb[88].mxu1  ;;  %8501 = vmatmul.mubr.msk.f32.gmra.mrb[194].mxu0 %vm910_vm6, %v14634_v38  ;;  %vm974_vm6 = vcmp.eq.s32.totalorder %v10654_v19, %v11125_v40 }
 0x218   : > { %v11728_v20 = vadd.f32 %v4509_v22, %v4124_v54  ;;  %v4511_v50 = vpop.f32.mrb[89].mxu1  ;;  %8629 = vmatmul.mubr.msk.f32.gmra.mrb[194].mxu1 %vm912_vm7, %v14634_v38  ;;  %8502 = vmatprep.mubr.msk.f32.mxu0 %vm927_vm8, %v14634_v38  ;;  %vm976_vm7 = vcmp.eq.s32.totalorder %v10654_v19, %v11134_v34  ;;  %vm991_vm8 = vcmp.eq.s32.totalorder %v10670_v27, %v11107_v46  ;;  %v14712_v19 = vld [vmem:[#allocation62_spill] sm:$0xff] }
 0x219   : > { %8630 = vmatprep.mubr.msk.f32.mxu1 %vm929_vm9, %v14634_v38  ;;  %vm993_vm9 = vcmp.eq.s32.totalorder %v10670_v27, %v11114_v41 }
 0x21a   : > { %14652 = vst [vmem:[#allocation83_spill] sm:$0xff] %v11728_v20  ;;  %v4129_v51 = vpop.f32.mrb[90].mxu0 }
 0x21b   : > { %v4131_v54 = vpop.f32.mrb[91].mxu0  ;;  %v4514_v22 = vpop.f32.mrb[90].mxu1  ;;  %8503 = vmatmul.mubr.msk.f32.gmra.mrb[196].mxu0 %vm926_vm10, %v14634_v38  ;;  %vm990_vm10 = vcmp.eq.s32.totalorder %v10670_v27, %v11125_v40 }
 0x21c   : > { %v11742_v50 = vadd.f32 %v4514_v22, %v4129_v51  ;;  %v4516_v20 = vpop.f32.mrb[91].mxu1  ;;  %8631 = vmatmul.mubr.msk.f32.gmra.mrb[196].mxu1 %vm928_vm11, %v14634_v38  ;;  %8504 = vmatprep.mubr.msk.f32.mxu0 %vm943_vm12, %v14634_v38  ;;  %vm992_vm11 = vcmp.eq.s32.totalorder %v10670_v27, %v11134_v34  ;;  %vm1007_vm12 = vcmp.eq.s32.totalorder %v10686_v31, %v11107_v46 }
 0x21d   : > { %8632 = vmatprep.mubr.msk.f32.mxu1 %vm945_vm13, %v14634_v38  ;;  %vm1009_vm13 = vcmp.eq.s32.totalorder %v10686_v31, %v11114_v41 }
 0x21e   : > { %14653 = vst [vmem:[#allocation84_spill] sm:$0xff] %v11742_v50  ;;  %v4134_v54 = vpop.f32.mrb[92].mxu0 }
 0x21f   : > { %v4136_v20 = vpop.f32.mrb[93].mxu0  ;;  %v4519_v51 = vpop.f32.mrb[92].mxu1  ;;  %8505 = vmatmul.mubr.msk.f32.gmra.mrb[198].mxu0 %vm942_vm14, %v14634_v38  ;;  %vm1006_vm14 = vcmp.eq.s32.totalorder %v10686_v31, %v11125_v40 }
 0x220   : > { %v11756_v22 = vadd.f32 %v4519_v51, %v4134_v54  ;;  %v4521_v50 = vpop.f32.mrb[93].mxu1  ;;  %8633 = vmatmul.mubr.msk.f32.gmra.mrb[198].mxu1 %vm944_vm15, %v14634_v38  ;;  %8506 = vmatprep.mubr.msk.f32.mxu0 %vm959_vm0, %v14634_v38  ;;  %vm1008_vm15 = vcmp.eq.s32.totalorder %v10686_v31, %v11134_v34  ;;  %vm1023_vm0 = vcmp.eq.s32.totalorder %v10702_v39, %v11107_v46 }
 0x221   : > { %8634 = vmatprep.mubr.msk.f32.mxu1 %vm961_vm1, %v14634_v38  ;;  %vm1025_vm1 = vcmp.eq.s32.totalorder %v10702_v39, %v11114_v41 }
 0x222   : > { %14654 = vst [vmem:[#allocation85_spill] sm:$0xff] %v11756_v22  ;;  %v4139_v20 = vpop.f32.mrb[94].mxu0 }
 0x223   : > { %v4141_v50 = vpop.f32.mrb[95].mxu0  ;;  %v4524_v54 = vpop.f32.mrb[94].mxu1  ;;  %8507 = vmatmul.mubr.msk.f32.gmra.mrb[200].mxu0 %vm958_vm2, %v14634_v38  ;;  %vm1022_vm2 = vcmp.eq.s32.totalorder %v10702_v39, %v11125_v40 }
 0x224   : > { %v11770_v51 = vadd.f32 %v4524_v54, %v4139_v20  ;;  %v4526_v22 = vpop.f32.mrb[95].mxu1  ;;  %8635 = vmatmul.mubr.msk.f32.gmra.mrb[200].mxu1 %vm960_vm3, %v14634_v38  ;;  %8508 = vmatprep.mubr.msk.f32.mxu0 %vm975_vm4, %v14634_v38  ;;  %vm1024_vm3 = vcmp.eq.s32.totalorder %v10702_v39, %v11134_v34  ;;  %vm1039_vm4 = vcmp.eq.s32.totalorder %v10718_v43, %v11107_v46 }
 0x225   : > { %8636 = vmatprep.mubr.msk.f32.mxu1 %vm977_vm5, %v14634_v38  ;;  %vm1041_vm5 = vcmp.eq.s32.totalorder %v10718_v43, %v11114_v41 }
 0x226   : > { %14655 = vst [vmem:[#allocation86_spill] sm:$0xff] %v11770_v51  ;;  %v4144_v50 = vpop.f32.mrb[96].mxu0 }
 0x227   : > { %v4146_v22 = vpop.f32.mrb[97].mxu0  ;;  %v4529_v20 = vpop.f32.mrb[96].mxu1  ;;  %8509 = vmatmul.mubr.msk.f32.gmra.mrb[202].mxu0 %vm974_vm6, %v14634_v38  ;;  %vm1038_vm6 = vcmp.eq.s32.totalorder %v10718_v43, %v11125_v40 }
 0x228   : > { %v11784_v54 = vadd.f32 %v4529_v20, %v4144_v50  ;;  %v4531_v51 = vpop.f32.mrb[97].mxu1  ;;  %8637 = vmatmul.mubr.msk.f32.gmra.mrb[202].mxu1 %vm976_vm7, %v14634_v38  ;;  %8510 = vmatprep.mubr.msk.f32.mxu0 %vm991_vm8, %v14634_v38  ;;  %vm1040_vm7 = vcmp.eq.s32.totalorder %v10718_v43, %v11134_v34  ;;  %vm1055_vm8 = vcmp.eq.s32.totalorder %v10734_v59, %v11107_v46 }
 0x229   : > { %8638 = vmatprep.mubr.msk.f32.mxu1 %vm993_vm9, %v14634_v38  ;;  %vm1057_vm9 = vcmp.eq.s32.totalorder %v10734_v59, %v11114_v41 }
 0x22a   : > { %14656 = vst [vmem:[#allocation87_spill] sm:$0xff] %v11784_v54  ;;  %v4149_v22 = vpop.f32.mrb[98].mxu0 }
 0x22b   : > { %v4151_v51 = vpop.f32.mrb[99].mxu0  ;;  %v4534_v50 = vpop.f32.mrb[98].mxu1  ;;  %8511 = vmatmul.mubr.msk.f32.gmra.mrb[204].mxu0 %vm990_vm10, %v14634_v38  ;;  %vm1054_vm10 = vcmp.eq.s32.totalorder %v10734_v59, %v11125_v40 }
 0x22c   : > { %v11798_v20 = vadd.f32 %v4534_v50, %v4149_v22  ;;  %v4536_v54 = vpop.f32.mrb[99].mxu1  ;;  %8639 = vmatmul.mubr.msk.f32.gmra.mrb[204].mxu1 %vm992_vm11, %v14634_v38  ;;  %8512 = vmatprep.mubr.msk.f32.mxu0 %vm1007_vm12, %v14634_v38  ;;  %vm1056_vm11 = vcmp.eq.s32.totalorder %v10734_v59, %v11134_v34  ;;  %vm1071_vm12 = vcmp.eq.s32.totalorder %v10750_v5, %v11107_v46 }
 0x22d   : > { %8640 = vmatprep.mubr.msk.f32.mxu1 %vm1009_vm13, %v14634_v38  ;;  %vm1073_vm13 = vcmp.eq.s32.totalorder %v10750_v5, %v11114_v41 }
 0x22e   : > { %14657 = vst [vmem:[#allocation88_spill] sm:$0xff] %v11798_v20  ;;  %v4154_v51 = vpop.f32.mrb[100].mxu0 }
 0x22f   : > { %v4156_v54 = vpop.f32.mrb[101].mxu0  ;;  %v4539_v22 = vpop.f32.mrb[100].mxu1  ;;  %8513 = vmatmul.mubr.msk.f32.gmra.mrb[206].mxu0 %vm1006_vm14, %v14634_v38  ;;  %vm1070_vm14 = vcmp.eq.s32.totalorder %v10750_v5, %v11125_v40 }
 0x230   : > { %v11812_v50 = vadd.f32 %v4539_v22, %v4154_v51  ;;  %v4541_v20 = vpop.f32.mrb[101].mxu1  ;;  %8641 = vmatmul.mubr.msk.f32.gmra.mrb[206].mxu1 %vm1008_vm15, %v14634_v38  ;;  %8514 = vmatprep.mubr.msk.f32.mxu0 %vm1023_vm0, %v14634_v38  ;;  %vm1072_vm15 = vcmp.eq.s32.totalorder %v10750_v5, %v11134_v34  ;;  %vm1087_vm0 = vcmp.eq.s32.totalorder %v10766_v15, %v11107_v46 }
 0x231   : > { %8642 = vmatprep.mubr.msk.f32.mxu1 %vm1025_vm1, %v14634_v38  ;;  %vm1089_vm1 = vcmp.eq.s32.totalorder %v10766_v15, %v11114_v41 }
 0x232   : > { %14658 = vst [vmem:[#allocation89_spill] sm:$0xff] %v11812_v50  ;;  %v4159_v54 = vpop.f32.mrb[102].mxu0 }
 0x233   : > { %v4161_v20 = vpop.f32.mrb[103].mxu0  ;;  %v4544_v51 = vpop.f32.mrb[102].mxu1  ;;  %8515 = vmatmul.mubr.msk.f32.gmra.mrb[208].mxu0 %vm1022_vm2, %v14634_v38  ;;  %vm1086_vm2 = vcmp.eq.s32.totalorder %v10766_v15, %v11125_v40 }
 0x234   : > { %v11826_v22 = vadd.f32 %v4544_v51, %v4159_v54  ;;  %v4546_v50 = vpop.f32.mrb[103].mxu1  ;;  %8643 = vmatmul.mubr.msk.f32.gmra.mrb[208].mxu1 %vm1024_vm3, %v14634_v38  ;;  %8516 = vmatprep.mubr.msk.f32.mxu0 %vm1039_vm4, %v14634_v38  ;;  %vm1088_vm3 = vcmp.eq.s32.totalorder %v10766_v15, %v11134_v34 }
 0x235   : > { %8644 = vmatprep.mubr.msk.f32.mxu1 %vm1041_vm5, %v14634_v38 }
 0x236   : > { %14659 = vst [vmem:[#allocation90_spill] sm:$0xff] %v11826_v22  ;;  %v4164_v20 = vpop.f32.mrb[104].mxu0 }
 0x237   : > { %v4166_v50 = vpop.f32.mrb[105].mxu0  ;;  %v4549_v54 = vpop.f32.mrb[104].mxu1  ;;  %8517 = vmatmul.mubr.msk.f32.gmra.mrb[210].mxu0 %vm1038_vm6, %v14634_v38 }
 0x238   : > { %v11840_v51 = vadd.f32 %v4549_v54, %v4164_v20  ;;  %v4551_v22 = vpop.f32.mrb[105].mxu1  ;;  %8645 = vmatmul.mubr.msk.f32.gmra.mrb[210].mxu1 %vm1040_vm7, %v14634_v38  ;;  %8518 = vmatprep.mubr.msk.f32.mxu0 %vm1055_vm8, %v14634_v38 }
 0x239   : > { %8646 = vmatprep.mubr.msk.f32.mxu1 %vm1057_vm9, %v14634_v38 }
 0x23a   : > { %14660 = vst [vmem:[#allocation91_spill] sm:$0xff] %v11840_v51  ;;  %v4169_v50 = vpop.f32.mrb[106].mxu0 }
 0x23b   : > { %v4171_v22 = vpop.f32.mrb[107].mxu0  ;;  %v4554_v20 = vpop.f32.mrb[106].mxu1  ;;  %8519 = vmatmul.mubr.msk.f32.gmra.mrb[212].mxu0 %vm1054_vm10, %v14634_v38 }
 0x23c   : > { %v11854_v54 = vadd.f32 %v4554_v20, %v4169_v50  ;;  %v4556_v51 = vpop.f32.mrb[107].mxu1  ;;  %8647 = vmatmul.mubr.msk.f32.gmra.mrb[212].mxu1 %vm1056_vm11, %v14634_v38  ;;  %8520 = vmatprep.mubr.msk.f32.mxu0 %vm1071_vm12, %v14634_v38 }
 0x23d   : > { %8648 = vmatprep.mubr.msk.f32.mxu1 %vm1073_vm13, %v14634_v38 }
 0x23e   : > { %14661 = vst [vmem:[#allocation92_spill] sm:$0xff] %v11854_v54  ;;  %v4174_v22 = vpop.f32.mrb[108].mxu0 }
 0x23f   : > { %v4176_v51 = vpop.f32.mrb[109].mxu0  ;;  %v4559_v50 = vpop.f32.mrb[108].mxu1  ;;  %8521 = vmatmul.mubr.msk.f32.gmra.mrb[214].mxu0 %vm1070_vm14, %v14634_v38 }
 0x240   : > { %v11868_v20 = vadd.f32 %v4559_v50, %v4174_v22  ;;  %v4561_v54 = vpop.f32.mrb[109].mxu1  ;;  %8649 = vmatmul.mubr.msk.f32.gmra.mrb[214].mxu1 %vm1072_vm15, %v14634_v38  ;;  %8522 = vmatprep.mubr.msk.f32.mxu0 %vm1087_vm0, %v14634_v38  ;;  %v14663_v51 = vld [vmem:[#allocation34_spill] sm:$0xff] }
 0x241   : > { %8650 = vmatprep.mubr.msk.f32.mxu1 %vm1089_vm1, %v14634_v38  ;;  %vm1103_vm4 = vcmp.eq.s32.totalorder %v14663_v51, %v11107_v46  ;;  %vm1105_vm5 = vcmp.eq.s32.totalorder %v14663_v51, %v11114_v41  ;;  %vm1102_vm6 = vcmp.eq.s32.totalorder %v14663_v51, %v11125_v40  ;;  %vm1104_vm7 = vcmp.eq.s32.totalorder %v14663_v51, %v11134_v34 }
 0x242   : > { %14662 = vst [vmem:[#allocation93_spill] sm:$0xff] %v11868_v20  ;;  %v4179_v5 = vpop.f32.mrb[110].mxu0 }
 0x243   : > { %v4181_v54 = vpop.f32.mrb[111].mxu0  ;;  %v4564_v22 = vpop.f32.mrb[110].mxu1  ;;  %8523 = vmatmul.mubr.msk.f32.gmra.mrb[216].mxu0 %vm1086_vm2, %v14634_v38 }
 0x244   : > { %v11882_v50 = vadd.f32 %v4564_v22, %v4179_v5  ;;  %v4566_v20 = vpop.f32.mrb[111].mxu1  ;;  %8651 = vmatmul.mubr.msk.f32.gmra.mrb[216].mxu1 %vm1088_vm3, %v14634_v38  ;;  %8524 = vmatprep.mubr.msk.f32.mxu0 %vm1103_vm4, %v14634_v38  ;;  %v14665_v54 = vld [vmem:[#allocation35_spill] sm:$0xff] }
 0x245   : > { %8652 = vmatprep.mubr.msk.f32.mxu1 %vm1105_vm5, %v14634_v38  ;;  %vm1119_vm8 = vcmp.eq.s32.totalorder %v14665_v54, %v11107_v46  ;;  %vm1121_vm9 = vcmp.eq.s32.totalorder %v14665_v54, %v11114_v41  ;;  %vm1118_vm10 = vcmp.eq.s32.totalorder %v14665_v54, %v11125_v40  ;;  %vm1120_vm11 = vcmp.eq.s32.totalorder %v14665_v54, %v11134_v34 }
 0x246   : > { %14664 = vst [vmem:[#allocation94_spill] sm:$0xff] %v11882_v50  ;;  %v4184_v15 = vpop.f32.mrb[112].mxu0 }
 0x247   : > { %v4186_v5 = vpop.f32.mrb[113].mxu0  ;;  %v4569_v20 = vpop.f32.mrb[112].mxu1  ;;  %8525 = vmatmul.mubr.msk.f32.gmra.mrb[218].mxu0 %vm1102_vm6, %v14634_v38 }
 0x248   : > { %v11896_v22 = vadd.f32 %v4569_v20, %v4184_v15  ;;  %v4571_v50 = vpop.f32.mrb[113].mxu1  ;;  %8653 = vmatmul.mubr.msk.f32.gmra.mrb[218].mxu1 %vm1104_vm7, %v14634_v38  ;;  %8526 = vmatprep.mubr.msk.f32.mxu0 %vm1119_vm8, %v14634_v38  ;;  %v14667_v5 = vld [vmem:[#allocation36_spill] sm:$0xff] }
 0x249   : > { %8654 = vmatprep.mubr.msk.f32.mxu1 %vm1121_vm9, %v14634_v38  ;;  %vm1135_vm12 = vcmp.eq.s32.totalorder %v14667_v5, %v11107_v46  ;;  %vm1137_vm13 = vcmp.eq.s32.totalorder %v14667_v5, %v11114_v41  ;;  %vm1134_vm14 = vcmp.eq.s32.totalorder %v14667_v5, %v11125_v40  ;;  %vm1136_vm15 = vcmp.eq.s32.totalorder %v14667_v5, %v11134_v34 }
 0x24a   : > { %14666 = vst [vmem:[#allocation95_spill] sm:$0xff] %v11896_v22  ;;  %v4189_v51 = vpop.f32.mrb[114].mxu0 }
 0x24b   : > { %v4191_v15 = vpop.f32.mrb[115].mxu0  ;;  %v4574_v50 = vpop.f32.mrb[114].mxu1  ;;  %8527 = vmatmul.mubr.msk.f32.gmra.mrb[220].mxu0 %vm1118_vm10, %v14634_v38 }
 0x24c   : > { %v11910_v20 = vadd.f32 %v4574_v50, %v4189_v51  ;;  %v4576_v22 = vpop.f32.mrb[115].mxu1  ;;  %8655 = vmatmul.mubr.msk.f32.gmra.mrb[220].mxu1 %vm1120_vm11, %v14634_v38  ;;  %8528 = vmatprep.mubr.msk.f32.mxu0 %vm1135_vm12, %v14634_v38  ;;  %v14669_v15 = vld [vmem:[#allocation37_spill] sm:$0xff] }
 0x24d   : > { %8656 = vmatprep.mubr.msk.f32.mxu1 %vm1137_vm13, %v14634_v38  ;;  %vm1151_vm0 = vcmp.eq.s32.totalorder %v14669_v15, %v11107_v46  ;;  %vm1153_vm1 = vcmp.eq.s32.totalorder %v14669_v15, %v11114_v41  ;;  %vm1150_vm2 = vcmp.eq.s32.totalorder %v14669_v15, %v11125_v40  ;;  %vm1152_vm3 = vcmp.eq.s32.totalorder %v14669_v15, %v11134_v34 }
 0x24e   : > { %14668 = vst [vmem:[#allocation96_spill] sm:$0xff] %v11910_v20  ;;  %v4194_v54 = vpop.f32.mrb[116].mxu0 }
 0x24f   : > { %v4196_v51 = vpop.f32.mrb[117].mxu0  ;;  %v4579_v22 = vpop.f32.mrb[116].mxu1  ;;  %8529 = vmatmul.mubr.msk.f32.gmra.mrb[222].mxu0 %vm1134_vm14, %v14634_v38 }
 0x250   : > { %v11924_v50 = vadd.f32 %v4579_v22, %v4194_v54  ;;  %v4581_v20 = vpop.f32.mrb[117].mxu1  ;;  %8657 = vmatmul.mubr.msk.f32.gmra.mrb[222].mxu1 %vm1136_vm15, %v14634_v38  ;;  %8530 = vmatprep.mubr.msk.f32.mxu0 %vm1151_vm0, %v14634_v38  ;;  %v14671_v51 = vld [vmem:[#allocation38_spill] sm:$0xff] }
 0x251   : > { %8658 = vmatprep.mubr.msk.f32.mxu1 %vm1153_vm1, %v14634_v38  ;;  %vm1167_vm4 = vcmp.eq.s32.totalorder %v14671_v51, %v11107_v46  ;;  %vm1169_vm5 = vcmp.eq.s32.totalorder %v14671_v51, %v11114_v41  ;;  %vm1166_vm6 = vcmp.eq.s32.totalorder %v14671_v51, %v11125_v40  ;;  %vm1168_vm7 = vcmp.eq.s32.totalorder %v14671_v51, %v11134_v34 }
 0x252   : > { %14670 = vst [vmem:[#allocation97_spill] sm:$0xff] %v11924_v50  ;;  %v4199_v5 = vpop.f32.mrb[118].mxu0 }
 0x253   : > { %v4201_v54 = vpop.f32.mrb[119].mxu0  ;;  %v4584_v20 = vpop.f32.mrb[118].mxu1  ;;  %8531 = vmatmul.mubr.msk.f32.gmra.mrb[224].mxu0 %vm1150_vm2, %v14634_v38 }
 0x254   : > { %v11938_v22 = vadd.f32 %v4584_v20, %v4199_v5  ;;  %v4586_v50 = vpop.f32.mrb[119].mxu1  ;;  %8659 = vmatmul.mubr.msk.f32.gmra.mrb[224].mxu1 %vm1152_vm3, %v14634_v38  ;;  %8532 = vmatprep.mubr.msk.f32.mxu0 %vm1167_vm4, %v14634_v38  ;;  %v14673_v54 = vld [vmem:[#allocation39_spill] sm:$0xff] }
 0x255   : > { %8660 = vmatprep.mubr.msk.f32.mxu1 %vm1169_vm5, %v14634_v38  ;;  %vm1183_vm8 = vcmp.eq.s32.totalorder %v14673_v54, %v11107_v46  ;;  %vm1185_vm9 = vcmp.eq.s32.totalorder %v14673_v54, %v11114_v41  ;;  %vm1182_vm10 = vcmp.eq.s32.totalorder %v14673_v54, %v11125_v40  ;;  %vm1184_vm11 = vcmp.eq.s32.totalorder %v14673_v54, %v11134_v34 }
 0x256   : > { %14672 = vst [vmem:[#allocation98_spill] sm:$0xff] %v11938_v22  ;;  %v4204_v15 = vpop.f32.mrb[120].mxu0 }
 0x257   : > { %v4206_v5 = vpop.f32.mrb[121].mxu0  ;;  %v4589_v50 = vpop.f32.mrb[120].mxu1  ;;  %8533 = vmatmul.mubr.msk.f32.gmra.mrb[226].mxu0 %vm1166_vm6, %v14634_v38 }
 0x258   : > { %v11952_v20 = vadd.f32 %v4589_v50, %v4204_v15  ;;  %v4591_v22 = vpop.f32.mrb[121].mxu1  ;;  %8661 = vmatmul.mubr.msk.f32.gmra.mrb[226].mxu1 %vm1168_vm7, %v14634_v38  ;;  %8534 = vmatprep.mubr.msk.f32.mxu0 %vm1183_vm8, %v14634_v38  ;;  %v14675_v5 = vld [vmem:[#allocation40_spill] sm:$0xff] }
 0x259   : > { %8662 = vmatprep.mubr.msk.f32.mxu1 %vm1185_vm9, %v14634_v38  ;;  %vm1199_vm12 = vcmp.eq.s32.totalorder %v14675_v5, %v11107_v46  ;;  %vm1201_vm13 = vcmp.eq.s32.totalorder %v14675_v5, %v11114_v41  ;;  %vm1198_vm14 = vcmp.eq.s32.totalorder %v14675_v5, %v11125_v40  ;;  %vm1200_vm15 = vcmp.eq.s32.totalorder %v14675_v5, %v11134_v34 }
 0x25a   : > { %14674 = vst [vmem:[#allocation99_spill] sm:$0xff] %v11952_v20  ;;  %v4209_v51 = vpop.f32.mrb[122].mxu0 }
 0x25b   : > { %v4211_v15 = vpop.f32.mrb[123].mxu0  ;;  %v4594_v22 = vpop.f32.mrb[122].mxu1  ;;  %8535 = vmatmul.mubr.msk.f32.gmra.mrb[228].mxu0 %vm1182_vm10, %v14634_v38 }
 0x25c   : > { %v11966_v50 = vadd.f32 %v4594_v22, %v4209_v51  ;;  %v4596_v20 = vpop.f32.mrb[123].mxu1  ;;  %8663 = vmatmul.mubr.msk.f32.gmra.mrb[228].mxu1 %vm1184_vm11, %v14634_v38  ;;  %8536 = vmatprep.mubr.msk.f32.mxu0 %vm1199_vm12, %v14634_v38  ;;  %v14677_v15 = vld [vmem:[#allocation41_spill] sm:$0xff] }
 0x25d   : > { %8664 = vmatprep.mubr.msk.f32.mxu1 %vm1201_vm13, %v14634_v38  ;;  %vm1215_vm0 = vcmp.eq.s32.totalorder %v14677_v15, %v11107_v46  ;;  %vm1217_vm1 = vcmp.eq.s32.totalorder %v14677_v15, %v11114_v41  ;;  %vm1214_vm2 = vcmp.eq.s32.totalorder %v14677_v15, %v11125_v40  ;;  %vm1216_vm3 = vcmp.eq.s32.totalorder %v14677_v15, %v11134_v34 }
 0x25e   : > { %14676 = vst [vmem:[#allocation100_spill] sm:$0xff] %v11966_v50  ;;  %v4214_v54 = vpop.f32.mrb[124].mxu0 }
 0x25f   : > { %v4216_v51 = vpop.f32.mrb[125].mxu0  ;;  %v4599_v20 = vpop.f32.mrb[124].mxu1  ;;  %8537 = vmatmul.mubr.msk.f32.gmra.mrb[230].mxu0 %vm1198_vm14, %v14634_v38 }
 0x260   : > { %v11980_v22 = vadd.f32 %v4599_v20, %v4214_v54  ;;  %v4601_v50 = vpop.f32.mrb[125].mxu1  ;;  %8665 = vmatmul.mubr.msk.f32.gmra.mrb[230].mxu1 %vm1200_vm15, %v14634_v38  ;;  %8538 = vmatprep.mubr.msk.f32.mxu0 %vm1215_vm0, %v14634_v38  ;;  %v14679_v51 = vld [vmem:[#allocation42_spill] sm:$0xff] }
 0x261   : > { %8666 = vmatprep.mubr.msk.f32.mxu1 %vm1217_vm1, %v14634_v38  ;;  %vm1231_vm4 = vcmp.eq.s32.totalorder %v14679_v51, %v11107_v46  ;;  %vm1233_vm5 = vcmp.eq.s32.totalorder %v14679_v51, %v11114_v41  ;;  %vm1230_vm6 = vcmp.eq.s32.totalorder %v14679_v51, %v11125_v40  ;;  %vm1232_vm7 = vcmp.eq.s32.totalorder %v14679_v51, %v11134_v34  ;;  %v14683_v51 = vld [vmem:[#allocation44_spill] sm:$0xff] }
 0x262   : > { %14678 = vst [vmem:[#allocation101_spill] sm:$0xff] %v11980_v22  ;;  %v4219_v5 = vpop.f32.mrb[126].mxu0  ;;  %vm1263_vm12 = vcmp.eq.s32.totalorder %v14683_v51, %v11107_v46  ;;  %vm1265_vm13 = vcmp.eq.s32.totalorder %v14683_v51, %v11114_v41  ;;  %vm1262_vm14 = vcmp.eq.s32.totalorder %v14683_v51, %v11125_v40  ;;  %vm1264_vm15 = vcmp.eq.s32.totalorder %v14683_v51, %v11134_v34 }
 0x263   : > { %v4221_v54 = vpop.f32.mrb[127].mxu0  ;;  %v4604_v50 = vpop.f32.mrb[126].mxu1  ;;  %8539 = vmatmul.mubr.msk.f32.gmra.mrb[232].mxu0 %vm1214_vm2, %v14634_v38 }
 0x264   : > { %v11994_v20 = vadd.f32 %v4604_v50, %v4219_v5  ;;  %v4606_v22 = vpop.f32.mrb[127].mxu1  ;;  %8667 = vmatmul.mubr.msk.f32.gmra.mrb[232].mxu1 %vm1216_vm3, %v14634_v38  ;;  %8540 = vmatprep.mubr.msk.f32.mxu0 %vm1231_vm4, %v14634_v38  ;;  %v14681_v54 = vld [vmem:[#allocation43_spill] sm:$0xff]  ;;  %v14682_v5 = vld [vmem:[#allocation45_spill] sm:$0xff] }
 0x265   : > { %8668 = vmatprep.mubr.msk.f32.mxu1 %vm1233_vm5, %v14634_v38  ;;  %vm1247_vm8 = vcmp.eq.s32.totalorder %v14681_v54, %v11107_v46  ;;  %vm1249_vm9 = vcmp.eq.s32.totalorder %v14681_v54, %v11114_v41  ;;  %vm1246_vm10 = vcmp.eq.s32.totalorder %v14681_v54, %v11125_v40  ;;  %vm1248_vm11 = vcmp.eq.s32.totalorder %v14681_v54, %v11134_v34 }
 0x266   : > { %14680 = vst [vmem:[#allocation102_spill] sm:$0xff] %v11994_v20  ;;  %v4674_v15 = vpop.f32.mrb[128].mxu0 }
 0x267   : > { %v4675_v22 = vadd.f32 %v4674_v15, %v14682_v5  ;;  %v4676_v50 = vpop.f32.mrb[129].mxu0  ;;  %8541 = vmatmul.mubr.msk.f32.gmra.mrb[234].mxu0 %vm1230_vm6, %v14634_v38  ;;  %v5059_v20 = vpop.f32.mrb[128].mxu1 }
 0x268   : > { %v5061_v59 = vpop.f32.mrb[129].mxu1  ;;  %8669 = vmatmul.mubr.msk.f32.gmra.mrb[234].mxu1 %vm1232_vm7, %v14634_v38  ;;  %8542 = vmatprep.mubr.msk.f32.mxu0 %vm1247_vm8, %v14634_v38 }
 0x269   : > { %8670 = vmatprep.mubr.msk.f32.mxu1 %vm1249_vm9, %v14634_v38  ;;  %v12018_v15 = vadd.f32 %v5059_v20, %v4675_v22  ;;  %v14685_v59 = vld [vmem:[#allocation47_spill] sm:$0xff]  ;;  %v14686_v20 = vld [vmem:[#allocation46_spill] sm:$0xff] }
 0x26a   : > { %v4679_v5 = vpop.f32.mrb[130].mxu0  ;;  %vm1279_vm0 = vcmp.eq.s32.totalorder %v14686_v20, %v11107_v46  ;;  %vm1281_vm1 = vcmp.eq.s32.totalorder %v14686_v20, %v11114_v41  ;;  %vm1278_vm2 = vcmp.eq.s32.totalorder %v14686_v20, %v11125_v40  ;;  %vm1280_vm3 = vcmp.eq.s32.totalorder %v14686_v20, %v11134_v34 }
 0x26b   : > { %14684 = vst [vmem:[#allocation45_spill] sm:$0xff] %v12018_v15  ;;  %v4680_v50 = vadd.f32 %v4679_v5, %v14685_v59  ;;  %v4681_v43 = vpop.f32.mrb[131].mxu0  ;;  %8543 = vmatmul.mubr.msk.f32.gmra.mrb[236].mxu0 %vm1246_vm10, %v14634_v38  ;;  %v5064_v39 = vpop.f32.mrb[130].mxu1 }
 0x26c   : > { %v5066_v31 = vpop.f32.mrb[131].mxu1  ;;  %8671 = vmatmul.mubr.msk.f32.gmra.mrb[236].mxu1 %vm1248_vm11, %v14634_v38  ;;  %8544 = vmatprep.mubr.msk.f32.mxu0 %vm1263_vm12, %v14634_v38 }
 0x26d   : > { %8672 = vmatprep.mubr.msk.f32.mxu1 %vm1265_vm13, %v14634_v38  ;;  %v12033_v43 = vadd.f32 %v5064_v39, %v4680_v50  ;;  %v14688_v31 = vld [vmem:[#allocation49_spill] sm:$0xff]  ;;  %v14689_v39 = vld [vmem:[#allocation48_spill] sm:$0xff] }
 0x26e   : > { %v4684_v22 = vpop.f32.mrb[132].mxu0  ;;  %vm1295_vm4 = vcmp.eq.s32.totalorder %v14689_v39, %v11107_v46  ;;  %vm1297_vm5 = vcmp.eq.s32.totalorder %v14689_v39, %v11114_v41  ;;  %vm1294_vm6 = vcmp.eq.s32.totalorder %v14689_v39, %v11125_v40  ;;  %vm1296_vm7 = vcmp.eq.s32.totalorder %v14689_v39, %v11134_v34 }
 0x26f   : > { %14687 = vst [vmem:[#allocation47_spill] sm:$0xff] %v12033_v43  ;;  %v4685_v5 = vadd.f32 %v4684_v22, %v14688_v31  ;;  %v4686_v59 = vpop.f32.mrb[133].mxu0  ;;  %8545 = vmatmul.mubr.msk.f32.gmra.mrb[238].mxu0 %vm1262_vm14, %v14634_v38  ;;  %v5069_v15 = vpop.f32.mrb[132].mxu1 }
 0x270   : > { %v5071_v54 = vpop.f32.mrb[133].mxu1  ;;  %8673 = vmatmul.mubr.msk.f32.gmra.mrb[238].mxu1 %vm1264_vm15, %v14634_v38  ;;  %8546 = vmatprep.mubr.msk.f32.mxu0 %vm1279_vm0, %v14634_v38 }
 0x271   : > { %8674 = vmatprep.mubr.msk.f32.mxu1 %vm1281_vm1, %v14634_v38  ;;  %v12048_v50 = vadd.f32 %v5069_v15, %v4685_v5  ;;  %v14691_v54 = vld [vmem:[#allocation51_spill] sm:$0xff]  ;;  %v14692_v15 = vld [vmem:[#allocation50_spill] sm:$0xff] }
 0x272   : > { %v4689_v22 = vpop.f32.mrb[134].mxu0  ;;  %vm1311_vm8 = vcmp.eq.s32.totalorder %v14692_v15, %v11107_v46  ;;  %vm1313_vm9 = vcmp.eq.s32.totalorder %v14692_v15, %v11114_v41  ;;  %vm1310_vm10 = vcmp.eq.s32.totalorder %v14692_v15, %v11125_v40  ;;  %vm1312_vm11 = vcmp.eq.s32.totalorder %v14692_v15, %v11134_v34 }
 0x273   : > { %14690 = vst [vmem:[#allocation49_spill] sm:$0xff] %v12048_v50  ;;  %v4690_v31 = vadd.f32 %v4689_v22, %v14691_v54  ;;  %v4691_v59 = vpop.f32.mrb[135].mxu0  ;;  %8547 = vmatmul.mubr.msk.f32.gmra.mrb[240].mxu0 %vm1278_vm2, %v14634_v38  ;;  %v5074_v43 = vpop.f32.mrb[134].mxu1 }
 0x274   : > { %v5076_v51 = vpop.f32.mrb[135].mxu1  ;;  %8675 = vmatmul.mubr.msk.f32.gmra.mrb[240].mxu1 %vm1280_vm3, %v14634_v38  ;;  %8548 = vmatprep.mubr.msk.f32.mxu0 %vm1295_vm4, %v14634_v38 }
 0x275   : > { %8676 = vmatprep.mubr.msk.f32.mxu1 %vm1297_vm5, %v14634_v38  ;;  %v12063_v5 = vadd.f32 %v5074_v43, %v4690_v31  ;;  %v14694_v51 = vld [vmem:[#allocation53_spill] sm:$0xff]  ;;  %v14695_v43 = vld [vmem:[#allocation52_spill] sm:$0xff] }
 0x276   : > { %v4694_v22 = vpop.f32.mrb[136].mxu0  ;;  %vm1327_vm12 = vcmp.eq.s32.totalorder %v14695_v43, %v11107_v46  ;;  %vm1329_vm13 = vcmp.eq.s32.totalorder %v14695_v43, %v11114_v41  ;;  %vm1326_vm14 = vcmp.eq.s32.totalorder %v14695_v43, %v11125_v40  ;;  %vm1328_vm15 = vcmp.eq.s32.totalorder %v14695_v43, %v11134_v34 }
 0x277   : > { %14693 = vst [vmem:[#allocation51_spill] sm:$0xff] %v12063_v5  ;;  %v4695_v54 = vadd.f32 %v4694_v22, %v14694_v51  ;;  %v4696_v59 = vpop.f32.mrb[137].mxu0  ;;  %8549 = vmatmul.mubr.msk.f32.gmra.mrb[242].mxu0 %vm1294_vm6, %v14634_v38  ;;  %v5079_v50 = vpop.f32.mrb[136].mxu1 }
 0x278   : > { %v5081_v20 = vpop.f32.mrb[137].mxu1  ;;  %8677 = vmatmul.mubr.msk.f32.gmra.mrb[242].mxu1 %vm1296_vm7, %v14634_v38  ;;  %8550 = vmatprep.mubr.msk.f32.mxu0 %vm1311_vm8, %v14634_v38 }
 0x279   : > { %8678 = vmatprep.mubr.msk.f32.mxu1 %vm1313_vm9, %v14634_v38  ;;  %v12078_v31 = vadd.f32 %v5079_v50, %v4695_v54  ;;  %v14697_v20 = vld [vmem:[#allocation55_spill] sm:$0xff]  ;;  %v14698_v50 = vld [vmem:[#allocation54_spill] sm:$0xff] }
 0x27a   : > { %v4699_v22 = vpop.f32.mrb[138].mxu0  ;;  %vm1343_vm0 = vcmp.eq.s32.totalorder %v14698_v50, %v11107_v46  ;;  %vm1345_vm1 = vcmp.eq.s32.totalorder %v14698_v50, %v11114_v41  ;;  %vm1342_vm2 = vcmp.eq.s32.totalorder %v14698_v50, %v11125_v40  ;;  %vm1344_vm3 = vcmp.eq.s32.totalorder %v14698_v50, %v11134_v34 }
 0x27b   : > { %14696 = vst [vmem:[#allocation53_spill] sm:$0xff] %v12078_v31  ;;  %v4700_v51 = vadd.f32 %v4699_v22, %v14697_v20  ;;  %v4701_v59 = vpop.f32.mrb[139].mxu0  ;;  %8551 = vmatmul.mubr.msk.f32.gmra.mrb[244].mxu0 %vm1310_vm10, %v14634_v38  ;;  %v5084_v5 = vpop.f32.mrb[138].mxu1 }
 0x27c   : > { %v5086_v39 = vpop.f32.mrb[139].mxu1  ;;  %8679 = vmatmul.mubr.msk.f32.gmra.mrb[244].mxu1 %vm1312_vm11, %v14634_v38  ;;  %8552 = vmatprep.mubr.msk.f32.mxu0 %vm1327_vm12, %v14634_v38 }
 0x27d   : > { %8680 = vmatprep.mubr.msk.f32.mxu1 %vm1329_vm13, %v14634_v38  ;;  %v12093_v54 = vadd.f32 %v5084_v5, %v4700_v51  ;;  %v14700_v39 = vld [vmem:[#allocation57_spill] sm:$0xff]  ;;  %v14701_v5 = vld [vmem:[#allocation56_spill] sm:$0xff] }
 0x27e   : > { %v4704_v22 = vpop.f32.mrb[140].mxu0  ;;  %vm1359_vm4 = vcmp.eq.s32.totalorder %v14701_v5, %v11107_v46  ;;  %vm1361_vm5 = vcmp.eq.s32.totalorder %v14701_v5, %v11114_v41  ;;  %vm1358_vm6 = vcmp.eq.s32.totalorder %v14701_v5, %v11125_v40  ;;  %vm1360_vm7 = vcmp.eq.s32.totalorder %v14701_v5, %v11134_v34 }
 0x27f   : > { %14699 = vst [vmem:[#allocation55_spill] sm:$0xff] %v12093_v54  ;;  %v4705_v20 = vadd.f32 %v4704_v22, %v14700_v39  ;;  %v4706_v59 = vpop.f32.mrb[141].mxu0  ;;  %8553 = vmatmul.mubr.msk.f32.gmra.mrb[246].mxu0 %vm1326_vm14, %v14634_v38  ;;  %v5089_v31 = vpop.f32.mrb[140].mxu1 }
 0x280   : > { %v5091_v15 = vpop.f32.mrb[141].mxu1  ;;  %8681 = vmatmul.mubr.msk.f32.gmra.mrb[246].mxu1 %vm1328_vm15, %v14634_v38  ;;  %8554 = vmatprep.mubr.msk.f32.mxu0 %vm1343_vm0, %v14634_v38 }
 0x281   : > { %8682 = vmatprep.mubr.msk.f32.mxu1 %vm1345_vm1, %v14634_v38  ;;  %v12108_v51 = vadd.f32 %v5089_v31, %v4705_v20  ;;  %v14703_v15 = vld [vmem:[#allocation59_spill] sm:$0xff]  ;;  %v14704_v31 = vld [vmem:[#allocation58_spill] sm:$0xff] }
 0x282   : > { %v4709_v22 = vpop.f32.mrb[142].mxu0  ;;  %vm1375_vm8 = vcmp.eq.s32.totalorder %v14704_v31, %v11107_v46  ;;  %vm1377_vm9 = vcmp.eq.s32.totalorder %v14704_v31, %v11114_v41  ;;  %vm1374_vm10 = vcmp.eq.s32.totalorder %v14704_v31, %v11125_v40  ;;  %vm1376_vm11 = vcmp.eq.s32.totalorder %v14704_v31, %v11134_v34 }
 0x283   : > { %14702 = vst [vmem:[#allocation57_spill] sm:$0xff] %v12108_v51  ;;  %v4710_v39 = vadd.f32 %v4709_v22, %v14703_v15  ;;  %v4711_v59 = vpop.f32.mrb[143].mxu0  ;;  %8555 = vmatmul.mubr.msk.f32.gmra.mrb[248].mxu0 %vm1342_vm2, %v14634_v38  ;;  %v5094_v54 = vpop.f32.mrb[142].mxu1  ;;  %v313_v22 = vld [vmem:[#allocation2 + $0x8] sm:$0xff] }
 0x284   : > { %v5096_v43 = vpop.f32.mrb[143].mxu1  ;;  %8683 = vmatmul.mubr.msk.f32.gmra.mrb[248].mxu1 %vm1344_vm3, %v14634_v38  ;;  %8556 = vmatprep.mubr.msk.f32.mxu0 %vm1359_vm4, %v14634_v38 }
 0x285   : > { %8684 = vmatprep.mubr.msk.f32.mxu1 %vm1361_vm5, %v14634_v38  ;;  %v12123_v20 = vadd.f32 %v5094_v54, %v4710_v39  ;;  %v14706_v43 = vld [vmem:[#allocation61_spill] sm:$0xff]  ;;  %v14707_v54 = vld [vmem:[#allocation60_spill] sm:$0xff] }
 0x286   : > { %v4714_v15 = vpop.f32.mrb[144].mxu0  ;;  %vm1391_vm12 = vcmp.eq.s32.totalorder %v14707_v54, %v11107_v46  ;;  %vm1393_vm13 = vcmp.eq.s32.totalorder %v14707_v54, %v11114_v41  ;;  %vm1390_vm14 = vcmp.eq.s32.totalorder %v14707_v54, %v11125_v40  ;;  %vm1392_vm15 = vcmp.eq.s32.totalorder %v14707_v54, %v11134_v34  ;;  %v3806_v40 = vld [vmem:[#allocation5 + $0x700] sm:$0xff]  ;;  %v14720_v54 = vld [vmem:[#allocation64_spill] sm:$0xff] }
 0x287   : > { %14705 = vst [vmem:[#allocation59_spill] sm:$0xff] %v12123_v20  ;;  %v4715_v59 = vadd.f32 %v4714_v15, %v14706_v43  ;;  %v4716_v51 = vpop.f32.mrb[145].mxu0  ;;  %8557 = vmatmul.mubr.msk.f32.gmra.mrb[250].mxu0 %vm1358_vm6, %v14634_v38  ;;  %v5099_v50 = vpop.f32.mrb[144].mxu1 }
 0x288   : > { %v5101_v27 = vpop.f32.mrb[145].mxu1  ;;  %8685 = vmatmul.mubr.msk.f32.gmra.mrb[250].mxu1 %vm1360_vm7, %v14634_v38  ;;  %8558 = vmatprep.mubr.msk.f32.mxu0 %vm1375_vm8, %v14634_v38  ;;  %v14708_v51 = vld [vmem:[#allocation11_spill] sm:$0xff] }
 0x289   : > { %8686 = vmatprep.mubr.msk.f32.mxu1 %vm1377_vm9, %v14634_v38  ;;  %v14709_v39 = vsub.s32 1, %v14708_v51  ;;  %v12142_v27 = vadd.f32 %v5099_v50, %v4715_v59  ;;  %v14711_v20 = vsub.s32 3, %v14708_v51  ;;  %v14713_v10 = vsub.s32 0, %v14708_v51 }
 0x28a   : > { %v4719_v43 = vpop.f32.mrb[146].mxu0  ;;  %v14714_v41 = vsub.s32 2, %v14708_v51 }
 0x28b   : > { %v12140_v15 = vrot.slane %v313_v22, %v14709_v39  ;;  %14710 = vst [vmem:[#allocation61_spill] sm:$0xff] %v12142_v27  ;;  %v12148_v5 = vrot.slane %v313_v22, %v14711_v20  ;;  %v4720_v14 = vadd.f32 %v4719_v43, %v14712_v19  ;;  %v4721_v31 = vpop.f32.mrb[147].mxu0  ;;  %8559 = vmatmul.mubr.msk.f32.gmra.mrb[252].mxu0 %vm1374_vm10, %v14634_v38  ;;  %v5104_v46 = vpop.f32.mrb[146].mxu1  ;;  %v3774_v19 = vld [vmem:[#allocation5 + $0x600] sm:$0xff] }
 0x28c   : > { %v12154_v39 = vrot.slane %v313_v22, %v14713_v10  ;;  %v5106_v50 = vpop.f32.mrb[147].mxu1  ;;  %8687 = vmatmul.mubr.msk.f32.gmra.mrb[252].mxu1 %vm1376_vm11, %v14634_v38  ;;  %8560 = vmatprep.mubr.msk.f32.mxu0 %vm1391_vm12, %v14634_v38  ;;  %v12162_v20 = vrot.slane %v313_v22, %v14714_v41  ;;  %v14715_v10 = vld [vmem:[#allocation12_spill] sm:$0xff]  ;;  %v14717_v22 = vld [vmem:[#allocation63_spill] sm:$0xff] }
 0x28d   : > { %8688 = vmatprep.mubr.msk.f32.mxu1 %vm1393_vm13, %v14634_v38  ;;  %vm387_vm0 = vcmp.eq.s32.totalorder %v14715_v10, %v12140_v15  ;;  %v3775_v31 = vld [vmem:[#allocation5 + $0x608] sm:$0xff]  ;;  %v12169_v59 = vadd.f32 %v5104_v46, %v4720_v14  ;;  %vm389_vm1 = vcmp.eq.s32.totalorder %v14715_v10, %v12148_v5  ;;  %vm419_vm8 = vcmp.eq.s32.totalorder %v10060_v3, %v12140_v15 }
 0x28e   : > { %v4724_v43 = vpop.f32.mrb[148].mxu0  ;;  %v3807_v50 = vld [vmem:[#allocation5 + $0x708] sm:$0xff]  ;;  %vm386_vm2 = vcmp.eq.s32.totalorder %v14715_v10, %v12154_v39  ;;  %v9497_v14 = vpack.c.bf16 %v3775_v31, %v3774_v19  ;;  %vm388_vm3 = vcmp.eq.s32.totalorder %v14715_v10, %v12162_v20  ;;  %v3808_v31 = vld [vmem:[#allocation5 + $0x710] sm:$0xff]  ;;  %vm421_vm9 = vcmp.eq.s32.totalorder %v10060_v3, %v12148_v5 }
 0x28f   : > { %14716 = vst [vmem:[#allocation62_spill] sm:$0xff] %v12169_v59  ;;  %v4725_v41 = vadd.f32 %v4724_v43, %v14717_v22  ;;  %v4726_v51 = vpop.f32.mrb[149].mxu0  ;;  %8561 = vmatmul.mubr.msk.f32.gmra.mrb[254].mxu0 %vm1390_vm14, %v14634_v38  ;;  %v5109_v27 = vpop.f32.mrb[148].mxu1  ;;  %v9545_v46 = vpack.c.bf16 %v3807_v50, %v3806_v40  ;;  %v14719_v22 = vld [vmem:[#allocation13_spill] sm:$0xff]  ;;  %v3777_v59 = vld [vmem:[#allocation5 + $0x618] sm:$0xff]  ;;  %v9548_v50 = vpack.c.bf16 %v3809_v1, %v3808_v31 }
 0x290   : > { %v5111_v34 = vpop.f32.mrb[149].mxu1  ;;  %8689 = vmatmul.mubr.msk.f32.gmra.mrb[254].mxu1 %vm1392_vm15, %v14634_v38  ;;  %8690 = vmatprep.mubr.msk.f32.mxu0 %vm387_vm0, %v14634_v38  ;;  %vm403_vm4 = vcmp.eq.s32.totalorder %v14719_v22, %v12140_v15  ;;  %vm405_vm5 = vcmp.eq.s32.totalorder %v14719_v22, %v12148_v5  ;;  %vm402_vm6 = vcmp.eq.s32.totalorder %v14719_v22, %v12154_v39 }
 0x291   : > { %8818 = vmatprep.mubr.msk.f32.mxu1 %vm389_vm1, %v14634_v38  ;;  %v12182_v43 = vadd.f32 %v5109_v27, %v4725_v41  ;;  %v3776_v34 = vld [vmem:[#allocation5 + $0x610] sm:$0xff]  ;;  %vm404_vm7 = vcmp.eq.s32.totalorder %v14719_v22, %v12162_v20  ;;  %v3778_v41 = vld [vmem:[#allocation5 + $0x620] sm:$0xff]  ;;  %vm418_vm10 = vcmp.eq.s32.totalorder %v10060_v3, %v12154_v39  ;;  %vm420_vm11 = vcmp.eq.s32.totalorder %v10060_v3, %v12162_v20 }
 0x292   : > { %v4729_v51 = vpop.f32.mrb[150].mxu0  ;;  %vm435_vm12 = vcmp.eq.s32.totalorder %v10072_v8, %v12140_v15  ;;  %vm437_vm13 = vcmp.eq.s32.totalorder %v10072_v8, %v12148_v5  ;;  %vm434_vm14 = vcmp.eq.s32.totalorder %v10072_v8, %v12154_v39  ;;  %vm436_vm15 = vcmp.eq.s32.totalorder %v10072_v8, %v12162_v20 }
 0x293   : > { %14718 = vst [vmem:[#allocation12_spill] sm:$0xff] %v12182_v43  ;;  %v4730_v47 = vadd.f32 %v4729_v51, %v14720_v54  ;;  %v4731_v58 = vpop.f32.mrb[151].mxu0  ;;  %8691 = vmatmul.mubr.msk.f32.vlgmr.msra.gmra.mrb[0].mxu0 %vm386_vm2, %v14634_v38  ;;  %v5114_v19 = vpop.f32.mrb[150].mxu1  ;;  %v14722_v51 = vld [vmem:[#allocation65_spill] sm:$0xff]  ;;  %vm451_vm0 = vcmp.eq.s32.totalorder %v10091_v16, %v12140_v15  ;;  %vm453_vm1 = vcmp.eq.s32.totalorder %v10091_v16, %v12148_v5 }
 0x294   : > { %9498 = vmatpush1.bf16.msra.mxu0 %v9497_v14  ;;  %v5116_v27 = vpop.f32.mrb[151].mxu1  ;;  %8819 = vmatmul.mubr.msk.f32.vlgmr.msra.gmra.mrb[0].mxu1 %vm388_vm3, %v14634_v38  ;;  %v9500_v58 = vpack.c.bf16 %v3777_v59, %v3776_v34  ;;  %v3779_v14 = vld [vmem:[#allocation5 + $0x628] sm:$0xff]  ;;  %v3810_v59 = vld [vmem:[#allocation5 + $0x720] sm:$0xff]  ;;  %vm450_vm2 = vcmp.eq.s32.totalorder %v10091_v16, %v12154_v39  ;;  %vm452_vm3 = vcmp.eq.s32.totalorder %v10091_v16, %v12162_v20 }
 0x295   : > { %8692 = vmatprep.mubr.msk.f32.mxu0 %vm403_vm4, %v14634_v38  ;;  %9546 = vmatpush1.bf16.msra.mxu1 %v9545_v46  ;;  %v12201_v54 = vadd.f32 %v5114_v19, %v4730_v47  ;;  %v3811_v34 = vld [vmem:[#allocation5 + $0x728] sm:$0xff]  ;;  %v9503_v1 = vpack.c.bf16 %v3779_v14, %v3778_v41  ;;  %v3812_v41 = vld [vmem:[#allocation5 + $0x730] sm:$0xff]  ;;  %v3813_v14 = vld [vmem:[#allocation5 + $0x738] sm:$0xff]  ;;  %vm467_vm4 = vcmp.eq.s32.totalorder %v10109_v24, %v12140_v15 }
 0x296   : > { %v4734_v40 = vpop.f32.mrb[152].mxu0  ;;  %8820 = vmatprep.mubr.msk.f32.mxu1 %vm405_vm5, %v14634_v38  ;;  %9499 = vmatprep.subr.bf16.mxu0 %v14632_v44  ;;  %vm469_vm5 = vcmp.eq.s32.totalorder %v10109_v24, %v12148_v5 }
 0x297   : > { %14721 = vst [vmem:[#allocation63_spill] sm:$0xff] %v12201_v54  ;;  %v4735_v27 = vadd.f32 %v4734_v40, %v14722_v51  ;;  %v4736_v46 = vpop.f32.mrb[153].mxu0  ;;  %8693 = vmatmul.mubr.msk.f32.gmra.mrb[2].mxu0 %vm402_vm6, %v14634_v38  ;;  %v5119_v47 = vpop.f32.mrb[152].mxu1  ;;  %9547 = vmatprep.subr.bf16.mxu1 %v14632_v44  ;;  %v9551_v51 = vpack.c.bf16 %v3811_v34, %v3810_v59  ;;  %v14724_v54 = vld [vmem:[#allocation66_spill] sm:$0xff]  ;;  %v3782_v59 = vld [vmem:[#allocation5 + $0x640] sm:$0xff]  ;;  %v3783_v34 = vld [vmem:[#allocation5 + $0x648] sm:$0xff] }
 0x298   : > { %v5121_v19 = vpop.f32.mrb[153].mxu1  ;;  %8821 = vmatmul.mubr.msk.f32.gmra.mrb[2].mxu1 %vm404_vm7, %v14634_v38  ;;  %8694 = vmatprep.mubr.msk.f32.mxu0 %vm419_vm8, %v14634_v38  ;;  %v3780_v46 = vld [vmem:[#allocation5 + $0x630] sm:$0xff]  ;;  %vm466_vm6 = vcmp.eq.s32.totalorder %v10109_v24, %v12154_v39  ;;  %vm468_vm7 = vcmp.eq.s32.totalorder %v10109_v24, %v12162_v20  ;;  %vm483_vm8 = vcmp.eq.s32.totalorder %v10127_v33, %v12140_v15 }
 0x299   : > { %8822 = vmatprep.mubr.msk.f32.mxu1 %vm421_vm9, %v14634_v38  ;;  %9501 = vmatpush1.bf16.msra.mxu0 %v9500_v58  ;;  %v12231_v31 = vadd.f32 %v5119_v47, %v4735_v27  ;;  %v3781_v19 = vld [vmem:[#allocation5 + $0x638] sm:$0xff]  ;;  %v9554_v47 = vpack.c.bf16 %v3813_v14, %v3812_v41  ;;  %v3784_v14 = vld [vmem:[#allocation5 + $0x650] sm:$0xff]  ;;  %vm485_vm9 = vcmp.eq.s32.totalorder %v10127_v33, %v12148_v5 }
 0x29a   : > { %v4739_v40 = vpop.f32.mrb[154].mxu0  ;;  %9549 = vmatpush1.bf16.msra.mxu1 %v9548_v50  ;;  %9502 = vmatprep.subr.bf16.mxu0 %v14632_v44 }
 0x29b   : > { %14723 = vst [vmem:[#allocation64_spill] sm:$0xff] %v12231_v31  ;;  %v4740_v22 = vadd.f32 %v4739_v40, %v14724_v54  ;;  %v4741_v43 = vpop.f32.mrb[155].mxu0  ;;  %8695 = vmatmul.mubr.msk.f32.gmra.mrb[4].mxu0 %vm418_vm10, %v14634_v38  ;;  %v5124_v58 = vpop.f32.mrb[154].mxu1  ;;  %9550 = vmatprep.subr.bf16.mxu1 %v14632_v44  ;;  %v14726_v40 = vld [vmem:[#allocation67_spill] sm:$0xff]  ;;  %vm482_vm10 = vcmp.eq.s32.totalorder %v10127_v33, %v12154_v39 }
 0x29c   : > { %v5126_v27 = vpop.f32.mrb[155].mxu1  ;;  %8823 = vmatmul.mubr.msk.f32.gmra.mrb[4].mxu1 %vm420_vm11, %v14634_v38  ;;  %8696 = vmatprep.mubr.msk.f32.mxu0 %vm435_vm12, %v14634_v38  ;;  %v9506_v43 = vpack.c.bf16 %v3781_v19, %v3780_v46  ;;  %v3815_v46 = vld [vmem:[#allocation5 + $0x748] sm:$0xff]  ;;  %vm484_vm11 = vcmp.eq.s32.totalorder %v10127_v33, %v12162_v20  ;;  %vm499_vm12 = vcmp.eq.s32.totalorder %v10145_v49, %v12140_v15 }
 0x29d   : > { %8824 = vmatprep.mubr.msk.f32.mxu1 %vm437_vm13, %v14634_v38  ;;  %9504 = vmatpush1.bf16.msra.mxu0 %v9503_v1  ;;  %v12260_v54 = vadd.f32 %v5124_v58, %v4740_v22  ;;  %v3814_v1 = vld [vmem:[#allocation5 + $0x740] sm:$0xff]  ;;  %vm501_vm13 = vcmp.eq.s32.totalorder %v10145_v49, %v12148_v5 }
 0x29e   : > { %v4744_v50 = vpop.f32.mrb[156].mxu0  ;;  %9552 = vmatpush1.bf16.msra.mxu1 %v9551_v51  ;;  %9505 = vmatprep.subr.bf16.mxu0 %v14632_v44  ;;  %v9557_v41 = vpack.c.bf16 %v3815_v46, %v3814_v1  ;;  %v3786_v46 = vld [vmem:[#allocation5 + $0x660] sm:$0xff] }
 0x29f   : > { %14725 = vst [vmem:[#allocation65_spill] sm:$0xff] %v12260_v54  ;;  %v4745_v27 = vadd.f32 %v4744_v50, %v14726_v40  ;;  %v4746_v31 = vpop.f32.mrb[157].mxu0  ;;  %8697 = vmatmul.mubr.msk.f32.gmra.mrb[6].mxu0 %vm434_vm14, %v14634_v38  ;;  %v5129_v22 = vpop.f32.mrb[156].mxu1  ;;  %9553 = vmatprep.subr.bf16.mxu1 %v14632_v44  ;;  %v3785_v50 = vld [vmem:[#allocation5 + $0x658] sm:$0xff]  ;;  %v14728_v40 = vld [vmem:[#allocation68_spill] sm:$0xff]  ;;  %vm498_vm14 = vcmp.eq.s32.totalorder %v10145_v49, %v12154_v39 }
 0x2a0   : > { %v5131_v19 = vpop.f32.mrb[157].mxu1  ;;  %8825 = vmatmul.mubr.msk.f32.gmra.mrb[6].mxu1 %vm436_vm15, %v14634_v38  ;;  %8698 = vmatprep.mubr.msk.f32.mxu0 %vm451_vm0, %v14634_v38  ;;  %v9509_v31 = vpack.c.bf16 %v3783_v34, %v3782_v59  ;;  %v3816_v59 = vld [vmem:[#allocation5 + $0x750] sm:$0xff]  ;;  %v3817_v34 = vld [vmem:[#allocation5 + $0x758] sm:$0xff]  ;;  %vm500_vm15 = vcmp.eq.s32.totalorder %v10145_v49, %v12162_v20  ;;  %vm515_vm0 = vcmp.eq.s32.totalorder %v10163_v62, %v12140_v15 }
 0x2a1   : > { %8826 = vmatprep.mubr.msk.f32.mxu1 %vm453_vm1, %v14634_v38  ;;  %9507 = vmatpush1.bf16.msra.mxu0 %v9506_v43  ;;  %v12289_v51 = vadd.f32 %v5129_v22, %v4745_v27  ;;  %v9560_v1 = vpack.c.bf16 %v3817_v34, %v3816_v59  ;;  %v3788_v34 = vld [vmem:[#allocation5 + $0x670] sm:$0xff]  ;;  %vm517_vm1 = vcmp.eq.s32.totalorder %v10163_v62, %v12148_v5 }
 0x2a2   : > { %v4749_v58 = vpop.f32.mrb[158].mxu0  ;;  %9555 = vmatpush1.bf16.msra.mxu1 %v9554_v47  ;;  %9508 = vmatprep.subr.bf16.mxu0 %v14632_v44 }
 0x2a3   : > { %14727 = vst [vmem:[#allocation66_spill] sm:$0xff] %v12289_v51  ;;  %v4750_v19 = vadd.f32 %v4749_v58, %v14728_v40  ;;  %v4751_v54 = vpop.f32.mrb[159].mxu0  ;;  %8699 = vmatmul.mubr.msk.f32.gmra.mrb[8].mxu0 %vm450_vm2, %v14634_v38  ;;  %v5134_v43 = vpop.f32.mrb[158].mxu1  ;;  %9556 = vmatprep.subr.bf16.mxu1 %v14632_v44  ;;  %v3787_v58 = vld [vmem:[#allocation5 + $0x668] sm:$0xff]  ;;  %v14730_v40 = vld [vmem:[#allocation69_spill] sm:$0xff]  ;;  %vm514_vm2 = vcmp.eq.s32.totalorder %v10163_v62, %v12154_v39 }
 0x2a4   : > { %v5136_v27 = vpop.f32.mrb[159].mxu1  ;;  %8827 = vmatmul.mubr.msk.f32.gmra.mrb[8].mxu1 %vm452_vm3, %v14634_v38  ;;  %8700 = vmatprep.mubr.msk.f32.mxu0 %vm467_vm4, %v14634_v38  ;;  %v9512_v54 = vpack.c.bf16 %v3785_v50, %v3784_v14  ;;  %v3818_v14 = vld [vmem:[#allocation5 + $0x760] sm:$0xff]  ;;  %v3819_v50 = vld [vmem:[#allocation5 + $0x768] sm:$0xff]  ;;  %vm516_vm3 = vcmp.eq.s32.totalorder %v10163_v62, %v12162_v20  ;;  %vm531_vm4 = vcmp.eq.s32.totalorder %v10181_v7, %v12140_v15 }
 0x2a5   : > { %8828 = vmatprep.mubr.msk.f32.mxu1 %vm469_vm5, %v14634_v38  ;;  %9510 = vmatpush1.bf16.msra.mxu0 %v9509_v31  ;;  %v12318_v47 = vadd.f32 %v5134_v43, %v4750_v19  ;;  %v9563_v59 = vpack.c.bf16 %v3819_v50, %v3818_v14  ;;  %v3790_v50 = vld [vmem:[#allocation5 + $0x680] sm:$0xff]  ;;  %vm533_vm5 = vcmp.eq.s32.totalorder %v10181_v7, %v12148_v5 }
 0x2a6   : > { %v4754_v22 = vpop.f32.mrb[160].mxu0  ;;  %9558 = vmatpush1.bf16.msra.mxu1 %v9557_v41  ;;  %9511 = vmatprep.subr.bf16.mxu0 %v14632_v44 }
 0x2a7   : > { %14729 = vst [vmem:[#allocation67_spill] sm:$0xff] %v12318_v47  ;;  %v4755_v27 = vadd.f32 %v4754_v22, %v14730_v40  ;;  %v4756_v51 = vpop.f32.mrb[161].mxu0  ;;  %8701 = vmatmul.mubr.msk.f32.gmra.mrb[10].mxu0 %vm466_vm6, %v14634_v38  ;;  %v5139_v31 = vpop.f32.mrb[160].mxu1  ;;  %9559 = vmatprep.subr.bf16.mxu1 %v14632_v44  ;;  %v3789_v22 = vld [vmem:[#allocation5 + $0x678] sm:$0xff]  ;;  %vm530_vm6 = vcmp.eq.s32.totalorder %v10181_v7, %v12154_v39 }
 0x2a8   : > { %v5141_v19 = vpop.f32.mrb[161].mxu1  ;;  %8829 = vmatmul.mubr.msk.f32.gmra.mrb[10].mxu1 %vm468_vm7, %v14634_v38  ;;  %8702 = vmatprep.mubr.msk.f32.mxu0 %vm483_vm8, %v14634_v38  ;;  %v9515_v51 = vpack.c.bf16 %v3787_v58, %v3786_v46  ;;  %v14732_v40 = vld [vmem:[#allocation70_spill] sm:$0xff]  ;;  %v3820_v46 = vld [vmem:[#allocation5 + $0x770] sm:$0xff]  ;;  %vm532_vm7 = vcmp.eq.s32.totalorder %v10181_v7, %v12162_v20  ;;  %vm547_vm8 = vcmp.eq.s32.totalorder %v10199_v17, %v12140_v15 }
 0x2a9   : > { %8830 = vmatprep.mubr.msk.f32.mxu1 %vm485_vm9, %v14634_v38  ;;  %9513 = vmatpush1.bf16.msra.mxu0 %v9512_v54  ;;  %v12347_v41 = vadd.f32 %v5139_v31, %v4755_v27  ;;  %v3821_v58 = vld [vmem:[#allocation5 + $0x778] sm:$0xff]  ;;  %vm549_vm9 = vcmp.eq.s32.totalorder %v10199_v17, %v12148_v5 }
 0x2aa   : > { %v4759_v43 = vpop.f32.mrb[162].mxu0  ;;  %9561 = vmatpush1.bf16.msra.mxu1 %v9560_v1  ;;  %9514 = vmatprep.subr.bf16.mxu0 %v14632_v44  ;;  %v9566_v14 = vpack.c.bf16 %v3821_v58, %v3820_v46  ;;  %v3792_v58 = vld [vmem:[#allocation5 + $0x690] sm:$0xff] }
 0x2ab   : > { %14731 = vst [vmem:[#allocation68_spill] sm:$0xff] %v12347_v41  ;;  %v4760_v19 = vadd.f32 %v4759_v43, %v14732_v40  ;;  %v4761_v47 = vpop.f32.mrb[163].mxu0  ;;  %8703 = vmatmul.mubr.msk.f32.gmra.mrb[12].mxu0 %vm482_vm10, %v14634_v38  ;;  %v5144_v54 = vpop.f32.mrb[162].mxu1  ;;  %9562 = vmatprep.subr.bf16.mxu1 %v14632_v44  ;;  %v3791_v43 = vld [vmem:[#allocation5 + $0x688] sm:$0xff]  ;;  %v14734_v40 = vld [vmem:[#allocation71_spill] sm:$0xff]  ;;  %vm546_vm10 = vcmp.eq.s32.totalorder %v10199_v17, %v12154_v39 }
 0x2ac   : > { %v5146_v27 = vpop.f32.mrb[163].mxu1  ;;  %8831 = vmatmul.mubr.msk.f32.gmra.mrb[12].mxu1 %vm484_vm11, %v14634_v38  ;;  %8704 = vmatprep.mubr.msk.f32.mxu0 %vm499_vm12, %v14634_v38  ;;  %v9518_v47 = vpack.c.bf16 %v3789_v22, %v3788_v34  ;;  %v3822_v34 = vld [vmem:[#allocation5 + $0x780] sm:$0xff]  ;;  %v3823_v22 = vld [vmem:[#allocation5 + $0x788] sm:$0xff]  ;;  %vm548_vm11 = vcmp.eq.s32.totalorder %v10199_v17, %v12162_v20  ;;  %vm563_vm12 = vcmp.eq.s32.totalorder %v10217_v26, %v12140_v15 }
 0x2ad   : > { %8832 = vmatprep.mubr.msk.f32.mxu1 %vm501_vm13, %v14634_v38  ;;  %9516 = vmatpush1.bf16.msra.mxu0 %v9515_v51  ;;  %v12376_v1 = vadd.f32 %v5144_v54, %v4760_v19  ;;  %v9569_v46 = vpack.c.bf16 %v3823_v22, %v3822_v34  ;;  %v3794_v22 = vld [vmem:[#allocation5 + $0x6a0] sm:$0xff]  ;;  %vm565_vm13 = vcmp.eq.s32.totalorder %v10217_v26, %v12148_v5 }
 0x2ae   : > { %v4764_v31 = vpop.f32.mrb[164].mxu0  ;;  %9564 = vmatpush1.bf16.msra.mxu1 %v9563_v59  ;;  %9517 = vmatprep.subr.bf16.mxu0 %v14632_v44 }
 0x2af   : > { %14733 = vst [vmem:[#allocation69_spill] sm:$0xff] %v12376_v1  ;;  %v4765_v27 = vadd.f32 %v4764_v31, %v14734_v40  ;;  %v4766_v41 = vpop.f32.mrb[165].mxu0  ;;  %8705 = vmatmul.mubr.msk.f32.gmra.mrb[14].mxu0 %vm498_vm14, %v14634_v38  ;;  %v5149_v51 = vpop.f32.mrb[164].mxu1  ;;  %9565 = vmatprep.subr.bf16.mxu1 %v14632_v44  ;;  %v3793_v31 = vld [vmem:[#allocation5 + $0x698] sm:$0xff]  ;;  %v14735_v40 = vld [vmem:[#allocation72_spill] sm:$0xff]  ;;  %vm562_vm14 = vcmp.eq.s32.totalorder %v10217_v26, %v12154_v39 }
 0x2b0   : > { %v5151_v19 = vpop.f32.mrb[165].mxu1  ;;  %8833 = vmatmul.mubr.msk.f32.gmra.mrb[14].mxu1 %vm500_vm15, %v14634_v38  ;;  %8706 = vmatprep.mubr.msk.f32.mxu0 %vm515_vm0, %v14634_v38  ;;  %v9521_v41 = vpack.c.bf16 %v3791_v43, %v3790_v50  ;;  %v3824_v50 = vld [vmem:[#allocation5 + $0x790] sm:$0xff]  ;;  %v3825_v43 = vld [vmem:[#allocation5 + $0x798] sm:$0xff]  ;;  %vm564_vm15 = vcmp.eq.s32.totalorder %v10217_v26, %v12162_v20  ;;  %vm579_vm0 = vcmp.eq.s32.totalorder %v10235_v36, %v12140_v15 }
 0x2b1   : > { %8834 = vmatprep.mubr.msk.f32.mxu1 %vm517_vm1, %v14634_v38  ;;  %9519 = vmatpush1.bf16.msra.mxu0 %v9518_v47  ;;  %v12405_v59 = vadd.f32 %v5149_v51, %v4765_v27  ;;  %v9572_v34 = vpack.c.bf16 %v3825_v43, %v3824_v50  ;;  %vm581_vm1 = vcmp.eq.s32.totalorder %v10235_v36, %v12148_v5 }
 0x2b2   : > { %v4769_v54 = vpop.f32.mrb[166].mxu0  ;;  %9567 = vmatpush1.bf16.msra.mxu1 %v9566_v14  ;;  %9520 = vmatprep.subr.bf16.mxu0 %v14632_v44 }
 0x2b3   : > { %v4770_v19 = vadd.f32 %v4769_v54, %v14735_v40  ;;  %v4771_v1 = vpop.f32.mrb[167].mxu0  ;;  %8707 = vmatmul.mubr.msk.f32.gmra.mrb[16].mxu0 %vm514_vm2, %v14634_v38  ;;  %v5154_v47 = vpop.f32.mrb[166].mxu1  ;;  %9568 = vmatprep.subr.bf16.mxu1 %v14632_v44  ;;  %v3795_v54 = vld [vmem:[#allocation5 + $0x6a8] sm:$0xff]  ;;  %vm578_vm2 = vcmp.eq.s32.totalorder %v10235_v36, %v12154_v39 }
 0x2b4   : > { %v5156_v27 = vpop.f32.mrb[167].mxu1  ;;  %8835 = vmatmul.mubr.msk.f32.gmra.mrb[16].mxu1 %vm516_vm3, %v14634_v38  ;;  %8708 = vmatprep.mubr.msk.f32.mxu0 %vm531_vm4, %v14634_v38  ;;  %v9524_v1 = vpack.c.bf16 %v3793_v31, %v3792_v58  ;;  %v3826_v58 = vld [vmem:[#allocation5 + $0x7a0] sm:$0xff]  ;;  %v3827_v31 = vld [vmem:[#allocation5 + $0x7a8] sm:$0xff]  ;;  %vm580_vm3 = vcmp.eq.s32.totalorder %v10235_v36, %v12162_v20  ;;  %vm595_vm4 = vcmp.eq.s32.totalorder %v10258_v45, %v12140_v15 }
 0x2b5   : > { %8836 = vmatprep.mubr.msk.f32.mxu1 %vm533_vm5, %v14634_v38  ;;  %9522 = vmatpush1.bf16.msra.mxu0 %v9521_v41  ;;  %v12434_v14 = vadd.f32 %v5154_v47, %v4770_v19  ;;  %v9575_v50 = vpack.c.bf16 %v3827_v31, %v3826_v58  ;;  %vm597_vm5 = vcmp.eq.s32.totalorder %v10258_v45, %v12148_v5 }
 0x2b6   : > { %v4774_v51 = vpop.f32.mrb[168].mxu0  ;;  %9570 = vmatpush1.bf16.msra.mxu1 %v9569_v46  ;;  %9523 = vmatprep.subr.bf16.mxu0 %v14632_v44 }
 0x2b7   : > { %v4775_v40 = vadd.f32 %v4774_v51, %v11369_v61  ;;  %v4776_v27 = vpop.f32.mrb[169].mxu0  ;;  %8709 = vmatmul.mubr.msk.f32.gmra.mrb[18].mxu0 %vm530_vm6, %v14634_v38  ;;  %v5159_v41 = vpop.f32.mrb[168].mxu1  ;;  %9571 = vmatprep.subr.bf16.mxu1 %v14632_v44  ;;  %v9527_v61 = vpack.c.bf16 %v3795_v54, %v3794_v22  ;;  %vm594_vm6 = vcmp.eq.s32.totalorder %v10258_v45, %v12154_v39 }
 0x2b8   : > { %v5161_v19 = vpop.f32.mrb[169].mxu1  ;;  %8837 = vmatmul.mubr.msk.f32.gmra.mrb[18].mxu1 %vm532_vm7, %v14634_v38  ;;  %8710 = vmatprep.mubr.msk.f32.mxu0 %vm547_vm8, %v14634_v38  ;;  %vm596_vm7 = vcmp.eq.s32.totalorder %v10258_v45, %v12162_v20  ;;  %vm611_vm8 = vcmp.eq.s32.totalorder %v10276_v52, %v12140_v15 }
 0x2b9   : > { %8838 = vmatprep.mubr.msk.f32.mxu1 %vm549_vm9, %v14634_v38  ;;  %9525 = vmatpush1.bf16.msra.mxu0 %v9524_v1  ;;  %v12463_v46 = vadd.f32 %v5159_v41, %v4775_v40  ;;  %vm613_vm9 = vcmp.eq.s32.totalorder %v10276_v52, %v12148_v5 }
 0x2ba   : > { %v4779_v47 = vpop.f32.mrb[170].mxu0  ;;  %9573 = vmatpush1.bf16.msra.mxu1 %v9572_v34  ;;  %9526 = vmatprep.subr.bf16.mxu0 %v14632_v44 }
 0x2bb   : > { %v4780_v43 = vadd.f32 %v4779_v47, %v11394_v37  ;;  %v4781_v51 = vpop.f32.mrb[171].mxu0  ;;  %8711 = vmatmul.mubr.msk.f32.gmra.mrb[20].mxu0 %vm546_vm10, %v14634_v38  ;;  %v5164_v27 = vpop.f32.mrb[170].mxu1  ;;  %9574 = vmatprep.subr.bf16.mxu1 %v14632_v44  ;;  %v3796_v47 = vld [vmem:[#allocation5 + $0x6b0] sm:$0xff]  ;;  %vm610_vm10 = vcmp.eq.s32.totalorder %v10276_v52, %v12154_v39 }
 0x2bc   : > { %v5166_v1 = vpop.f32.mrb[171].mxu1  ;;  %8839 = vmatmul.mubr.msk.f32.gmra.mrb[20].mxu1 %vm548_vm11, %v14634_v38  ;;  %8712 = vmatprep.mubr.msk.f32.mxu0 %vm563_vm12, %v14634_v38  ;;  %vm612_vm11 = vcmp.eq.s32.totalorder %v10276_v52, %v12162_v20  ;;  %vm627_vm12 = vcmp.eq.s32.totalorder %v10293_v63, %v12140_v15 }
 0x2bd   : > { %8840 = vmatprep.mubr.msk.f32.mxu1 %vm565_vm13, %v14634_v38  ;;  %9528 = vmatpush1.bf16.msra.mxu0 %v9527_v61  ;;  %v12486_v37 = vadd.f32 %v5164_v27, %v4780_v43  ;;  %vm629_vm13 = vcmp.eq.s32.totalorder %v10293_v63, %v12148_v5 }
 0x2be   : > { %v4784_v34 = vpop.f32.mrb[172].mxu0  ;;  %9576 = vmatpush1.bf16.msra.mxu1 %v9575_v50  ;;  %9529 = vmatprep.subr.bf16.mxu0 %v14632_v44  ;;  %v3797_v50 = vld [vmem:[#allocation5 + $0x6b8] sm:$0xff] }
 0x2bf   : > { %v4785_v22 = vadd.f32 %v4784_v34, %v11410_v21  ;;  %v4786_v54 = vpop.f32.mrb[173].mxu0  ;;  %8713 = vmatmul.mubr.msk.f32.gmra.mrb[22].mxu0 %vm562_vm14, %v14634_v38  ;;  %v5169_v40 = vpop.f32.mrb[172].mxu1  ;;  %9577 = vmatprep.subr.bf16.mxu1 %v14632_v44  ;;  %v9530_v51 = vpack.c.bf16 %v3797_v50, %v3796_v47  ;;  %vm626_vm14 = vcmp.eq.s32.totalorder %v10293_v63, %v12154_v39 }
 0x2c0   : > { %v5171_v41 = vpop.f32.mrb[173].mxu1  ;;  %8841 = vmatmul.mubr.msk.f32.gmra.mrb[22].mxu1 %vm564_vm15, %v14634_v38  ;;  %8714 = vmatprep.mubr.msk.f32.mxu0 %vm579_vm0, %v14634_v38  ;;  %v3828_v54 = vld [vmem:[#allocation5 + $0x7b0] sm:$0xff]  ;;  %vm628_vm15 = vcmp.eq.s32.totalorder %v10293_v63, %v12162_v20 }
 0x2c1   : > { %8842 = vmatprep.mubr.msk.f32.mxu1 %vm581_vm1, %v14634_v38  ;;  %v12503_v21 = vadd.f32 %v5169_v40, %v4785_v22  ;;  %9531 = vmatpush1.bf16.msra.mxu0 %v9530_v51  ;;  %v3829_v40 = vld [vmem:[#allocation5 + $0x7b8] sm:$0xff] }
 0x2c2   : > { %v4789_v58 = vpop.f32.mrb[174].mxu0  ;;  %9532 = vmatprep.subr.bf16.mxu0 %v14632_v44  ;;  %v14737_v51 = vld [vmem:[#allocation14_spill] sm:$0xff] }
 0x2c3   : > { %v4790_v31 = vadd.f32 %v4789_v58, %v11424_v42  ;;  %v4791_v19 = vpop.f32.mrb[175].mxu0  ;;  %8715 = vmatmul.mubr.msk.f32.gmra.mrb[24].mxu0 %vm578_vm2, %v14634_v38  ;;  %v5174_v61 = vpop.f32.mrb[174].mxu1  ;;  %v9578_v58 = vpack.c.bf16 %v3829_v40, %v3828_v54  ;;  %vm643_vm0 = vcmp.eq.s32.totalorder %v14737_v51, %v12140_v15  ;;  %vm645_vm1 = vcmp.eq.s32.totalorder %v14737_v51, %v12148_v5 }
 0x2c4   : > { %v5176_v43 = vpop.f32.mrb[175].mxu1  ;;  %8843 = vmatmul.mubr.msk.f32.gmra.mrb[24].mxu1 %vm580_vm3, %v14634_v38  ;;  %8716 = vmatprep.mubr.msk.f32.mxu0 %vm595_vm4, %v14634_v38  ;;  %v14736_v19 = vld [vmem:[#allocation73_spill] sm:$0xff]  ;;  %vm642_vm2 = vcmp.eq.s32.totalorder %v14737_v51, %v12154_v39  ;;  %vm644_vm3 = vcmp.eq.s32.totalorder %v14737_v51, %v12162_v20  ;;  %vm659_vm4 = vcmp.eq.s32.totalorder %v10325_v6, %v12140_v15 }
 0x2c5   : > { %8844 = vmatprep.mubr.msk.f32.mxu1 %vm597_vm5, %v14634_v38  ;;  %v12518_v42 = vadd.f32 %v5174_v61, %v4790_v31  ;;  %9579 = vmatpush1.bf16.msra.mxu1 %v9578_v58  ;;  %vm661_vm5 = vcmp.eq.s32.totalorder %v10325_v6, %v12148_v5 }
 0x2c6   : > { %v4794_v27 = vpop.f32.mrb[176].mxu0  ;;  %9580 = vmatprep.subr.bf16.mxu1 %v14632_v44 }
 0x2c7   : > { %v4795_v1 = vadd.f32 %v4794_v27, %v11438_v2  ;;  %v4796_v34 = vpop.f32.mrb[177].mxu0  ;;  %8717 = vmatmul.mubr.msk.f32.gmra.mrb[26].mxu0 %vm594_vm6, %v14634_v38  ;;  %v5179_v22 = vpop.f32.mrb[176].mxu1  ;;  %vm658_vm6 = vcmp.eq.s32.totalorder %v10325_v6, %v12154_v39 }
 0x2c8   : > { %v5181_v41 = vpop.f32.mrb[177].mxu1  ;;  %8845 = vmatmul.mubr.msk.f32.gmra.mrb[26].mxu1 %vm596_vm7, %v14634_v38  ;;  %8718 = vmatprep.mubr.msk.f32.mxu0 %vm611_vm8, %v14634_v38  ;;  %v14738_v34 = vld [vmem:[#allocation74_spill] sm:$0xff]  ;;  %vm660_vm7 = vcmp.eq.s32.totalorder %v10325_v6, %v12162_v20  ;;  %vm675_vm8 = vcmp.eq.s32.totalorder %v10343_v11, %v12140_v15 }
 0x2c9   : > { %8846 = vmatprep.mubr.msk.f32.mxu1 %vm613_vm9, %v14634_v38  ;;  %v12534_v2 = vadd.f32 %v5179_v22, %v4795_v1  ;;  %vm677_vm9 = vcmp.eq.s32.totalorder %v10343_v11, %v12148_v5 }
 0x2ca   : > { %v4799_v31 = vpop.f32.mrb[178].mxu0 }
 0x2cb   : > { %v4800_v61 = vadd.f32 %v4799_v31, %v14736_v19  ;;  %v4801_v47 = vpop.f32.mrb[179].mxu0  ;;  %8719 = vmatmul.mubr.msk.f32.gmra.mrb[28].mxu0 %vm610_vm10, %v14634_v38  ;;  %v5184_v50 = vpop.f32.mrb[178].mxu1  ;;  %v14739_v19 = vld [vmem:[#allocation75_spill] sm:$0xff]  ;;  %vm674_vm10 = vcmp.eq.s32.totalorder %v10343_v11, %v12154_v39 }
 0x2cc   : > { %v5186_v43 = vpop.f32.mrb[179].mxu1  ;;  %8847 = vmatmul.mubr.msk.f32.gmra.mrb[28].mxu1 %vm612_vm11, %v14634_v38  ;;  %8720 = vmatprep.mubr.msk.f32.mxu0 %vm627_vm12, %v14634_v38  ;;  %vm676_vm11 = vcmp.eq.s32.totalorder %v10343_v11, %v12162_v20  ;;  %vm691_vm12 = vcmp.eq.s32.totalorder %v10353_v12, %v12140_v15 }
 0x2cd   : > { %8848 = vmatprep.mubr.msk.f32.mxu1 %vm629_vm13, %v14634_v38  ;;  %v12550_v27 = vadd.f32 %v5184_v50, %v4800_v61  ;;  %v3798_v43 = vld [vmem:[#allocation5 + $0x6c0] sm:$0xff]  ;;  %vm693_vm13 = vcmp.eq.s32.totalorder %v10353_v12, %v12148_v5 }
 0x2ce   : > { %v4804_v1 = vpop.f32.mrb[180].mxu0 }
 0x2cf   : > { %v4805_v22 = vadd.f32 %v4804_v1, %v14738_v34  ;;  %v4806_v54 = vpop.f32.mrb[181].mxu0  ;;  %8721 = vmatmul.mubr.msk.f32.gmra.mrb[30].mxu0 %vm626_vm14, %v14634_v38  ;;  %v5189_v40 = vpop.f32.mrb[180].mxu1  ;;  %v3799_v1 = vld [vmem:[#allocation5 + $0x6c8] sm:$0xff]  ;;  %vm690_vm14 = vcmp.eq.s32.totalorder %v10353_v12, %v12154_v39 }
 0x2d0   : > { %v5191_v41 = vpop.f32.mrb[181].mxu1  ;;  %8849 = vmatmul.mubr.msk.f32.gmra.mrb[30].mxu1 %vm628_vm15, %v14634_v38  ;;  %8722 = vmatprep.mubr.msk.f32.mxu0 %vm643_vm0, %v14634_v38  ;;  %vm692_vm15 = vcmp.eq.s32.totalorder %v10353_v12, %v12162_v20 }
 0x2d1   : > { %8850 = vmatprep.mubr.msk.f32.mxu1 %vm645_vm1, %v14634_v38  ;;  %v12565_v58 = vadd.f32 %v5189_v40, %v4805_v22  ;;  %v9533_v22 = vpack.c.bf16 %v3799_v1, %v3798_v43  ;;  %v3831_v43 = vld [vmem:[#allocation5 + $0x7c8] sm:$0xff] }
 0x2d2   : > { %v4809_v31 = vpop.f32.mrb[182].mxu0 }
 0x2d3   : > { %v4810_v61 = vadd.f32 %v4809_v31, %v14739_v19  ;;  %v4811_v47 = vpop.f32.mrb[183].mxu0  ;;  %8723 = vmatmul.mubr.msk.f32.gmra.mrb[32].mxu0 %vm642_vm2, %v14634_v38  ;;  %v5194_v50 = vpop.f32.mrb[182].mxu1 }
 0x2d4   : > { %v5196_v34 = vpop.f32.mrb[183].mxu1  ;;  %8851 = vmatmul.mubr.msk.f32.gmra.mrb[32].mxu1 %vm644_vm3, %v14634_v38  ;;  %8724 = vmatprep.mubr.msk.f32.mxu0 %vm659_vm4, %v14634_v38  ;;  %v3830_v47 = vld [vmem:[#allocation5 + $0x7c0] sm:$0xff]  ;;  %vm723_vm4 = vcmp.eq.s32.totalorder %v10391_v25, %v12140_v15 }
 0x2d5   : > { %8852 = vmatprep.mubr.msk.f32.mxu1 %vm661_vm5, %v14634_v38  ;;  %v12580_v54 = vadd.f32 %v5194_v50, %v4810_v61  ;;  %9534 = vmatpush1.bf16.msra.mxu0 %v9533_v22  ;;  %v9581_v61 = vpack.c.bf16 %v3831_v43, %v3830_v47  ;;  %v14742_v47 = vld [vmem:[#allocation76_spill] sm:$0xff]  ;;  %vm725_vm5 = vcmp.eq.s32.totalorder %v10391_v25, %v12148_v5 }
 0x2d6   : > { %v4814_v40 = vpop.f32.mrb[184].mxu0  ;;  %9535 = vmatprep.subr.bf16.mxu0 %v14632_v44 }
 0x2d7   : > { %v4815_v41 = vadd.f32 %v4814_v40, %v11496_v4  ;;  %v4816_v31 = vpop.f32.mrb[185].mxu0  ;;  %8725 = vmatmul.mubr.msk.f32.gmra.mrb[34].mxu0 %vm658_vm6, %v14634_v38  ;;  %v5199_v19 = vpop.f32.mrb[184].mxu1  ;;  %9582 = vmatpush1.bf16.msra.mxu1 %v9581_v61  ;;  %vm722_vm6 = vcmp.eq.s32.totalorder %v10391_v25, %v12154_v39 }
 0x2d8   : > { %v5201_v1 = vpop.f32.mrb[185].mxu1  ;;  %8853 = vmatmul.mubr.msk.f32.gmra.mrb[34].mxu1 %vm660_vm7, %v14634_v38  ;;  %8726 = vmatprep.mubr.msk.f32.mxu0 %vm675_vm8, %v14634_v38  ;;  %vm724_vm7 = vcmp.eq.s32.totalorder %v10391_v25, %v12162_v20  ;;  %vm739_vm8 = vcmp.eq.s32.totalorder %v10408_v28, %v12140_v15 }
 0x2d9   : > { %8854 = vmatprep.mubr.msk.f32.mxu1 %vm677_vm9, %v14634_v38  ;;  %v12596_v4 = vadd.f32 %v5199_v19, %v4815_v41  ;;  %9583 = vmatprep.subr.bf16.mxu1 %v14632_v44  ;;  %vm741_vm9 = vcmp.eq.s32.totalorder %v10408_v28, %v12148_v5 }
 0x2da   : > { %v4819_v50 = vpop.f32.mrb[186].mxu0 }
 0x2db   : > { %v4820_v34 = vadd.f32 %v4819_v50, %v11512_v57  ;;  %v4821_v22 = vpop.f32.mrb[187].mxu0  ;;  %8727 = vmatmul.mubr.msk.f32.gmra.mrb[36].mxu0 %vm674_vm10, %v14634_v38  ;;  %v5204_v40 = vpop.f32.mrb[186].mxu1  ;;  %v14740_v57 = vld [vmem:[#allocation15_spill] sm:$0xff]  ;;  %vm738_vm10 = vcmp.eq.s32.totalorder %v10408_v28, %v12154_v39 }
 0x2dc   : > { %v5206_v31 = vpop.f32.mrb[187].mxu1  ;;  %8855 = vmatmul.mubr.msk.f32.gmra.mrb[36].mxu1 %vm676_vm11, %v14634_v38  ;;  %8728 = vmatprep.mubr.msk.f32.mxu0 %vm691_vm12, %v14634_v38  ;;  %vm707_vm0 = vcmp.eq.s32.totalorder %v14740_v57, %v12140_v15  ;;  %vm709_vm1 = vcmp.eq.s32.totalorder %v14740_v57, %v12148_v5  ;;  %vm706_vm2 = vcmp.eq.s32.totalorder %v14740_v57, %v12154_v39 }
 0x2dd   : > { %8856 = vmatprep.mubr.msk.f32.mxu1 %vm693_vm13, %v14634_v38  ;;  %v12612_v41 = vadd.f32 %v5204_v40, %v4820_v34  ;;  %vm708_vm3 = vcmp.eq.s32.totalorder %v14740_v57, %v12162_v20  ;;  %v14743_v40 = vld [vmem:[#allocation77_spill] sm:$0xff]  ;;  %vm740_vm11 = vcmp.eq.s32.totalorder %v10408_v28, %v12162_v20  ;;  %vm755_vm12 = vcmp.eq.s32.totalorder %v10425_v35, %v12140_v15 }
 0x2de   : > { %v4824_v19 = vpop.f32.mrb[188].mxu0  ;;  %vm757_vm13 = vcmp.eq.s32.totalorder %v10425_v35, %v12148_v5 }
 0x2df   : > { %14741 = vst [vmem:[#allocation70_spill] sm:$0xff] %v12612_v41  ;;  %v4825_v43 = vadd.f32 %v4824_v19, %v14742_v47  ;;  %v4826_v1 = vpop.f32.mrb[189].mxu0  ;;  %8729 = vmatmul.mubr.msk.f32.gmra.mrb[38].mxu0 %vm690_vm14, %v14634_v38  ;;  %v5209_v61 = vpop.f32.mrb[188].mxu1  ;;  %vm754_vm14 = vcmp.eq.s32.totalorder %v10425_v35, %v12154_v39 }
 0x2e0   : > { %v5211_v50 = vpop.f32.mrb[189].mxu1  ;;  %8857 = vmatmul.mubr.msk.f32.gmra.mrb[38].mxu1 %vm692_vm15, %v14634_v38  ;;  %8730 = vmatprep.mubr.msk.f32.mxu0 %vm707_vm0, %v14634_v38  ;;  %v3800_v1 = vld [vmem:[#allocation5 + $0x6d0] sm:$0xff]  ;;  %vm756_vm15 = vcmp.eq.s32.totalorder %v10425_v35, %v12162_v20  ;;  %vm771_vm0 = vcmp.eq.s32.totalorder %v10440_v53, %v12140_v15 }
 0x2e1   : > { %8858 = vmatprep.mubr.msk.f32.mxu1 %vm709_vm1, %v14634_v38  ;;  %v12627_v34 = vadd.f32 %v5209_v61, %v4825_v43  ;;  %v3801_v50 = vld [vmem:[#allocation5 + $0x6d8] sm:$0xff]  ;;  %vm773_vm1 = vcmp.eq.s32.totalorder %v10440_v53, %v12148_v5 }
 0x2e2   : > { %v4829_v22 = vpop.f32.mrb[190].mxu0  ;;  %v9536_v43 = vpack.c.bf16 %v3801_v50, %v3800_v1  ;;  %v3832_v1 = vld [vmem:[#allocation5 + $0x7d0] sm:$0xff]  ;;  %v3833_v50 = vld [vmem:[#allocation5 + $0x7d8] sm:$0xff] }
 0x2e3   : > { %v4830_v31 = vadd.f32 %v4829_v22, %v14743_v40  ;;  %v4831_v19 = vpop.f32.mrb[191].mxu0  ;;  %8731 = vmatmul.mubr.msk.f32.gmra.mrb[40].mxu0 %vm706_vm2, %v14634_v38  ;;  %v5214_v47 = vpop.f32.mrb[190].mxu1  ;;  %vm770_vm2 = vcmp.eq.s32.totalorder %v10440_v53, %v12154_v39 }
 0x2e4   : > { %v5216_v41 = vpop.f32.mrb[191].mxu1  ;;  %8859 = vmatmul.mubr.msk.f32.gmra.mrb[40].mxu1 %vm708_vm3, %v14634_v38  ;;  %8732 = vmatprep.mubr.msk.f32.mxu0 %vm723_vm4, %v14634_v38  ;;  %vm772_vm3 = vcmp.eq.s32.totalorder %v10440_v53, %v12162_v20 }
 0x2e5   : > { %8860 = vmatprep.mubr.msk.f32.mxu1 %vm725_vm5, %v14634_v38  ;;  %v12642_v61 = vadd.f32 %v5214_v47, %v4830_v31  ;;  %9537 = vmatpush1.bf16.msra.mxu0 %v9536_v43  ;;  %v9584_v31 = vpack.c.bf16 %v3833_v50, %v3832_v1 }
 0x2e6   : > { %v4834_v22 = vpop.f32.mrb[192].mxu0  ;;  %9538 = vmatprep.subr.bf16.mxu0 %v14632_v44 }
 0x2e7   : > { %v4835_v41 = vadd.f32 %v4834_v22, %v11554_v30  ;;  %v4836_v40 = vpop.f32.mrb[193].mxu0  ;;  %8733 = vmatmul.mubr.msk.f32.gmra.mrb[42].mxu0 %vm722_vm6, %v14634_v38  ;;  %v5219_v19 = vpop.f32.mrb[192].mxu1  ;;  %9585 = vmatpush1.bf16.msra.mxu1 %v9584_v31 }
 0x2e8   : > { %v5221_v25 = vpop.f32.mrb[193].mxu1  ;;  %8861 = vmatmul.mubr.msk.f32.gmra.mrb[42].mxu1 %vm724_vm7, %v14634_v38  ;;  %8734 = vmatprep.mubr.msk.f32.mxu0 %vm739_vm8, %v14634_v38  ;;  %vm803_vm8 = vcmp.eq.s32.totalorder %v10474_v60, %v12140_v15 }
 0x2e9   : > { %8862 = vmatprep.mubr.msk.f32.mxu1 %vm741_vm9, %v14634_v38  ;;  %v12658_v30 = vadd.f32 %v5219_v19, %v4835_v41  ;;  %9586 = vmatprep.subr.bf16.mxu1 %v14632_v44  ;;  %v14745_v19 = vld [vmem:[#allocation78_spill] sm:$0xff]  ;;  %vm805_vm9 = vcmp.eq.s32.totalorder %v10474_v60, %v12148_v5 }
 0x2ea   : > { %v4839_v47 = vpop.f32.mrb[194].mxu0 }
 0x2eb   : > { %v4840_v25 = vadd.f32 %v4839_v47, %v11570_v0  ;;  %v4841_v43 = vpop.f32.mrb[195].mxu0  ;;  %8735 = vmatmul.mubr.msk.f32.gmra.mrb[44].mxu0 %vm738_vm10, %v14634_v38  ;;  %v5224_v22 = vpop.f32.mrb[194].mxu1  ;;  %vm802_vm10 = vcmp.eq.s32.totalorder %v10474_v60, %v12154_v39 }
 0x2ec   : > { %v5226_v40 = vpop.f32.mrb[195].mxu1  ;;  %8863 = vmatmul.mubr.msk.f32.gmra.mrb[44].mxu1 %vm740_vm11, %v14634_v38  ;;  %8736 = vmatprep.mubr.msk.f32.mxu0 %vm755_vm12, %v14634_v38  ;;  %vm804_vm11 = vcmp.eq.s32.totalorder %v10474_v60, %v12162_v20  ;;  %vm819_vm12 = vcmp.eq.s32.totalorder %v10491_v9, %v12140_v15 }
 0x2ed   : > { %8864 = vmatprep.mubr.msk.f32.mxu1 %vm757_vm13, %v14634_v38  ;;  %v12674_v0 = vadd.f32 %v5224_v22, %v4840_v25  ;;  %v14746_v25 = vld [vmem:[#allocation19_spill] sm:$0xff]  ;;  %vm821_vm13 = vcmp.eq.s32.totalorder %v10491_v9, %v12148_v5 }
 0x2ee   : > { %v4844_v41 = vpop.f32.mrb[196].mxu0  ;;  %vm787_vm4 = vcmp.eq.s32.totalorder %v14746_v25, %v12140_v15  ;;  %vm789_vm5 = vcmp.eq.s32.totalorder %v14746_v25, %v12148_v5  ;;  %v14748_v40 = vld [vmem:[#allocation79_spill] sm:$0xff]  ;;  %vm786_vm6 = vcmp.eq.s32.totalorder %v14746_v25, %v12154_v39  ;;  %vm788_vm7 = vcmp.eq.s32.totalorder %v14746_v25, %v12162_v20  ;;  %v3835_v25 = vld [vmem:[#allocation5 + $0x7e8] sm:$0xff] }
 0x2ef   : > { %14744 = vst [vmem:[#allocation71_spill] sm:$0xff] %v12674_v0  ;;  %v4845_v1 = vadd.f32 %v4844_v41, %v14745_v19  ;;  %v4846_v50 = vpop.f32.mrb[197].mxu0  ;;  %8737 = vmatmul.mubr.msk.f32.gmra.mrb[46].mxu0 %vm754_vm14, %v14634_v38  ;;  %v5229_v31 = vpop.f32.mrb[196].mxu1  ;;  %v3834_v0 = vld [vmem:[#allocation5 + $0x7e0] sm:$0xff]  ;;  %vm818_vm14 = vcmp.eq.s32.totalorder %v10491_v9, %v12154_v39 }
 0x2f0   : > { %v5231_v47 = vpop.f32.mrb[197].mxu1  ;;  %8865 = vmatmul.mubr.msk.f32.gmra.mrb[46].mxu1 %vm756_vm15, %v14634_v38  ;;  %8738 = vmatprep.mubr.msk.f32.mxu0 %vm771_vm0, %v14634_v38  ;;  %vm820_vm15 = vcmp.eq.s32.totalorder %v10491_v9, %v12162_v20 }
 0x2f1   : > { %8866 = vmatprep.mubr.msk.f32.mxu1 %vm773_vm1, %v14634_v38  ;;  %v12689_v43 = vadd.f32 %v5229_v31, %v4845_v1  ;;  %v3802_v1 = vld [vmem:[#allocation5 + $0x6e0] sm:$0xff]  ;;  %v3803_v31 = vld [vmem:[#allocation5 + $0x6e8] sm:$0xff] }
 0x2f2   : > { %v4849_v22 = vpop.f32.mrb[198].mxu0 }
 0x2f3   : > { %14747 = vst [vmem:[#allocation72_spill] sm:$0xff] %v12689_v43  ;;  %v4850_v41 = vadd.f32 %v4849_v22, %v14748_v40  ;;  %v4851_v19 = vpop.f32.mrb[199].mxu0  ;;  %8739 = vmatmul.mubr.msk.f32.gmra.mrb[48].mxu0 %vm770_vm2, %v14634_v38  ;;  %v5234_v50 = vpop.f32.mrb[198].mxu1 }
 0x2f4   : > { %v5236_v47 = vpop.f32.mrb[199].mxu1  ;;  %8867 = vmatmul.mubr.msk.f32.gmra.mrb[48].mxu1 %vm772_vm3, %v14634_v38  ;;  %8740 = vmatprep.mubr.msk.f32.mxu0 %vm787_vm4, %v14634_v38  ;;  %v9539_v19 = vpack.c.bf16 %v3803_v31, %v3802_v1 }
 0x2f5   : > { %8868 = vmatprep.mubr.msk.f32.mxu1 %vm789_vm5, %v14634_v38  ;;  %v12704_v22 = vadd.f32 %v5234_v50, %v4850_v41  ;;  %v9587_v41 = vpack.c.bf16 %v3835_v25, %v3834_v0 }
 0x2f6   : > { %v4854_v40 = vpop.f32.mrb[200].mxu0  ;;  %9540 = vmatpush1.bf16.msra.mxu0 %v9539_v19 }
 0x2f7   : > { %v4855_v47 = vadd.f32 %v4854_v40, %v11613_v13  ;;  %v4856_v43 = vpop.f32.mrb[201].mxu0  ;;  %8741 = vmatmul.mubr.msk.f32.gmra.mrb[50].mxu0 %vm786_vm6, %v14634_v38  ;;  %v5239_v53 = vpop.f32.mrb[200].mxu1  ;;  %9588 = vmatpush1.bf16.msra.mxu1 %v9587_v41  ;;  %v14751_v41 = vld [vmem:[#allocation21_spill] sm:$0xff] }
 0x2f8   : > { %v5241_v35 = vpop.f32.mrb[201].mxu1  ;;  %8869 = vmatmul.mubr.msk.f32.gmra.mrb[50].mxu1 %vm788_vm7, %v14634_v38  ;;  %8742 = vmatprep.mubr.msk.f32.mxu0 %vm803_vm8, %v14634_v38  ;;  %vm851_vm4 = vcmp.eq.s32.totalorder %v14751_v41, %v12140_v15  ;;  %vm853_vm5 = vcmp.eq.s32.totalorder %v14751_v41, %v12148_v5  ;;  %vm850_vm6 = vcmp.eq.s32.totalorder %v14751_v41, %v12154_v39 }
 0x2f9   : > { %8870 = vmatprep.mubr.msk.f32.mxu1 %vm805_vm9, %v14634_v38  ;;  %v12719_v13 = vadd.f32 %v5239_v53, %v4855_v47  ;;  %9541 = vmatprep.subr.bf16.mxu0 %v14632_v44  ;;  %v14749_v53 = vld [vmem:[#allocation20_spill] sm:$0xff]  ;;  %vm852_vm7 = vcmp.eq.s32.totalorder %v14751_v41, %v12162_v20  ;;  %vm867_vm8 = vcmp.eq.s32.totalorder %v10540_v23, %v12140_v15  ;;  %v3837_v41 = vld [vmem:[#allocation5 + $0x7f8] sm:$0xff] }
 0x2fa   : > { %v4859_v35 = vpop.f32.mrb[202].mxu0  ;;  %9589 = vmatprep.subr.bf16.mxu1 %v14632_v44  ;;  %vm835_vm0 = vcmp.eq.s32.totalorder %v14749_v53, %v12140_v15  ;;  %vm837_vm1 = vcmp.eq.s32.totalorder %v14749_v53, %v12148_v5  ;;  %v14750_v44 = vld [vmem:[#allocation80_spill] sm:$0xff]  ;;  %vm834_vm2 = vcmp.eq.s32.totalorder %v14749_v53, %v12154_v39  ;;  %vm836_vm3 = vcmp.eq.s32.totalorder %v14749_v53, %v12162_v20 }
 0x2fb   : > { %v4860_v0 = vadd.f32 %v4859_v35, %v11628_v48  ;;  %v4861_v25 = vpop.f32.mrb[203].mxu0  ;;  %8743 = vmatmul.mubr.msk.f32.gmra.mrb[52].mxu0 %vm802_vm10, %v14634_v38  ;;  %v5244_v43 = vpop.f32.mrb[202].mxu1  ;;  %vm869_vm9 = vcmp.eq.s32.totalorder %v10540_v23, %v12148_v5  ;;  %vm866_vm10 = vcmp.eq.s32.totalorder %v10540_v23, %v12154_v39 }
 0x2fc   : > { %v5246_v50 = vpop.f32.mrb[203].mxu1  ;;  %8871 = vmatmul.mubr.msk.f32.gmra.mrb[52].mxu1 %vm804_vm11, %v14634_v38  ;;  %8744 = vmatprep.mubr.msk.f32.mxu0 %vm819_vm12, %v14634_v38  ;;  %v14753_v25 = vld [vmem:[#allocation81_spill] sm:$0xff]  ;;  %vm868_vm11 = vcmp.eq.s32.totalorder %v10540_v23, %v12162_v20  ;;  %vm883_vm12 = vcmp.eq.s32.totalorder %v10556_v32, %v12140_v15 }
 0x2fd   : > { %8872 = vmatprep.mubr.msk.f32.mxu1 %vm821_vm13, %v14634_v38  ;;  %v12736_v48 = vadd.f32 %v5244_v43, %v4860_v0  ;;  %vm885_vm13 = vcmp.eq.s32.totalorder %v10556_v32, %v12148_v5 }
 0x2fe   : > { %v4864_v1 = vpop.f32.mrb[204].mxu0 }
 0x2ff   : > { %v4865_v31 = vadd.f32 %v4864_v1, %v14750_v44  ;;  %v4866_v40 = vpop.f32.mrb[205].mxu0  ;;  %8745 = vmatmul.mubr.msk.f32.gmra.mrb[54].mxu0 %vm818_vm14, %v14634_v38  ;;  %v5249_v19 = vpop.f32.mrb[204].mxu1  ;;  %vm882_vm14 = vcmp.eq.s32.totalorder %v10556_v32, %v12154_v39 }
 0x300   : > { %v5251_v47 = vpop.f32.mrb[205].mxu1  ;;  %8873 = vmatmul.mubr.msk.f32.gmra.mrb[54].mxu1 %vm820_vm15, %v14634_v38  ;;  %8746 = vmatprep.mubr.msk.f32.mxu0 %vm835_vm0, %v14634_v38  ;;  %v3805_v40 = vld [vmem:[#allocation5 + $0x6f8] sm:$0xff]  ;;  %vm884_vm15 = vcmp.eq.s32.totalorder %v10556_v32, %v12162_v20  ;;  %vm899_vm0 = vcmp.eq.s32.totalorder %v10572_v55, %v12140_v15 }
 0x301   : > { %8874 = vmatprep.mubr.msk.f32.mxu1 %vm837_vm1, %v14634_v38  ;;  %v12751_v35 = vadd.f32 %v5249_v19, %v4865_v31  ;;  %v3804_v31 = vld [vmem:[#allocation5 + $0x6f0] sm:$0xff]  ;;  %vm901_vm1 = vcmp.eq.s32.totalorder %v10572_v55, %v12148_v5 }
 0x302   : > { %v4869_v0 = vpop.f32.mrb[206].mxu0 }
 0x303   : > { %14752 = vst [vmem:[#allocation73_spill] sm:$0xff] %v12751_v35  ;;  %v4870_v43 = vadd.f32 %v4869_v0, %v14753_v25  ;;  %v4871_v50 = vpop.f32.mrb[207].mxu0  ;;  %8747 = vmatmul.mubr.msk.f32.gmra.mrb[56].mxu0 %vm834_vm2, %v14634_v38  ;;  %v5254_v1 = vpop.f32.mrb[206].mxu1  ;;  %v9542_v0 = vpack.c.bf16 %v3805_v40, %v3804_v31  ;;  %v3836_v35 = vld [vmem:[#allocation5 + $0x7f0] sm:$0xff]  ;;  %vm898_vm2 = vcmp.eq.s32.totalorder %v10572_v55, %v12154_v39 }
 0x304   : > { %v5256_v44 = vpop.f32.mrb[207].mxu1  ;;  %8875 = vmatmul.mubr.msk.f32.gmra.mrb[56].mxu1 %vm836_vm3, %v14634_v38  ;;  %8748 = vmatprep.mubr.msk.f32.mxu0 %vm851_vm4, %v14634_v38  ;;  %vm900_vm3 = vcmp.eq.s32.totalorder %v10572_v55, %v12162_v20 }
 0x305   : > { %8876 = vmatprep.mubr.msk.f32.mxu1 %vm853_vm5, %v14634_v38  ;;  %v12766_v19 = vadd.f32 %v5254_v1, %v4870_v43  ;;  %v9590_v43 = vpack.c.bf16 %v3837_v41, %v3836_v35  ;;  %9543 = vmatpush1.bf16.msra.mxu0 %v9542_v0 }
 0x306   : > { %v4874_v47 = vpop.f32.mrb[208].mxu0 }
 0x307   : > { %v4875_v25 = vadd.f32 %v4874_v47, %v11671_v29  ;;  %v4876_v50 = vpop.f32.mrb[209].mxu0  ;;  %8749 = vmatmul.mubr.msk.f32.gmra.mrb[58].mxu0 %vm850_vm6, %v14634_v38  ;;  %v5259_v44 = vpop.f32.mrb[208].mxu1  ;;  %9591 = vmatpush1.bf16.msra.mxu1 %v9590_v43 }
 0x308   : > { %v5261_v53 = vpop.f32.mrb[209].mxu1  ;;  %8877 = vmatmul.mubr.msk.f32.gmra.mrb[58].mxu1 %vm852_vm7, %v14634_v38  ;;  %8750 = vmatprep.mubr.msk.f32.mxu0 %vm867_vm8, %v14634_v38 }
 0x309   : > { %8878 = vmatprep.mubr.msk.f32.mxu1 %vm869_vm9, %v14634_v38  ;;  %v12781_v29 = vadd.f32 %v5259_v44, %v4875_v25  ;;  %v14754_v44 = vld [vmem:[#allocation22_spill] sm:$0xff] }
 0x30a   : > { %v4879_v53 = vpop.f32.mrb[210].mxu0  ;;  %vm915_vm4 = vcmp.eq.s32.totalorder %v14754_v44, %v12140_v15  ;;  %vm917_vm5 = vcmp.eq.s32.totalorder %v14754_v44, %v12148_v5  ;;  %vm914_vm6 = vcmp.eq.s32.totalorder %v14754_v44, %v12154_v39  ;;  %vm916_vm7 = vcmp.eq.s32.totalorder %v14754_v44, %v12162_v20 }
 0x30b   : > { %v4880_v1 = vadd.f32 %v4879_v53, %v11686_v56  ;;  %v4881_v31 = vpop.f32.mrb[211].mxu0  ;;  %8751 = vmatmul.mubr.msk.f32.gmra.mrb[60].mxu0 %vm866_vm10, %v14634_v38  ;;  %v5264_v41 = vpop.f32.mrb[210].mxu1  ;;  %v14756_v53 = vld [vmem:[#allocation82_spill] sm:$0xff] }
 0x30c   : > { %v5266_v35 = vpop.f32.mrb[211].mxu1  ;;  %8879 = vmatmul.mubr.msk.f32.gmra.mrb[60].mxu1 %vm868_vm11, %v14634_v38  ;;  %8752 = vmatprep.mubr.msk.f32.mxu0 %vm883_vm12, %v14634_v38 }
 0x30d   : > { %8880 = vmatprep.mubr.msk.f32.mxu1 %vm885_vm13, %v14634_v38  ;;  %v12796_v56 = vadd.f32 %v5264_v41, %v4880_v1 }
 0x30e   : > { %v4884_v40 = vpop.f32.mrb[212].mxu0 }
 0x30f   : > { %v4885_v47 = vadd.f32 %v4884_v40, %v11700_v18  ;;  %v4886_v0 = vpop.f32.mrb[213].mxu0  ;;  %8753 = vmatmul.mubr.msk.f32.gmra.mrb[62].mxu0 %vm882_vm14, %v14634_v38  ;;  %v5269_v25 = vpop.f32.mrb[212].mxu1  ;;  %v14757_v40 = vld [vmem:[#allocation23_spill] sm:$0xff] }
 0x310   : > { %v5271_v50 = vpop.f32.mrb[213].mxu1  ;;  %8881 = vmatmul.mubr.msk.f32.gmra.mrb[62].mxu1 %vm884_vm15, %v14634_v38  ;;  %8754 = vmatprep.mubr.msk.f32.mxu0 %vm899_vm0, %v14634_v38  ;;  %vm931_vm8 = vcmp.eq.s32.totalorder %v14757_v40, %v12140_v15  ;;  %vm933_vm9 = vcmp.eq.s32.totalorder %v14757_v40, %v12148_v5  ;;  %vm930_vm10 = vcmp.eq.s32.totalorder %v14757_v40, %v12154_v39 }
 0x311   : > { %8882 = vmatprep.mubr.msk.f32.mxu1 %vm901_vm1, %v14634_v38  ;;  %v12811_v18 = vadd.f32 %v5269_v25, %v4885_v47  ;;  %v14759_v25 = vld [vmem:[#allocation83_spill] sm:$0xff]  ;;  %vm932_vm11 = vcmp.eq.s32.totalorder %v14757_v40, %v12162_v20 }
 0x312   : > { %v4889_v43 = vpop.f32.mrb[214].mxu0 }
 0x313   : > { %14755 = vst [vmem:[#allocation14_spill] sm:$0xff] %v12811_v18  ;;  %v4890_v1 = vadd.f32 %v4889_v43, %v14756_v53  ;;  %v4891_v31 = vpop.f32.mrb[215].mxu0  ;;  %8755 = vmatmul.mubr.msk.f32.gmra.mrb[64].mxu0 %vm898_vm2, %v14634_v38  ;;  %v5274_v41 = vpop.f32.mrb[214].mxu1 }
 0x314   : > { %v5276_v35 = vpop.f32.mrb[215].mxu1  ;;  %8883 = vmatmul.mubr.msk.f32.gmra.mrb[64].mxu1 %vm900_vm3, %v14634_v38  ;;  %8756 = vmatprep.mubr.msk.f32.mxu0 %vm915_vm4, %v14634_v38 }
 0x315   : > { %8884 = vmatprep.mubr.msk.f32.mxu1 %vm917_vm5, %v14634_v38  ;;  %v12826_v47 = vadd.f32 %v5274_v41, %v4890_v1  ;;  %v14760_v1 = vld [vmem:[#allocation24_spill] sm:$0xff] }
 0x316   : > { %v4894_v0 = vpop.f32.mrb[216].mxu0  ;;  %vm947_vm12 = vcmp.eq.s32.totalorder %v14760_v1, %v12140_v15  ;;  %vm949_vm13 = vcmp.eq.s32.totalorder %v14760_v1, %v12148_v5  ;;  %vm946_vm14 = vcmp.eq.s32.totalorder %v14760_v1, %v12154_v39  ;;  %vm948_vm15 = vcmp.eq.s32.totalorder %v14760_v1, %v12162_v20 }
 0x317   : > { %14758 = vst [vmem:[#allocation74_spill] sm:$0xff] %v12826_v47  ;;  %v4895_v50 = vadd.f32 %v4894_v0, %v14759_v25  ;;  %v4896_v43 = vpop.f32.mrb[217].mxu0  ;;  %8757 = vmatmul.mubr.msk.f32.gmra.mrb[66].mxu0 %vm914_vm6, %v14634_v38  ;;  %v5279_v53 = vpop.f32.mrb[216].mxu1  ;;  %v14762_v0 = vld [vmem:[#allocation84_spill] sm:$0xff] }
 0x318   : > { %v5281_v31 = vpop.f32.mrb[217].mxu1  ;;  %8885 = vmatmul.mubr.msk.f32.gmra.mrb[66].mxu1 %vm916_vm7, %v14634_v38  ;;  %8758 = vmatprep.mubr.msk.f32.mxu0 %vm931_vm8, %v14634_v38 }
 0x319   : > { %8886 = vmatprep.mubr.msk.f32.mxu1 %vm933_vm9, %v14634_v38  ;;  %v12841_v41 = vadd.f32 %v5279_v53, %v4895_v50  ;;  %v14763_v50 = vld [vmem:[#allocation25_spill] sm:$0xff] }
 0x31a   : > { %v4899_v35 = vpop.f32.mrb[218].mxu0  ;;  %vm963_vm0 = vcmp.eq.s32.totalorder %v14763_v50, %v12140_v15  ;;  %vm965_vm1 = vcmp.eq.s32.totalorder %v14763_v50, %v12148_v5  ;;  %vm962_vm2 = vcmp.eq.s32.totalorder %v14763_v50, %v12154_v39  ;;  %vm964_vm3 = vcmp.eq.s32.totalorder %v14763_v50, %v12162_v20 }
 0x31b   : > { %14761 = vst [vmem:[#allocation75_spill] sm:$0xff] %v12841_v41  ;;  %v4900_v25 = vadd.f32 %v4899_v35, %v14762_v0  ;;  %v4901_v43 = vpop.f32.mrb[219].mxu0  ;;  %8759 = vmatmul.mubr.msk.f32.gmra.mrb[68].mxu0 %vm930_vm10, %v14634_v38  ;;  %v5284_v31 = vpop.f32.mrb[218].mxu1 }
 0x31c   : > { %v5286_v47 = vpop.f32.mrb[219].mxu1  ;;  %8887 = vmatmul.mubr.msk.f32.gmra.mrb[68].mxu1 %vm932_vm11, %v14634_v38  ;;  %8760 = vmatprep.mubr.msk.f32.mxu0 %vm947_vm12, %v14634_v38 }
 0x31d   : > { %8888 = vmatprep.mubr.msk.f32.mxu1 %vm949_vm13, %v14634_v38  ;;  %v12856_v53 = vadd.f32 %v5284_v31, %v4900_v25  ;;  %v14765_v47 = vld [vmem:[#allocation85_spill] sm:$0xff]  ;;  %v14766_v25 = vld [vmem:[#allocation26_spill] sm:$0xff] }
 0x31e   : > { %v4904_v35 = vpop.f32.mrb[220].mxu0  ;;  %vm979_vm4 = vcmp.eq.s32.totalorder %v14766_v25, %v12140_v15  ;;  %vm981_vm5 = vcmp.eq.s32.totalorder %v14766_v25, %v12148_v5  ;;  %vm978_vm6 = vcmp.eq.s32.totalorder %v14766_v25, %v12154_v39  ;;  %vm980_vm7 = vcmp.eq.s32.totalorder %v14766_v25, %v12162_v20 }
 0x31f   : > { %14764 = vst [vmem:[#allocation15_spill] sm:$0xff] %v12856_v53  ;;  %v4905_v0 = vadd.f32 %v4904_v35, %v14765_v47  ;;  %v4906_v43 = vpop.f32.mrb[221].mxu0  ;;  %8761 = vmatmul.mubr.msk.f32.gmra.mrb[70].mxu0 %vm946_vm14, %v14634_v38  ;;  %v5289_v41 = vpop.f32.mrb[220].mxu1 }
 0x320   : > { %v5291_v40 = vpop.f32.mrb[221].mxu1  ;;  %8889 = vmatmul.mubr.msk.f32.gmra.mrb[70].mxu1 %vm948_vm15, %v14634_v38  ;;  %8762 = vmatprep.mubr.msk.f32.mxu0 %vm963_vm0, %v14634_v38 }
 0x321   : > { %8890 = vmatprep.mubr.msk.f32.mxu1 %vm965_vm1, %v14634_v38  ;;  %v12871_v31 = vadd.f32 %v5289_v41, %v4905_v0  ;;  %v14768_v40 = vld [vmem:[#allocation86_spill] sm:$0xff]  ;;  %v14769_v41 = vld [vmem:[#allocation27_spill] sm:$0xff] }
 0x322   : > { %v4909_v35 = vpop.f32.mrb[222].mxu0  ;;  %vm995_vm8 = vcmp.eq.s32.totalorder %v14769_v41, %v12140_v15  ;;  %vm997_vm9 = vcmp.eq.s32.totalorder %v14769_v41, %v12148_v5  ;;  %vm994_vm10 = vcmp.eq.s32.totalorder %v14769_v41, %v12154_v39  ;;  %vm996_vm11 = vcmp.eq.s32.totalorder %v14769_v41, %v12162_v20 }
 0x323   : > { %14767 = vst [vmem:[#allocation76_spill] sm:$0xff] %v12871_v31  ;;  %v4910_v47 = vadd.f32 %v4909_v35, %v14768_v40  ;;  %v4911_v43 = vpop.f32.mrb[223].mxu0  ;;  %8763 = vmatmul.mubr.msk.f32.gmra.mrb[72].mxu0 %vm962_vm2, %v14634_v38  ;;  %v5294_v53 = vpop.f32.mrb[222].mxu1 }
 0x324   : > { %v5296_v1 = vpop.f32.mrb[223].mxu1  ;;  %8891 = vmatmul.mubr.msk.f32.gmra.mrb[72].mxu1 %vm964_vm3, %v14634_v38  ;;  %8764 = vmatprep.mubr.msk.f32.mxu0 %vm979_vm4, %v14634_v38 }
 0x325   : > { %8892 = vmatprep.mubr.msk.f32.mxu1 %vm981_vm5, %v14634_v38  ;;  %v12886_v0 = vadd.f32 %v5294_v53, %v4910_v47  ;;  %v14771_v1 = vld [vmem:[#allocation87_spill] sm:$0xff]  ;;  %v14772_v53 = vld [vmem:[#allocation28_spill] sm:$0xff] }
 0x326   : > { %v4914_v35 = vpop.f32.mrb[224].mxu0  ;;  %vm1011_vm12 = vcmp.eq.s32.totalorder %v14772_v53, %v12140_v15  ;;  %vm1013_vm13 = vcmp.eq.s32.totalorder %v14772_v53, %v12148_v5  ;;  %vm1010_vm14 = vcmp.eq.s32.totalorder %v14772_v53, %v12154_v39  ;;  %vm1012_vm15 = vcmp.eq.s32.totalorder %v14772_v53, %v12162_v20 }
 0x327   : > { %14770 = vst [vmem:[#allocation77_spill] sm:$0xff] %v12886_v0  ;;  %v4915_v40 = vadd.f32 %v4914_v35, %v14771_v1  ;;  %v4916_v43 = vpop.f32.mrb[225].mxu0  ;;  %8765 = vmatmul.mubr.msk.f32.gmra.mrb[74].mxu0 %vm978_vm6, %v14634_v38  ;;  %v5299_v31 = vpop.f32.mrb[224].mxu1 }
 0x328   : > { %v5301_v50 = vpop.f32.mrb[225].mxu1  ;;  %8893 = vmatmul.mubr.msk.f32.gmra.mrb[74].mxu1 %vm980_vm7, %v14634_v38  ;;  %8766 = vmatprep.mubr.msk.f32.mxu0 %vm995_vm8, %v14634_v38 }
 0x329   : > { %8894 = vmatprep.mubr.msk.f32.mxu1 %vm997_vm9, %v14634_v38  ;;  %v12901_v47 = vadd.f32 %v5299_v31, %v4915_v40  ;;  %v14774_v50 = vld [vmem:[#allocation88_spill] sm:$0xff]  ;;  %v14775_v31 = vld [vmem:[#allocation29_spill] sm:$0xff] }
 0x32a   : > { %v4919_v35 = vpop.f32.mrb[226].mxu0  ;;  %vm1027_vm0 = vcmp.eq.s32.totalorder %v14775_v31, %v12140_v15  ;;  %vm1029_vm1 = vcmp.eq.s32.totalorder %v14775_v31, %v12148_v5  ;;  %vm1026_vm2 = vcmp.eq.s32.totalorder %v14775_v31, %v12154_v39  ;;  %vm1028_vm3 = vcmp.eq.s32.totalorder %v14775_v31, %v12162_v20 }
 0x32b   : > { %14773 = vst [vmem:[#allocation78_spill] sm:$0xff] %v12901_v47  ;;  %v4920_v1 = vadd.f32 %v4919_v35, %v14774_v50  ;;  %v4921_v43 = vpop.f32.mrb[227].mxu0  ;;  %8767 = vmatmul.mubr.msk.f32.gmra.mrb[76].mxu0 %vm994_vm10, %v14634_v38  ;;  %v5304_v0 = vpop.f32.mrb[226].mxu1 }
 0x32c   : > { %v5306_v25 = vpop.f32.mrb[227].mxu1  ;;  %8895 = vmatmul.mubr.msk.f32.gmra.mrb[76].mxu1 %vm996_vm11, %v14634_v38  ;;  %8768 = vmatprep.mubr.msk.f32.mxu0 %vm1011_vm12, %v14634_v38 }
 0x32d   : > { %8896 = vmatprep.mubr.msk.f32.mxu1 %vm1013_vm13, %v14634_v38  ;;  %v12916_v40 = vadd.f32 %v5304_v0, %v4920_v1  ;;  %v14777_v25 = vld [vmem:[#allocation89_spill] sm:$0xff]  ;;  %v14778_v0 = vld [vmem:[#allocation30_spill] sm:$0xff] }
 0x32e   : > { %v4924_v35 = vpop.f32.mrb[228].mxu0  ;;  %vm1043_vm4 = vcmp.eq.s32.totalorder %v14778_v0, %v12140_v15  ;;  %vm1045_vm5 = vcmp.eq.s32.totalorder %v14778_v0, %v12148_v5  ;;  %vm1042_vm6 = vcmp.eq.s32.totalorder %v14778_v0, %v12154_v39  ;;  %vm1044_vm7 = vcmp.eq.s32.totalorder %v14778_v0, %v12162_v20 }
 0x32f   : > { %14776 = vst [vmem:[#allocation79_spill] sm:$0xff] %v12916_v40  ;;  %v4925_v50 = vadd.f32 %v4924_v35, %v14777_v25  ;;  %v4926_v43 = vpop.f32.mrb[229].mxu0  ;;  %8769 = vmatmul.mubr.msk.f32.gmra.mrb[78].mxu0 %vm1010_vm14, %v14634_v38  ;;  %v5309_v47 = vpop.f32.mrb[228].mxu1 }
 0x330   : > { %v5311_v41 = vpop.f32.mrb[229].mxu1  ;;  %8897 = vmatmul.mubr.msk.f32.gmra.mrb[78].mxu1 %vm1012_vm15, %v14634_v38  ;;  %8770 = vmatprep.mubr.msk.f32.mxu0 %vm1027_vm0, %v14634_v38 }
 0x331   : > { %8898 = vmatprep.mubr.msk.f32.mxu1 %vm1029_vm1, %v14634_v38  ;;  %v12931_v1 = vadd.f32 %v5309_v47, %v4925_v50  ;;  %v14780_v41 = vld [vmem:[#allocation90_spill] sm:$0xff]  ;;  %v14781_v47 = vld [vmem:[#allocation31_spill] sm:$0xff] }
 0x332   : > { %v4929_v35 = vpop.f32.mrb[230].mxu0  ;;  %vm1059_vm8 = vcmp.eq.s32.totalorder %v14781_v47, %v12140_v15  ;;  %vm1061_vm9 = vcmp.eq.s32.totalorder %v14781_v47, %v12148_v5  ;;  %vm1058_vm10 = vcmp.eq.s32.totalorder %v14781_v47, %v12154_v39  ;;  %vm1060_vm11 = vcmp.eq.s32.totalorder %v14781_v47, %v12162_v20 }
 0x333   : > { %14779 = vst [vmem:[#allocation80_spill] sm:$0xff] %v12931_v1  ;;  %v4930_v25 = vadd.f32 %v4929_v35, %v14780_v41  ;;  %v4931_v43 = vpop.f32.mrb[231].mxu0  ;;  %8771 = vmatmul.mubr.msk.f32.gmra.mrb[80].mxu0 %vm1026_vm2, %v14634_v38  ;;  %v5314_v40 = vpop.f32.mrb[230].mxu1 }
 0x334   : > { %v5316_v53 = vpop.f32.mrb[231].mxu1  ;;  %8899 = vmatmul.mubr.msk.f32.gmra.mrb[80].mxu1 %vm1028_vm3, %v14634_v38  ;;  %8772 = vmatprep.mubr.msk.f32.mxu0 %vm1043_vm4, %v14634_v38 }
 0x335   : > { %8900 = vmatprep.mubr.msk.f32.mxu1 %vm1045_vm5, %v14634_v38  ;;  %v12946_v50 = vadd.f32 %v5314_v40, %v4930_v25  ;;  %v14783_v53 = vld [vmem:[#allocation91_spill] sm:$0xff]  ;;  %v14784_v40 = vld [vmem:[#allocation32_spill] sm:$0xff] }
 0x336   : > { %v4934_v35 = vpop.f32.mrb[232].mxu0  ;;  %vm1075_vm12 = vcmp.eq.s32.totalorder %v14784_v40, %v12140_v15  ;;  %vm1077_vm13 = vcmp.eq.s32.totalorder %v14784_v40, %v12148_v5  ;;  %vm1074_vm14 = vcmp.eq.s32.totalorder %v14784_v40, %v12154_v39  ;;  %vm1076_vm15 = vcmp.eq.s32.totalorder %v14784_v40, %v12162_v20 }
 0x337   : > { %14782 = vst [vmem:[#allocation81_spill] sm:$0xff] %v12946_v50  ;;  %v4935_v41 = vadd.f32 %v4934_v35, %v14783_v53  ;;  %v4936_v43 = vpop.f32.mrb[233].mxu0  ;;  %8773 = vmatmul.mubr.msk.f32.gmra.mrb[82].mxu0 %vm1042_vm6, %v14634_v38  ;;  %v5319_v1 = vpop.f32.mrb[232].mxu1 }
 0x338   : > { %v5321_v31 = vpop.f32.mrb[233].mxu1  ;;  %8901 = vmatmul.mubr.msk.f32.gmra.mrb[82].mxu1 %vm1044_vm7, %v14634_v38  ;;  %8774 = vmatprep.mubr.msk.f32.mxu0 %vm1059_vm8, %v14634_v38 }
 0x339   : > { %8902 = vmatprep.mubr.msk.f32.mxu1 %vm1061_vm9, %v14634_v38  ;;  %v12961_v25 = vadd.f32 %v5319_v1, %v4935_v41  ;;  %v14786_v31 = vld [vmem:[#allocation92_spill] sm:$0xff]  ;;  %v14787_v1 = vld [vmem:[#allocation33_spill] sm:$0xff] }
 0x33a   : > { %v4939_v35 = vpop.f32.mrb[234].mxu0  ;;  %vm1091_vm0 = vcmp.eq.s32.totalorder %v14787_v1, %v12140_v15  ;;  %vm1093_vm1 = vcmp.eq.s32.totalorder %v14787_v1, %v12148_v5  ;;  %vm1090_vm2 = vcmp.eq.s32.totalorder %v14787_v1, %v12154_v39  ;;  %vm1092_vm3 = vcmp.eq.s32.totalorder %v14787_v1, %v12162_v20 }
 0x33b   : > { %14785 = vst [vmem:[#allocation82_spill] sm:$0xff] %v12961_v25  ;;  %v4940_v53 = vadd.f32 %v4939_v35, %v14786_v31  ;;  %v4941_v43 = vpop.f32.mrb[235].mxu0  ;;  %8775 = vmatmul.mubr.msk.f32.gmra.mrb[84].mxu0 %vm1058_vm10, %v14634_v38  ;;  %v5324_v50 = vpop.f32.mrb[234].mxu1 }
 0x33c   : > { %v5326_v0 = vpop.f32.mrb[235].mxu1  ;;  %8903 = vmatmul.mubr.msk.f32.gmra.mrb[84].mxu1 %vm1060_vm11, %v14634_v38  ;;  %8776 = vmatprep.mubr.msk.f32.mxu0 %vm1075_vm12, %v14634_v38 }
 0x33d   : > { %8904 = vmatprep.mubr.msk.f32.mxu1 %vm1077_vm13, %v14634_v38  ;;  %v12976_v41 = vadd.f32 %v5324_v50, %v4940_v53  ;;  %v14789_v0 = vld [vmem:[#allocation93_spill] sm:$0xff]  ;;  %v14790_v50 = vld [vmem:[#allocation34_spill] sm:$0xff] }
 0x33e   : > { %v4944_v35 = vpop.f32.mrb[236].mxu0  ;;  %vm1107_vm4 = vcmp.eq.s32.totalorder %v14790_v50, %v12140_v15  ;;  %vm1109_vm5 = vcmp.eq.s32.totalorder %v14790_v50, %v12148_v5  ;;  %vm1106_vm6 = vcmp.eq.s32.totalorder %v14790_v50, %v12154_v39  ;;  %vm1108_vm7 = vcmp.eq.s32.totalorder %v14790_v50, %v12162_v20 }
 0x33f   : > { %14788 = vst [vmem:[#allocation83_spill] sm:$0xff] %v12976_v41  ;;  %v4945_v31 = vadd.f32 %v4944_v35, %v14789_v0  ;;  %v4946_v43 = vpop.f32.mrb[237].mxu0  ;;  %8777 = vmatmul.mubr.msk.f32.gmra.mrb[86].mxu0 %vm1074_vm14, %v14634_v38  ;;  %v5329_v25 = vpop.f32.mrb[236].mxu1 }
 0x340   : > { %v5331_v47 = vpop.f32.mrb[237].mxu1  ;;  %8905 = vmatmul.mubr.msk.f32.gmra.mrb[86].mxu1 %vm1076_vm15, %v14634_v38  ;;  %8778 = vmatprep.mubr.msk.f32.mxu0 %vm1091_vm0, %v14634_v38 }
 0x341   : > { %8906 = vmatprep.mubr.msk.f32.mxu1 %vm1093_vm1, %v14634_v38  ;;  %v12991_v53 = vadd.f32 %v5329_v25, %v4945_v31  ;;  %v14792_v47 = vld [vmem:[#allocation94_spill] sm:$0xff]  ;;  %v14793_v25 = vld [vmem:[#allocation35_spill] sm:$0xff] }
 0x342   : > { %v4949_v35 = vpop.f32.mrb[238].mxu0  ;;  %vm1123_vm8 = vcmp.eq.s32.totalorder %v14793_v25, %v12140_v15  ;;  %vm1125_vm9 = vcmp.eq.s32.totalorder %v14793_v25, %v12148_v5  ;;  %vm1122_vm10 = vcmp.eq.s32.totalorder %v14793_v25, %v12154_v39  ;;  %vm1124_vm11 = vcmp.eq.s32.totalorder %v14793_v25, %v12162_v20 }
 0x343   : > { %14791 = vst [vmem:[#allocation84_spill] sm:$0xff] %v12991_v53  ;;  %v4950_v0 = vadd.f32 %v4949_v35, %v14792_v47  ;;  %v4951_v43 = vpop.f32.mrb[239].mxu0  ;;  %8779 = vmatmul.mubr.msk.f32.gmra.mrb[88].mxu0 %vm1090_vm2, %v14634_v38  ;;  %v5334_v41 = vpop.f32.mrb[238].mxu1 }
 0x344   : > { %v5336_v40 = vpop.f32.mrb[239].mxu1  ;;  %8907 = vmatmul.mubr.msk.f32.gmra.mrb[88].mxu1 %vm1092_vm3, %v14634_v38  ;;  %8780 = vmatprep.mubr.msk.f32.mxu0 %vm1107_vm4, %v14634_v38 }
 0x345   : > { %8908 = vmatprep.mubr.msk.f32.mxu1 %vm1109_vm5, %v14634_v38  ;;  %v13006_v31 = vadd.f32 %v5334_v41, %v4950_v0  ;;  %v14795_v40 = vld [vmem:[#allocation95_spill] sm:$0xff]  ;;  %v14796_v41 = vld [vmem:[#allocation36_spill] sm:$0xff] }
 0x346   : > { %v4954_v35 = vpop.f32.mrb[240].mxu0  ;;  %vm1139_vm12 = vcmp.eq.s32.totalorder %v14796_v41, %v12140_v15  ;;  %vm1141_vm13 = vcmp.eq.s32.totalorder %v14796_v41, %v12148_v5  ;;  %vm1138_vm14 = vcmp.eq.s32.totalorder %v14796_v41, %v12154_v39  ;;  %vm1140_vm15 = vcmp.eq.s32.totalorder %v14796_v41, %v12162_v20 }
 0x347   : > { %14794 = vst [vmem:[#allocation85_spill] sm:$0xff] %v13006_v31  ;;  %v4955_v47 = vadd.f32 %v4954_v35, %v14795_v40  ;;  %v4956_v43 = vpop.f32.mrb[241].mxu0  ;;  %8781 = vmatmul.mubr.msk.f32.gmra.mrb[90].mxu0 %vm1106_vm6, %v14634_v38  ;;  %v5339_v53 = vpop.f32.mrb[240].mxu1 }
 0x348   : > { %v5341_v1 = vpop.f32.mrb[241].mxu1  ;;  %8909 = vmatmul.mubr.msk.f32.gmra.mrb[90].mxu1 %vm1108_vm7, %v14634_v38  ;;  %8782 = vmatprep.mubr.msk.f32.mxu0 %vm1123_vm8, %v14634_v38 }
 0x349   : > { %8910 = vmatprep.mubr.msk.f32.mxu1 %vm1125_vm9, %v14634_v38  ;;  %v13021_v0 = vadd.f32 %v5339_v53, %v4955_v47  ;;  %v14798_v1 = vld [vmem:[#allocation96_spill] sm:$0xff]  ;;  %v14799_v53 = vld [vmem:[#allocation37_spill] sm:$0xff] }
 0x34a   : > { %v4959_v35 = vpop.f32.mrb[242].mxu0  ;;  %vm1155_vm0 = vcmp.eq.s32.totalorder %v14799_v53, %v12140_v15  ;;  %vm1157_vm1 = vcmp.eq.s32.totalorder %v14799_v53, %v12148_v5  ;;  %vm1154_vm2 = vcmp.eq.s32.totalorder %v14799_v53, %v12154_v39  ;;  %vm1156_vm3 = vcmp.eq.s32.totalorder %v14799_v53, %v12162_v20 }
 0x34b   : > { %14797 = vst [vmem:[#allocation86_spill] sm:$0xff] %v13021_v0  ;;  %v4960_v40 = vadd.f32 %v4959_v35, %v14798_v1  ;;  %v4961_v43 = vpop.f32.mrb[243].mxu0  ;;  %8783 = vmatmul.mubr.msk.f32.gmra.mrb[92].mxu0 %vm1122_vm10, %v14634_v38  ;;  %v5344_v31 = vpop.f32.mrb[242].mxu1 }
 0x34c   : > { %v5346_v50 = vpop.f32.mrb[243].mxu1  ;;  %8911 = vmatmul.mubr.msk.f32.gmra.mrb[92].mxu1 %vm1124_vm11, %v14634_v38  ;;  %8784 = vmatprep.mubr.msk.f32.mxu0 %vm1139_vm12, %v14634_v38 }
 0x34d   : > { %8912 = vmatprep.mubr.msk.f32.mxu1 %vm1141_vm13, %v14634_v38  ;;  %v13036_v47 = vadd.f32 %v5344_v31, %v4960_v40  ;;  %v14801_v50 = vld [vmem:[#allocation97_spill] sm:$0xff]  ;;  %v14802_v31 = vld [vmem:[#allocation38_spill] sm:$0xff] }
 0x34e   : > { %v4964_v35 = vpop.f32.mrb[244].mxu0  ;;  %vm1171_vm4 = vcmp.eq.s32.totalorder %v14802_v31, %v12140_v15  ;;  %vm1173_vm5 = vcmp.eq.s32.totalorder %v14802_v31, %v12148_v5  ;;  %vm1170_vm6 = vcmp.eq.s32.totalorder %v14802_v31, %v12154_v39  ;;  %vm1172_vm7 = vcmp.eq.s32.totalorder %v14802_v31, %v12162_v20 }
 0x34f   : > { %14800 = vst [vmem:[#allocation87_spill] sm:$0xff] %v13036_v47  ;;  %v4965_v1 = vadd.f32 %v4964_v35, %v14801_v50  ;;  %v4966_v43 = vpop.f32.mrb[245].mxu0  ;;  %8785 = vmatmul.mubr.msk.f32.gmra.mrb[94].mxu0 %vm1138_vm14, %v14634_v38  ;;  %v5349_v0 = vpop.f32.mrb[244].mxu1 }
 0x350   : > { %v5351_v25 = vpop.f32.mrb[245].mxu1  ;;  %8913 = vmatmul.mubr.msk.f32.gmra.mrb[94].mxu1 %vm1140_vm15, %v14634_v38  ;;  %8786 = vmatprep.mubr.msk.f32.mxu0 %vm1155_vm0, %v14634_v38 }
 0x351   : > { %8914 = vmatprep.mubr.msk.f32.mxu1 %vm1157_vm1, %v14634_v38  ;;  %v13051_v40 = vadd.f32 %v5349_v0, %v4965_v1  ;;  %v14804_v25 = vld [vmem:[#allocation98_spill] sm:$0xff]  ;;  %v14805_v0 = vld [vmem:[#allocation39_spill] sm:$0xff] }
 0x352   : > { %v4969_v35 = vpop.f32.mrb[246].mxu0  ;;  %vm1187_vm8 = vcmp.eq.s32.totalorder %v14805_v0, %v12140_v15  ;;  %vm1189_vm9 = vcmp.eq.s32.totalorder %v14805_v0, %v12148_v5  ;;  %vm1186_vm10 = vcmp.eq.s32.totalorder %v14805_v0, %v12154_v39  ;;  %vm1188_vm11 = vcmp.eq.s32.totalorder %v14805_v0, %v12162_v20 }
 0x353   : > { %14803 = vst [vmem:[#allocation88_spill] sm:$0xff] %v13051_v40  ;;  %v4970_v50 = vadd.f32 %v4969_v35, %v14804_v25  ;;  %v4971_v43 = vpop.f32.mrb[247].mxu0  ;;  %8787 = vmatmul.mubr.msk.f32.gmra.mrb[96].mxu0 %vm1154_vm2, %v14634_v38  ;;  %v5354_v47 = vpop.f32.mrb[246].mxu1 }
 0x354   : > { %v5356_v41 = vpop.f32.mrb[247].mxu1  ;;  %8915 = vmatmul.mubr.msk.f32.gmra.mrb[96].mxu1 %vm1156_vm3, %v14634_v38  ;;  %8788 = vmatprep.mubr.msk.f32.mxu0 %vm1171_vm4, %v14634_v38 }
 0x355   : > { %8916 = vmatprep.mubr.msk.f32.mxu1 %vm1173_vm5, %v14634_v38  ;;  %v13066_v1 = vadd.f32 %v5354_v47, %v4970_v50  ;;  %v14807_v41 = vld [vmem:[#allocation99_spill] sm:$0xff]  ;;  %v14808_v47 = vld [vmem:[#allocation40_spill] sm:$0xff] }
 0x356   : > { %v4974_v35 = vpop.f32.mrb[248].mxu0  ;;  %vm1203_vm12 = vcmp.eq.s32.totalorder %v14808_v47, %v12140_v15  ;;  %vm1205_vm13 = vcmp.eq.s32.totalorder %v14808_v47, %v12148_v5  ;;  %vm1202_vm14 = vcmp.eq.s32.totalorder %v14808_v47, %v12154_v39  ;;  %vm1204_vm15 = vcmp.eq.s32.totalorder %v14808_v47, %v12162_v20 }
 0x357   : > { %14806 = vst [vmem:[#allocation89_spill] sm:$0xff] %v13066_v1  ;;  %v4975_v25 = vadd.f32 %v4974_v35, %v14807_v41  ;;  %v4976_v43 = vpop.f32.mrb[249].mxu0  ;;  %8789 = vmatmul.mubr.msk.f32.gmra.mrb[98].mxu0 %vm1170_vm6, %v14634_v38  ;;  %v5359_v40 = vpop.f32.mrb[248].mxu1 }
 0x358   : > { %v5361_v53 = vpop.f32.mrb[249].mxu1  ;;  %8917 = vmatmul.mubr.msk.f32.gmra.mrb[98].mxu1 %vm1172_vm7, %v14634_v38  ;;  %8790 = vmatprep.mubr.msk.f32.mxu0 %vm1187_vm8, %v14634_v38 }
 0x359   : > { %8918 = vmatprep.mubr.msk.f32.mxu1 %vm1189_vm9, %v14634_v38  ;;  %v13081_v50 = vadd.f32 %v5359_v40, %v4975_v25  ;;  %v14810_v53 = vld [vmem:[#allocation100_spill] sm:$0xff]  ;;  %v14811_v40 = vld [vmem:[#allocation41_spill] sm:$0xff] }
 0x35a   : > { %v4979_v35 = vpop.f32.mrb[250].mxu0  ;;  %vm1219_vm0 = vcmp.eq.s32.totalorder %v14811_v40, %v12140_v15  ;;  %vm1221_vm1 = vcmp.eq.s32.totalorder %v14811_v40, %v12148_v5  ;;  %vm1218_vm2 = vcmp.eq.s32.totalorder %v14811_v40, %v12154_v39  ;;  %vm1220_vm3 = vcmp.eq.s32.totalorder %v14811_v40, %v12162_v20 }
 0x35b   : > { %14809 = vst [vmem:[#allocation90_spill] sm:$0xff] %v13081_v50  ;;  %v4980_v41 = vadd.f32 %v4979_v35, %v14810_v53  ;;  %v4981_v43 = vpop.f32.mrb[251].mxu0  ;;  %8791 = vmatmul.mubr.msk.f32.gmra.mrb[100].mxu0 %vm1186_vm10, %v14634_v38  ;;  %v5364_v1 = vpop.f32.mrb[250].mxu1 }
 0x35c   : > { %v5366_v31 = vpop.f32.mrb[251].mxu1  ;;  %8919 = vmatmul.mubr.msk.f32.gmra.mrb[100].mxu1 %vm1188_vm11, %v14634_v38  ;;  %8792 = vmatprep.mubr.msk.f32.mxu0 %vm1203_vm12, %v14634_v38 }
 0x35d   : > { %8920 = vmatprep.mubr.msk.f32.mxu1 %vm1205_vm13, %v14634_v38  ;;  %v13096_v25 = vadd.f32 %v5364_v1, %v4980_v41  ;;  %v14813_v31 = vld [vmem:[#allocation101_spill] sm:$0xff]  ;;  %v14814_v1 = vld [vmem:[#allocation42_spill] sm:$0xff] }
 0x35e   : > { %v4984_v35 = vpop.f32.mrb[252].mxu0  ;;  %vm1235_vm4 = vcmp.eq.s32.totalorder %v14814_v1, %v12140_v15  ;;  %vm1237_vm5 = vcmp.eq.s32.totalorder %v14814_v1, %v12148_v5  ;;  %vm1234_vm6 = vcmp.eq.s32.totalorder %v14814_v1, %v12154_v39  ;;  %vm1236_vm7 = vcmp.eq.s32.totalorder %v14814_v1, %v12162_v20 }
 0x35f   : > { %14812 = vst [vmem:[#allocation91_spill] sm:$0xff] %v13096_v25  ;;  %v4985_v53 = vadd.f32 %v4984_v35, %v14813_v31  ;;  %v4986_v43 = vpop.f32.mrb[253].mxu0  ;;  %8793 = vmatmul.mubr.msk.f32.gmra.mrb[102].mxu0 %vm1202_vm14, %v14634_v38  ;;  %v5369_v50 = vpop.f32.mrb[252].mxu1 }
 0x360   : > { %v5371_v0 = vpop.f32.mrb[253].mxu1  ;;  %8921 = vmatmul.mubr.msk.f32.gmra.mrb[102].mxu1 %vm1204_vm15, %v14634_v38  ;;  %8794 = vmatprep.mubr.msk.f32.mxu0 %vm1219_vm0, %v14634_v38 }
 0x361   : > { %8922 = vmatprep.mubr.msk.f32.mxu1 %vm1221_vm1, %v14634_v38  ;;  %v13111_v41 = vadd.f32 %v5369_v50, %v4985_v53  ;;  %v14816_v0 = vld [vmem:[#allocation102_spill] sm:$0xff]  ;;  %v14817_v50 = vld [vmem:[#allocation43_spill] sm:$0xff] }
 0x362   : > { %v4989_v35 = vpop.f32.mrb[254].mxu0  ;;  %vm1251_vm8 = vcmp.eq.s32.totalorder %v14817_v50, %v12140_v15  ;;  %vm1253_vm9 = vcmp.eq.s32.totalorder %v14817_v50, %v12148_v5  ;;  %vm1250_vm10 = vcmp.eq.s32.totalorder %v14817_v50, %v12154_v39  ;;  %vm1252_vm11 = vcmp.eq.s32.totalorder %v14817_v50, %v12162_v20 }
 0x363   : > { %14815 = vst [vmem:[#allocation92_spill] sm:$0xff] %v13111_v41  ;;  %v4990_v31 = vadd.f32 %v4989_v35, %v14816_v0  ;;  %v4991_v43 = vpop.f32.mrb[255].mxu0  ;;  %8795 = vmatmul.mubr.msk.f32.gmra.mrb[104].mxu0 %vm1218_vm2, %v14634_v38  ;;  %v5374_v25 = vpop.f32.mrb[254].mxu1 }
 0x364   : > { %v5376_v47 = vpop.f32.mrb[255].mxu1  ;;  %8923 = vmatmul.mubr.msk.f32.gmra.mrb[104].mxu1 %vm1220_vm3, %v14634_v38  ;;  %8796 = vmatprep.mubr.msk.f32.mxu0 %vm1235_vm4, %v14634_v38 }
 0x365   : > { %8924 = vmatprep.mubr.msk.f32.mxu1 %vm1237_vm5, %v14634_v38  ;;  %v13126_v53 = vadd.f32 %v5374_v25, %v4990_v31  ;;  %v14819_v47 = vld [vmem:[#allocation45_spill] sm:$0xff]  ;;  %v14821_v31 = vld [vmem:[#allocation44_spill] sm:$0xff] }
 0x366   : > { %v5444_v35 = vpop.f32.mrb[0].mxu0  ;;  %vm1267_vm12 = vcmp.eq.s32.totalorder %v14821_v31, %v12140_v15  ;;  %vm1269_vm13 = vcmp.eq.s32.totalorder %v14821_v31, %v12148_v5  ;;  %vm1266_vm14 = vcmp.eq.s32.totalorder %v14821_v31, %v12154_v39  ;;  %vm1268_vm15 = vcmp.eq.s32.totalorder %v14821_v31, %v12162_v20 }
 0x367   : > { %14818 = vst [vmem:[#allocation93_spill] sm:$0xff] %v13126_v53  ;;  %v5445_v0 = vadd.f32 %v5444_v35, %v14819_v47  ;;  %v5446_v43 = vpop.f32.mrb[1].mxu0  ;;  %8797 = vmatmul.mubr.msk.f32.gmra.mrb[106].mxu0 %vm1234_vm6, %v14634_v38  ;;  %v5829_v41 = vpop.f32.mrb[0].mxu1 }
 0x368   : > { %v5831_v40 = vpop.f32.mrb[1].mxu1  ;;  %8925 = vmatmul.mubr.msk.f32.gmra.mrb[106].mxu1 %vm1236_vm7, %v14634_v38  ;;  %8798 = vmatprep.mubr.msk.f32.mxu0 %vm1251_vm8, %v14634_v38 }
 0x369   : > { %v13136_v25 = vadd.f32 %v5829_v41, %v5445_v0  ;;  %8926 = vmatprep.mubr.msk.f32.mxu1 %vm1253_vm9, %v14634_v38  ;;  %v14822_v40 = vld [vmem:[#allocation47_spill] sm:$0xff] }
 0x36a   : > { %v5449_v35 = vpop.f32.mrb[2].mxu0 }
 0x36b   : > { %14820 = vst [vmem:[#allocation94_spill] sm:$0xff] %v13136_v25  ;;  %v5450_v47 = vadd.f32 %v5449_v35, %v14822_v40  ;;  %v5451_v43 = vpop.f32.mrb[3].mxu0  ;;  %8799 = vmatmul.mubr.msk.f32.gmra.mrb[108].mxu0 %vm1250_vm10, %v14634_v38  ;;  %v5834_v53 = vpop.f32.mrb[2].mxu1  ;;  %v14824_v35 = vld [vmem:[#allocation46_spill] sm:$0xff] }
 0x36c   : > { %v5836_v41 = vpop.f32.mrb[3].mxu1  ;;  %8927 = vmatmul.mubr.msk.f32.gmra.mrb[108].mxu1 %vm1252_vm11, %v14634_v38  ;;  %8800 = vmatprep.mubr.msk.f32.mxu0 %vm1267_vm12, %v14634_v38  ;;  %vm1283_vm0 = vcmp.eq.s32.totalorder %v14824_v35, %v12140_v15  ;;  %vm1285_vm1 = vcmp.eq.s32.totalorder %v14824_v35, %v12148_v5  ;;  %v14825_v43 = vld [vmem:[#allocation49_spill] sm:$0xff]  ;;  %vm1282_vm2 = vcmp.eq.s32.totalorder %v14824_v35, %v12154_v39 }
 0x36d   : > { %v13151_v0 = vadd.f32 %v5834_v53, %v5450_v47  ;;  %8928 = vmatprep.mubr.msk.f32.mxu1 %vm1269_vm13, %v14634_v38  ;;  %vm1284_vm3 = vcmp.eq.s32.totalorder %v14824_v35, %v12162_v20 }
 0x36e   : > { %v5454_v40 = vpop.f32.mrb[4].mxu0 }
 0x36f   : > { %14823 = vst [vmem:[#allocation95_spill] sm:$0xff] %v13151_v0  ;;  %v5455_v41 = vadd.f32 %v5454_v40, %v14825_v43  ;;  %v5456_v25 = vpop.f32.mrb[5].mxu0  ;;  %8801 = vmatmul.mubr.msk.f32.gmra.mrb[110].mxu0 %vm1266_vm14, %v14634_v38  ;;  %v5839_v50 = vpop.f32.mrb[4].mxu1  ;;  %v14828_v43 = vld [vmem:[#allocation51_spill] sm:$0xff] }
 0x370   : > { %v5841_v53 = vpop.f32.mrb[5].mxu1  ;;  %8929 = vmatmul.mubr.msk.f32.gmra.mrb[110].mxu1 %vm1268_vm15, %v14634_v38  ;;  %8802 = vmatprep.mubr.msk.f32.mxu0 %vm1283_vm0, %v14634_v38  ;;  %v14827_v25 = vld [vmem:[#allocation48_spill] sm:$0xff] }
 0x371   : > { %v13166_v47 = vadd.f32 %v5839_v50, %v5455_v41  ;;  %8930 = vmatprep.mubr.msk.f32.mxu1 %vm1285_vm1, %v14634_v38  ;;  %vm1299_vm4 = vcmp.eq.s32.totalorder %v14827_v25, %v12140_v15  ;;  %vm1301_vm5 = vcmp.eq.s32.totalorder %v14827_v25, %v12148_v5  ;;  %vm1298_vm6 = vcmp.eq.s32.totalorder %v14827_v25, %v12154_v39 }
 0x372   : > { %v5459_v40 = vpop.f32.mrb[6].mxu0  ;;  %vm1300_vm7 = vcmp.eq.s32.totalorder %v14827_v25, %v12162_v20 }
 0x373   : > { %14826 = vst [vmem:[#allocation96_spill] sm:$0xff] %v13166_v47  ;;  %v5460_v53 = vadd.f32 %v5459_v40, %v14828_v43  ;;  %v5461_v0 = vpop.f32.mrb[7].mxu0  ;;  %8803 = vmatmul.mubr.msk.f32.gmra.mrb[112].mxu0 %vm1282_vm2, %v14634_v38  ;;  %v5844_v31 = vpop.f32.mrb[6].mxu1  ;;  %v14831_v43 = vld [vmem:[#allocation53_spill] sm:$0xff] }
 0x374   : > { %v5846_v50 = vpop.f32.mrb[7].mxu1  ;;  %8931 = vmatmul.mubr.msk.f32.gmra.mrb[112].mxu1 %vm1284_vm3, %v14634_v38  ;;  %8804 = vmatprep.mubr.msk.f32.mxu0 %vm1299_vm4, %v14634_v38  ;;  %v14830_v0 = vld [vmem:[#allocation50_spill] sm:$0xff] }
 0x375   : > { %v13181_v41 = vadd.f32 %v5844_v31, %v5460_v53  ;;  %8932 = vmatprep.mubr.msk.f32.mxu1 %vm1301_vm5, %v14634_v38  ;;  %vm1315_vm8 = vcmp.eq.s32.totalorder %v14830_v0, %v12140_v15  ;;  %vm1317_vm9 = vcmp.eq.s32.totalorder %v14830_v0, %v12148_v5  ;;  %vm1314_vm10 = vcmp.eq.s32.totalorder %v14830_v0, %v12154_v39 }
 0x376   : > { %v5464_v40 = vpop.f32.mrb[8].mxu0  ;;  %vm1316_vm11 = vcmp.eq.s32.totalorder %v14830_v0, %v12162_v20 }
 0x377   : > { %14829 = vst [vmem:[#allocation97_spill] sm:$0xff] %v13181_v41  ;;  %v5465_v50 = vadd.f32 %v5464_v40, %v14831_v43  ;;  %v5466_v47 = vpop.f32.mrb[9].mxu0  ;;  %8805 = vmatmul.mubr.msk.f32.gmra.mrb[114].mxu0 %vm1298_vm6, %v14634_v38  ;;  %v5849_v35 = vpop.f32.mrb[8].mxu1  ;;  %v14834_v43 = vld [vmem:[#allocation55_spill] sm:$0xff] }
 0x378   : > { %v5851_v31 = vpop.f32.mrb[9].mxu1  ;;  %8933 = vmatmul.mubr.msk.f32.gmra.mrb[114].mxu1 %vm1300_vm7, %v14634_v38  ;;  %8806 = vmatprep.mubr.msk.f32.mxu0 %vm1315_vm8, %v14634_v38  ;;  %v14833_v47 = vld [vmem:[#allocation52_spill] sm:$0xff] }
 0x379   : > { %v13196_v53 = vadd.f32 %v5849_v35, %v5465_v50  ;;  %8934 = vmatprep.mubr.msk.f32.mxu1 %vm1317_vm9, %v14634_v38  ;;  %vm1331_vm12 = vcmp.eq.s32.totalorder %v14833_v47, %v12140_v15  ;;  %vm1333_vm13 = vcmp.eq.s32.totalorder %v14833_v47, %v12148_v5  ;;  %vm1330_vm14 = vcmp.eq.s32.totalorder %v14833_v47, %v12154_v39 }
 0x37a   : > { %v5469_v40 = vpop.f32.mrb[10].mxu0  ;;  %vm1332_vm15 = vcmp.eq.s32.totalorder %v14833_v47, %v12162_v20 }
 0x37b   : > { %14832 = vst [vmem:[#allocation98_spill] sm:$0xff] %v13196_v53  ;;  %v5470_v31 = vadd.f32 %v5469_v40, %v14834_v43  ;;  %v5471_v41 = vpop.f32.mrb[11].mxu0  ;;  %8807 = vmatmul.mubr.msk.f32.gmra.mrb[116].mxu0 %vm1314_vm10, %v14634_v38  ;;  %v5854_v25 = vpop.f32.mrb[10].mxu1  ;;  %v14837_v43 = vld [vmem:[#allocation57_spill] sm:$0xff] }
 0x37c   : > { %v5856_v35 = vpop.f32.mrb[11].mxu1  ;;  %8935 = vmatmul.mubr.msk.f32.gmra.mrb[116].mxu1 %vm1316_vm11, %v14634_v38  ;;  %8808 = vmatprep.mubr.msk.f32.mxu0 %vm1331_vm12, %v14634_v38  ;;  %v14836_v41 = vld [vmem:[#allocation54_spill] sm:$0xff] }
 0x37d   : > { %v13211_v50 = vadd.f32 %v5854_v25, %v5470_v31  ;;  %8936 = vmatprep.mubr.msk.f32.mxu1 %vm1333_vm13, %v14634_v38  ;;  %vm1347_vm0 = vcmp.eq.s32.totalorder %v14836_v41, %v12140_v15  ;;  %vm1349_vm1 = vcmp.eq.s32.totalorder %v14836_v41, %v12148_v5  ;;  %vm1346_vm2 = vcmp.eq.s32.totalorder %v14836_v41, %v12154_v39 }
 0x37e   : > { %v5474_v40 = vpop.f32.mrb[12].mxu0  ;;  %vm1348_vm3 = vcmp.eq.s32.totalorder %v14836_v41, %v12162_v20 }
 0x37f   : > { %14835 = vst [vmem:[#allocation99_spill] sm:$0xff] %v13211_v50  ;;  %v5475_v35 = vadd.f32 %v5474_v40, %v14837_v43  ;;  %v5476_v53 = vpop.f32.mrb[13].mxu0  ;;  %8809 = vmatmul.mubr.msk.f32.gmra.mrb[118].mxu0 %vm1330_vm14, %v14634_v38  ;;  %v5859_v0 = vpop.f32.mrb[12].mxu1  ;;  %v14840_v43 = vld [vmem:[#allocation59_spill] sm:$0xff] }
 0x380   : > { %v5861_v25 = vpop.f32.mrb[13].mxu1  ;;  %8937 = vmatmul.mubr.msk.f32.gmra.mrb[118].mxu1 %vm1332_vm15, %v14634_v38  ;;  %8810 = vmatprep.mubr.msk.f32.mxu0 %vm1347_vm0, %v14634_v38  ;;  %v14839_v53 = vld [vmem:[#allocation56_spill] sm:$0xff] }
 0x381   : > { %v13226_v31 = vadd.f32 %v5859_v0, %v5475_v35  ;;  %8938 = vmatprep.mubr.msk.f32.mxu1 %vm1349_vm1, %v14634_v38  ;;  %vm1363_vm4 = vcmp.eq.s32.totalorder %v14839_v53, %v12140_v15  ;;  %vm1365_vm5 = vcmp.eq.s32.totalorder %v14839_v53, %v12148_v5  ;;  %vm1362_vm6 = vcmp.eq.s32.totalorder %v14839_v53, %v12154_v39 }
 0x382   : > { %v5479_v40 = vpop.f32.mrb[14].mxu0  ;;  %vm1364_vm7 = vcmp.eq.s32.totalorder %v14839_v53, %v12162_v20 }
 0x383   : > { %14838 = vst [vmem:[#allocation100_spill] sm:$0xff] %v13226_v31  ;;  %v5480_v25 = vadd.f32 %v5479_v40, %v14840_v43  ;;  %v5481_v50 = vpop.f32.mrb[15].mxu0  ;;  %8811 = vmatmul.mubr.msk.f32.gmra.mrb[120].mxu0 %vm1346_vm2, %v14634_v38  ;;  %v5864_v47 = vpop.f32.mrb[14].mxu1  ;;  %v14843_v43 = vld [vmem:[#allocation61_spill] sm:$0xff] }
 0x384   : > { %v5866_v0 = vpop.f32.mrb[15].mxu1  ;;  %8939 = vmatmul.mubr.msk.f32.gmra.mrb[120].mxu1 %vm1348_vm3, %v14634_v38  ;;  %8812 = vmatprep.mubr.msk.f32.mxu0 %vm1363_vm4, %v14634_v38  ;;  %v14842_v50 = vld [vmem:[#allocation58_spill] sm:$0xff] }
 0x385   : > { %v13241_v35 = vadd.f32 %v5864_v47, %v5480_v25  ;;  %8940 = vmatprep.mubr.msk.f32.mxu1 %vm1365_vm5, %v14634_v38  ;;  %vm1379_vm8 = vcmp.eq.s32.totalorder %v14842_v50, %v12140_v15  ;;  %vm1381_vm9 = vcmp.eq.s32.totalorder %v14842_v50, %v12148_v5  ;;  %vm1378_vm10 = vcmp.eq.s32.totalorder %v14842_v50, %v12154_v39 }
 0x386   : > { %v5484_v40 = vpop.f32.mrb[16].mxu0  ;;  %vm1380_vm11 = vcmp.eq.s32.totalorder %v14842_v50, %v12162_v20 }
 0x387   : > { %14841 = vst [vmem:[#allocation101_spill] sm:$0xff] %v13241_v35  ;;  %v5485_v0 = vadd.f32 %v5484_v40, %v14843_v43  ;;  %v5486_v31 = vpop.f32.mrb[17].mxu0  ;;  %8813 = vmatmul.mubr.msk.f32.gmra.mrb[122].mxu0 %vm1362_vm6, %v14634_v38  ;;  %v5869_v41 = vpop.f32.mrb[16].mxu1  ;;  %v9676_v40 = vld [vmem:[#allocation2 + $0x8] sm:$0xff]  ;;  %v14846_v43 = vld [vmem:[#allocation11_spill] sm:$0xff] }
 0x388   : > { %v5871_v47 = vpop.f32.mrb[17].mxu1  ;;  %8941 = vmatmul.mubr.msk.f32.gmra.mrb[122].mxu1 %vm1364_vm7, %v14634_v38  ;;  %8814 = vmatprep.mubr.msk.f32.mxu0 %vm1379_vm8, %v14634_v38  ;;  %v14845_v31 = vld [vmem:[#allocation60_spill] sm:$0xff] }
 0x389   : > { %v13256_v25 = vadd.f32 %v5869_v41, %v5485_v0  ;;  %8942 = vmatprep.mubr.msk.f32.mxu1 %vm1381_vm9, %v14634_v38  ;;  %vm1395_vm12 = vcmp.eq.s32.totalorder %v14845_v31, %v12140_v15  ;;  %v14847_v47 = vsub.s32 5, %v14846_v43  ;;  %vm1397_vm13 = vcmp.eq.s32.totalorder %v14845_v31, %v12148_v5 }
 0x38a   : > { %v5489_v53 = vpop.f32.mrb[18].mxu0  ;;  %v14848_v41 = vsub.s32 7, %v14846_v43  ;;  %v14850_v15 = vsub.s32 4, %v14846_v43  ;;  %vm1394_vm14 = vcmp.eq.s32.totalorder %v14845_v31, %v12154_v39  ;;  %v14851_v5 = vsub.s32 6, %v14846_v43 }
 0x38b   : > { %14844 = vst [vmem:[#allocation102_spill] sm:$0xff] %v13256_v25  ;;  %v13265_v35 = vrot.slane %v9676_v40, %v14847_v47  ;;  %v14849_v25 = vld [vmem:[#allocation62_spill] sm:$0xff]  ;;  %v5491_v44 = vpop.f32.mrb[19].mxu0  ;;  %8815 = vmatmul.mubr.msk.f32.gmra.mrb[124].mxu0 %vm1378_vm10, %v14634_v38  ;;  %v5874_v50 = vpop.f32.mrb[18].mxu1  ;;  %vm1396_vm15 = vcmp.eq.s32.totalorder %v14845_v31, %v12162_v20 }
 0x38c   : > { %v13271_v0 = vrot.slane %v9676_v40, %v14848_v41  ;;  %v5490_v1 = vadd.f32 %v5489_v53, %v14849_v25  ;;  %v13277_v18 = vrot.slane %v9676_v40, %v14850_v15  ;;  %v5876_v47 = vpop.f32.mrb[19].mxu1  ;;  %8943 = vmatmul.mubr.msk.f32.gmra.mrb[124].mxu1 %vm1380_vm11, %v14634_v38  ;;  %8816 = vmatprep.mubr.msk.f32.mxu0 %vm1395_vm12, %v14634_v38  ;;  %v14852_v25 = vld [vmem:[#allocation12_spill] sm:$0xff] }
 0x38d   : > { %v13285_v41 = vrot.slane %v9676_v40, %v14851_v5  ;;  %8944 = vmatprep.mubr.msk.f32.mxu1 %vm1397_vm13, %v14634_v38  ;;  %vm391_vm0 = vcmp.eq.s32.totalorder %v14715_v10, %v13265_v35  ;;  %v14854_v47 = vld [vmem:[#allocation63_spill] sm:$0xff]  ;;  %vm423_vm8 = vcmp.eq.s32.totalorder %v10060_v3, %v13265_v35  ;;  %vm439_vm12 = vcmp.eq.s32.totalorder %v10072_v8, %v13265_v35 }
 0x38e   : > { %v13287_v44 = vadd.f32 %v5874_v50, %v5490_v1  ;;  %v5494_v53 = vpop.f32.mrb[20].mxu0  ;;  %vm393_vm1 = vcmp.eq.s32.totalorder %v14715_v10, %v13271_v0  ;;  %vm390_vm2 = vcmp.eq.s32.totalorder %v14715_v10, %v13277_v18  ;;  %v14853_v50 = vld [vmem:[#allocation13_spill] sm:$0xff]  ;;  %vm425_vm9 = vcmp.eq.s32.totalorder %v10060_v3, %v13271_v0 }
 0x38f   : > { %v5495_v39 = vadd.f32 %v5494_v53, %v14852_v25  ;;  %v5496_v15 = vpop.f32.mrb[21].mxu0  ;;  %8817 = vmatmul.mubr.msk.f32.gmra.mrb[126].mxu0 %vm1394_vm14, %v14634_v38  ;;  %v5879_v40 = vpop.f32.mrb[20].mxu1  ;;  %vm392_vm3 = vcmp.eq.s32.totalorder %v14715_v10, %v13285_v41  ;;  %vm407_vm4 = vcmp.eq.s32.totalorder %v14853_v50, %v13265_v35  ;;  %vm409_vm5 = vcmp.eq.s32.totalorder %v14853_v50, %v13271_v0 }
 0x390   : > { %v5881_v1 = vpop.f32.mrb[21].mxu1  ;;  %8945 = vmatmul.mubr.msk.f32.gmra.mrb[126].mxu1 %vm1396_vm15, %v14634_v38  ;;  %8946 = vmatprep.mubr.msk.f32.mxu0 %vm391_vm0, %v14634_v38  ;;  %vm406_vm6 = vcmp.eq.s32.totalorder %v14853_v50, %v13277_v18  ;;  %vm408_vm7 = vcmp.eq.s32.totalorder %v14853_v50, %v13285_v41  ;;  %vm422_vm10 = vcmp.eq.s32.totalorder %v10060_v3, %v13277_v18 }
 0x391   : > { %v13302_v20 = vadd.f32 %v5879_v40, %v5495_v39  ;;  %9074 = vmatprep.mubr.msk.f32.mxu1 %vm393_vm1, %v14634_v38  ;;  %v14855_v40 = vld [vmem:[#allocation64_spill] sm:$0xff]  ;;  %vm424_vm11 = vcmp.eq.s32.totalorder %v10060_v3, %v13285_v41  ;;  %vm441_vm13 = vcmp.eq.s32.totalorder %v10072_v8, %v13271_v0  ;;  %vm438_vm14 = vcmp.eq.s32.totalorder %v10072_v8, %v13277_v18 }
 0x392   : > { %v5499_v43 = vpop.f32.mrb[22].mxu0  ;;  %vm440_vm15 = vcmp.eq.s32.totalorder %v10072_v8, %v13285_v41  ;;  %vm455_vm0 = vcmp.eq.s32.totalorder %v10091_v16, %v13265_v35  ;;  %vm457_vm1 = vcmp.eq.s32.totalorder %v10091_v16, %v13271_v0 }
 0x393   : > { %v5500_v5 = vadd.f32 %v5499_v43, %v14854_v47  ;;  %v5501_v53 = vpop.f32.mrb[23].mxu0  ;;  %8947 = vmatmul.mubr.msk.f32.vlgmr.msra.gmra.mrb[128].mxu0 %vm390_vm2, %v14634_v38  ;;  %v5884_v25 = vpop.f32.mrb[22].mxu1  ;;  %vm454_vm2 = vcmp.eq.s32.totalorder %v10091_v16, %v13277_v18 }
 0x394   : > { %v5886_v39 = vpop.f32.mrb[23].mxu1  ;;  %9075 = vmatmul.mubr.msk.f32.vlgmr.msra.gmra.mrb[128].mxu1 %vm392_vm3, %v14634_v38  ;;  %8948 = vmatprep.mubr.msk.f32.mxu0 %vm407_vm4, %v14634_v38  ;;  %vm456_vm3 = vcmp.eq.s32.totalorder %v10091_v16, %v13285_v41  ;;  %vm471_vm4 = vcmp.eq.s32.totalorder %v10109_v24, %v13265_v35 }
 0x395   : > { %v13317_v10 = vadd.f32 %v5884_v25, %v5500_v5  ;;  %9076 = vmatprep.mubr.msk.f32.mxu1 %vm409_vm5, %v14634_v38  ;;  %v14856_v25 = vld [vmem:[#allocation65_spill] sm:$0xff]  ;;  %vm473_vm5 = vcmp.eq.s32.totalorder %v10109_v24, %v13271_v0 }
 0x396   : > { %v5504_v15 = vpop.f32.mrb[24].mxu0 }
 0x397   : > { %v5505_v1 = vadd.f32 %v5504_v15, %v14855_v40  ;;  %v5506_v43 = vpop.f32.mrb[25].mxu0  ;;  %8949 = vmatmul.mubr.msk.f32.gmra.mrb[130].mxu0 %vm406_vm6, %v14634_v38  ;;  %v5889_v47 = vpop.f32.mrb[24].mxu1  ;;  %vm470_vm6 = vcmp.eq.s32.totalorder %v10109_v24, %v13277_v18 }
 0x398   : > { %v5891_v5 = vpop.f32.mrb[25].mxu1  ;;  %9077 = vmatmul.mubr.msk.f32.gmra.mrb[130].mxu1 %vm408_vm7, %v14634_v38  ;;  %8950 = vmatprep.mubr.msk.f32.mxu0 %vm423_vm8, %v14634_v38  ;;  %vm472_vm7 = vcmp.eq.s32.totalorder %v10109_v24, %v13285_v41  ;;  %vm487_vm8 = vcmp.eq.s32.totalorder %v10127_v33, %v13265_v35 }
 0x399   : > { %v13332_v50 = vadd.f32 %v5889_v47, %v5505_v1  ;;  %9078 = vmatprep.mubr.msk.f32.mxu1 %vm425_vm9, %v14634_v38  ;;  %v14857_v47 = vld [vmem:[#allocation66_spill] sm:$0xff]  ;;  %vm489_vm9 = vcmp.eq.s32.totalorder %v10127_v33, %v13271_v0 }
 0x39a   : > { %v5509_v53 = vpop.f32.mrb[26].mxu0 }
 0x39b   : > { %v5510_v39 = vadd.f32 %v5509_v53, %v14856_v25  ;;  %v5511_v15 = vpop.f32.mrb[27].mxu0  ;;  %8951 = vmatmul.mubr.msk.f32.gmra.mrb[132].mxu0 %vm422_vm10, %v14634_v38  ;;  %v5894_v40 = vpop.f32.mrb[26].mxu1  ;;  %vm486_vm10 = vcmp.eq.s32.totalorder %v10127_v33, %v13277_v18 }
 0x39c   : > { %v5896_v1 = vpop.f32.mrb[27].mxu1  ;;  %9079 = vmatmul.mubr.msk.f32.gmra.mrb[132].mxu1 %vm424_vm11, %v14634_v38  ;;  %8952 = vmatprep.mubr.msk.f32.mxu0 %vm439_vm12, %v14634_v38  ;;  %vm488_vm11 = vcmp.eq.s32.totalorder %v10127_v33, %v13285_v41  ;;  %vm503_vm12 = vcmp.eq.s32.totalorder %v10145_v49, %v13265_v35 }
 0x39d   : > { %v13347_v3 = vadd.f32 %v5894_v40, %v5510_v39  ;;  %9080 = vmatprep.mubr.msk.f32.mxu1 %vm441_vm13, %v14634_v38  ;;  %v14858_v40 = vld [vmem:[#allocation67_spill] sm:$0xff]  ;;  %vm505_vm13 = vcmp.eq.s32.totalorder %v10145_v49, %v13271_v0 }
 0x39e   : > { %v5514_v43 = vpop.f32.mrb[28].mxu0 }
 0x39f   : > { %v5515_v5 = vadd.f32 %v5514_v43, %v14857_v47  ;;  %v5516_v53 = vpop.f32.mrb[29].mxu0  ;;  %8953 = vmatmul.mubr.msk.f32.gmra.mrb[134].mxu0 %vm438_vm14, %v14634_v38  ;;  %v5899_v25 = vpop.f32.mrb[28].mxu1  ;;  %vm502_vm14 = vcmp.eq.s32.totalorder %v10145_v49, %v13277_v18 }
 0x3a0   : > { %v5901_v39 = vpop.f32.mrb[29].mxu1  ;;  %9081 = vmatmul.mubr.msk.f32.gmra.mrb[134].mxu1 %vm440_vm15, %v14634_v38  ;;  %8954 = vmatprep.mubr.msk.f32.mxu0 %vm455_vm0, %v14634_v38  ;;  %vm504_vm15 = vcmp.eq.s32.totalorder %v10145_v49, %v13285_v41  ;;  %vm519_vm0 = vcmp.eq.s32.totalorder %v10163_v62, %v13265_v35 }
 0x3a1   : > { %v13362_v8 = vadd.f32 %v5899_v25, %v5515_v5  ;;  %9082 = vmatprep.mubr.msk.f32.mxu1 %vm457_vm1, %v14634_v38  ;;  %v14859_v25 = vld [vmem:[#allocation68_spill] sm:$0xff]  ;;  %vm521_vm1 = vcmp.eq.s32.totalorder %v10163_v62, %v13271_v0 }
 0x3a2   : > { %v5519_v15 = vpop.f32.mrb[30].mxu0 }
 0x3a3   : > { %v5520_v1 = vadd.f32 %v5519_v15, %v14858_v40  ;;  %v5521_v43 = vpop.f32.mrb[31].mxu0  ;;  %8955 = vmatmul.mubr.msk.f32.gmra.mrb[136].mxu0 %vm454_vm2, %v14634_v38  ;;  %v5904_v47 = vpop.f32.mrb[30].mxu1  ;;  %vm518_vm2 = vcmp.eq.s32.totalorder %v10163_v62, %v13277_v18 }
 0x3a4   : > { %v5906_v5 = vpop.f32.mrb[31].mxu1  ;;  %9083 = vmatmul.mubr.msk.f32.gmra.mrb[136].mxu1 %vm456_vm3, %v14634_v38  ;;  %8956 = vmatprep.mubr.msk.f32.mxu0 %vm471_vm4, %v14634_v38  ;;  %vm520_vm3 = vcmp.eq.s32.totalorder %v10163_v62, %v13285_v41  ;;  %vm535_vm4 = vcmp.eq.s32.totalorder %v10181_v7, %v13265_v35 }
 0x3a5   : > { %v13377_v16 = vadd.f32 %v5904_v47, %v5520_v1  ;;  %9084 = vmatprep.mubr.msk.f32.mxu1 %vm473_vm5, %v14634_v38  ;;  %v14860_v47 = vld [vmem:[#allocation69_spill] sm:$0xff]  ;;  %vm537_vm5 = vcmp.eq.s32.totalorder %v10181_v7, %v13271_v0 }
 0x3a6   : > { %v5524_v53 = vpop.f32.mrb[32].mxu0 }
 0x3a7   : > { %v5525_v39 = vadd.f32 %v5524_v53, %v14859_v25  ;;  %v5526_v15 = vpop.f32.mrb[33].mxu0  ;;  %8957 = vmatmul.mubr.msk.f32.gmra.mrb[138].mxu0 %vm470_vm6, %v14634_v38  ;;  %v5909_v40 = vpop.f32.mrb[32].mxu1  ;;  %vm534_vm6 = vcmp.eq.s32.totalorder %v10181_v7, %v13277_v18 }
 0x3a8   : > { %v5911_v1 = vpop.f32.mrb[33].mxu1  ;;  %9085 = vmatmul.mubr.msk.f32.gmra.mrb[138].mxu1 %vm472_vm7, %v14634_v38  ;;  %8958 = vmatprep.mubr.msk.f32.mxu0 %vm487_vm8, %v14634_v38  ;;  %vm536_vm7 = vcmp.eq.s32.totalorder %v10181_v7, %v13285_v41  ;;  %vm551_vm8 = vcmp.eq.s32.totalorder %v10199_v17, %v13265_v35 }
 0x3a9   : > { %v13392_v24 = vadd.f32 %v5909_v40, %v5525_v39  ;;  %9086 = vmatprep.mubr.msk.f32.mxu1 %vm489_vm9, %v14634_v38  ;;  %vm553_vm9 = vcmp.eq.s32.totalorder %v10199_v17, %v13271_v0 }
 0x3aa   : > { %v5529_v43 = vpop.f32.mrb[34].mxu0 }
 0x3ab   : > { %v5530_v5 = vadd.f32 %v5529_v43, %v14860_v47  ;;  %v5531_v53 = vpop.f32.mrb[35].mxu0  ;;  %8959 = vmatmul.mubr.msk.f32.gmra.mrb[140].mxu0 %vm486_vm10, %v14634_v38  ;;  %v5914_v25 = vpop.f32.mrb[34].mxu1  ;;  %vm550_vm10 = vcmp.eq.s32.totalorder %v10199_v17, %v13277_v18 }
 0x3ac   : > { %v5916_v39 = vpop.f32.mrb[35].mxu1  ;;  %9087 = vmatmul.mubr.msk.f32.gmra.mrb[140].mxu1 %vm488_vm11, %v14634_v38  ;;  %8960 = vmatprep.mubr.msk.f32.mxu0 %vm503_vm12, %v14634_v38  ;;  %vm552_vm11 = vcmp.eq.s32.totalorder %v10199_v17, %v13285_v41  ;;  %vm567_vm12 = vcmp.eq.s32.totalorder %v10217_v26, %v13265_v35 }
 0x3ad   : > { %v13407_v33 = vadd.f32 %v5914_v25, %v5530_v5  ;;  %9088 = vmatprep.mubr.msk.f32.mxu1 %vm505_vm13, %v14634_v38  ;;  %vm569_vm13 = vcmp.eq.s32.totalorder %v10217_v26, %v13271_v0 }
 0x3ae   : > { %v5534_v15 = vpop.f32.mrb[36].mxu0 }
 0x3af   : > { %v5535_v40 = vadd.f32 %v5534_v15, %v12405_v59  ;;  %v5536_v1 = vpop.f32.mrb[37].mxu0  ;;  %8961 = vmatmul.mubr.msk.f32.gmra.mrb[142].mxu0 %vm502_vm14, %v14634_v38  ;;  %v5919_v43 = vpop.f32.mrb[36].mxu1  ;;  %vm566_vm14 = vcmp.eq.s32.totalorder %v10217_v26, %v13277_v18 }
 0x3b0   : > { %v5921_v47 = vpop.f32.mrb[37].mxu1  ;;  %9089 = vmatmul.mubr.msk.f32.gmra.mrb[142].mxu1 %vm504_vm15, %v14634_v38  ;;  %8962 = vmatprep.mubr.msk.f32.mxu0 %vm519_vm0, %v14634_v38  ;;  %vm568_vm15 = vcmp.eq.s32.totalorder %v10217_v26, %v13285_v41  ;;  %vm583_vm0 = vcmp.eq.s32.totalorder %v10235_v36, %v13265_v35 }
 0x3b1   : > { %v13422_v49 = vadd.f32 %v5919_v43, %v5535_v40  ;;  %9090 = vmatprep.mubr.msk.f32.mxu1 %vm521_vm1, %v14634_v38  ;;  %vm585_vm1 = vcmp.eq.s32.totalorder %v10235_v36, %v13271_v0 }
 0x3b2   : > { %v5539_v59 = vpop.f32.mrb[38].mxu0 }
 0x3b3   : > { %v5540_v5 = vadd.f32 %v5539_v59, %v12434_v14  ;;  %v5541_v53 = vpop.f32.mrb[39].mxu0  ;;  %8963 = vmatmul.mubr.msk.f32.gmra.mrb[144].mxu0 %vm518_vm2, %v14634_v38  ;;  %v5924_v25 = vpop.f32.mrb[38].mxu1  ;;  %vm582_vm2 = vcmp.eq.s32.totalorder %v10235_v36, %v13277_v18 }
 0x3b4   : > { %v5926_v39 = vpop.f32.mrb[39].mxu1  ;;  %9091 = vmatmul.mubr.msk.f32.gmra.mrb[144].mxu1 %vm520_vm3, %v14634_v38  ;;  %8964 = vmatprep.mubr.msk.f32.mxu0 %vm535_vm4, %v14634_v38  ;;  %vm584_vm3 = vcmp.eq.s32.totalorder %v10235_v36, %v13285_v41  ;;  %vm599_vm4 = vcmp.eq.s32.totalorder %v10258_v45, %v13265_v35 }
 0x3b5   : > { %v13437_v62 = vadd.f32 %v5924_v25, %v5540_v5  ;;  %9092 = vmatprep.mubr.msk.f32.mxu1 %vm537_vm5, %v14634_v38  ;;  %vm601_vm5 = vcmp.eq.s32.totalorder %v10258_v45, %v13271_v0 }
 0x3b6   : > { %v5544_v14 = vpop.f32.mrb[40].mxu0 }
 0x3b7   : > { %v5545_v15 = vadd.f32 %v5544_v14, %v12463_v46  ;;  %v5546_v40 = vpop.f32.mrb[41].mxu0  ;;  %8965 = vmatmul.mubr.msk.f32.gmra.mrb[146].mxu0 %vm534_vm6, %v14634_v38  ;;  %v5929_v1 = vpop.f32.mrb[40].mxu1  ;;  %vm598_vm6 = vcmp.eq.s32.totalorder %v10258_v45, %v13277_v18 }
 0x3b8   : > { %v5931_v43 = vpop.f32.mrb[41].mxu1  ;;  %9093 = vmatmul.mubr.msk.f32.gmra.mrb[146].mxu1 %vm536_vm7, %v14634_v38  ;;  %8966 = vmatprep.mubr.msk.f32.mxu0 %vm551_vm8, %v14634_v38  ;;  %vm600_vm7 = vcmp.eq.s32.totalorder %v10258_v45, %v13285_v41  ;;  %vm615_vm8 = vcmp.eq.s32.totalorder %v10276_v52, %v13265_v35 }
 0x3b9   : > { %v13452_v7 = vadd.f32 %v5929_v1, %v5545_v15  ;;  %9094 = vmatprep.mubr.msk.f32.mxu1 %vm553_vm9, %v14634_v38  ;;  %vm617_vm9 = vcmp.eq.s32.totalorder %v10276_v52, %v13271_v0 }
 0x3ba   : > { %v5549_v46 = vpop.f32.mrb[42].mxu0 }
 0x3bb   : > { %v5550_v47 = vadd.f32 %v5549_v46, %v12486_v37  ;;  %v5551_v59 = vpop.f32.mrb[43].mxu0  ;;  %8967 = vmatmul.mubr.msk.f32.gmra.mrb[148].mxu0 %vm550_vm10, %v14634_v38  ;;  %v5934_v5 = vpop.f32.mrb[42].mxu1  ;;  %vm614_vm10 = vcmp.eq.s32.totalorder %v10276_v52, %v13277_v18 }
 0x3bc   : > { %v5936_v53 = vpop.f32.mrb[43].mxu1  ;;  %9095 = vmatmul.mubr.msk.f32.gmra.mrb[148].mxu1 %vm552_vm11, %v14634_v38  ;;  %8968 = vmatprep.mubr.msk.f32.mxu0 %vm567_vm12, %v14634_v38  ;;  %vm616_vm11 = vcmp.eq.s32.totalorder %v10276_v52, %v13285_v41  ;;  %vm631_vm12 = vcmp.eq.s32.totalorder %v10293_v63, %v13265_v35 }
 0x3bd   : > { %v13467_v17 = vadd.f32 %v5934_v5, %v5550_v47  ;;  %9096 = vmatprep.mubr.msk.f32.mxu1 %vm569_vm13, %v14634_v38  ;;  %vm633_vm13 = vcmp.eq.s32.totalorder %v10293_v63, %v13271_v0 }
 0x3be   : > { %v5554_v37 = vpop.f32.mrb[44].mxu0 }
 0x3bf   : > { %v5555_v25 = vadd.f32 %v5554_v37, %v12503_v21  ;;  %v5556_v39 = vpop.f32.mrb[45].mxu0  ;;  %8969 = vmatmul.mubr.msk.f32.gmra.mrb[150].mxu0 %vm566_vm14, %v14634_v38  ;;  %v5939_v14 = vpop.f32.mrb[44].mxu1  ;;  %vm630_vm14 = vcmp.eq.s32.totalorder %v10293_v63, %v13277_v18 }
 0x3c0   : > { %v5941_v15 = vpop.f32.mrb[45].mxu1  ;;  %9097 = vmatmul.mubr.msk.f32.gmra.mrb[150].mxu1 %vm568_vm15, %v14634_v38  ;;  %8970 = vmatprep.mubr.msk.f32.mxu0 %vm583_vm0, %v14634_v38  ;;  %vm632_vm15 = vcmp.eq.s32.totalorder %v10293_v63, %v13285_v41  ;;  %vm647_vm0 = vcmp.eq.s32.totalorder %v14737_v51, %v13265_v35 }
 0x3c1   : > { %v13482_v26 = vadd.f32 %v5939_v14, %v5555_v25  ;;  %9098 = vmatprep.mubr.msk.f32.mxu1 %vm585_vm1, %v14634_v38  ;;  %vm649_vm1 = vcmp.eq.s32.totalorder %v14737_v51, %v13271_v0 }
 0x3c2   : > { %v5559_v21 = vpop.f32.mrb[46].mxu0 }
 0x3c3   : > { %v5560_v40 = vadd.f32 %v5559_v21, %v12518_v42  ;;  %v5561_v1 = vpop.f32.mrb[47].mxu0  ;;  %8971 = vmatmul.mubr.msk.f32.gmra.mrb[152].mxu0 %vm582_vm2, %v14634_v38  ;;  %v5944_v43 = vpop.f32.mrb[46].mxu1  ;;  %vm646_vm2 = vcmp.eq.s32.totalorder %v14737_v51, %v13277_v18 }
 0x3c4   : > { %v5946_v46 = vpop.f32.mrb[47].mxu1  ;;  %9099 = vmatmul.mubr.msk.f32.gmra.mrb[152].mxu1 %vm584_vm3, %v14634_v38  ;;  %8972 = vmatprep.mubr.msk.f32.mxu0 %vm599_vm4, %v14634_v38  ;;  %vm648_vm3 = vcmp.eq.s32.totalorder %v14737_v51, %v13285_v41  ;;  %vm663_vm4 = vcmp.eq.s32.totalorder %v10325_v6, %v13265_v35 }
 0x3c5   : > { %v13497_v36 = vadd.f32 %v5944_v43, %v5560_v40  ;;  %9100 = vmatprep.mubr.msk.f32.mxu1 %vm601_vm5, %v14634_v38  ;;  %vm665_vm5 = vcmp.eq.s32.totalorder %v10325_v6, %v13271_v0 }
 0x3c6   : > { %v5564_v42 = vpop.f32.mrb[48].mxu0 }
 0x3c7   : > { %v5565_v47 = vadd.f32 %v5564_v42, %v12534_v2  ;;  %v5566_v59 = vpop.f32.mrb[49].mxu0  ;;  %8973 = vmatmul.mubr.msk.f32.gmra.mrb[154].mxu0 %vm598_vm6, %v14634_v38  ;;  %v5949_v5 = vpop.f32.mrb[48].mxu1  ;;  %vm662_vm6 = vcmp.eq.s32.totalorder %v10325_v6, %v13277_v18 }
 0x3c8   : > { %v5951_v53 = vpop.f32.mrb[49].mxu1  ;;  %9101 = vmatmul.mubr.msk.f32.gmra.mrb[154].mxu1 %vm600_vm7, %v14634_v38  ;;  %8974 = vmatprep.mubr.msk.f32.mxu0 %vm615_vm8, %v14634_v38  ;;  %vm664_vm7 = vcmp.eq.s32.totalorder %v10325_v6, %v13285_v41  ;;  %vm679_vm8 = vcmp.eq.s32.totalorder %v10343_v11, %v13265_v35 }
 0x3c9   : > { %v13512_v45 = vadd.f32 %v5949_v5, %v5565_v47  ;;  %9102 = vmatprep.mubr.msk.f32.mxu1 %vm617_vm9, %v14634_v38  ;;  %vm681_vm9 = vcmp.eq.s32.totalorder %v10343_v11, %v13271_v0 }
 0x3ca   : > { %v5569_v2 = vpop.f32.mrb[50].mxu0 }
 0x3cb   : > { %v5570_v37 = vadd.f32 %v5569_v2, %v12550_v27  ;;  %v5571_v25 = vpop.f32.mrb[51].mxu0  ;;  %8975 = vmatmul.mubr.msk.f32.gmra.mrb[156].mxu0 %vm614_vm10, %v14634_v38  ;;  %v5954_v39 = vpop.f32.mrb[50].mxu1  ;;  %vm678_vm10 = vcmp.eq.s32.totalorder %v10343_v11, %v13277_v18 }
 0x3cc   : > { %v5956_v14 = vpop.f32.mrb[51].mxu1  ;;  %9103 = vmatmul.mubr.msk.f32.gmra.mrb[156].mxu1 %vm616_vm11, %v14634_v38  ;;  %8976 = vmatprep.mubr.msk.f32.mxu0 %vm631_vm12, %v14634_v38  ;;  %vm680_vm11 = vcmp.eq.s32.totalorder %v10343_v11, %v13285_v41  ;;  %vm695_vm12 = vcmp.eq.s32.totalorder %v10353_v12, %v13265_v35 }
 0x3cd   : > { %v13527_v52 = vadd.f32 %v5954_v39, %v5570_v37  ;;  %9104 = vmatprep.mubr.msk.f32.mxu1 %vm633_vm13, %v14634_v38  ;;  %vm697_vm13 = vcmp.eq.s32.totalorder %v10353_v12, %v13271_v0  ;;  %v14861_v37 = vld [vmem:[#allocation70_spill] sm:$0xff] }
 0x3ce   : > { %v5574_v27 = vpop.f32.mrb[52].mxu0 }
 0x3cf   : > { %v5575_v15 = vadd.f32 %v5574_v27, %v12565_v58  ;;  %v5576_v21 = vpop.f32.mrb[53].mxu0  ;;  %8977 = vmatmul.mubr.msk.f32.gmra.mrb[158].mxu0 %vm630_vm14, %v14634_v38  ;;  %v5959_v40 = vpop.f32.mrb[52].mxu1  ;;  %vm694_vm14 = vcmp.eq.s32.totalorder %v10353_v12, %v13277_v18 }
 0x3d0   : > { %v5961_v1 = vpop.f32.mrb[53].mxu1  ;;  %9105 = vmatmul.mubr.msk.f32.gmra.mrb[158].mxu1 %vm632_vm15, %v14634_v38  ;;  %8978 = vmatprep.mubr.msk.f32.mxu0 %vm647_vm0, %v14634_v38  ;;  %vm696_vm15 = vcmp.eq.s32.totalorder %v10353_v12, %v13285_v41  ;;  %vm711_vm0 = vcmp.eq.s32.totalorder %v14740_v57, %v13265_v35 }
 0x3d1   : > { %v13542_v63 = vadd.f32 %v5959_v40, %v5575_v15  ;;  %9106 = vmatprep.mubr.msk.f32.mxu1 %vm649_vm1, %v14634_v38  ;;  %vm713_vm1 = vcmp.eq.s32.totalorder %v14740_v57, %v13271_v0 }
 0x3d2   : > { %v5579_v58 = vpop.f32.mrb[54].mxu0 }
 0x3d3   : > { %v5580_v43 = vadd.f32 %v5579_v58, %v12580_v54  ;;  %v5581_v46 = vpop.f32.mrb[55].mxu0  ;;  %8979 = vmatmul.mubr.msk.f32.gmra.mrb[160].mxu0 %vm646_vm2, %v14634_v38  ;;  %v5964_v42 = vpop.f32.mrb[54].mxu1  ;;  %vm710_vm2 = vcmp.eq.s32.totalorder %v14740_v57, %v13277_v18 }
 0x3d4   : > { %v5966_v47 = vpop.f32.mrb[55].mxu1  ;;  %9107 = vmatmul.mubr.msk.f32.gmra.mrb[160].mxu1 %vm648_vm3, %v14634_v38  ;;  %8980 = vmatprep.mubr.msk.f32.mxu0 %vm663_vm4, %v14634_v38  ;;  %vm712_vm3 = vcmp.eq.s32.totalorder %v14740_v57, %v13285_v41 }
 0x3d5   : > { %v13557_v51 = vadd.f32 %v5964_v42, %v5580_v43  ;;  %9108 = vmatprep.mubr.msk.f32.mxu1 %vm665_vm5, %v14634_v38 }
 0x3d6   : > { %v5584_v54 = vpop.f32.mrb[56].mxu0 }
 0x3d7   : > { %v5585_v59 = vadd.f32 %v5584_v54, %v12596_v4  ;;  %v5586_v5 = vpop.f32.mrb[57].mxu0  ;;  %8981 = vmatmul.mubr.msk.f32.gmra.mrb[162].mxu0 %vm662_vm6, %v14634_v38  ;;  %v5969_v53 = vpop.f32.mrb[56].mxu1 }
 0x3d8   : > { %v5971_v2 = vpop.f32.mrb[57].mxu1  ;;  %9109 = vmatmul.mubr.msk.f32.gmra.mrb[162].mxu1 %vm664_vm7, %v14634_v38  ;;  %8982 = vmatprep.mubr.msk.f32.mxu0 %vm679_vm8, %v14634_v38  ;;  %vm743_vm8 = vcmp.eq.s32.totalorder %v10408_v28, %v13265_v35 }
 0x3d9   : > { %v13572_v6 = vadd.f32 %v5969_v53, %v5585_v59  ;;  %9110 = vmatprep.mubr.msk.f32.mxu1 %vm681_vm9, %v14634_v38  ;;  %vm745_vm9 = vcmp.eq.s32.totalorder %v10408_v28, %v13271_v0 }
 0x3da   : > { %v5589_v4 = vpop.f32.mrb[58].mxu0 }
 0x3db   : > { %v5590_v25 = vadd.f32 %v5589_v4, %v14861_v37  ;;  %v5591_v39 = vpop.f32.mrb[59].mxu0  ;;  %8983 = vmatmul.mubr.msk.f32.gmra.mrb[164].mxu0 %vm678_vm10, %v14634_v38  ;;  %v5974_v14 = vpop.f32.mrb[58].mxu1  ;;  %vm742_vm10 = vcmp.eq.s32.totalorder %v10408_v28, %v13277_v18 }
 0x3dc   : > { %v5976_v27 = vpop.f32.mrb[59].mxu1  ;;  %9111 = vmatmul.mubr.msk.f32.gmra.mrb[164].mxu1 %vm680_vm11, %v14634_v38  ;;  %8984 = vmatprep.mubr.msk.f32.mxu0 %vm695_vm12, %v14634_v38  ;;  %vm744_vm11 = vcmp.eq.s32.totalorder %v10408_v28, %v13285_v41 }
 0x3dd   : > { %v13587_v11 = vadd.f32 %v5974_v14, %v5590_v25  ;;  %9112 = vmatprep.mubr.msk.f32.mxu1 %vm697_vm13, %v14634_v38  ;;  %v14864_v25 = vld [vmem:[#allocation71_spill] sm:$0xff] }
 0x3de   : > { %v5594_v15 = vpop.f32.mrb[60].mxu0 }
 0x3df   : > { %v5595_v21 = vadd.f32 %v5594_v15, %v12627_v34  ;;  %v5596_v40 = vpop.f32.mrb[61].mxu0  ;;  %8985 = vmatmul.mubr.msk.f32.gmra.mrb[166].mxu0 %vm694_vm14, %v14634_v38  ;;  %v5979_v1 = vpop.f32.mrb[60].mxu1  ;;  %v14862_v34 = vld [vmem:[#allocation16_spill] sm:$0xff] }
 0x3e0   : > { %v5981_v58 = vpop.f32.mrb[61].mxu1  ;;  %9113 = vmatmul.mubr.msk.f32.gmra.mrb[166].mxu1 %vm696_vm15, %v14634_v38  ;;  %8986 = vmatprep.mubr.msk.f32.mxu0 %vm711_vm0, %v14634_v38  ;;  %vm727_vm4 = vcmp.eq.s32.totalorder %v14862_v34, %v13265_v35  ;;  %vm729_vm5 = vcmp.eq.s32.totalorder %v14862_v34, %v13271_v0  ;;  %vm726_vm6 = vcmp.eq.s32.totalorder %v14862_v34, %v13277_v18 }
 0x3e1   : > { %v13602_v12 = vadd.f32 %v5979_v1, %v5595_v21  ;;  %9114 = vmatprep.mubr.msk.f32.mxu1 %vm713_vm1, %v14634_v38  ;;  %vm728_vm7 = vcmp.eq.s32.totalorder %v14862_v34, %v13285_v41  ;;  %v14865_v21 = vld [vmem:[#allocation18_spill] sm:$0xff]  ;;  %v14866_v1 = vld [vmem:[#allocation72_spill] sm:$0xff] }
 0x3e2   : > { %v5599_v43 = vpop.f32.mrb[62].mxu0  ;;  %vm775_vm0 = vcmp.eq.s32.totalorder %v14865_v21, %v13265_v35  ;;  %vm777_vm1 = vcmp.eq.s32.totalorder %v14865_v21, %v13271_v0 }
 0x3e3   : > { %v5600_v46 = vadd.f32 %v5599_v43, %v12642_v61  ;;  %v5601_v42 = vpop.f32.mrb[63].mxu0  ;;  %8987 = vmatmul.mubr.msk.f32.gmra.mrb[168].mxu0 %vm710_vm2, %v14634_v38  ;;  %v5984_v47 = vpop.f32.mrb[62].mxu1  ;;  %vm774_vm2 = vcmp.eq.s32.totalorder %v14865_v21, %v13277_v18 }
 0x3e4   : > { %v5986_v54 = vpop.f32.mrb[63].mxu1  ;;  %9115 = vmatmul.mubr.msk.f32.gmra.mrb[168].mxu1 %vm712_vm3, %v14634_v38  ;;  %8988 = vmatprep.mubr.msk.f32.mxu0 %vm727_vm4, %v14634_v38  ;;  %vm776_vm3 = vcmp.eq.s32.totalorder %v14865_v21, %v13285_v41 }
 0x3e5   : > { %v13617_v57 = vadd.f32 %v5984_v47, %v5600_v46  ;;  %9116 = vmatprep.mubr.msk.f32.mxu1 %vm729_vm5, %v14634_v38  ;;  %v14867_v47 = vld [vmem:[#allocation19_spill] sm:$0xff] }
 0x3e6   : > { %v5604_v61 = vpop.f32.mrb[64].mxu0  ;;  %vm791_vm4 = vcmp.eq.s32.totalorder %v14867_v47, %v13265_v35  ;;  %vm793_vm5 = vcmp.eq.s32.totalorder %v14867_v47, %v13271_v0 }
 0x3e7   : > { %v5605_v59 = vadd.f32 %v5604_v61, %v12658_v30  ;;  %v5606_v5 = vpop.f32.mrb[65].mxu0  ;;  %8989 = vmatmul.mubr.msk.f32.gmra.mrb[170].mxu0 %vm726_vm6, %v14634_v38  ;;  %v5989_v53 = vpop.f32.mrb[64].mxu1  ;;  %v14863_v30 = vld [vmem:[#allocation17_spill] sm:$0xff]  ;;  %vm790_vm6 = vcmp.eq.s32.totalorder %v14867_v47, %v13277_v18 }
 0x3e8   : > { %v5991_v2 = vpop.f32.mrb[65].mxu1  ;;  %9117 = vmatmul.mubr.msk.f32.gmra.mrb[170].mxu1 %vm728_vm7, %v14634_v38  ;;  %8990 = vmatprep.mubr.msk.f32.mxu0 %vm743_vm8, %v14634_v38  ;;  %vm759_vm12 = vcmp.eq.s32.totalorder %v14863_v30, %v13265_v35  ;;  %vm761_vm13 = vcmp.eq.s32.totalorder %v14863_v30, %v13271_v0  ;;  %vm758_vm14 = vcmp.eq.s32.totalorder %v14863_v30, %v13277_v18 }
 0x3e9   : > { %v13632_v4 = vadd.f32 %v5989_v53, %v5605_v59  ;;  %9118 = vmatprep.mubr.msk.f32.mxu1 %vm745_vm9, %v14634_v38  ;;  %vm760_vm15 = vcmp.eq.s32.totalorder %v14863_v30, %v13285_v41  ;;  %vm792_vm7 = vcmp.eq.s32.totalorder %v14867_v47, %v13285_v41  ;;  %vm807_vm8 = vcmp.eq.s32.totalorder %v10474_v60, %v13265_v35 }
 0x3ea   : > { %v5609_v37 = vpop.f32.mrb[66].mxu0  ;;  %vm809_vm9 = vcmp.eq.s32.totalorder %v10474_v60, %v13271_v0 }
 0x3eb   : > { %v5610_v39 = vadd.f32 %v5609_v37, %v14864_v25  ;;  %v5611_v14 = vpop.f32.mrb[67].mxu0  ;;  %8991 = vmatmul.mubr.msk.f32.gmra.mrb[172].mxu0 %vm742_vm10, %v14634_v38  ;;  %v5994_v27 = vpop.f32.mrb[66].mxu1  ;;  %vm806_vm10 = vcmp.eq.s32.totalorder %v10474_v60, %v13277_v18 }
 0x3ec   : > { %v5996_v15 = vpop.f32.mrb[67].mxu1  ;;  %9119 = vmatmul.mubr.msk.f32.gmra.mrb[172].mxu1 %vm744_vm11, %v14634_v38  ;;  %8992 = vmatprep.mubr.msk.f32.mxu0 %vm759_vm12, %v14634_v38  ;;  %vm808_vm11 = vcmp.eq.s32.totalorder %v10474_v60, %v13285_v41  ;;  %vm823_vm12 = vcmp.eq.s32.totalorder %v10491_v9, %v13265_v35 }
 0x3ed   : > { %v13647_v28 = vadd.f32 %v5994_v27, %v5610_v39  ;;  %9120 = vmatprep.mubr.msk.f32.mxu1 %vm761_vm13, %v14634_v38  ;;  %vm825_vm13 = vcmp.eq.s32.totalorder %v10491_v9, %v13271_v0 }
 0x3ee   : > { %v5614_v40 = vpop.f32.mrb[68].mxu0 }
 0x3ef   : > { %v5615_v58 = vadd.f32 %v5614_v40, %v14866_v1  ;;  %v5616_v34 = vpop.f32.mrb[69].mxu0  ;;  %8993 = vmatmul.mubr.msk.f32.gmra.mrb[174].mxu0 %vm758_vm14, %v14634_v38  ;;  %v5999_v43 = vpop.f32.mrb[68].mxu1  ;;  %vm822_vm14 = vcmp.eq.s32.totalorder %v10491_v9, %v13277_v18 }
 0x3f0   : > { %v6001_v46 = vpop.f32.mrb[69].mxu1  ;;  %9121 = vmatmul.mubr.msk.f32.gmra.mrb[174].mxu1 %vm760_vm15, %v14634_v38  ;;  %8994 = vmatprep.mubr.msk.f32.mxu0 %vm775_vm0, %v14634_v38  ;;  %vm824_vm15 = vcmp.eq.s32.totalorder %v10491_v9, %v13285_v41 }
 0x3f1   : > { %v13662_v42 = vadd.f32 %v5999_v43, %v5615_v58  ;;  %9122 = vmatprep.mubr.msk.f32.mxu1 %vm777_vm1, %v14634_v38  ;;  %v14869_v58 = vld [vmem:[#allocation73_spill] sm:$0xff] }
 0x3f2   : > { %v5619_v54 = vpop.f32.mrb[70].mxu0 }
 0x3f3   : > { %v5620_v61 = vadd.f32 %v5619_v54, %v12704_v22  ;;  %v5621_v59 = vpop.f32.mrb[71].mxu0  ;;  %8995 = vmatmul.mubr.msk.f32.gmra.mrb[176].mxu0 %vm774_vm2, %v14634_v38  ;;  %v6004_v5 = vpop.f32.mrb[70].mxu1  ;;  %v14870_v54 = vld [vmem:[#allocation21_spill] sm:$0xff] }
 0x3f4   : > { %v6006_v53 = vpop.f32.mrb[71].mxu1  ;;  %9123 = vmatmul.mubr.msk.f32.gmra.mrb[176].mxu1 %vm776_vm3, %v14634_v38  ;;  %8996 = vmatprep.mubr.msk.f32.mxu0 %vm791_vm4, %v14634_v38  ;;  %vm855_vm4 = vcmp.eq.s32.totalorder %v14870_v54, %v13265_v35 }
 0x3f5   : > { %v13677_v2 = vadd.f32 %v6004_v5, %v5620_v61  ;;  %9124 = vmatprep.mubr.msk.f32.mxu1 %vm793_vm5, %v14634_v38  ;;  %vm857_vm5 = vcmp.eq.s32.totalorder %v14870_v54, %v13271_v0 }
 0x3f6   : > { %v5624_v22 = vpop.f32.mrb[72].mxu0 }
 0x3f7   : > { %v5625_v30 = vadd.f32 %v5624_v22, %v12719_v13  ;;  %v5626_v37 = vpop.f32.mrb[73].mxu0  ;;  %8997 = vmatmul.mubr.msk.f32.gmra.mrb[178].mxu0 %vm790_vm6, %v14634_v38  ;;  %v6009_v25 = vpop.f32.mrb[72].mxu1  ;;  %vm854_vm6 = vcmp.eq.s32.totalorder %v14870_v54, %v13277_v18 }
 0x3f8   : > { %v6011_v39 = vpop.f32.mrb[73].mxu1  ;;  %9125 = vmatmul.mubr.msk.f32.gmra.mrb[178].mxu1 %vm792_vm7, %v14634_v38  ;;  %8998 = vmatprep.mubr.msk.f32.mxu0 %vm807_vm8, %v14634_v38  ;;  %vm856_vm7 = vcmp.eq.s32.totalorder %v14870_v54, %v13285_v41  ;;  %vm871_vm8 = vcmp.eq.s32.totalorder %v10540_v23, %v13265_v35 }
 0x3f9   : > { %v13692_v14 = vadd.f32 %v6009_v25, %v5625_v30  ;;  %9126 = vmatprep.mubr.msk.f32.mxu1 %vm809_vm9, %v14634_v38  ;;  %vm873_vm9 = vcmp.eq.s32.totalorder %v10540_v23, %v13271_v0 }
 0x3fa   : > { %v5629_v13 = vpop.f32.mrb[74].mxu0 }
 0x3fb   : > { %v5630_v27 = vadd.f32 %v5629_v13, %v12736_v48  ;;  %v5631_v15 = vpop.f32.mrb[75].mxu0  ;;  %8999 = vmatmul.mubr.msk.f32.gmra.mrb[180].mxu0 %vm806_vm10, %v14634_v38  ;;  %v6014_v21 = vpop.f32.mrb[74].mxu1  ;;  %v14868_v48 = vld [vmem:[#allocation20_spill] sm:$0xff]  ;;  %vm870_vm10 = vcmp.eq.s32.totalorder %v10540_v23, %v13277_v18 }
 0x3fc   : > { %v6016_v40 = vpop.f32.mrb[75].mxu1  ;;  %9127 = vmatmul.mubr.msk.f32.gmra.mrb[180].mxu1 %vm808_vm11, %v14634_v38  ;;  %9000 = vmatprep.mubr.msk.f32.mxu0 %vm823_vm12, %v14634_v38  ;;  %vm839_vm0 = vcmp.eq.s32.totalorder %v14868_v48, %v13265_v35  ;;  %vm841_vm1 = vcmp.eq.s32.totalorder %v14868_v48, %v13271_v0  ;;  %vm838_vm2 = vcmp.eq.s32.totalorder %v14868_v48, %v13277_v18 }
 0x3fd   : > { %v13707_v60 = vadd.f32 %v6014_v21, %v5630_v27  ;;  %9128 = vmatprep.mubr.msk.f32.mxu1 %vm825_vm13, %v14634_v38  ;;  %vm840_vm3 = vcmp.eq.s32.totalorder %v14868_v48, %v13285_v41  ;;  %vm872_vm11 = vcmp.eq.s32.totalorder %v10540_v23, %v13285_v41  ;;  %vm887_vm12 = vcmp.eq.s32.totalorder %v10556_v32, %v13265_v35 }
 0x3fe   : > { %v5634_v1 = vpop.f32.mrb[76].mxu0  ;;  %vm889_vm13 = vcmp.eq.s32.totalorder %v10556_v32, %v13271_v0 }
 0x3ff   : > { %v5635_v34 = vadd.f32 %v5634_v1, %v14869_v58  ;;  %v5636_v43 = vpop.f32.mrb[77].mxu0  ;;  %9001 = vmatmul.mubr.msk.f32.gmra.mrb[182].mxu0 %vm822_vm14, %v14634_v38  ;;  %v6019_v46 = vpop.f32.mrb[76].mxu1  ;;  %vm886_vm14 = vcmp.eq.s32.totalorder %v10556_v32, %v13277_v18  ;;  %v14871_v1 = vld [vmem:[#allocation14_spill] sm:$0xff] }
 0x400   : > { %v6021_v47 = vpop.f32.mrb[77].mxu1  ;;  %9129 = vmatmul.mubr.msk.f32.gmra.mrb[182].mxu1 %vm824_vm15, %v14634_v38  ;;  %9002 = vmatprep.mubr.msk.f32.mxu0 %vm839_vm0, %v14634_v38  ;;  %vm888_vm15 = vcmp.eq.s32.totalorder %v10556_v32, %v13285_v41  ;;  %vm903_vm0 = vcmp.eq.s32.totalorder %v10572_v55, %v13265_v35 }
 0x401   : > { %v13722_v9 = vadd.f32 %v6019_v46, %v5635_v34  ;;  %9130 = vmatprep.mubr.msk.f32.mxu1 %vm841_vm1, %v14634_v38  ;;  %vm905_vm1 = vcmp.eq.s32.totalorder %v10572_v55, %v13271_v0  ;;  %v14872_v47 = vld [vmem:[#allocation22_spill] sm:$0xff] }
 0x402   : > { %v5639_v61 = vpop.f32.mrb[78].mxu0 }
 0x403   : > { %v5640_v59 = vadd.f32 %v5639_v61, %v12766_v19  ;;  %v5641_v5 = vpop.f32.mrb[79].mxu0  ;;  %9003 = vmatmul.mubr.msk.f32.gmra.mrb[184].mxu0 %vm838_vm2, %v14634_v38  ;;  %v6024_v53 = vpop.f32.mrb[78].mxu1  ;;  %vm902_vm2 = vcmp.eq.s32.totalorder %v10572_v55, %v13277_v18  ;;  %v14873_v61 = vld [vmem:[#allocation74_spill] sm:$0xff] }
 0x404   : > { %v6026_v22 = vpop.f32.mrb[79].mxu1  ;;  %9131 = vmatmul.mubr.msk.f32.gmra.mrb[184].mxu1 %vm840_vm3, %v14634_v38  ;;  %9004 = vmatprep.mubr.msk.f32.mxu0 %vm855_vm4, %v14634_v38  ;;  %vm904_vm3 = vcmp.eq.s32.totalorder %v10572_v55, %v13285_v41  ;;  %vm919_vm4 = vcmp.eq.s32.totalorder %v14872_v47, %v13265_v35 }
 0x405   : > { %v13737_v30 = vadd.f32 %v6024_v53, %v5640_v59  ;;  %9132 = vmatprep.mubr.msk.f32.mxu1 %vm857_vm5, %v14634_v38  ;;  %vm921_vm5 = vcmp.eq.s32.totalorder %v14872_v47, %v13271_v0 }
 0x406   : > { %v5644_v19 = vpop.f32.mrb[80].mxu0 }
 0x407   : > { %v5645_v37 = vadd.f32 %v5644_v19, %v12781_v29  ;;  %v5646_v25 = vpop.f32.mrb[81].mxu0  ;;  %9005 = vmatmul.mubr.msk.f32.gmra.mrb[186].mxu0 %vm854_vm6, %v14634_v38  ;;  %v6029_v39 = vpop.f32.mrb[80].mxu1  ;;  %vm918_vm6 = vcmp.eq.s32.totalorder %v14872_v47, %v13277_v18  ;;  %v14874_v19 = vld [vmem:[#allocation23_spill] sm:$0xff] }
 0x408   : > { %v6031_v13 = vpop.f32.mrb[81].mxu1  ;;  %9133 = vmatmul.mubr.msk.f32.gmra.mrb[186].mxu1 %vm856_vm7, %v14634_v38  ;;  %9006 = vmatprep.mubr.msk.f32.mxu0 %vm871_vm8, %v14634_v38  ;;  %vm920_vm7 = vcmp.eq.s32.totalorder %v14872_v47, %v13285_v41  ;;  %vm935_vm8 = vcmp.eq.s32.totalorder %v14874_v19, %v13265_v35  ;;  %v14875_v25 = vld [vmem:[#allocation75_spill] sm:$0xff]  ;;  %v14878_v47 = vld [vmem:[#allocation25_spill] sm:$0xff] }
 0x409   : > { %v13752_v27 = vadd.f32 %v6029_v39, %v5645_v37  ;;  %9134 = vmatprep.mubr.msk.f32.mxu1 %vm873_vm9, %v14634_v38  ;;  %vm937_vm9 = vcmp.eq.s32.totalorder %v14874_v19, %v13271_v0 }
 0x40a   : > { %v5649_v29 = vpop.f32.mrb[82].mxu0 }
 0x40b   : > { %v5650_v15 = vadd.f32 %v5649_v29, %v12796_v56  ;;  %v5651_v21 = vpop.f32.mrb[83].mxu0  ;;  %9007 = vmatmul.mubr.msk.f32.gmra.mrb[188].mxu0 %vm870_vm10, %v14634_v38  ;;  %v6034_v40 = vpop.f32.mrb[82].mxu1  ;;  %vm934_vm10 = vcmp.eq.s32.totalorder %v14874_v19, %v13277_v18 }
 0x40c   : > { %v6036_v48 = vpop.f32.mrb[83].mxu1  ;;  %9135 = vmatmul.mubr.msk.f32.gmra.mrb[188].mxu1 %vm872_vm11, %v14634_v38  ;;  %9008 = vmatprep.mubr.msk.f32.mxu0 %vm887_vm12, %v14634_v38  ;;  %vm936_vm11 = vcmp.eq.s32.totalorder %v14874_v19, %v13285_v41 }
 0x40d   : > { %v13767_v23 = vadd.f32 %v6034_v40, %v5650_v15  ;;  %9136 = vmatprep.mubr.msk.f32.mxu1 %vm889_vm13, %v14634_v38  ;;  %v14876_v40 = vld [vmem:[#allocation24_spill] sm:$0xff] }
 0x40e   : > { %v5654_v56 = vpop.f32.mrb[84].mxu0  ;;  %vm951_vm12 = vcmp.eq.s32.totalorder %v14876_v40, %v13265_v35  ;;  %vm953_vm13 = vcmp.eq.s32.totalorder %v14876_v40, %v13271_v0 }
 0x40f   : > { %v5655_v58 = vadd.f32 %v5654_v56, %v14871_v1  ;;  %v5656_v34 = vpop.f32.mrb[85].mxu0  ;;  %9009 = vmatmul.mubr.msk.f32.gmra.mrb[190].mxu0 %vm886_vm14, %v14634_v38  ;;  %v6039_v43 = vpop.f32.mrb[84].mxu1  ;;  %v14877_v56 = vld [vmem:[#allocation15_spill] sm:$0xff]  ;;  %vm950_vm14 = vcmp.eq.s32.totalorder %v14876_v40, %v13277_v18 }
 0x410   : > { %v6041_v46 = vpop.f32.mrb[85].mxu1  ;;  %9137 = vmatmul.mubr.msk.f32.gmra.mrb[190].mxu1 %vm888_vm15, %v14634_v38  ;;  %9010 = vmatprep.mubr.msk.f32.mxu0 %vm903_vm0, %v14634_v38  ;;  %vm952_vm15 = vcmp.eq.s32.totalorder %v14876_v40, %v13285_v41  ;;  %vm967_vm0 = vcmp.eq.s32.totalorder %v14878_v47, %v13265_v35 }
 0x411   : > { %v13782_v32 = vadd.f32 %v6039_v43, %v5655_v58  ;;  %9138 = vmatprep.mubr.msk.f32.mxu1 %vm905_vm1, %v14634_v38  ;;  %vm969_vm1 = vcmp.eq.s32.totalorder %v14878_v47, %v13271_v0 }
 0x412   : > { %v5659_v54 = vpop.f32.mrb[86].mxu0 }
 0x413   : > { %v5660_v59 = vadd.f32 %v5659_v54, %v14873_v61  ;;  %v5661_v5 = vpop.f32.mrb[87].mxu0  ;;  %9011 = vmatmul.mubr.msk.f32.gmra.mrb[192].mxu0 %vm902_vm2, %v14634_v38  ;;  %v6044_v53 = vpop.f32.mrb[86].mxu1  ;;  %v14879_v61 = vld [vmem:[#allocation76_spill] sm:$0xff]  ;;  %vm966_vm2 = vcmp.eq.s32.totalorder %v14878_v47, %v13277_v18 }
 0x414   : > { %v6046_v22 = vpop.f32.mrb[87].mxu1  ;;  %9139 = vmatmul.mubr.msk.f32.gmra.mrb[192].mxu1 %vm904_vm3, %v14634_v38  ;;  %9012 = vmatprep.mubr.msk.f32.mxu0 %vm919_vm4, %v14634_v38  ;;  %vm968_vm3 = vcmp.eq.s32.totalorder %v14878_v47, %v13285_v41 }
 0x415   : > { %v13797_v55 = vadd.f32 %v6044_v53, %v5660_v59  ;;  %9140 = vmatprep.mubr.msk.f32.mxu1 %vm921_vm5, %v14634_v38 }
 0x416   : > { %v5664_v37 = vpop.f32.mrb[88].mxu0 }
 0x417   : > { %v5665_v39 = vadd.f32 %v5664_v37, %v14875_v25  ;;  %v5666_v13 = vpop.f32.mrb[89].mxu0  ;;  %9013 = vmatmul.mubr.msk.f32.gmra.mrb[194].mxu0 %vm918_vm6, %v14634_v38  ;;  %v6049_v29 = vpop.f32.mrb[88].mxu1  ;;  %v14880_v37 = vld [vmem:[#allocation26_spill] sm:$0xff] }
 0x418   : > { %v6051_v15 = vpop.f32.mrb[89].mxu1  ;;  %9141 = vmatmul.mubr.msk.f32.gmra.mrb[194].mxu1 %vm920_vm7, %v14634_v38  ;;  %9014 = vmatprep.mubr.msk.f32.mxu0 %vm935_vm8, %v14634_v38  ;;  %vm983_vm4 = vcmp.eq.s32.totalorder %v14880_v37, %v13265_v35  ;;  %vm985_vm5 = vcmp.eq.s32.totalorder %v14880_v37, %v13271_v0  ;;  %vm982_vm6 = vcmp.eq.s32.totalorder %v14880_v37, %v13277_v18 }
 0x419   : > { %v13812_v21 = vadd.f32 %v6049_v29, %v5665_v39  ;;  %9142 = vmatprep.mubr.msk.f32.mxu1 %vm937_vm9, %v14634_v38  ;;  %v14881_v39 = vld [vmem:[#allocation77_spill] sm:$0xff]  ;;  %vm984_vm7 = vcmp.eq.s32.totalorder %v14880_v37, %v13285_v41 }
 0x41a   : > { %v5669_v48 = vpop.f32.mrb[90].mxu0 }
 0x41b   : > { %v5670_v1 = vadd.f32 %v5669_v48, %v14877_v56  ;;  %v5671_v58 = vpop.f32.mrb[91].mxu0  ;;  %9015 = vmatmul.mubr.msk.f32.gmra.mrb[196].mxu0 %vm934_vm10, %v14634_v38  ;;  %v6054_v34 = vpop.f32.mrb[90].mxu1  ;;  %v14882_v56 = vld [vmem:[#allocation27_spill] sm:$0xff] }
 0x41c   : > { %v6056_v43 = vpop.f32.mrb[91].mxu1  ;;  %9143 = vmatmul.mubr.msk.f32.gmra.mrb[196].mxu1 %vm936_vm11, %v14634_v38  ;;  %9016 = vmatprep.mubr.msk.f32.mxu0 %vm951_vm12, %v14634_v38  ;;  %vm999_vm8 = vcmp.eq.s32.totalorder %v14882_v56, %v13265_v35  ;;  %vm1001_vm9 = vcmp.eq.s32.totalorder %v14882_v56, %v13271_v0  ;;  %v14883_v58 = vld [vmem:[#allocation78_spill] sm:$0xff]  ;;  %vm998_vm10 = vcmp.eq.s32.totalorder %v14882_v56, %v13277_v18 }
 0x41d   : > { %v13827_v46 = vadd.f32 %v6054_v34, %v5670_v1  ;;  %9144 = vmatprep.mubr.msk.f32.mxu1 %vm953_vm13, %v14634_v38  ;;  %vm1000_vm11 = vcmp.eq.s32.totalorder %v14882_v56, %v13285_v41 }
 0x41e   : > { %v5674_v54 = vpop.f32.mrb[92].mxu0 }
 0x41f   : > { %v5675_v59 = vadd.f32 %v5674_v54, %v14879_v61  ;;  %v5676_v5 = vpop.f32.mrb[93].mxu0  ;;  %9017 = vmatmul.mubr.msk.f32.gmra.mrb[198].mxu0 %vm950_vm14, %v14634_v38  ;;  %v6059_v53 = vpop.f32.mrb[92].mxu1 }
 0x420   : > { %v6061_v22 = vpop.f32.mrb[93].mxu1  ;;  %9145 = vmatmul.mubr.msk.f32.gmra.mrb[198].mxu1 %vm952_vm15, %v14634_v38  ;;  %9018 = vmatprep.mubr.msk.f32.mxu0 %vm967_vm0, %v14634_v38 }
 0x421   : > { %v13842_v19 = vadd.f32 %v6059_v53, %v5675_v59  ;;  %9146 = vmatprep.mubr.msk.f32.mxu1 %vm969_vm1, %v14634_v38  ;;  %v14884_v59 = vld [vmem:[#allocation28_spill] sm:$0xff]  ;;  %v14885_v53 = vld [vmem:[#allocation79_spill] sm:$0xff] }
 0x422   : > { %v5679_v25 = vpop.f32.mrb[94].mxu0  ;;  %vm1015_vm12 = vcmp.eq.s32.totalorder %v14884_v59, %v13265_v35  ;;  %vm1017_vm13 = vcmp.eq.s32.totalorder %v14884_v59, %v13271_v0  ;;  %vm1014_vm14 = vcmp.eq.s32.totalorder %v14884_v59, %v13277_v18  ;;  %vm1016_vm15 = vcmp.eq.s32.totalorder %v14884_v59, %v13285_v41  ;;  %v14889_v59 = vld [vmem:[#allocation81_spill] sm:$0xff] }
 0x423   : > { %v5680_v13 = vadd.f32 %v5679_v25, %v14881_v39  ;;  %v5681_v29 = vpop.f32.mrb[95].mxu0  ;;  %9019 = vmatmul.mubr.msk.f32.gmra.mrb[200].mxu0 %vm966_vm2, %v14634_v38  ;;  %v6064_v15 = vpop.f32.mrb[94].mxu1 }
 0x424   : > { %v6066_v40 = vpop.f32.mrb[95].mxu1  ;;  %9147 = vmatmul.mubr.msk.f32.gmra.mrb[200].mxu1 %vm968_vm3, %v14634_v38  ;;  %9020 = vmatprep.mubr.msk.f32.mxu0 %vm983_vm4, %v14634_v38  ;;  %v14886_v29 = vld [vmem:[#allocation29_spill] sm:$0xff] }
 0x425   : > { %v13857_v48 = vadd.f32 %v6064_v15, %v5680_v13  ;;  %9148 = vmatprep.mubr.msk.f32.mxu1 %vm985_vm5, %v14634_v38  ;;  %vm1031_vm0 = vcmp.eq.s32.totalorder %v14886_v29, %v13265_v35  ;;  %vm1033_vm1 = vcmp.eq.s32.totalorder %v14886_v29, %v13271_v0  ;;  %v14887_v40 = vld [vmem:[#allocation80_spill] sm:$0xff]  ;;  %vm1030_vm2 = vcmp.eq.s32.totalorder %v14886_v29, %v13277_v18 }
 0x426   : > { %v5684_v1 = vpop.f32.mrb[96].mxu0  ;;  %vm1032_vm3 = vcmp.eq.s32.totalorder %v14886_v29, %v13285_v41 }
 0x427   : > { %v5685_v34 = vadd.f32 %v5684_v1, %v14883_v58  ;;  %v5686_v43 = vpop.f32.mrb[97].mxu0  ;;  %9021 = vmatmul.mubr.msk.f32.gmra.mrb[202].mxu0 %vm982_vm6, %v14634_v38  ;;  %v6069_v47 = vpop.f32.mrb[96].mxu1 }
 0x428   : > { %v6071_v54 = vpop.f32.mrb[97].mxu1  ;;  %9149 = vmatmul.mubr.msk.f32.gmra.mrb[202].mxu1 %vm984_vm7, %v14634_v38  ;;  %9022 = vmatprep.mubr.msk.f32.mxu0 %vm999_vm8, %v14634_v38 }
 0x429   : > { %v13872_v61 = vadd.f32 %v6069_v47, %v5685_v34  ;;  %9150 = vmatprep.mubr.msk.f32.mxu1 %vm1001_vm9, %v14634_v38  ;;  %v14888_v47 = vld [vmem:[#allocation30_spill] sm:$0xff] }
 0x42a   : > { %v5689_v5 = vpop.f32.mrb[98].mxu0  ;;  %vm1047_vm4 = vcmp.eq.s32.totalorder %v14888_v47, %v13265_v35  ;;  %vm1049_vm5 = vcmp.eq.s32.totalorder %v14888_v47, %v13271_v0  ;;  %vm1046_vm6 = vcmp.eq.s32.totalorder %v14888_v47, %v13277_v18  ;;  %vm1048_vm7 = vcmp.eq.s32.totalorder %v14888_v47, %v13285_v41  ;;  %v14892_v47 = vld [vmem:[#allocation32_spill] sm:$0xff] }
 0x42b   : > { %v5690_v22 = vadd.f32 %v5689_v5, %v14885_v53  ;;  %v5691_v37 = vpop.f32.mrb[99].mxu0  ;;  %9023 = vmatmul.mubr.msk.f32.gmra.mrb[204].mxu0 %vm998_vm10, %v14634_v38  ;;  %v6074_v25 = vpop.f32.mrb[98].mxu1 }
 0x42c   : > { %v6076_v39 = vpop.f32.mrb[99].mxu1  ;;  %9151 = vmatmul.mubr.msk.f32.gmra.mrb[204].mxu1 %vm1000_vm11, %v14634_v38  ;;  %9024 = vmatprep.mubr.msk.f32.mxu0 %vm1015_vm12, %v14634_v38  ;;  %vm1079_vm12 = vcmp.eq.s32.totalorder %v14892_v47, %v13265_v35 }
 0x42d   : > { %v13887_v13 = vadd.f32 %v6074_v25, %v5690_v22  ;;  %9152 = vmatprep.mubr.msk.f32.mxu1 %vm1017_vm13, %v14634_v38  ;;  %v14890_v39 = vld [vmem:[#allocation31_spill] sm:$0xff]  ;;  %vm1081_vm13 = vcmp.eq.s32.totalorder %v14892_v47, %v13271_v0 }
 0x42e   : > { %v5694_v15 = vpop.f32.mrb[100].mxu0  ;;  %vm1063_vm8 = vcmp.eq.s32.totalorder %v14890_v39, %v13265_v35  ;;  %vm1065_vm9 = vcmp.eq.s32.totalorder %v14890_v39, %v13271_v0  ;;  %vm1062_vm10 = vcmp.eq.s32.totalorder %v14890_v39, %v13277_v18  ;;  %vm1064_vm11 = vcmp.eq.s32.totalorder %v14890_v39, %v13285_v41 }
 0x42f   : > { %v5695_v56 = vadd.f32 %v5694_v15, %v14887_v40  ;;  %v5696_v1 = vpop.f32.mrb[101].mxu0  ;;  %9025 = vmatmul.mubr.msk.f32.gmra.mrb[206].mxu0 %vm1014_vm14, %v14634_v38  ;;  %v6079_v58 = vpop.f32.mrb[100].mxu1  ;;  %v14891_v15 = vld [vmem:[#allocation82_spill] sm:$0xff]  ;;  %vm1078_vm14 = vcmp.eq.s32.totalorder %v14892_v47, %v13277_v18 }
 0x430   : > { %v6081_v34 = vpop.f32.mrb[101].mxu1  ;;  %9153 = vmatmul.mubr.msk.f32.gmra.mrb[206].mxu1 %vm1016_vm15, %v14634_v38  ;;  %9026 = vmatprep.mubr.msk.f32.mxu0 %vm1031_vm0, %v14634_v38  ;;  %vm1080_vm15 = vcmp.eq.s32.totalorder %v14892_v47, %v13285_v41 }
 0x431   : > { %v13902_v43 = vadd.f32 %v6079_v58, %v5695_v56  ;;  %9154 = vmatprep.mubr.msk.f32.mxu1 %vm1033_vm1, %v14634_v38 }
 0x432   : > { %v5699_v54 = vpop.f32.mrb[102].mxu0 }
 0x433   : > { %v5700_v5 = vadd.f32 %v5699_v54, %v14889_v59  ;;  %v5701_v53 = vpop.f32.mrb[103].mxu0  ;;  %9027 = vmatmul.mubr.msk.f32.gmra.mrb[208].mxu0 %vm1030_vm2, %v14634_v38  ;;  %v6084_v22 = vpop.f32.mrb[102].mxu1  ;;  %v14893_v59 = vld [vmem:[#allocation83_spill] sm:$0xff] }
 0x434   : > { %v6086_v37 = vpop.f32.mrb[103].mxu1  ;;  %9155 = vmatmul.mubr.msk.f32.gmra.mrb[208].mxu1 %vm1032_vm3, %v14634_v38  ;;  %9028 = vmatprep.mubr.msk.f32.mxu0 %vm1047_vm4, %v14634_v38 }
 0x435   : > { %v13917_v25 = vadd.f32 %v6084_v22, %v5700_v5  ;;  %9156 = vmatprep.mubr.msk.f32.mxu1 %vm1049_vm5, %v14634_v38 }
 0x436   : > { %v5704_v29 = vpop.f32.mrb[104].mxu0 }
 0x437   : > { %v5705_v40 = vadd.f32 %v5704_v29, %v14891_v15  ;;  %v5706_v56 = vpop.f32.mrb[105].mxu0  ;;  %9029 = vmatmul.mubr.msk.f32.gmra.mrb[210].mxu0 %vm1046_vm6, %v14634_v38  ;;  %v6089_v1 = vpop.f32.mrb[104].mxu1  ;;  %v14894_v29 = vld [vmem:[#allocation33_spill] sm:$0xff] }
 0x438   : > { %v6091_v58 = vpop.f32.mrb[105].mxu1  ;;  %9157 = vmatmul.mubr.msk.f32.gmra.mrb[210].mxu1 %vm1048_vm7, %v14634_v38  ;;  %9030 = vmatprep.mubr.msk.f32.mxu0 %vm1063_vm8, %v14634_v38  ;;  %vm1095_vm0 = vcmp.eq.s32.totalorder %v14894_v29, %v13265_v35  ;;  %vm1097_vm1 = vcmp.eq.s32.totalorder %v14894_v29, %v13271_v0  ;;  %vm1094_vm2 = vcmp.eq.s32.totalorder %v14894_v29, %v13277_v18 }
 0x439   : > { %v13932_v34 = vadd.f32 %v6089_v1, %v5705_v40  ;;  %9158 = vmatprep.mubr.msk.f32.mxu1 %vm1065_vm9, %v14634_v38  ;;  %v14895_v40 = vld [vmem:[#allocation84_spill] sm:$0xff]  ;;  %vm1096_vm3 = vcmp.eq.s32.totalorder %v14894_v29, %v13285_v41 }
 0x43a   : > { %v5709_v54 = vpop.f32.mrb[106].mxu0 }
 0x43b   : > { %v5710_v5 = vadd.f32 %v5709_v54, %v14893_v59  ;;  %v5711_v53 = vpop.f32.mrb[107].mxu0  ;;  %9031 = vmatmul.mubr.msk.f32.gmra.mrb[212].mxu0 %vm1062_vm10, %v14634_v38  ;;  %v6094_v22 = vpop.f32.mrb[106].mxu1  ;;  %v14896_v59 = vld [vmem:[#allocation34_spill] sm:$0xff] }
 0x43c   : > { %v6096_v37 = vpop.f32.mrb[107].mxu1  ;;  %9159 = vmatmul.mubr.msk.f32.gmra.mrb[212].mxu1 %vm1064_vm11, %v14634_v38  ;;  %9032 = vmatprep.mubr.msk.f32.mxu0 %vm1079_vm12, %v14634_v38  ;;  %vm1111_vm4 = vcmp.eq.s32.totalorder %v14896_v59, %v13265_v35  ;;  %vm1113_vm5 = vcmp.eq.s32.totalorder %v14896_v59, %v13271_v0  ;;  %v14897_v53 = vld [vmem:[#allocation85_spill] sm:$0xff]  ;;  %vm1110_vm6 = vcmp.eq.s32.totalorder %v14896_v59, %v13277_v18 }
 0x43d   : > { %v13947_v39 = vadd.f32 %v6094_v22, %v5710_v5  ;;  %9160 = vmatprep.mubr.msk.f32.mxu1 %vm1081_vm13, %v14634_v38  ;;  %vm1112_vm7 = vcmp.eq.s32.totalorder %v14896_v59, %v13285_v41 }
 0x43e   : > { %v5714_v15 = vpop.f32.mrb[108].mxu0 }
 0x43f   : > { %v5715_v56 = vadd.f32 %v5714_v15, %v14895_v40  ;;  %v5716_v1 = vpop.f32.mrb[109].mxu0  ;;  %9033 = vmatmul.mubr.msk.f32.gmra.mrb[214].mxu0 %vm1078_vm14, %v14634_v38  ;;  %v6099_v58 = vpop.f32.mrb[108].mxu1 }
 0x440   : > { %v6101_v54 = vpop.f32.mrb[109].mxu1  ;;  %9161 = vmatmul.mubr.msk.f32.gmra.mrb[214].mxu1 %vm1080_vm15, %v14634_v38  ;;  %9034 = vmatprep.mubr.msk.f32.mxu0 %vm1095_vm0, %v14634_v38 }
 0x441   : > { %v13962_v47 = vadd.f32 %v6099_v58, %v5715_v56  ;;  %9162 = vmatprep.mubr.msk.f32.mxu1 %vm1097_vm1, %v14634_v38  ;;  %v14898_v56 = vld [vmem:[#allocation35_spill] sm:$0xff]  ;;  %v14899_v58 = vld [vmem:[#allocation86_spill] sm:$0xff] }
 0x442   : > { %v5719_v5 = vpop.f32.mrb[110].mxu0  ;;  %vm1127_vm8 = vcmp.eq.s32.totalorder %v14898_v56, %v13265_v35  ;;  %vm1129_vm9 = vcmp.eq.s32.totalorder %v14898_v56, %v13271_v0  ;;  %vm1126_vm10 = vcmp.eq.s32.totalorder %v14898_v56, %v13277_v18  ;;  %vm1128_vm11 = vcmp.eq.s32.totalorder %v14898_v56, %v13285_v41 }
 0x443   : > { %v5720_v22 = vadd.f32 %v5719_v5, %v14897_v53  ;;  %v5721_v37 = vpop.f32.mrb[111].mxu0  ;;  %9035 = vmatmul.mubr.msk.f32.gmra.mrb[216].mxu0 %vm1094_vm2, %v14634_v38  ;;  %v6104_v15 = vpop.f32.mrb[110].mxu1 }
 0x444   : > { %v6106_v40 = vpop.f32.mrb[111].mxu1  ;;  %9163 = vmatmul.mubr.msk.f32.gmra.mrb[216].mxu1 %vm1096_vm3, %v14634_v38  ;;  %9036 = vmatprep.mubr.msk.f32.mxu0 %vm1111_vm4, %v14634_v38  ;;  %v14901_v37 = vld [vmem:[#allocation36_spill] sm:$0xff] }
 0x445   : > { %v13977_v29 = vadd.f32 %v6104_v15, %v5720_v22  ;;  %9164 = vmatprep.mubr.msk.f32.mxu1 %vm1113_vm5, %v14634_v38  ;;  %vm1143_vm12 = vcmp.eq.s32.totalorder %v14901_v37, %v13265_v35  ;;  %vm1145_vm13 = vcmp.eq.s32.totalorder %v14901_v37, %v13271_v0  ;;  %v14902_v40 = vld [vmem:[#allocation87_spill] sm:$0xff]  ;;  %vm1142_vm14 = vcmp.eq.s32.totalorder %v14901_v37, %v13277_v18 }
 0x446   : > { %v5724_v1 = vpop.f32.mrb[112].mxu0  ;;  %vm1144_vm15 = vcmp.eq.s32.totalorder %v14901_v37, %v13285_v41 }
 0x447   : > { %v5725_v54 = vadd.f32 %v5724_v1, %v14899_v58  ;;  %v5726_v5 = vpop.f32.mrb[113].mxu0  ;;  %9037 = vmatmul.mubr.msk.f32.gmra.mrb[218].mxu0 %vm1110_vm6, %v14634_v38  ;;  %v6109_v53 = vpop.f32.mrb[112].mxu1 }
 0x448   : > { %v6111_v22 = vpop.f32.mrb[113].mxu1  ;;  %9165 = vmatmul.mubr.msk.f32.gmra.mrb[218].mxu1 %vm1112_vm7, %v14634_v38  ;;  %9038 = vmatprep.mubr.msk.f32.mxu0 %vm1127_vm8, %v14634_v38 }
 0x449   : > { %v13992_v59 = vadd.f32 %v6109_v53, %v5725_v54  ;;  %9166 = vmatprep.mubr.msk.f32.mxu1 %vm1129_vm9, %v14634_v38  ;;  %v14904_v53 = vld [vmem:[#allocation37_spill] sm:$0xff] }
 0x44a   : > { %v5729_v15 = vpop.f32.mrb[114].mxu0  ;;  %vm1159_vm0 = vcmp.eq.s32.totalorder %v14904_v53, %v13265_v35  ;;  %vm1161_vm1 = vcmp.eq.s32.totalorder %v14904_v53, %v13271_v0  ;;  %vm1158_vm2 = vcmp.eq.s32.totalorder %v14904_v53, %v13277_v18  ;;  %vm1160_vm3 = vcmp.eq.s32.totalorder %v14904_v53, %v13285_v41 }
 0x44b   : > { %14900 = vst [vmem:[#allocation45_spill] sm:$0xff] %v13992_v59  ;;  %v5730_v1 = vadd.f32 %v5729_v15, %v14902_v40  ;;  %v5731_v58 = vpop.f32.mrb[115].mxu0  ;;  %9039 = vmatmul.mubr.msk.f32.gmra.mrb[220].mxu0 %vm1126_vm10, %v14634_v38  ;;  %v6114_v5 = vpop.f32.mrb[114].mxu1  ;;  %v14905_v15 = vld [vmem:[#allocation88_spill] sm:$0xff] }
 0x44c   : > { %v6116_v54 = vpop.f32.mrb[115].mxu1  ;;  %9167 = vmatmul.mubr.msk.f32.gmra.mrb[220].mxu1 %vm1128_vm11, %v14634_v38  ;;  %9040 = vmatprep.mubr.msk.f32.mxu0 %vm1143_vm12, %v14634_v38 }
 0x44d   : > { %v14007_v56 = vadd.f32 %v6114_v5, %v5730_v1  ;;  %9168 = vmatprep.mubr.msk.f32.mxu1 %vm1145_vm13, %v14634_v38  ;;  %v14907_v5 = vld [vmem:[#allocation38_spill] sm:$0xff] }
 0x44e   : > { %v5734_v22 = vpop.f32.mrb[116].mxu0  ;;  %vm1175_vm4 = vcmp.eq.s32.totalorder %v14907_v5, %v13265_v35  ;;  %vm1177_vm5 = vcmp.eq.s32.totalorder %v14907_v5, %v13271_v0  ;;  %vm1174_vm6 = vcmp.eq.s32.totalorder %v14907_v5, %v13277_v18  ;;  %vm1176_vm7 = vcmp.eq.s32.totalorder %v14907_v5, %v13285_v41 }
 0x44f   : > { %14903 = vst [vmem:[#allocation47_spill] sm:$0xff] %v14007_v56  ;;  %v5735_v40 = vadd.f32 %v5734_v22, %v14905_v15  ;;  %v5736_v58 = vpop.f32.mrb[117].mxu0  ;;  %9041 = vmatmul.mubr.msk.f32.gmra.mrb[222].mxu0 %vm1142_vm14, %v14634_v38  ;;  %v6119_v54 = vpop.f32.mrb[116].mxu1  ;;  %v14908_v15 = vld [vmem:[#allocation89_spill] sm:$0xff] }
 0x450   : > { %v6121_v1 = vpop.f32.mrb[117].mxu1  ;;  %9169 = vmatmul.mubr.msk.f32.gmra.mrb[222].mxu1 %vm1144_vm15, %v14634_v38  ;;  %9042 = vmatprep.mubr.msk.f32.mxu0 %vm1159_vm0, %v14634_v38 }
 0x451   : > { %v14022_v37 = vadd.f32 %v6119_v54, %v5735_v40  ;;  %9170 = vmatprep.mubr.msk.f32.mxu1 %vm1161_vm1, %v14634_v38  ;;  %v14910_v54 = vld [vmem:[#allocation39_spill] sm:$0xff] }
 0x452   : > { %v5739_v22 = vpop.f32.mrb[118].mxu0  ;;  %vm1191_vm8 = vcmp.eq.s32.totalorder %v14910_v54, %v13265_v35  ;;  %vm1193_vm9 = vcmp.eq.s32.totalorder %v14910_v54, %v13271_v0  ;;  %vm1190_vm10 = vcmp.eq.s32.totalorder %v14910_v54, %v13277_v18  ;;  %vm1192_vm11 = vcmp.eq.s32.totalorder %v14910_v54, %v13285_v41 }
 0x453   : > { %14906 = vst [vmem:[#allocation49_spill] sm:$0xff] %v14022_v37  ;;  %v5740_v58 = vadd.f32 %v5739_v22, %v14908_v15  ;;  %v5741_v1 = vpop.f32.mrb[119].mxu0  ;;  %9043 = vmatmul.mubr.msk.f32.gmra.mrb[224].mxu0 %vm1158_vm2, %v14634_v38  ;;  %v6124_v56 = vpop.f32.mrb[118].mxu1  ;;  %v14911_v15 = vld [vmem:[#allocation90_spill] sm:$0xff] }
 0x454   : > { %v6126_v40 = vpop.f32.mrb[119].mxu1  ;;  %9171 = vmatmul.mubr.msk.f32.gmra.mrb[224].mxu1 %vm1160_vm3, %v14634_v38  ;;  %9044 = vmatprep.mubr.msk.f32.mxu0 %vm1175_vm4, %v14634_v38 }
 0x455   : > { %v14037_v53 = vadd.f32 %v6124_v56, %v5740_v58  ;;  %9172 = vmatprep.mubr.msk.f32.mxu1 %vm1177_vm5, %v14634_v38  ;;  %v14913_v58 = vld [vmem:[#allocation40_spill] sm:$0xff] }
 0x456   : > { %v5744_v22 = vpop.f32.mrb[120].mxu0  ;;  %vm1207_vm12 = vcmp.eq.s32.totalorder %v14913_v58, %v13265_v35  ;;  %vm1209_vm13 = vcmp.eq.s32.totalorder %v14913_v58, %v13271_v0  ;;  %vm1206_vm14 = vcmp.eq.s32.totalorder %v14913_v58, %v13277_v18  ;;  %vm1208_vm15 = vcmp.eq.s32.totalorder %v14913_v58, %v13285_v41 }
 0x457   : > { %14909 = vst [vmem:[#allocation51_spill] sm:$0xff] %v14037_v53  ;;  %v5745_v1 = vadd.f32 %v5744_v22, %v14911_v15  ;;  %v5746_v40 = vpop.f32.mrb[121].mxu0  ;;  %9045 = vmatmul.mubr.msk.f32.gmra.mrb[226].mxu0 %vm1174_vm6, %v14634_v38  ;;  %v6129_v37 = vpop.f32.mrb[120].mxu1  ;;  %v14914_v15 = vld [vmem:[#allocation91_spill] sm:$0xff] }
 0x458   : > { %v6131_v56 = vpop.f32.mrb[121].mxu1  ;;  %9173 = vmatmul.mubr.msk.f32.gmra.mrb[226].mxu1 %vm1176_vm7, %v14634_v38  ;;  %9046 = vmatprep.mubr.msk.f32.mxu0 %vm1191_vm8, %v14634_v38 }
 0x459   : > { %v14052_v5 = vadd.f32 %v6129_v37, %v5745_v1  ;;  %9174 = vmatprep.mubr.msk.f32.mxu1 %vm1193_vm9, %v14634_v38  ;;  %v14916_v1 = vld [vmem:[#allocation41_spill] sm:$0xff] }
 0x45a   : > { %v5749_v22 = vpop.f32.mrb[122].mxu0  ;;  %vm1223_vm0 = vcmp.eq.s32.totalorder %v14916_v1, %v13265_v35  ;;  %vm1225_vm1 = vcmp.eq.s32.totalorder %v14916_v1, %v13271_v0  ;;  %vm1222_vm2 = vcmp.eq.s32.totalorder %v14916_v1, %v13277_v18  ;;  %vm1224_vm3 = vcmp.eq.s32.totalorder %v14916_v1, %v13285_v41 }
 0x45b   : > { %14912 = vst [vmem:[#allocation53_spill] sm:$0xff] %v14052_v5  ;;  %v5750_v40 = vadd.f32 %v5749_v22, %v14914_v15  ;;  %v5751_v56 = vpop.f32.mrb[123].mxu0  ;;  %9047 = vmatmul.mubr.msk.f32.gmra.mrb[228].mxu0 %vm1190_vm10, %v14634_v38  ;;  %v6134_v53 = vpop.f32.mrb[122].mxu1  ;;  %v14917_v15 = vld [vmem:[#allocation92_spill] sm:$0xff] }
 0x45c   : > { %v6136_v37 = vpop.f32.mrb[123].mxu1  ;;  %9175 = vmatmul.mubr.msk.f32.gmra.mrb[228].mxu1 %vm1192_vm11, %v14634_v38  ;;  %9048 = vmatprep.mubr.msk.f32.mxu0 %vm1207_vm12, %v14634_v38 }
 0x45d   : > { %v14067_v54 = vadd.f32 %v6134_v53, %v5750_v40  ;;  %9176 = vmatprep.mubr.msk.f32.mxu1 %vm1209_vm13, %v14634_v38  ;;  %v14919_v40 = vld [vmem:[#allocation42_spill] sm:$0xff] }
 0x45e   : > { %v5754_v22 = vpop.f32.mrb[124].mxu0  ;;  %vm1239_vm4 = vcmp.eq.s32.totalorder %v14919_v40, %v13265_v35  ;;  %vm1241_vm5 = vcmp.eq.s32.totalorder %v14919_v40, %v13271_v0  ;;  %vm1238_vm6 = vcmp.eq.s32.totalorder %v14919_v40, %v13277_v18  ;;  %vm1240_vm7 = vcmp.eq.s32.totalorder %v14919_v40, %v13285_v41 }
 0x45f   : > { %14915 = vst [vmem:[#allocation55_spill] sm:$0xff] %v14067_v54  ;;  %v5755_v56 = vadd.f32 %v5754_v22, %v14917_v15  ;;  %v5756_v37 = vpop.f32.mrb[125].mxu0  ;;  %9049 = vmatmul.mubr.msk.f32.gmra.mrb[230].mxu0 %vm1206_vm14, %v14634_v38  ;;  %v6139_v5 = vpop.f32.mrb[124].mxu1  ;;  %v14920_v15 = vld [vmem:[#allocation93_spill] sm:$0xff] }
 0x460   : > { %v6141_v53 = vpop.f32.mrb[125].mxu1  ;;  %9177 = vmatmul.mubr.msk.f32.gmra.mrb[230].mxu1 %vm1208_vm15, %v14634_v38  ;;  %9050 = vmatprep.mubr.msk.f32.mxu0 %vm1223_vm0, %v14634_v38 }
 0x461   : > { %v14082_v58 = vadd.f32 %v6139_v5, %v5755_v56  ;;  %9178 = vmatprep.mubr.msk.f32.mxu1 %vm1225_vm1, %v14634_v38 }
 0x462   : > { %v5759_v22 = vpop.f32.mrb[126].mxu0 }
 0x463   : > { %14918 = vst [vmem:[#allocation57_spill] sm:$0xff] %v14082_v58  ;;  %v5760_v37 = vadd.f32 %v5759_v22, %v14920_v15  ;;  %v5761_v53 = vpop.f32.mrb[127].mxu0  ;;  %9051 = vmatmul.mubr.msk.f32.gmra.mrb[232].mxu0 %vm1222_vm2, %v14634_v38  ;;  %v6144_v5 = vpop.f32.mrb[126].mxu1  ;;  %v14922_v22 = vld [vmem:[#allocation43_spill] sm:$0xff] }
 0x464   : > { %v6146_v56 = vpop.f32.mrb[127].mxu1  ;;  %9179 = vmatmul.mubr.msk.f32.gmra.mrb[232].mxu1 %vm1224_vm3, %v14634_v38  ;;  %9052 = vmatprep.mubr.msk.f32.mxu0 %vm1239_vm4, %v14634_v38  ;;  %vm1255_vm8 = vcmp.eq.s32.totalorder %v14922_v22, %v13265_v35  ;;  %vm1257_vm9 = vcmp.eq.s32.totalorder %v14922_v22, %v13271_v0  ;;  %v14923_v53 = vld [vmem:[#allocation94_spill] sm:$0xff]  ;;  %vm1254_vm10 = vcmp.eq.s32.totalorder %v14922_v22, %v13277_v18 }
 0x465   : > { %v14098_v1 = vadd.f32 %v6144_v5, %v5760_v37  ;;  %9180 = vmatprep.mubr.msk.f32.mxu1 %vm1241_vm5, %v14634_v38  ;;  %vm1256_vm11 = vcmp.eq.s32.totalorder %v14922_v22, %v13285_v41 }
 0x466   : > { %v6214_v15 = vpop.f32.mrb[128].mxu0 }
 0x467   : > { %14921 = vst [vmem:[#allocation59_spill] sm:$0xff] %v14098_v1  ;;  %v6215_v56 = vadd.f32 %v6214_v15, %v14923_v53  ;;  %v6216_v58 = vpop.f32.mrb[129].mxu0  ;;  %9053 = vmatmul.mubr.msk.f32.gmra.mrb[234].mxu0 %vm1238_vm6, %v14634_v38  ;;  %v6599_v37 = vpop.f32.mrb[128].mxu1  ;;  %v14925_v53 = vld [vmem:[#allocation95_spill] sm:$0xff] }
 0x468   : > { %v6601_v5 = vpop.f32.mrb[129].mxu1  ;;  %9181 = vmatmul.mubr.msk.f32.gmra.mrb[234].mxu1 %vm1240_vm7, %v14634_v38  ;;  %9054 = vmatprep.mubr.msk.f32.mxu0 %vm1255_vm8, %v14634_v38  ;;  %v14924_v58 = vld [vmem:[#allocation44_spill] sm:$0xff] }
 0x469   : > { %v6600_v40 = vadd.f32 %v6599_v37, %v6215_v56  ;;  %9182 = vmatprep.mubr.msk.f32.mxu1 %vm1257_vm9, %v14634_v38  ;;  %vm1271_vm12 = vcmp.eq.s32.totalorder %v14924_v58, %v13265_v35  ;;  %vm1273_vm13 = vcmp.eq.s32.totalorder %v14924_v58, %v13271_v0  ;;  %vm1270_vm14 = vcmp.eq.s32.totalorder %v14924_v58, %v13277_v18  ;;  %v14927_v56 = vld [vmem:[#allocation96_spill] sm:$0xff] }
 0x46a   : > { %v6219_v15 = vpop.f32.mrb[130].mxu0  ;;  %vm1272_vm15 = vcmp.eq.s32.totalorder %v14924_v58, %v13285_v41  ;;  %v14928_v58 = vld [vmem:[#allocation48_spill] sm:$0xff] }
 0x46b   : > { %v6220_v5 = vadd.f32 %v6219_v15, %v14925_v53  ;;  %v6221_v1 = vpop.f32.mrb[131].mxu0  ;;  %9055 = vmatmul.mubr.msk.f32.gmra.mrb[236].mxu0 %vm1254_vm10, %v14634_v38  ;;  %v6604_v54 = vpop.f32.mrb[130].mxu1  ;;  %6982 = vst [vmem:[%s14128_s29] sm:$0xff] %v6600_v40  ;;  %vm1303_vm4 = vcmp.eq.s32.totalorder %v14928_v58, %v13265_v35  ;;  %vm1305_vm5 = vcmp.eq.s32.totalorder %v14928_v58, %v13271_v0 }
 0x46c   : > { %v6606_v59 = vpop.f32.mrb[131].mxu1  ;;  %9183 = vmatmul.mubr.msk.f32.gmra.mrb[236].mxu1 %vm1256_vm11, %v14634_v38  ;;  %9056 = vmatprep.mubr.msk.f32.mxu0 %vm1271_vm12, %v14634_v38  ;;  %vm1302_vm6 = vcmp.eq.s32.totalorder %v14928_v58, %v13277_v18  ;;  %vm1304_vm7 = vcmp.eq.s32.totalorder %v14928_v58, %v13285_v41 }
 0x46d   : > { %v6605_v22 = vadd.f32 %v6604_v54, %v6220_v5  ;;  %9184 = vmatprep.mubr.msk.f32.mxu1 %vm1273_vm13, %v14634_v38  ;;  %v14926_v59 = vld [vmem:[#allocation46_spill] sm:$0xff] }
 0x46e   : > { %vm1287_vm0 = vcmp.eq.s32.totalorder %v14926_v59, %v13265_v35  ;;  %v6224_v1 = vpop.f32.mrb[132].mxu0  ;;  %vm1289_vm1 = vcmp.eq.s32.totalorder %v14926_v59, %v13271_v0  ;;  %vm1286_vm2 = vcmp.eq.s32.totalorder %v14926_v59, %v13277_v18  ;;  %vm1288_vm3 = vcmp.eq.s32.totalorder %v14926_v59, %v13285_v41 }
 0x46f   : > { %v6225_v37 = vadd.f32 %v6224_v1, %v14927_v56  ;;  %v6226_v15 = vpop.f32.mrb[133].mxu0  ;;  %9057 = vmatmul.mubr.msk.f32.gmra.mrb[238].mxu0 %vm1270_vm14, %v14634_v38  ;;  %v6609_v53 = vpop.f32.mrb[132].mxu1  ;;  %6983 = vst [vmem:[%s14128_s29 + $0x8] sm:$0xff] %v6605_v22  ;;  %v14929_v1 = vld [vmem:[#allocation97_spill] sm:$0xff] }
 0x470   : > { %v6611_v40 = vpop.f32.mrb[133].mxu1  ;;  %9185 = vmatmul.mubr.msk.f32.gmra.mrb[238].mxu1 %vm1272_vm15, %v14634_v38  ;;  %9058 = vmatprep.mubr.msk.f32.mxu0 %vm1287_vm0, %v14634_v38 }
 0x471   : > { %v6610_v54 = vadd.f32 %v6609_v53, %v6225_v37  ;;  %9186 = vmatprep.mubr.msk.f32.mxu1 %vm1289_vm1, %v14634_v38  ;;  %v14930_v37 = vld [vmem:[#allocation50_spill] sm:$0xff] }
 0x472   : > { %v6229_v5 = vpop.f32.mrb[134].mxu0  ;;  %vm1319_vm8 = vcmp.eq.s32.totalorder %v14930_v37, %v13265_v35  ;;  %vm1321_vm9 = vcmp.eq.s32.totalorder %v14930_v37, %v13271_v0  ;;  %vm1318_vm10 = vcmp.eq.s32.totalorder %v14930_v37, %v13277_v18  ;;  %vm1320_vm11 = vcmp.eq.s32.totalorder %v14930_v37, %v13285_v41 }
 0x473   : > { %v6230_v56 = vadd.f32 %v6229_v5, %v14929_v1  ;;  %v6231_v15 = vpop.f32.mrb[135].mxu0  ;;  %9059 = vmatmul.mubr.msk.f32.gmra.mrb[240].mxu0 %vm1286_vm2, %v14634_v38  ;;  %v6614_v40 = vpop.f32.mrb[134].mxu1  ;;  %6984 = vst [vmem:[%s14128_s29 + $0x10] sm:$0xff] %v6610_v54  ;;  %v14931_v5 = vld [vmem:[#allocation98_spill] sm:$0xff] }
 0x474   : > { %v6616_v22 = vpop.f32.mrb[135].mxu1  ;;  %9187 = vmatmul.mubr.msk.f32.gmra.mrb[240].mxu1 %vm1288_vm3, %v14634_v38  ;;  %9060 = vmatprep.mubr.msk.f32.mxu0 %vm1303_vm4, %v14634_v38 }
 0x475   : > { %v6615_v59 = vadd.f32 %v6614_v40, %v6230_v56  ;;  %9188 = vmatprep.mubr.msk.f32.mxu1 %vm1305_vm5, %v14634_v38  ;;  %v14932_v56 = vld [vmem:[#allocation52_spill] sm:$0xff] }
 0x476   : > { %v6234_v53 = vpop.f32.mrb[136].mxu0  ;;  %vm1335_vm12 = vcmp.eq.s32.totalorder %v14932_v56, %v13265_v35  ;;  %vm1337_vm13 = vcmp.eq.s32.totalorder %v14932_v56, %v13271_v0  ;;  %vm1334_vm14 = vcmp.eq.s32.totalorder %v14932_v56, %v13277_v18  ;;  %vm1336_vm15 = vcmp.eq.s32.totalorder %v14932_v56, %v13285_v41 }
 0x477   : > { %v6235_v1 = vadd.f32 %v6234_v53, %v14931_v5  ;;  %v6236_v15 = vpop.f32.mrb[137].mxu0  ;;  %9061 = vmatmul.mubr.msk.f32.gmra.mrb[242].mxu0 %vm1302_vm6, %v14634_v38  ;;  %v6619_v22 = vpop.f32.mrb[136].mxu1  ;;  %6985 = vst [vmem:[%s14128_s29 + $0x18] sm:$0xff] %v6615_v59  ;;  %v14933_v53 = vld [vmem:[#allocation99_spill] sm:$0xff] }
 0x478   : > { %v6621_v54 = vpop.f32.mrb[137].mxu1  ;;  %9189 = vmatmul.mubr.msk.f32.gmra.mrb[242].mxu1 %vm1304_vm7, %v14634_v38  ;;  %9062 = vmatprep.mubr.msk.f32.mxu0 %vm1319_vm8, %v14634_v38 }
 0x479   : > { %v6620_v58 = vadd.f32 %v6619_v22, %v6235_v1  ;;  %9190 = vmatprep.mubr.msk.f32.mxu1 %vm1321_vm9, %v14634_v38  ;;  %v14934_v1 = vld [vmem:[#allocation54_spill] sm:$0xff] }
 0x47a   : > { %v6239_v40 = vpop.f32.mrb[138].mxu0  ;;  %vm1351_vm0 = vcmp.eq.s32.totalorder %v14934_v1, %v13265_v35  ;;  %vm1353_vm1 = vcmp.eq.s32.totalorder %v14934_v1, %v13271_v0  ;;  %vm1350_vm2 = vcmp.eq.s32.totalorder %v14934_v1, %v13277_v18  ;;  %vm1352_vm3 = vcmp.eq.s32.totalorder %v14934_v1, %v13285_v41 }
 0x47b   : > { %v6240_v5 = vadd.f32 %v6239_v40, %v14933_v53  ;;  %v6241_v15 = vpop.f32.mrb[139].mxu0  ;;  %9063 = vmatmul.mubr.msk.f32.gmra.mrb[244].mxu0 %vm1318_vm10, %v14634_v38  ;;  %v6624_v54 = vpop.f32.mrb[138].mxu1  ;;  %6986 = vst [vmem:[%s14128_s29 + $0x20] sm:$0xff] %v6620_v58  ;;  %v14935_v40 = vld [vmem:[#allocation100_spill] sm:$0xff] }
 0x47c   : > { %v6626_v59 = vpop.f32.mrb[139].mxu1  ;;  %9191 = vmatmul.mubr.msk.f32.gmra.mrb[244].mxu1 %vm1320_vm11, %v14634_v38  ;;  %9064 = vmatprep.mubr.msk.f32.mxu0 %vm1335_vm12, %v14634_v38  ;;  %vm1399_vm12 = vcmp.eq.s32.totalorder %v14845_v31, %v13265_v35 }
 0x47d   : > { %v6625_v37 = vadd.f32 %v6624_v54, %v6240_v5  ;;  %9192 = vmatprep.mubr.msk.f32.mxu1 %vm1337_vm13, %v14634_v38  ;;  %v14936_v5 = vld [vmem:[#allocation56_spill] sm:$0xff]  ;;  %vm1401_vm13 = vcmp.eq.s32.totalorder %v14845_v31, %v13271_v0 }
 0x47e   : > { %v6244_v22 = vpop.f32.mrb[140].mxu0  ;;  %vm1367_vm4 = vcmp.eq.s32.totalorder %v14936_v5, %v13265_v35  ;;  %vm1369_vm5 = vcmp.eq.s32.totalorder %v14936_v5, %v13271_v0  ;;  %vm1366_vm6 = vcmp.eq.s32.totalorder %v14936_v5, %v13277_v18  ;;  %vm1368_vm7 = vcmp.eq.s32.totalorder %v14936_v5, %v13285_v41 }
 0x47f   : > { %v6245_v53 = vadd.f32 %v6244_v22, %v14935_v40  ;;  %v6246_v15 = vpop.f32.mrb[141].mxu0  ;;  %9065 = vmatmul.mubr.msk.f32.gmra.mrb[246].mxu0 %vm1334_vm14, %v14634_v38  ;;  %v6629_v59 = vpop.f32.mrb[140].mxu1  ;;  %6987 = vst [vmem:[%s14128_s29 + $0x28] sm:$0xff] %v6625_v37  ;;  %v14937_v22 = vld [vmem:[#allocation101_spill] sm:$0xff]  ;;  %vm1398_vm14 = vcmp.eq.s32.totalorder %v14845_v31, %v13277_v18 }
 0x480   : > { %v6631_v58 = vpop.f32.mrb[141].mxu1  ;;  %9193 = vmatmul.mubr.msk.f32.gmra.mrb[246].mxu1 %vm1336_vm15, %v14634_v38  ;;  %9066 = vmatprep.mubr.msk.f32.mxu0 %vm1351_vm0, %v14634_v38  ;;  %vm1400_vm15 = vcmp.eq.s32.totalorder %v14845_v31, %v13285_v41 }
 0x481   : > { %v6630_v56 = vadd.f32 %v6629_v59, %v6245_v53  ;;  %9194 = vmatprep.mubr.msk.f32.mxu1 %vm1353_vm1, %v14634_v38  ;;  %v14938_v53 = vld [vmem:[#allocation58_spill] sm:$0xff] }
 0x482   : > { %v6249_v54 = vpop.f32.mrb[142].mxu0  ;;  %vm1383_vm8 = vcmp.eq.s32.totalorder %v14938_v53, %v13265_v35  ;;  %vm1385_vm9 = vcmp.eq.s32.totalorder %v14938_v53, %v13271_v0  ;;  %vm1382_vm10 = vcmp.eq.s32.totalorder %v14938_v53, %v13277_v18  ;;  %vm1384_vm11 = vcmp.eq.s32.totalorder %v14938_v53, %v13285_v41 }
 0x483   : > { %v6250_v40 = vadd.f32 %v6249_v54, %v14937_v22  ;;  %v6251_v15 = vpop.f32.mrb[143].mxu0  ;;  %9067 = vmatmul.mubr.msk.f32.gmra.mrb[248].mxu0 %vm1350_vm2, %v14634_v38  ;;  %v6634_v58 = vpop.f32.mrb[142].mxu1  ;;  %6988 = vst [vmem:[%s14128_s29 + $0x30] sm:$0xff] %v6630_v56  ;;  %v14939_v54 = vld [vmem:[#allocation102_spill] sm:$0xff] }
 0x484   : > { %v6636_v37 = vpop.f32.mrb[143].mxu1  ;;  %9195 = vmatmul.mubr.msk.f32.gmra.mrb[248].mxu1 %vm1352_vm3, %v14634_v38  ;;  %9068 = vmatprep.mubr.msk.f32.mxu0 %vm1367_vm4, %v14634_v38 }
 0x485   : > { %v6635_v1 = vadd.f32 %v6634_v58, %v6250_v40  ;;  %9196 = vmatprep.mubr.msk.f32.mxu1 %vm1369_vm5, %v14634_v38 }
 0x486   : > { %v6254_v59 = vpop.f32.mrb[144].mxu0 }
 0x487   : > { %v6255_v22 = vadd.f32 %v6254_v59, %v14939_v54  ;;  %v6256_v15 = vpop.f32.mrb[145].mxu0  ;;  %9069 = vmatmul.mubr.msk.f32.gmra.mrb[250].mxu0 %vm1366_vm6, %v14634_v38  ;;  %v6639_v37 = vpop.f32.mrb[144].mxu1  ;;  %6989 = vst [vmem:[%s14128_s29 + $0x38] sm:$0xff] %v6635_v1 }
 0x488   : > { %v6641_v56 = vpop.f32.mrb[145].mxu1  ;;  %9197 = vmatmul.mubr.msk.f32.gmra.mrb[250].mxu1 %vm1368_vm7, %v14634_v38  ;;  %9070 = vmatprep.mubr.msk.f32.mxu0 %vm1383_vm8, %v14634_v38 }
 0x489   : > { %v6640_v5 = vadd.f32 %v6639_v37, %v6255_v22  ;;  %9198 = vmatprep.mubr.msk.f32.mxu1 %vm1385_vm9, %v14634_v38 }
 0x48a   : > { %v6259_v40 = vpop.f32.mrb[146].mxu0 }
 0x48b   : > { %v6260_v58 = vadd.f32 %v6259_v40, %v13287_v44  ;;  %v6261_v59 = vpop.f32.mrb[147].mxu0  ;;  %9071 = vmatmul.mubr.msk.f32.gmra.mrb[252].mxu0 %vm1382_vm10, %v14634_v38  ;;  %v6644_v54 = vpop.f32.mrb[146].mxu1  ;;  %6990 = vst [vmem:[%s14128_s29 + $0x40] sm:$0xff] %v6640_v5 }
 0x48c   : > { %v6646_v1 = vpop.f32.mrb[147].mxu1  ;;  %9199 = vmatmul.mubr.msk.f32.gmra.mrb[252].mxu1 %vm1384_vm11, %v14634_v38  ;;  %9072 = vmatprep.mubr.msk.f32.mxu0 %vm1399_vm12, %v14634_v38 }
 0x48d   : > { %v6645_v35 = vadd.f32 %v6644_v54, %v6260_v58  ;;  %9200 = vmatprep.mubr.msk.f32.mxu1 %vm1401_vm13, %v14634_v38 }
 0x48e   : > { %v6264_v0 = vpop.f32.mrb[148].mxu0 }
 0x48f   : > { %v6265_v44 = vadd.f32 %v6264_v0, %v13302_v20  ;;  %v6266_v53 = vpop.f32.mrb[149].mxu0  ;;  %9073 = vmatmul.mubr.msk.f32.gmra.mrb[254].mxu0 %vm1398_vm14, %v14634_v38  ;;  %v6649_v22 = vpop.f32.mrb[148].mxu1  ;;  %6991 = vst [vmem:[%s14128_s29 + $0x48] sm:$0xff] %v6645_v35 }
 0x490   : > { %v6651_v15 = vpop.f32.mrb[149].mxu1  ;;  %9201 = vmatmul.mubr.msk.f32.gmra.mrb[254].mxu1 %vm1400_vm15, %v14634_v38 }
 0x491   : > { %v6650_v18 = vadd.f32 %v6649_v22, %v6265_v44 }
 0x492   : > { %v6269_v37 = vpop.f32.mrb[150].mxu0 }
 0x493   : > { %v6270_v56 = vadd.f32 %v6269_v37, %v13317_v10  ;;  %v6271_v5 = vpop.f32.mrb[151].mxu0  ;;  %v6654_v40 = vpop.f32.mrb[150].mxu1  ;;  %6992 = vst [vmem:[%s14128_s29 + $0x50] sm:$0xff] %v6650_v18 }
 0x494   : > { %v6656_v31 = vpop.f32.mrb[151].mxu1 }
 0x495   : > { %v6655_v41 = vadd.f32 %v6654_v40, %v6270_v56 }
 0x496   : > { %v6274_v20 = vpop.f32.mrb[152].mxu0 }
 0x497   : > { %v6275_v58 = vadd.f32 %v6274_v20, %v13332_v50  ;;  %v6276_v59 = vpop.f32.mrb[153].mxu0  ;;  %v6659_v54 = vpop.f32.mrb[152].mxu1  ;;  %6993 = vst [vmem:[%s14128_s29 + $0x58] sm:$0xff] %v6655_v41 }
 0x498   : > { %v6661_v1 = vpop.f32.mrb[153].mxu1 }
 0x499   : > { %v6660_v38 = vadd.f32 %v6659_v54, %v6275_v58 }
 0x49a   : > { %v6279_v35 = vpop.f32.mrb[154].mxu0 }
 0x49b   : > { %v6280_v0 = vadd.f32 %v6279_v35, %v13347_v3  ;;  %v6281_v44 = vpop.f32.mrb[155].mxu0  ;;  %v6664_v10 = vpop.f32.mrb[154].mxu1  ;;  %6994 = vst [vmem:[%s14128_s29 + $0x60] sm:$0xff] %v6660_v38 }
 0x49c   : > { %v6666_v53 = vpop.f32.mrb[155].mxu1 }
 0x49d   : > { %v6665_v22 = vadd.f32 %v6664_v10, %v6280_v0 }
 0x49e   : > { %v6284_v15 = vpop.f32.mrb[156].mxu0 }
 0x49f   : > { %v6285_v18 = vadd.f32 %v6284_v15, %v13362_v8  ;;  %v6286_v37 = vpop.f32.mrb[157].mxu0  ;;  %v6669_v50 = vpop.f32.mrb[156].mxu1  ;;  %6995 = vst [vmem:[%s14128_s29 + $0x68] sm:$0xff] %v6665_v22 }
 0x4a0   : > { %v6671_v56 = vpop.f32.mrb[157].mxu1 }
 0x4a1   : > { %v6670_v5 = vadd.f32 %v6669_v50, %v6285_v18 }
 0x4a2   : > { %v6289_v40 = vpop.f32.mrb[158].mxu0 }
 0x4a3   : > { %v6290_v31 = vadd.f32 %v6289_v40, %v13377_v16  ;;  %v6291_v41 = vpop.f32.mrb[159].mxu0  ;;  %v6674_v3 = vpop.f32.mrb[158].mxu1  ;;  %6996 = vst [vmem:[%s14128_s29 + $0x70] sm:$0xff] %v6670_v5 }
 0x4a4   : > { %v6676_v20 = vpop.f32.mrb[159].mxu1 }
 0x4a5   : > { %v6675_v58 = vadd.f32 %v6674_v3, %v6290_v31 }
 0x4a6   : > { %v6294_v59 = vpop.f32.mrb[160].mxu0 }
 0x4a7   : > { %v6295_v54 = vadd.f32 %v6294_v59, %v13392_v24  ;;  %v6296_v1 = vpop.f32.mrb[161].mxu0  ;;  %v6679_v8 = vpop.f32.mrb[160].mxu1  ;;  %6997 = vst [vmem:[%s14128_s29 + $0x78] sm:$0xff] %v6675_v58 }
 0x4a8   : > { %v6681_v38 = vpop.f32.mrb[161].mxu1 }
 0x4a9   : > { %v6680_v35 = vadd.f32 %v6679_v8, %v6295_v54 }
 0x4aa   : > { %v6299_v0 = vpop.f32.mrb[162].mxu0 }
 0x4ab   : > { %v6300_v44 = vadd.f32 %v6299_v0, %v13407_v33  ;;  %v6301_v10 = vpop.f32.mrb[163].mxu0  ;;  %v6684_v16 = vpop.f32.mrb[162].mxu1  ;;  %6998 = vst [vmem:[%s14128_s29 + $0x80] sm:$0xff] %v6680_v35 }
 0x4ac   : > { %v6686_v53 = vpop.f32.mrb[163].mxu1 }
 0x4ad   : > { %v6685_v22 = vadd.f32 %v6684_v16, %v6300_v44 }
 0x4ae   : > { %v6304_v15 = vpop.f32.mrb[164].mxu0 }
 0x4af   : > { %v6305_v18 = vadd.f32 %v6304_v15, %v13422_v49  ;;  %v6306_v37 = vpop.f32.mrb[165].mxu0  ;;  %v6689_v24 = vpop.f32.mrb[164].mxu1  ;;  %6999 = vst [vmem:[%s14128_s29 + $0x88] sm:$0xff] %v6685_v22 }
 0x4b0   : > { %v6691_v50 = vpop.f32.mrb[165].mxu1 }
 0x4b1   : > { %v6690_v56 = vadd.f32 %v6689_v24, %v6305_v18 }
 0x4b2   : > { %v6309_v5 = vpop.f32.mrb[166].mxu0 }
 0x4b3   : > { %v6310_v40 = vadd.f32 %v6309_v5, %v13437_v62  ;;  %v6311_v31 = vpop.f32.mrb[167].mxu0  ;;  %v6694_v33 = vpop.f32.mrb[166].mxu1  ;;  %7000 = vst [vmem:[%s14128_s29 + $0x90] sm:$0xff] %v6690_v56 }
 0x4b4   : > { %v6696_v41 = vpop.f32.mrb[167].mxu1 }
 0x4b5   : > { %v6695_v3 = vadd.f32 %v6694_v33, %v6310_v40 }
 0x4b6   : > { %v6314_v20 = vpop.f32.mrb[168].mxu0 }
 0x4b7   : > { %v6315_v58 = vadd.f32 %v6314_v20, %v13452_v7  ;;  %v6316_v59 = vpop.f32.mrb[169].mxu0  ;;  %v6699_v49 = vpop.f32.mrb[168].mxu1  ;;  %7001 = vst [vmem:[%s14128_s29 + $0x98] sm:$0xff] %v6695_v3 }
 0x4b8   : > { %v6701_v54 = vpop.f32.mrb[169].mxu1 }
 0x4b9   : > { %v6700_v1 = vadd.f32 %v6699_v49, %v6315_v58 }
 0x4ba   : > { %v6319_v8 = vpop.f32.mrb[170].mxu0 }
 0x4bb   : > { %v6320_v38 = vadd.f32 %v6319_v8, %v13467_v17  ;;  %v6321_v35 = vpop.f32.mrb[171].mxu0  ;;  %v6704_v62 = vpop.f32.mrb[170].mxu1  ;;  %7002 = vst [vmem:[%s14128_s29 + $0xa0] sm:$0xff] %v6700_v1 }
 0x4bc   : > { %v6706_v0 = vpop.f32.mrb[171].mxu1 }
 0x4bd   : > { %v6705_v44 = vadd.f32 %v6704_v62, %v6320_v38 }
 0x4be   : > { %v6324_v10 = vpop.f32.mrb[172].mxu0 }
 0x4bf   : > { %v6325_v16 = vadd.f32 %v6324_v10, %v13482_v26  ;;  %v6326_v53 = vpop.f32.mrb[173].mxu0  ;;  %v6709_v7 = vpop.f32.mrb[172].mxu1  ;;  %7003 = vst [vmem:[%s14128_s29 + $0xa8] sm:$0xff] %v6705_v44 }
 0x4c0   : > { %v6711_v22 = vpop.f32.mrb[173].mxu1 }
 0x4c1   : > { %v6710_v15 = vadd.f32 %v6709_v7, %v6325_v16 }
 0x4c2   : > { %v6329_v18 = vpop.f32.mrb[174].mxu0 }
 0x4c3   : > { %v6330_v37 = vadd.f32 %v6329_v18, %v13497_v36  ;;  %v6331_v24 = vpop.f32.mrb[175].mxu0  ;;  %v6714_v17 = vpop.f32.mrb[174].mxu1  ;;  %7004 = vst [vmem:[%s14128_s29 + $0xb0] sm:$0xff] %v6710_v15 }
 0x4c4   : > { %v6716_v50 = vpop.f32.mrb[175].mxu1 }
 0x4c5   : > { %v6715_v56 = vadd.f32 %v6714_v17, %v6330_v37 }
 0x4c6   : > { %v6334_v5 = vpop.f32.mrb[176].mxu0 }
 0x4c7   : > { %v6335_v40 = vadd.f32 %v6334_v5, %v13512_v45  ;;  %v6336_v31 = vpop.f32.mrb[177].mxu0  ;;  %v6719_v26 = vpop.f32.mrb[176].mxu1  ;;  %7005 = vst [vmem:[%s14128_s29 + $0xb8] sm:$0xff] %v6715_v56 }
 0x4c8   : > { %v6721_v33 = vpop.f32.mrb[177].mxu1 }
 0x4c9   : > { %v6720_v41 = vadd.f32 %v6719_v26, %v6335_v40 }
 0x4ca   : > { %v6339_v3 = vpop.f32.mrb[178].mxu0 }
 0x4cb   : > { %v6340_v20 = vadd.f32 %v6339_v3, %v13527_v52  ;;  %v6341_v58 = vpop.f32.mrb[179].mxu0  ;;  %v6724_v36 = vpop.f32.mrb[178].mxu1  ;;  %7006 = vst [vmem:[%s14128_s29 + $0xc0] sm:$0xff] %v6720_v41 }
 0x4cc   : > { %v6726_v59 = vpop.f32.mrb[179].mxu1 }
 0x4cd   : > { %v6725_v49 = vadd.f32 %v6724_v36, %v6340_v20 }
 0x4ce   : > { %v6344_v54 = vpop.f32.mrb[180].mxu0 }
 0x4cf   : > { %v6345_v1 = vadd.f32 %v6344_v54, %v13542_v63  ;;  %v6346_v8 = vpop.f32.mrb[181].mxu0  ;;  %v6729_v45 = vpop.f32.mrb[180].mxu1  ;;  %7007 = vst [vmem:[%s14128_s29 + $0xc8] sm:$0xff] %v6725_v49 }
 0x4d0   : > { %v6731_v38 = vpop.f32.mrb[181].mxu1 }
 0x4d1   : > { %v6730_v35 = vadd.f32 %v6729_v45, %v6345_v1 }
 0x4d2   : > { %v6349_v62 = vpop.f32.mrb[182].mxu0 }
 0x4d3   : > { %v6350_v0 = vadd.f32 %v6349_v62, %v13557_v51  ;;  %v6351_v44 = vpop.f32.mrb[183].mxu0  ;;  %v6734_v52 = vpop.f32.mrb[182].mxu1  ;;  %7008 = vst [vmem:[%s14128_s29 + $0xd0] sm:$0xff] %v6730_v35 }
 0x4d4   : > { %v6736_v10 = vpop.f32.mrb[183].mxu1 }
 0x4d5   : > { %v6735_v16 = vadd.f32 %v6734_v52, %v6350_v0 }
 0x4d6   : > { %v6354_v53 = vpop.f32.mrb[184].mxu0 }
 0x4d7   : > { %v6355_v7 = vadd.f32 %v6354_v53, %v13572_v6  ;;  %v6356_v22 = vpop.f32.mrb[185].mxu0  ;;  %v6739_v63 = vpop.f32.mrb[184].mxu1  ;;  %7009 = vst [vmem:[%s14128_s29 + $0xd8] sm:$0xff] %v6735_v16 }
 0x4d8   : > { %v6741_v15 = vpop.f32.mrb[185].mxu1 }
 0x4d9   : > { %v6740_v18 = vadd.f32 %v6739_v63, %v6355_v7 }
 0x4da   : > { %v6359_v37 = vpop.f32.mrb[186].mxu0 }
 0x4db   : > { %v6360_v24 = vadd.f32 %v6359_v37, %v13587_v11  ;;  %v6361_v17 = vpop.f32.mrb[187].mxu0  ;;  %v6744_v51 = vpop.f32.mrb[186].mxu1  ;;  %7010 = vst [vmem:[%s14128_s29 + $0xe0] sm:$0xff] %v6740_v18 }
 0x4dc   : > { %v6746_v50 = vpop.f32.mrb[187].mxu1 }
 0x4dd   : > { %v6745_v56 = vadd.f32 %v6744_v51, %v6360_v24 }
 0x4de   : > { %v6364_v5 = vpop.f32.mrb[188].mxu0 }
 0x4df   : > { %v6365_v40 = vadd.f32 %v6364_v5, %v13602_v12  ;;  %v6366_v31 = vpop.f32.mrb[189].mxu0  ;;  %v6749_v6 = vpop.f32.mrb[188].mxu1  ;;  %7011 = vst [vmem:[%s14128_s29 + $0xe8] sm:$0xff] %v6745_v56 }
 0x4e0   : > { %v6751_v26 = vpop.f32.mrb[189].mxu1 }
 0x4e1   : > { %v6750_v33 = vadd.f32 %v6749_v6, %v6365_v40 }
 0x4e2   : > { %v6369_v41 = vpop.f32.mrb[190].mxu0 }
 0x4e3   : > { %v6370_v3 = vadd.f32 %v6369_v41, %v13617_v57  ;;  %v6371_v20 = vpop.f32.mrb[191].mxu0  ;;  %v6754_v11 = vpop.f32.mrb[190].mxu1  ;;  %7012 = vst [vmem:[%s14128_s29 + $0xf0] sm:$0xff] %v6750_v33 }
 0x4e4   : > { %v6756_v58 = vpop.f32.mrb[191].mxu1 }
 0x4e5   : > { %v6755_v36 = vadd.f32 %v6754_v11, %v6370_v3 }
 0x4e6   : > { %v6374_v59 = vpop.f32.mrb[192].mxu0 }
 0x4e7   : > { %v6375_v49 = vadd.f32 %v6374_v59, %v13632_v4  ;;  %v6376_v54 = vpop.f32.mrb[193].mxu0  ;;  %v6759_v12 = vpop.f32.mrb[192].mxu1  ;;  %7013 = vst [vmem:[%s14128_s29 + $0xf8] sm:$0xff] %v6755_v36 }
 0x4e8   : > { %v6761_v1 = vpop.f32.mrb[193].mxu1 }
 0x4e9   : > { %v6760_v8 = vadd.f32 %v6759_v12, %v6375_v49 }
 0x4ea   : > { %v6379_v45 = vpop.f32.mrb[194].mxu0 }
 0x4eb   : > { %v6380_v38 = vadd.f32 %v6379_v45, %v13647_v28  ;;  %v6381_v35 = vpop.f32.mrb[195].mxu0  ;;  %v6764_v57 = vpop.f32.mrb[194].mxu1  ;;  %7014 = vst [vmem:[%s14128_s29 + $0x100] sm:$0xff] %v6760_v8 }
 0x4ec   : > { %v6766_v62 = vpop.f32.mrb[195].mxu1 }
 0x4ed   : > { %v6765_v0 = vadd.f32 %v6764_v57, %v6380_v38 }
 0x4ee   : > { %v6384_v44 = vpop.f32.mrb[196].mxu0 }
 0x4ef   : > { %v6385_v52 = vadd.f32 %v6384_v44, %v13662_v42  ;;  %v6386_v10 = vpop.f32.mrb[197].mxu0  ;;  %v6769_v4 = vpop.f32.mrb[196].mxu1  ;;  %7015 = vst [vmem:[%s14128_s29 + $0x108] sm:$0xff] %v6765_v0 }
 0x4f0   : > { %v6771_v16 = vpop.f32.mrb[197].mxu1 }
 0x4f1   : > { %v6770_v53 = vadd.f32 %v6769_v4, %v6385_v52 }
 0x4f2   : > { %v6389_v7 = vpop.f32.mrb[198].mxu0 }
 0x4f3   : > { %v6390_v22 = vadd.f32 %v6389_v7, %v13677_v2  ;;  %v6391_v63 = vpop.f32.mrb[199].mxu0  ;;  %v6774_v28 = vpop.f32.mrb[198].mxu1  ;;  %7016 = vst [vmem:[%s14128_s29 + $0x110] sm:$0xff] %v6770_v53 }
 0x4f4   : > { %v6776_v15 = vpop.f32.mrb[199].mxu1 }
 0x4f5   : > { %v6775_v18 = vadd.f32 %v6774_v28, %v6390_v22 }
 0x4f6   : > { %v6394_v37 = vpop.f32.mrb[200].mxu0 }
 0x4f7   : > { %v6395_v24 = vadd.f32 %v6394_v37, %v13692_v14  ;;  %v6396_v17 = vpop.f32.mrb[201].mxu0  ;;  %v6779_v42 = vpop.f32.mrb[200].mxu1  ;;  %7017 = vst [vmem:[%s14128_s29 + $0x118] sm:$0xff] %v6775_v18 }
 0x4f8   : > { %v6781_v51 = vpop.f32.mrb[201].mxu1 }
 0x4f9   : > { %v6780_v50 = vadd.f32 %v6779_v42, %v6395_v24 }
 0x4fa   : > { %v6399_v56 = vpop.f32.mrb[202].mxu0 }
 0x4fb   : > { %v6400_v5 = vadd.f32 %v6399_v56, %v13707_v60  ;;  %v6401_v40 = vpop.f32.mrb[203].mxu0  ;;  %v6784_v2 = vpop.f32.mrb[202].mxu1  ;;  %7018 = vst [vmem:[%s14128_s29 + $0x120] sm:$0xff] %v6780_v50 }
 0x4fc   : > { %v6786_v31 = vpop.f32.mrb[203].mxu1 }
 0x4fd   : > { %v6785_v6 = vadd.f32 %v6784_v2, %v6400_v5 }
 0x4fe   : > { %v6404_v26 = vpop.f32.mrb[204].mxu0 }
 0x4ff   : > { %v6405_v33 = vadd.f32 %v6404_v26, %v13722_v9  ;;  %v6406_v41 = vpop.f32.mrb[205].mxu0  ;;  %v6789_v14 = vpop.f32.mrb[204].mxu1  ;;  %7019 = vst [vmem:[%s14128_s29 + $0x128] sm:$0xff] %v6785_v6 }
 0x500   : > { %v6791_v3 = vpop.f32.mrb[205].mxu1 }
 0x501   : > { %v6790_v20 = vadd.f32 %v6789_v14, %v6405_v33 }
 0x502   : > { %v6409_v11 = vpop.f32.mrb[206].mxu0 }
 0x503   : > { %v6410_v58 = vadd.f32 %v6409_v11, %v13737_v30  ;;  %v6411_v36 = vpop.f32.mrb[207].mxu0  ;;  %v6794_v60 = vpop.f32.mrb[206].mxu1  ;;  %7020 = vst [vmem:[%s14128_s29 + $0x130] sm:$0xff] %v6790_v20 }
 0x504   : > { %v6796_v59 = vpop.f32.mrb[207].mxu1 }
 0x505   : > { %v6795_v49 = vadd.f32 %v6794_v60, %v6410_v58 }
 0x506   : > { %v6414_v54 = vpop.f32.mrb[208].mxu0 }
 0x507   : > { %v6415_v12 = vadd.f32 %v6414_v54, %v13752_v27  ;;  %v6416_v1 = vpop.f32.mrb[209].mxu0  ;;  %v6799_v9 = vpop.f32.mrb[208].mxu1  ;;  %7021 = vst [vmem:[%s14128_s29 + $0x138] sm:$0xff] %v6795_v49 }
 0x508   : > { %v6801_v8 = vpop.f32.mrb[209].mxu1 }
 0x509   : > { %v6800_v45 = vadd.f32 %v6799_v9, %v6415_v12 }
 0x50a   : > { %v6419_v38 = vpop.f32.mrb[210].mxu0 }
 0x50b   : > { %v6420_v35 = vadd.f32 %v6419_v38, %v13767_v23  ;;  %v6421_v57 = vpop.f32.mrb[211].mxu0  ;;  %v6804_v30 = vpop.f32.mrb[210].mxu1  ;;  %7022 = vst [vmem:[%s14128_s29 + $0x140] sm:$0xff] %v6800_v45 }
 0x50c   : > { %v6806_v62 = vpop.f32.mrb[211].mxu1 }
 0x50d   : > { %v6805_v0 = vadd.f32 %v6804_v30, %v6420_v35 }
 0x50e   : > { %v6424_v44 = vpop.f32.mrb[212].mxu0 }
 0x50f   : > { %v6425_v52 = vadd.f32 %v6424_v44, %v13782_v32  ;;  %v6426_v10 = vpop.f32.mrb[213].mxu0  ;;  %v6809_v27 = vpop.f32.mrb[212].mxu1  ;;  %7023 = vst [vmem:[%s14128_s29 + $0x148] sm:$0xff] %v6805_v0 }
 0x510   : > { %v6811_v4 = vpop.f32.mrb[213].mxu1 }
 0x511   : > { %v6810_v16 = vadd.f32 %v6809_v27, %v6425_v52 }
 0x512   : > { %v6429_v53 = vpop.f32.mrb[214].mxu0 }
 0x513   : > { %v6430_v7 = vadd.f32 %v6429_v53, %v13797_v55  ;;  %v6431_v22 = vpop.f32.mrb[215].mxu0  ;;  %v6814_v23 = vpop.f32.mrb[214].mxu1  ;;  %7024 = vst [vmem:[%s14128_s29 + $0x150] sm:$0xff] %v6810_v16 }
 0x514   : > { %v6816_v63 = vpop.f32.mrb[215].mxu1 }
 0x515   : > { %v6815_v28 = vadd.f32 %v6814_v23, %v6430_v7 }
 0x516   : > { %v6434_v15 = vpop.f32.mrb[216].mxu0 }
 0x517   : > { %v6435_v18 = vadd.f32 %v6434_v15, %v13812_v21  ;;  %v6436_v37 = vpop.f32.mrb[217].mxu0  ;;  %v6819_v32 = vpop.f32.mrb[216].mxu1  ;;  %7025 = vst [vmem:[%s14128_s29 + $0x158] sm:$0xff] %v6815_v28 }
 0x518   : > { %v6821_v24 = vpop.f32.mrb[217].mxu1 }
 0x519   : > { %v6820_v17 = vadd.f32 %v6819_v32, %v6435_v18 }
 0x51a   : > { %v6439_v42 = vpop.f32.mrb[218].mxu0 }
 0x51b   : > { %v6440_v51 = vadd.f32 %v6439_v42, %v13827_v46  ;;  %v6441_v50 = vpop.f32.mrb[219].mxu0  ;;  %v6824_v55 = vpop.f32.mrb[218].mxu1  ;;  %7026 = vst [vmem:[%s14128_s29 + $0x160] sm:$0xff] %v6820_v17 }
 0x51c   : > { %v6826_v56 = vpop.f32.mrb[219].mxu1 }
 0x51d   : > { %v6825_v5 = vadd.f32 %v6824_v55, %v6440_v51 }
 0x51e   : > { %v6444_v40 = vpop.f32.mrb[220].mxu0 }
 0x51f   : > { %v6445_v2 = vadd.f32 %v6444_v40, %v13842_v19  ;;  %v6446_v31 = vpop.f32.mrb[221].mxu0  ;;  %v6829_v21 = vpop.f32.mrb[220].mxu1  ;;  %7027 = vst [vmem:[%s14128_s29 + $0x168] sm:$0xff] %v6825_v5  ;;  %v14940_v5 = vld [vmem:[#allocation45_spill] sm:$0xff] }
 0x520   : > { %v6831_v6 = vpop.f32.mrb[221].mxu1 }
 0x521   : > { %v6830_v26 = vadd.f32 %v6829_v21, %v6445_v2 }
 0x522   : > { %v6449_v33 = vpop.f32.mrb[222].mxu0 }
 0x523   : > { %v6450_v41 = vadd.f32 %v6449_v33, %v13857_v48  ;;  %v6451_v14 = vpop.f32.mrb[223].mxu0  ;;  %v6834_v46 = vpop.f32.mrb[222].mxu1  ;;  %7028 = vst [vmem:[%s14128_s29 + $0x170] sm:$0xff] %v6830_v26  ;;  %v14941_v26 = vld [vmem:[#allocation47_spill] sm:$0xff] }
 0x524   : > { %v6836_v3 = vpop.f32.mrb[223].mxu1 }
 0x525   : > { %v6835_v20 = vadd.f32 %v6834_v46, %v6450_v41 }
 0x526   : > { %v6454_v11 = vpop.f32.mrb[224].mxu0 }
 0x527   : > { %v6455_v58 = vadd.f32 %v6454_v11, %v13872_v61  ;;  %v6456_v36 = vpop.f32.mrb[225].mxu0  ;;  %v6839_v19 = vpop.f32.mrb[224].mxu1  ;;  %7029 = vst [vmem:[%s14128_s29 + $0x178] sm:$0xff] %v6835_v20  ;;  %v14942_v20 = vld [vmem:[#allocation49_spill] sm:$0xff] }
 0x528   : > { %v6841_v60 = vpop.f32.mrb[225].mxu1 }
 0x529   : > { %v6840_v59 = vadd.f32 %v6839_v19, %v6455_v58 }
 0x52a   : > { %v6459_v49 = vpop.f32.mrb[226].mxu0 }
 0x52b   : > { %v6460_v54 = vadd.f32 %v6459_v49, %v13887_v13  ;;  %v6461_v12 = vpop.f32.mrb[227].mxu0  ;;  %v6844_v48 = vpop.f32.mrb[226].mxu1  ;;  %7030 = vst [vmem:[%s14128_s29 + $0x180] sm:$0xff] %v6840_v59  ;;  %v14943_v49 = vld [vmem:[#allocation51_spill] sm:$0xff] }
 0x52c   : > { %v6846_v1 = vpop.f32.mrb[227].mxu1 }
 0x52d   : > { %v6845_v9 = vadd.f32 %v6844_v48, %v6460_v54 }
 0x52e   : > { %v6464_v8 = vpop.f32.mrb[228].mxu0 }
 0x52f   : > { %v6465_v45 = vadd.f32 %v6464_v8, %v13902_v43  ;;  %v6466_v38 = vpop.f32.mrb[229].mxu0  ;;  %v6849_v61 = vpop.f32.mrb[228].mxu1  ;;  %7031 = vst [vmem:[%s14128_s29 + $0x188] sm:$0xff] %v6845_v9 }
 0x530   : > { %v6851_v35 = vpop.f32.mrb[229].mxu1 }
 0x531   : > { %v6850_v57 = vadd.f32 %v6849_v61, %v6465_v45  ;;  %v14944_v45 = vld [vmem:[#allocation53_spill] sm:$0xff] }
 0x532   : > { %v6469_v30 = vpop.f32.mrb[230].mxu0 }
 0x533   : > { %v6470_v62 = vadd.f32 %v6469_v30, %v13917_v25  ;;  %v6471_v0 = vpop.f32.mrb[231].mxu0  ;;  %v6854_v13 = vpop.f32.mrb[230].mxu1  ;;  %7032 = vst [vmem:[%s14128_s29 + $0x190] sm:$0xff] %v6850_v57 }
 0x534   : > { %v6856_v44 = vpop.f32.mrb[231].mxu1  ;;  %v14945_v0 = vld [vmem:[#allocation55_spill] sm:$0xff] }
 0x535   : > { %v6855_v52 = vadd.f32 %v6854_v13, %v6470_v62 }
 0x536   : > { %v6474_v10 = vpop.f32.mrb[232].mxu0 }
 0x537   : > { %v6475_v27 = vadd.f32 %v6474_v10, %v13932_v34  ;;  %v6476_v4 = vpop.f32.mrb[233].mxu0  ;;  %v6859_v43 = vpop.f32.mrb[232].mxu1  ;;  %7033 = vst [vmem:[%s14128_s29 + $0x198] sm:$0xff] %v6855_v52 }
 0x538   : > { %v6861_v16 = vpop.f32.mrb[233].mxu1 }
 0x539   : > { %v6860_v53 = vadd.f32 %v6859_v43, %v6475_v27  ;;  %v14946_v43 = vld [vmem:[#allocation57_spill] sm:$0xff] }
 0x53a   : > { %v6479_v7 = vpop.f32.mrb[234].mxu0 }
 0x53b   : > { %v6480_v22 = vadd.f32 %v6479_v7, %v13947_v39  ;;  %v6481_v23 = vpop.f32.mrb[235].mxu0  ;;  %v6864_v25 = vpop.f32.mrb[234].mxu1  ;;  %7034 = vst [vmem:[%s14128_s29 + $0x1a0] sm:$0xff] %v6860_v53 }
 0x53c   : > { %v6866_v63 = vpop.f32.mrb[235].mxu1 }
 0x53d   : > { %v6865_v28 = vadd.f32 %v6864_v25, %v6480_v22  ;;  %v14947_v63 = vld [vmem:[#allocation59_spill] sm:$0xff] }
 0x53e   : > { %v6484_v15 = vpop.f32.mrb[236].mxu0 }
 0x53f   : > { %v6485_v18 = vadd.f32 %v6484_v15, %v13962_v47  ;;  %v6486_v37 = vpop.f32.mrb[237].mxu0  ;;  %v6869_v34 = vpop.f32.mrb[236].mxu1  ;;  %7035 = vst [vmem:[%s14128_s29 + $0x1a8] sm:$0xff] %v6865_v28 }
 0x540   : > { %v6871_v32 = vpop.f32.mrb[237].mxu1 }
 0x541   : > { %v6870_v24 = vadd.f32 %v6869_v34, %v6485_v18 }
 0x542   : > { %v6489_v17 = vpop.f32.mrb[238].mxu0 }
 0x543   : > { %v6490_v42 = vadd.f32 %v6489_v17, %v13977_v29  ;;  %v6491_v51 = vpop.f32.mrb[239].mxu0  ;;  %v6874_v39 = vpop.f32.mrb[238].mxu1  ;;  %7036 = vst [vmem:[%s14128_s29 + $0x1b0] sm:$0xff] %v6870_v24 }
 0x544   : > { %v6876_v50 = vpop.f32.mrb[239].mxu1 }
 0x545   : > { %v6875_v55 = vadd.f32 %v6874_v39, %v6490_v42 }
 0x546   : > { %v6494_v56 = vpop.f32.mrb[240].mxu0 }
 0x547   : > { %v6495_v40 = vadd.f32 %v6494_v56, %v14940_v5  ;;  %v6496_v2 = vpop.f32.mrb[241].mxu0  ;;  %v6879_v47 = vpop.f32.mrb[240].mxu1  ;;  %7037 = vst [vmem:[%s14128_s29 + $0x1b8] sm:$0xff] %v6875_v55 }
 0x548   : > { %v6881_v31 = vpop.f32.mrb[241].mxu1 }
 0x549   : > { %v6880_v21 = vadd.f32 %v6879_v47, %v6495_v40 }
 0x54a   : > { %v6499_v6 = vpop.f32.mrb[242].mxu0 }
 0x54b   : > { %v6500_v33 = vadd.f32 %v6499_v6, %v14941_v26  ;;  %v6501_v41 = vpop.f32.mrb[243].mxu0  ;;  %v6884_v29 = vpop.f32.mrb[242].mxu1  ;;  %7038 = vst [vmem:[%s14128_s29 + $0x1c0] sm:$0xff] %v6880_v21 }
 0x54c   : > { %v6886_v14 = vpop.f32.mrb[243].mxu1 }
 0x54d   : > { %v6885_v46 = vadd.f32 %v6884_v29, %v6500_v33 }
 0x54e   : > { %v6504_v3 = vpop.f32.mrb[244].mxu0 }
 0x54f   : > { %v6505_v11 = vadd.f32 %v6504_v3, %v14942_v20  ;;  %v6506_v58 = vpop.f32.mrb[245].mxu0  ;;  %v6889_v36 = vpop.f32.mrb[244].mxu1  ;;  %7039 = vst [vmem:[%s14128_s29 + $0x1c8] sm:$0xff] %v6885_v46 }
 0x550   : > { %v6891_v19 = vpop.f32.mrb[245].mxu1 }
 0x551   : > { %v6890_v60 = vadd.f32 %v6889_v36, %v6505_v11 }
 0x552   : > { %v6509_v59 = vpop.f32.mrb[246].mxu0 }
 0x553   : > { %v6510_v54 = vadd.f32 %v6509_v59, %v14943_v49  ;;  %v6511_v12 = vpop.f32.mrb[247].mxu0  ;;  %v6894_v48 = vpop.f32.mrb[246].mxu1  ;;  %7040 = vst [vmem:[%s14128_s29 + $0x1d0] sm:$0xff] %v6890_v60 }
 0x554   : > { %v6896_v1 = vpop.f32.mrb[247].mxu1 }
 0x555   : > { %v6895_v9 = vadd.f32 %v6894_v48, %v6510_v54 }
 0x556   : > { %v6514_v8 = vpop.f32.mrb[248].mxu0 }
 0x557   : > { %v6515_v38 = vadd.f32 %v6514_v8, %v14944_v45  ;;  %v6516_v61 = vpop.f32.mrb[249].mxu0  ;;  %v6899_v35 = vpop.f32.mrb[248].mxu1  ;;  %7041 = vst [vmem:[%s14128_s29 + $0x1d8] sm:$0xff] %v6895_v9 }
 0x558   : > { %v6901_v57 = vpop.f32.mrb[249].mxu1 }
 0x559   : > { %v6900_v30 = vadd.f32 %v6899_v35, %v6515_v38 }
 0x55a   : > { %v6519_v62 = vpop.f32.mrb[250].mxu0 }
 0x55b   : > { %v6520_v13 = vadd.f32 %v6519_v62, %v14945_v0  ;;  %v6521_v44 = vpop.f32.mrb[251].mxu0  ;;  %v6904_v52 = vpop.f32.mrb[250].mxu1  ;;  %7042 = vst [vmem:[%s14128_s29 + $0x1e0] sm:$0xff] %v6900_v30 }
 0x55c   : > { %v6906_v10 = vpop.f32.mrb[251].mxu1 }
 0x55d   : > { %v6905_v27 = vadd.f32 %v6904_v52, %v6520_v13 }
 0x55e   : > { %v6524_v4 = vpop.f32.mrb[252].mxu0 }
 0x55f   : > { %v6525_v16 = vadd.f32 %v6524_v4, %v14946_v43  ;;  %v6526_v53 = vpop.f32.mrb[253].mxu0  ;;  %v6909_v7 = vpop.f32.mrb[252].mxu1  ;;  %7043 = vst [vmem:[%s14128_s29 + $0x1e8] sm:$0xff] %v6905_v27 }
 0x560   : > { %v6911_v22 = vpop.f32.mrb[253].mxu1 }
 0x561   : > { %v6910_v23 = vadd.f32 %v6909_v7, %v6525_v16 }
 0x562   : > { %v6529_v25 = vpop.f32.mrb[254].mxu0 }
 0x563   : > { %v6530_v28 = vadd.f32 %v6529_v25, %v14947_v63  ;;  %v6531_v15 = vpop.f32.mrb[255].mxu0  ;;  %v6914_v18 = vpop.f32.mrb[254].mxu1  ;;  %7044 = vst [vmem:[%s14128_s29 + $0x1f0] sm:$0xff] %v6910_v23 }
 0x564   : > { %v6916_v37 = vpop.f32.mrb[255].mxu1 }
 0x565   : > { %v6915_v34 = vadd.f32 %v6914_v18, %v6530_v28 }
 0x567   : > { %7045 = vst [vmem:[%s14128_s29 + $0x1f8] sm:$0xff] %v6915_v34 }
 0x568   : > { %9746 = shalt.err (!%p9743_p5)
}
 0x569   : > { %s9747_s26 = scalar_lea.hbm %s14361_s27, 8192  ;;  %s9751_s8 = scalar_lea.hbm %s14416_s2, 24576 }
 0x56a   : > { %p9748_p6 = scmp.ne.s32.totalorder %s14361_s27, %s9747_s26  ;;  %p9752_p12 = scmp.lt.u32.totalorder %s14361_s27, %s14416_s2 }
 0x56b   : > { %p9753_p0 = scmp.lt.u32.totalorder %s9751_s8, %s9747_s26  ;;  %p9755_p13 = scmp.lt.u32.totalorder %s9747_s26, %s14361_s27 }
 0x56c   : > { %p9749_p7 = pnand %p9748_p6, %p14948_p4 }
 0x56d   : > { %p9754_p1 = por %p9753_p0, %p9752_p12 }
 0x56e   : > { %p9750_p9 = pneg %p9749_p7 }
 0x56f   : > { %p9756_p8 = por %p9755_p13, %p9754_p1 }
 0x571   : > { %p9757_p10 = pnand %p9756_p8, %p9750_p9 }
 0x573   : > { %9760 = shalt.err (!%p9757_p10)
}
 0x574   : > { %s9828_s24 = smov 128   ;;  %s9829_s28 = smov 8  }
 0x575   : > { %9600 = dma.vmem_to_hbm [thread:$0]  (%p14948_p4), %s14363_s18, 8192, %s14361_s27, %s14368_s30, %s9828_s24, %s9828_s24, %s9829_s28  }
 0x576 PF: > { %p9617_p11 = scmp.ge.s32.totalorder %s9819_s14, 2  ;;  %s7075_s29 = sand.u32 1, %s9799_s9  }
 0x577   : > { %p14949_p2 = scmp.ne.s32.totalorder %s14570_s21, 0  ;;  %s7076_s16 = scalar_lea.sflag [#allocation4], %s7075_s29 }
 0x579   : > { %p9610_p3 = pnand %p9617_p11, %p14949_p2 }
 0x57b   : > { %9794 = dma.done.wait (!%p9610_p3), %s7076_s16, 8192  }
 0x57c   : > { %9796 = vsyncadd (!%p9610_p3), %s7076_s16, 4294959104  ;;  %s17_s14 = sadd.s32 1, %s9819_s14   ;;  %s14950_s9 = smov %s9803_s10 }
 0x57d   : > { %p14_p5 = scmp.ge.s32.totalorder %s17_s14, 5   ;;  %s14951_s10 = smov %s9807_s11 }
 0x57e   : > { %s14952_s11 = smov %s9898_s22  ;;  %s14953_s12 = smov %s9815_s13 }
 0x57f   : > { %s14954_s13 = smov %s14956_s17  ;;  %16 = sbr.rel (!%p14_p5) target bundleno = 6 (0x6), region = 75 }
 0x586   :  { %7081 = vsyncpa [#allocation3], 1 }
 0x587   :  { %7083 = vsyncpa [#allocation3 + $0x1], 1 }
 0x588   :  { %7084 = vsyncpa [#allocation6], 1 }
 0x589   :  { %7085 = vsyncpa [#allocation4], 1 }
 0x58a   :  { %7087 = vsyncpa [#allocation4 + $0x1], 1 }

</bundles_post_ra>
